<compile_context>
chip_gen: v5e
topology: v5e:2x2
jax: 0.10.0
libtpu: 0.0.40
codegen_flags: <defaults>
</compile_context>

<pallas_src>
import numpy as np
import jax
import jax.numpy as jnp
from jax import lax
from jax.experimental import pallas as pl
from jax.experimental.pallas import tpu as pltpu

LANE = 128
NEG = -1e30
VMEM_SPEC = pl.BlockSpec(memory_space=pltpu.MemorySpace.VMEM)


def _round_up(n, m):
    return ((n + m - 1) // m) * m


# ----------------------------------------------------------------------------
# Fused Pallas kernel
# ----------------------------------------------------------------------------
def fused_seq2seq_kernel(
        enc_x_ref, dec_x_ref,
        e_wih_ref, e_whh_ref, e_b_ref,
        sf_wih_ref, sf_whh_ref, sf_b_ref,
        sb_wih_ref, sb_whh_ref, sb_b_ref,
        slu_wf_ref, slu_wb_ref, slu_bias_ref,
        d_wih_ref, d_whh_ref, d_b_ref,
        lin_w_ref, lin_bias_ref,
        slu_out_ref, word_out_ref,
        enc_out_sc, slu_fwd_sc, slu_bwd_sc, dec_out_sc,
        xg_e_sc, xg_b_sc, xg_d_sc):
    T_enc = enc_x_ref.shape[0]
    T_dec = dec_x_ref.shape[0]
    H = e_whh_ref.shape[0]            # true encoder/decoder hidden size
    Hs = sf_whh_ref.shape[0]          # true SLU hidden size
    HP = e_whh_ref.shape[1] // 4      # padded gate-block width (multiple of 128)
    SP = sf_whh_ref.shape[1] // 4
    f32 = jnp.float32

    def lstm_step(gates, c, n_pad):
        # gates: (1, 4*n_pad); every gate block starts at a 128-lane boundary,
        # so the slices below are vreg-aligned (no cross-lane relayout).
        i = jax.nn.sigmoid(gates[:, 0:n_pad])
        f = jax.nn.sigmoid(gates[:, n_pad:2 * n_pad])
        g = jnp.tanh(gates[:, 2 * n_pad:3 * n_pad])
        o = jax.nn.sigmoid(gates[:, 3 * n_pad:4 * n_pad])
        c_new = f * c + i * g
        h_new = o * jnp.tanh(c_new)
        return h_new, c_new

    def log_softmax(logits):
        m = jnp.max(logits, axis=1, keepdims=True)
        z = logits - m
        return z - jnp.log(jnp.sum(jnp.exp(z), axis=1, keepdims=True))

    # ---- Stage the encoder input projection (off the serial h->h chain) ----
    xg_e_sc[...] = (jnp.dot(enc_x_ref[...], e_wih_ref[...],
                            preferred_element_type=f32) + e_b_ref[...])

    # ---- Loop 1: encoder chain + SLU-forward chain (lagged by one step) ----
    h_e = jnp.zeros((1, HP), f32)
    c_e = jnp.zeros((1, HP), f32)
    hf = jnp.zeros((1, SP), f32)
    cf = jnp.zeros((1, SP), f32)
    prev_h = None                     # encoder hidden from the previous step

    def slu_fwd_step(prev_h, hf, cf, idx):
        g_f = (jnp.dot(prev_h[:, :H], sf_wih_ref[...], preferred_element_type=f32)
               + jnp.dot(hf[:, :Hs], sf_whh_ref[...], preferred_element_type=f32)
               + sf_b_ref[...])
        hf, cf = lstm_step(g_f, cf, SP)
        slu_fwd_sc[idx:idx + 1, :] = hf
        return hf, cf

    for t in range(T_enc):            # static trip count -> fully unrolled
        if t >= 1:
            # SLU-fwd consumes enc_out[t-1] as a live value (no scratch RAW dep
            # with the encoder chain), so the two chains can overlap.
            hf, cf = slu_fwd_step(prev_h, hf, cf, t - 1)
        g_e = (xg_e_sc[t:t + 1, :]
               + jnp.dot(h_e[:, :H], e_whh_ref[...], preferred_element_type=f32))
        h_e, c_e = lstm_step(g_e, c_e, HP)
        enc_out_sc[t:t + 1, :] = h_e
        prev_h = h_e
    hf, cf = slu_fwd_step(prev_h, hf, cf, T_enc - 1)   # last SLU-fwd step
    h_fin, c_fin = h_e, c_e

    # ---- Stage SLU-backward and decoder input projections ------------------
    enc_out = enc_out_sc[...]                                      # (T_enc, HP)
    xg_b_sc[...] = (jnp.dot(enc_out[:, :H], sb_wih_ref[...],
                            preferred_element_type=f32) + sb_b_ref[...])
    xg_d_sc[...] = (jnp.dot(dec_x_ref[...], d_wih_ref[...],
                            preferred_element_type=f32) + d_b_ref[...])

    # ---- Loop 2: SLU-backward chain + word-decoder chain, interleaved ------
    hb = jnp.zeros((1, SP), f32)
    cb = jnp.zeros((1, SP), f32)
    h_d, c_d = h_fin, c_fin           # decoder initial state = encoder final
    for t in range(max(T_enc, T_dec)):
        if t < T_enc:                 # SLU backward pass, reverse time order
            tb = T_enc - 1 - t
            g_b = (xg_b_sc[tb:tb + 1, :]
                   + jnp.dot(hb[:, :Hs], sb_whh_ref[...],
                             preferred_element_type=f32))
            hb, cb = lstm_step(g_b, cb, SP)
            slu_bwd_sc[tb:tb + 1, :] = hb
        if t < T_dec:                 # word decoder
            g_d = (xg_d_sc[t:t + 1, :]
                   + jnp.dot(h_d[:, :H], d_whh_ref[...],
                             preferred_element_type=f32))
            h_d, c_d = lstm_step(g_d, c_d, HP)
            dec_out_sc[t:t + 1, :] = h_d

    # ---- Heads: lane-dense linear + log_softmax -----------------------------
    # concat([fwd, bwd]) @ W == fwd @ W[:Hs] + bwd @ W[Hs:]; head weight rows
    # beyond the true hidden size are zero, padded vocab bias cols are -1e30.
    slu_logits = (jnp.dot(slu_fwd_sc[...], slu_wf_ref[...],
                          preferred_element_type=f32)
                  + jnp.dot(slu_bwd_sc[...], slu_wb_ref[...],
                            preferred_element_type=f32)
                  + slu_bias_ref[...])
    slu_out_ref[...] = log_softmax(slu_logits)

    word_logits = (jnp.dot(dec_out_sc[...], lin_w_ref[...],
                           preferred_element_type=f32)
                   + lin_bias_ref[...])
    word_out_ref[...] = log_softmax(word_logits)


# ----------------------------------------------------------------------------
# Wrapper: embedding gathers + gate/vocab padding + single pallas_call
# ----------------------------------------------------------------------------
def _pad_gate_cols(w, n, n_pad):
    """(K, 4n) -> (K, 4*n_pad): each gate block in its own 128-lane slot."""
    K = w.shape[0]
    out = jnp.zeros((K, 4 * n_pad), jnp.float32)
    for g in range(4):
        out = out.at[:, g * n_pad: g * n_pad + n].set(w[:, g * n:(g + 1) * n])
    return out


def _pad_lstm(lstm, n, n_pad):
    wih, whh, b = lstm
    return (_pad_gate_cols(wih, n, n_pad),
            _pad_gate_cols(whh, n, n_pad),
            _pad_gate_cols(b, n, n_pad))


@jax.jit
def seq2seq_forward(params, enc_tokens, dec_tokens):
    H = params["enc_lstm"][1].shape[0]
    Hs = params["slu_fwd"][1].shape[0]
    slu_voc = params["slu_w"].shape[1]
    dec_voc = params["lin_w"].shape[1]
    T_enc = enc_tokens.shape[0]
    T_dec = dec_tokens.shape[0]
    HP = _round_up(max(H, 1), LANE)
    SP = _round_up(max(Hs, 1), LANE)
    vs_pad = _round_up(max(slu_voc, 1), LANE)
    vd_pad = _round_up(max(dec_voc, 1), LANE)

    # Embedding gathers stay in plain JAX (cheap data-dependent gathers).
    enc_x = params["enc_emb"][enc_tokens]                          # (T_enc, E)
    dec_x = params["dec_emb"][dec_tokens]                          # (T_dec, E_dec)

    # LSTM weights with vreg-aligned gate blocks (zero padding).
    e_wih, e_whh, e_b = _pad_lstm(params["enc_lstm"], H, HP)
    sf_wih, sf_whh, sf_b = _pad_lstm(params["slu_fwd"], Hs, SP)
    sb_wih, sb_whh, sb_b = _pad_lstm(params["slu_bwd"], Hs, SP)
    d_wih, d_whh, d_b = _pad_lstm(params["dec_lstm"], H, HP)

    # Lane-dense heads: input rows zero-padded to the padded hidden width,
    # vocab padded to a multiple of 128 with -1e30 bias on padded columns.
    slu_wf = jnp.zeros((SP, vs_pad), jnp.float32).at[:Hs, :slu_voc].set(
        params["slu_w"][:Hs])
    slu_wb = jnp.zeros((SP, vs_pad), jnp.float32).at[:Hs, :slu_voc].set(
        params["slu_w"][Hs:])
    slu_bias = jnp.full((1, vs_pad), NEG, jnp.float32).at[:, :slu_voc].set(
        params["slu_b"])
    lin_w = jnp.zeros((HP, vd_pad), jnp.float32).at[:H, :dec_voc].set(
        params["lin_w"])
    lin_bias = jnp.full((1, vd_pad), NEG, jnp.float32).at[:, :dec_voc].set(
        params["lin_b"])

    slu_pad, word_pad = pl.pallas_call(
        fused_seq2seq_kernel,
        out_shape=(jax.ShapeDtypeStruct((T_enc, vs_pad), jnp.float32),
                   jax.ShapeDtypeStruct((T_dec, vd_pad), jnp.float32)),
        in_specs=[VMEM_SPEC] * 19,
        out_specs=(VMEM_SPEC, VMEM_SPEC),
        scratch_shapes=[
            pltpu.VMEM((T_enc, HP), jnp.float32),        # enc_out
            pltpu.VMEM((T_enc, SP), jnp.float32),        # SLU fwd hidden
            pltpu.VMEM((T_enc, SP), jnp.float32),        # SLU bwd hidden
            pltpu.VMEM((T_dec, HP), jnp.float32),        # dec_out
            pltpu.VMEM((T_enc, 4 * HP), jnp.float32),    # staged enc input proj
            pltpu.VMEM((T_enc, 4 * SP), jnp.float32),    # staged SLU-bwd proj
            pltpu.VMEM((T_dec, 4 * HP), jnp.float32),    # staged dec input proj
        ],
    )(enc_x, dec_x,
      e_wih, e_whh, e_b,
      sf_wih, sf_whh, sf_b,
      sb_wih, sb_whh, sb_b,
      slu_wf, slu_wb, slu_bias,
      d_wih, d_whh, d_b,
      lin_w, lin_bias)

    return {"slu": slu_pad[:, :slu_voc], "word": word_pad[:, :dec_voc]}


# ----------------------------------------------------------------------------
# Parameter construction (deterministic, synthetic)
# ----------------------------------------------------------------------------
def init_lstm_params(key, in_size, hidden):
    k1, k2, k3 = jax.random.split(key, 3)
    wih = 0.1 * jax.random.normal(k1, (in_size, 4 * hidden), jnp.float32)
    whh = 0.1 * jax.random.normal(k2, (hidden, 4 * hidden), jnp.float32)
    b = 0.1 * jax.random.normal(k3, (1, 4 * hidden), jnp.float32)   # b_ih + b_hh
    return wih, whh, b


def init_params(key, enc_voc, enc_emb, hidden, dec_voc, dec_emb,
                slu_hidden, slu_voc):
    keys = jax.random.split(key, 10)
    p = {}
    p["enc_emb"] = 0.1 * jax.random.normal(keys[0], (enc_voc, enc_emb), jnp.float32)
    p["enc_lstm"] = init_lstm_params(keys[1], enc_emb, hidden)
    # SLU bidirectional LSTM (input size = encoder hidden)
    p["slu_fwd"] = init_lstm_params(keys[2], hidden, slu_hidden)
    p["slu_bwd"] = init_lstm_params(keys[3], hidden, slu_hidden)
    p["slu_w"] = 0.1 * jax.random.normal(keys[4], (2 * slu_hidden, slu_voc), jnp.float32)
    p["slu_b"] = 0.1 * jax.random.normal(keys[5], (1, slu_voc), jnp.float32)
    # word decoder
    p["dec_emb"] = 0.1 * jax.random.normal(keys[6], (dec_voc, dec_emb), jnp.float32)
    p["dec_lstm"] = init_lstm_params(keys[7], dec_emb, hidden)
    # shared output linear (hidden -> dec_voc)
    p["lin_w"] = 0.1 * jax.random.normal(keys[8], (hidden, dec_voc), jnp.float32)
    p["lin_b"] = 0.1 * jax.random.normal(keys[9], (1, dec_voc), jnp.float32)
    return p


# ----------------------------------------------------------------------------
# Pure-JAX reference (full f32 matmul precision) for correctness checking
# ----------------------------------------------------------------------------
def ref_lstm(x, wih, whh, b, h0, c0):
    H = h0.shape[1]
    P = lax.Precision.HIGHEST

    def step(carry, x_t):
        h, c = carry
        g = (jnp.dot(x_t[None, :], wih, precision=P)
             + jnp.dot(h, whh, precision=P) + b)
        i = jax.nn.sigmoid(g[:, :H])
        f = jax.nn.sigmoid(g[:, H:2 * H])
        gg = jnp.tanh(g[:, 2 * H:3 * H])
        o = jax.nn.sigmoid(g[:, 3 * H:])
        c = f * c + i * gg
        h = o * jnp.tanh(c)
        return (h, c), h[0]

    (h, c), outs = lax.scan(step, (h0, c0), x)
    return outs, h, c


def ref_forward(params, enc_tokens, dec_tokens):
    P = lax.Precision.HIGHEST
    hidden = params["enc_lstm"][1].shape[0]
    slu_hidden = params["slu_fwd"][1].shape[0]
    zH = jnp.zeros((1, hidden), jnp.float32)
    zS = jnp.zeros((1, slu_hidden), jnp.float32)
    x = params["enc_emb"][enc_tokens]
    enc_out, h_fin, c_fin = ref_lstm(x, *params["enc_lstm"], zH, zH)
    fwd_out, _, _ = ref_lstm(enc_out, *params["slu_fwd"], zS, zS)
    bwd_out, _, _ = ref_lstm(enc_out[::-1], *params["slu_bwd"], zS, zS)
    slu_feat = jnp.concatenate([fwd_out, bwd_out[::-1]], axis=1)
    slu = jax.nn.log_softmax(jnp.dot(slu_feat, params["slu_w"], precision=P)
                             + params["slu_b"], axis=1)
    d = params["dec_emb"][dec_tokens]
    dec_out, _, _ = ref_lstm(d, *params["dec_lstm"], h_fin, c_fin)
    word = jax.nn.log_softmax(jnp.dot(dec_out, params["lin_w"], precision=P)
                              + params["lin_b"], axis=1)
    return {"slu": slu, "word": word}


# ----------------------------------------------------------------------------
if __name__ == "__main__":
    # Small shapes consistent with the module's forward (batch=1, seq-first).
    ENC_VOC, ENC_EMB = 50, 32
    HIDDEN = 32
    DEC_VOC, DEC_EMB = 20, 32
    SLU_HIDDEN, SLU_VOC = 32, 10
    T_ENC, T_DEC = 8, 8

    key = jax.random.PRNGKey(0)
    kp, ke, kd = jax.random.split(key, 3)
    params = init_params(kp, ENC_VOC, ENC_EMB, HIDDEN, DEC_VOC, DEC_EMB,
                         SLU_HIDDEN, SLU_VOC)
    enc_tokens = jax.random.randint(ke, (T_ENC,), 0, ENC_VOC)
    dec_tokens = jax.random.randint(kd, (T_DEC,), 0, DEC_VOC)

    scores = seq2seq_forward(params, enc_tokens, dec_tokens)
    scores = jax.tree_util.tree_map(jax.block_until_ready, scores)

    ref = ref_forward(params, enc_tokens, dec_tokens)
    np.testing.assert_allclose(np.asarray(scores["slu"]), np.asarray(ref["slu"]),
                               rtol=2e-3, atol=2e-3)
    np.testing.assert_allclose(np.asarray(scores["word"]), np.asarray(ref["word"]),
                               rtol=2e-3, atol=2e-3)
    assert scores["slu"].shape == (T_ENC, SLU_VOC)
    assert scores["word"].shape == (T_DEC, DEC_VOC)
    print("KERNEL_OK")
</pallas_src>

<mosaic_0001>
module attributes {stable_mosaic.version = 11 : i64} {
  func.func @fused_seq2seq_kernel(%arg0: memref<8x32xf32, #tpu.memory_space<vmem>>, %arg1: memref<8x32xf32, #tpu.memory_space<vmem>>, %arg2: memref<32x512xf32, #tpu.memory_space<vmem>>, %arg3: memref<32x512xf32, #tpu.memory_space<vmem>>, %arg4: memref<1x512xf32, #tpu.memory_space<vmem>>, %arg5: memref<32x512xf32, #tpu.memory_space<vmem>>, %arg6: memref<32x512xf32, #tpu.memory_space<vmem>>, %arg7: memref<1x512xf32, #tpu.memory_space<vmem>>, %arg8: memref<32x512xf32, #tpu.memory_space<vmem>>, %arg9: memref<32x512xf32, #tpu.memory_space<vmem>>, %arg10: memref<1x512xf32, #tpu.memory_space<vmem>>, %arg11: memref<128x128xf32, #tpu.memory_space<vmem>>, %arg12: memref<128x128xf32, #tpu.memory_space<vmem>>, %arg13: memref<1x128xf32, #tpu.memory_space<vmem>>, %arg14: memref<32x512xf32, #tpu.memory_space<vmem>>, %arg15: memref<32x512xf32, #tpu.memory_space<vmem>>, %arg16: memref<1x512xf32, #tpu.memory_space<vmem>>, %arg17: memref<128x128xf32, #tpu.memory_space<vmem>>, %arg18: memref<1x128xf32, #tpu.memory_space<vmem>>, %arg19: memref<8x128xf32, #tpu.memory_space<vmem>>, %arg20: memref<8x128xf32, #tpu.memory_space<vmem>>, %arg21: memref<8x128xf32, #tpu.memory_space<vmem>>, %arg22: memref<8x128xf32, #tpu.memory_space<vmem>>, %arg23: memref<8x128xf32, #tpu.memory_space<vmem>>, %arg24: memref<8x128xf32, #tpu.memory_space<vmem>>, %arg25: memref<8x512xf32, #tpu.memory_space<vmem>>, %arg26: memref<8x512xf32, #tpu.memory_space<vmem>>, %arg27: memref<8x512xf32, #tpu.memory_space<vmem>>) attributes {dimension_semantics = [], scalar_prefetch = 0 : i64, scratch_operands = 7 : i64, tpu.core_type = #tpu.core_type<tc>} {
    %c0 = arith.constant 0 : index
    %c0_0 = arith.constant 0 : index
    %0 = vector.load %arg0[%c0, %c0_0] : memref<8x32xf32, #tpu.memory_space<vmem>>, vector<8x32xf32>
    %c0_1 = arith.constant 0 : index
    %c0_2 = arith.constant 0 : index
    %1 = vector.load %arg2[%c0_1, %c0_2] : memref<32x512xf32, #tpu.memory_space<vmem>>, vector<32x512xf32>
    %cst = arith.constant dense<0.000000e+00> : vector<8x512xf32>
    %2 = tpu.matmul %0, %1, %cst {dimension_numbers = #tpu.dot_dimension_numbers<[1], [0], [0], [1], [0, 0, 1, 1], [], []>} : vector<8x32xf32>, vector<32x512xf32>, vector<8x512xf32> -> vector<8x512xf32>
    %c0_3 = arith.constant 0 : index
    %c0_4 = arith.constant 0 : index
    %3 = vector.load %arg4[%c0_3, %c0_4] : memref<1x512xf32, #tpu.memory_space<vmem>>, vector<1x512xf32>
    %4 = vector.broadcast %3 : vector<1x512xf32> to vector<8x512xf32>
    %5 = arith.addf %2, %4 : vector<8x512xf32>
    %c0_5 = arith.constant 0 : index
    %c0_6 = arith.constant 0 : index
    %6 = vector.load %arg25[%c0_5, %c0_6] : memref<8x512xf32, #tpu.memory_space<vmem>>, vector<8x512xf32>
    tpu.vector_store %arg25[%c0_5, %c0_6], %5 {strides = array<i32>} : memref<8x512xf32, #tpu.memory_space<vmem>>, vector<8x512xf32>,
    %cst_7 = arith.constant 0.000000e+00 : f32
    %7 = vector.broadcast %cst_7 : f32 to vector<1x128xf32>
    %cst_8 = arith.constant 0.000000e+00 : f32
    %8 = vector.broadcast %cst_8 : f32 to vector<1x128xf32>
    %cst_9 = arith.constant 0.000000e+00 : f32
    %9 = vector.broadcast %cst_9 : f32 to vector<1x128xf32>
    %cst_10 = arith.constant 0.000000e+00 : f32
    %10 = vector.broadcast %cst_10 : f32 to vector<1x128xf32>
    %c0_11 = arith.constant 0 : index
    %c0_12 = arith.constant 0 : index
    %11 = vector.load %arg25[%c0_11, %c0_12] : memref<8x512xf32, #tpu.memory_space<vmem>>, vector<1x512xf32>
    %12 = vector.extract_strided_slice %7 {offsets = [0, 0], sizes = [1, 32], strides = [1, 1]} : vector<1x128xf32> to vector<1x32xf32>
    %c0_13 = arith.constant 0 : index
    %c0_14 = arith.constant 0 : index
    %13 = vector.load %arg3[%c0_13, %c0_14] : memref<32x512xf32, #tpu.memory_space<vmem>>, vector<32x512xf32>
    %cst_15 = arith.constant dense<0.000000e+00> : vector<1x512xf32>
    %14 = tpu.matmul %12, %13, %cst_15 {dimension_numbers = #tpu.dot_dimension_numbers<[1], [0], [0], [1], [0, 0, 1, 1], [], []>} : vector<1x32xf32>, vector<32x512xf32>, vector<1x512xf32> -> vector<1x512xf32>
    %15 = arith.addf %11, %14 : vector<1x512xf32>
    %16 = vector.extract_strided_slice %15 {offsets = [0, 0], sizes = [1, 128], strides = [1, 1]} : vector<1x512xf32> to vector<1x128xf32>
    %17 = arith.negf %16 : vector<1x128xf32>
    %18 = math.exp %17 : vector<1x128xf32>
    %cst_16 = arith.constant 1.000000e+00 : f32
    %19 = vector.broadcast %cst_16 : f32 to vector<1x128xf32>
    %20 = arith.addf %19, %18 : vector<1x128xf32>
    %21 = arith.divf %19, %20 : vector<1x128xf32>
    %22 = vector.extract_strided_slice %15 {offsets = [0, 128], sizes = [1, 128], strides = [1, 1]} : vector<1x512xf32> to vector<1x128xf32>
    %23 = arith.negf %22 : vector<1x128xf32>
    %24 = math.exp %23 : vector<1x128xf32>
    %cst_17 = arith.constant 1.000000e+00 : f32
    %25 = vector.broadcast %cst_17 : f32 to vector<1x128xf32>
    %26 = arith.addf %25, %24 : vector<1x128xf32>
    %27 = arith.divf %25, %26 : vector<1x128xf32>
    %28 = vector.extract_strided_slice %15 {offsets = [0, 256], sizes = [1, 128], strides = [1, 1]} : vector<1x512xf32> to vector<1x128xf32>
    %29 = math.tanh %28 : vector<1x128xf32>
    %30 = vector.extract_strided_slice %15 {offsets = [0, 384], sizes = [1, 128], strides = [1, 1]} : vector<1x512xf32> to vector<1x128xf32>
    %31 = arith.negf %30 : vector<1x128xf32>
    %32 = math.exp %31 : vector<1x128xf32>
    %cst_18 = arith.constant 1.000000e+00 : f32
    %33 = vector.broadcast %cst_18 : f32 to vector<1x128xf32>
    %34 = arith.addf %33, %32 : vector<1x128xf32>
    %35 = arith.divf %33, %34 : vector<1x128xf32>
    %36 = arith.mulf %27, %8 : vector<1x128xf32>
    %37 = arith.mulf %21, %29 : vector<1x128xf32>
    %38 = arith.addf %36, %37 : vector<1x128xf32>
    %39 = math.tanh %38 : vector<1x128xf32>
    %40 = arith.mulf %35, %39 : vector<1x128xf32>
    %c0_19 = arith.constant 0 : index
    %c0_20 = arith.constant 0 : index
    %41 = vector.load %arg21[%c0_19, %c0_20] : memref<8x128xf32, #tpu.memory_space<vmem>>, vector<1x128xf32>
    tpu.vector_store %arg21[%c0_19, %c0_20], %40 {strides = array<i32>} : memref<8x128xf32, #tpu.memory_space<vmem>>, vector<1x128xf32>,
    %42 = vector.extract_strided_slice %40 {offsets = [0, 0], sizes = [1, 32], strides = [1, 1]} : vector<1x128xf32> to vector<1x32xf32>
    %c0_21 = arith.constant 0 : index
    %c0_22 = arith.constant 0 : index
    %43 = vector.load %arg5[%c0_21, %c0_22] : memref<32x512xf32, #tpu.memory_space<vmem>>, vector<32x512xf32>
    %cst_23 = arith.constant dense<0.000000e+00> : vector<1x512xf32>
    %44 = tpu.matmul %42, %43, %cst_23 {dimension_numbers = #tpu.dot_dimension_numbers<[1], [0], [0], [1], [0, 0, 1, 1], [], []>} : vector<1x32xf32>, vector<32x512xf32>, vector<1x512xf32> -> vector<1x512xf32>
    %45 = vector.extract_strided_slice %9 {offsets = [0, 0], sizes = [1, 32], strides = [1, 1]} : vector<1x128xf32> to vector<1x32xf32>
    %c0_24 = arith.constant 0 : index
    %c0_25 = arith.constant 0 : index
    %46 = vector.load %arg6[%c0_24, %c0_25] : memref<32x512xf32, #tpu.memory_space<vmem>>, vector<32x512xf32>
    %cst_26 = arith.constant dense<0.000000e+00> : vector<1x512xf32>
    %47 = tpu.matmul %45, %46, %cst_26 {dimension_numbers = #tpu.dot_dimension_numbers<[1], [0], [0], [1], [0, 0, 1, 1], [], []>} : vector<1x32xf32>, vector<32x512xf32>, vector<1x512xf32> -> vector<1x512xf32>
    %48 = arith.addf %44, %47 : vector<1x512xf32>
    %c0_27 = arith.constant 0 : index
    %c0_28 = arith.constant 0 : index
    %49 = vector.load %arg7[%c0_27, %c0_28] : memref<1x512xf32, #tpu.memory_space<vmem>>, vector<1x512xf32>
    %50 = arith.addf %48, %49 : vector<1x512xf32>
    %51 = vector.extract_strided_slice %50 {offsets = [0, 0], sizes = [1, 128], strides = [1, 1]} : vector<1x512xf32> to vector<1x128xf32>
    %52 = arith.negf %51 : vector<1x128xf32>
    %53 = math.exp %52 : vector<1x128xf32>
    %cst_29 = arith.constant 1.000000e+00 : f32
    %54 = vector.broadcast %cst_29 : f32 to vector<1x128xf32>
    %55 = arith.addf %54, %53 : vector<1x128xf32>
    %56 = arith.divf %54, %55 : vector<1x128xf32>
    %57 = vector.extract_strided_slice %50 {offsets = [0, 128], sizes = [1, 128], strides = [1, 1]} : vector<1x512xf32> to vector<1x128xf32>
    %58 = arith.negf %57 : vector<1x128xf32>
    %59 = math.exp %58 : vector<1x128xf32>
    %cst_30 = arith.constant 1.000000e+00 : f32
    %60 = vector.broadcast %cst_30 : f32 to vector<1x128xf32>
    %61 = arith.addf %60, %59 : vector<1x128xf32>
    %62 = arith.divf %60, %61 : vector<1x128xf32>
    %63 = vector.extract_strided_slice %50 {offsets = [0, 256], sizes = [1, 128], strides = [1, 1]} : vector<1x512xf32> to vector<1x128xf32>
    %64 = math.tanh %63 : vector<1x128xf32>
    %65 = vector.extract_strided_slice %50 {offsets = [0, 384], sizes = [1, 128], strides = [1, 1]} : vector<1x512xf32> to vector<1x128xf32>
    %66 = arith.negf %65 : vector<1x128xf32>
    %67 = math.exp %66 : vector<1x128xf32>
    %cst_31 = arith.constant 1.000000e+00 : f32
    %68 = vector.broadcast %cst_31 : f32 to vector<1x128xf32>
    %69 = arith.addf %68, %67 : vector<1x128xf32>
    %70 = arith.divf %68, %69 : vector<1x128xf32>
    %71 = arith.mulf %62, %10 : vector<1x128xf32>
    %72 = arith.mulf %56, %64 : vector<1x128xf32>
    %73 = arith.addf %71, %72 : vector<1x128xf32>
    %74 = math.tanh %73 : vector<1x128xf32>
    %75 = arith.mulf %70, %74 : vector<1x128xf32>
    %c0_32 = arith.constant 0 : index
    %c0_33 = arith.constant 0 : index
    %76 = vector.load %arg22[%c0_32, %c0_33] : memref<8x128xf32, #tpu.memory_space<vmem>>, vector<1x128xf32>
    tpu.vector_store %arg22[%c0_32, %c0_33], %75 {strides = array<i32>} : memref<8x128xf32, #tpu.memory_space<vmem>>, vector<1x128xf32>,
    %c1 = arith.constant 1 : index
    %c0_34 = arith.constant 0 : index
    %77 = vector.load %arg25[%c1, %c0_34] : memref<8x512xf32, #tpu.memory_space<vmem>>, vector<1x512xf32>
    %78 = vector.extract_strided_slice %40 {offsets = [0, 0], sizes = [1, 32], strides = [1, 1]} : vector<1x128xf32> to vector<1x32xf32>
    %c0_35 = arith.constant 0 : index
    %c0_36 = arith.constant 0 : index
    %79 = vector.load %arg3[%c0_35, %c0_36] : memref<32x512xf32, #tpu.memory_space<vmem>>, vector<32x512xf32>
    %cst_37 = arith.constant dense<0.000000e+00> : vector<1x512xf32>
    %80 = tpu.matmul %78, %79, %cst_37 {dimension_numbers = #tpu.dot_dimension_numbers<[1], [0], [0], [1], [0, 0, 1, 1], [], []>} : vector<1x32xf32>, vector<32x512xf32>, vector<1x512xf32> -> vector<1x512xf32>
    %81 = arith.addf %77, %80 : vector<1x512xf32>
    %82 = vector.extract_strided_slice %81 {offsets = [0, 0], sizes = [1, 128], strides = [1, 1]} : vector<1x512xf32> to vector<1x128xf32>
    %83 = arith.negf %82 : vector<1x128xf32>
    %84 = math.exp %83 : vector<1x128xf32>
    %cst_38 = arith.constant 1.000000e+00 : f32
    %85 = vector.broadcast %cst_38 : f32 to vector<1x128xf32>
    %86 = arith.addf %85, %84 : vector<1x128xf32>
    %87 = arith.divf %85, %86 : vector<1x128xf32>
    %88 = vector.extract_strided_slice %81 {offsets = [0, 128], sizes = [1, 128], strides = [1, 1]} : vector<1x512xf32> to vector<1x128xf32>
    %89 = arith.negf %88 : vector<1x128xf32>
    %90 = math.exp %89 : vector<1x128xf32>
    %cst_39 = arith.constant 1.000000e+00 : f32
    %91 = vector.broadcast %cst_39 : f32 to vector<1x128xf32>
    %92 = arith.addf %91, %90 : vector<1x128xf32>
    %93 = arith.divf %91, %92 : vector<1x128xf32>
    %94 = vector.extract_strided_slice %81 {offsets = [0, 256], sizes = [1, 128], strides = [1, 1]} : vector<1x512xf32> to vector<1x128xf32>
    %95 = math.tanh %94 : vector<1x128xf32>
    %96 = vector.extract_strided_slice %81 {offsets = [0, 384], sizes = [1, 128], strides = [1, 1]} : vector<1x512xf32> to vector<1x128xf32>
    %97 = arith.negf %96 : vector<1x128xf32>
    %98 = math.exp %97 : vector<1x128xf32>
    %cst_40 = arith.constant 1.000000e+00 : f32
    %99 = vector.broadcast %cst_40 : f32 to vector<1x128xf32>
    %100 = arith.addf %99, %98 : vector<1x128xf32>
    %101 = arith.divf %99, %100 : vector<1x128xf32>
    %102 = arith.mulf %93, %38 : vector<1x128xf32>
    %103 = arith.mulf %87, %95 : vector<1x128xf32>
    %104 = arith.addf %102, %103 : vector<1x128xf32>
    %105 = math.tanh %104 : vector<1x128xf32>
    %106 = arith.mulf %101, %105 : vector<1x128xf32>
    %c1_41 = arith.constant 1 : index
    %c0_42 = arith.constant 0 : index
    %107 = vector.load %arg21[%c1_41, %c0_42] : memref<8x128xf32, #tpu.memory_space<vmem>>, vector<1x128xf32>
    tpu.vector_store %arg21[%c1_41, %c0_42], %106 {strides = array<i32>} : memref<8x128xf32, #tpu.memory_space<vmem>>, vector<1x128xf32>,
    %108 = vector.extract_strided_slice %106 {offsets = [0, 0], sizes = [1, 32], strides = [1, 1]} : vector<1x128xf32> to vector<1x32xf32>
    %c0_43 = arith.constant 0 : index
    %c0_44 = arith.constant 0 : index
    %109 = vector.load %arg5[%c0_43, %c0_44] : memref<32x512xf32, #tpu.memory_space<vmem>>, vector<32x512xf32>
    %cst_45 = arith.constant dense<0.000000e+00> : vector<1x512xf32>
    %110 = tpu.matmul %108, %109, %cst_45 {dimension_numbers = #tpu.dot_dimension_numbers<[1], [0], [0], [1], [0, 0, 1, 1], [], []>} : vector<1x32xf32>, vector<32x512xf32>, vector<1x512xf32> -> vector<1x512xf32>
    %111 = vector.extract_strided_slice %75 {offsets = [0, 0], sizes = [1, 32], strides = [1, 1]} : vector<1x128xf32> to vector<1x32xf32>
    %c0_46 = arith.constant 0 : index
    %c0_47 = arith.constant 0 : index
    %112 = vector.load %arg6[%c0_46, %c0_47] : memref<32x512xf32, #tpu.memory_space<vmem>>, vector<32x512xf32>
    %cst_48 = arith.constant dense<0.000000e+00> : vector<1x512xf32>
    %113 = tpu.matmul %111, %112, %cst_48 {dimension_numbers = #tpu.dot_dimension_numbers<[1], [0], [0], [1], [0, 0, 1, 1], [], []>} : vector<1x32xf32>, vector<32x512xf32>, vector<1x512xf32> -> vector<1x512xf32>
    %114 = arith.addf %110, %113 : vector<1x512xf32>
    %c0_49 = arith.constant 0 : index
    %c0_50 = arith.constant 0 : index
    %115 = vector.load %arg7[%c0_49, %c0_50] : memref<1x512xf32, #tpu.memory_space<vmem>>, vector<1x512xf32>
    %116 = arith.addf %114, %115 : vector<1x512xf32>
    %117 = vector.extract_strided_slice %116 {offsets = [0, 0], sizes = [1, 128], strides = [1, 1]} : vector<1x512xf32> to vector<1x128xf32>
    %118 = arith.negf %117 : vector<1x128xf32>
    %119 = math.exp %118 : vector<1x128xf32>
    %cst_51 = arith.constant 1.000000e+00 : f32
    %120 = vector.broadcast %cst_51 : f32 to vector<1x128xf32>
    %121 = arith.addf %120, %119 : vector<1x128xf32>
    %122 = arith.divf %120, %121 : vector<1x128xf32>
    %123 = vector.extract_strided_slice %116 {offsets = [0, 128], sizes = [1, 128], strides = [1, 1]} : vector<1x512xf32> to vector<1x128xf32>
    %124 = arith.negf %123 : vector<1x128xf32>
    %125 = math.exp %124 : vector<1x128xf32>
    %cst_52 = arith.constant 1.000000e+00 : f32
    %126 = vector.broadcast %cst_52 : f32 to vector<1x128xf32>
    %127 = arith.addf %126, %125 : vector<1x128xf32>
    %128 = arith.divf %126, %127 : vector<1x128xf32>
    %129 = vector.extract_strided_slice %116 {offsets = [0, 256], sizes = [1, 128], strides = [1, 1]} : vector<1x512xf32> to vector<1x128xf32>
    %130 = math.tanh %129 : vector<1x128xf32>
    %131 = vector.extract_strided_slice %116 {offsets = [0, 384], sizes = [1, 128], strides = [1, 1]} : vector<1x512xf32> to vector<1x128xf32>
    %132 = arith.negf %131 : vector<1x128xf32>
    %133 = math.exp %132 : vector<1x128xf32>
    %cst_53 = arith.constant 1.000000e+00 : f32
    %134 = vector.broadcast %cst_53 : f32 to vector<1x128xf32>
    %135 = arith.addf %134, %133 : vector<1x128xf32>
    %136 = arith.divf %134, %135 : vector<1x128xf32>
    %137 = arith.mulf %128, %73 : vector<1x128xf32>
    %138 = arith.mulf %122, %130 : vector<1x128xf32>
    %139 = arith.addf %137, %138 : vector<1x128xf32>
    %140 = math.tanh %139 : vector<1x128xf32>
    %141 = arith.mulf %136, %140 : vector<1x128xf32>
    %c1_54 = arith.constant 1 : index
    %c0_55 = arith.constant 0 : index
    %142 = vector.load %arg22[%c1_54, %c0_55] : memref<8x128xf32, #tpu.memory_space<vmem>>, vector<1x128xf32>
    tpu.vector_store %arg22[%c1_54, %c0_55], %141 {strides = array<i32>} : memref<8x128xf32, #tpu.memory_space<vmem>>, vector<1x128xf32>,
    %c2 = arith.constant 2 : index
    %c0_56 = arith.constant 0 : index
    %143 = vector.load %arg25[%c2, %c0_56] : memref<8x512xf32, #tpu.memory_space<vmem>>, vector<1x512xf32>
    %144 = vector.extract_strided_slice %106 {offsets = [0, 0], sizes = [1, 32], strides = [1, 1]} : vector<1x128xf32> to vector<1x32xf32>
    %c0_57 = arith.constant 0 : index
    %c0_58 = arith.constant 0 : index
    %145 = vector.load %arg3[%c0_57, %c0_58] : memref<32x512xf32, #tpu.memory_space<vmem>>, vector<32x512xf32>
    %cst_59 = arith.constant dense<0.000000e+00> : vector<1x512xf32>
    %146 = tpu.matmul %144, %145, %cst_59 {dimension_numbers = #tpu.dot_dimension_numbers<[1], [0], [0], [1], [0, 0, 1, 1], [], []>} : vector<1x32xf32>, vector<32x512xf32>, vector<1x512xf32> -> vector<1x512xf32>
    %147 = arith.addf %143, %146 : vector<1x512xf32>
    %148 = vector.extract_strided_slice %147 {offsets = [0, 0], sizes = [1, 128], strides = [1, 1]} : vector<1x512xf32> to vector<1x128xf32>
    %149 = arith.negf %148 : vector<1x128xf32>
    %150 = math.exp %149 : vector<1x128xf32>
    %cst_60 = arith.constant 1.000000e+00 : f32
    %151 = vector.broadcast %cst_60 : f32 to vector<1x128xf32>
    %152 = arith.addf %151, %150 : vector<1x128xf32>
    %153 = arith.divf %151, %152 : vector<1x128xf32>
    %154 = vector.extract_strided_slice %147 {offsets = [0, 128], sizes = [1, 128], strides = [1, 1]} : vector<1x512xf32> to vector<1x128xf32>
    %155 = arith.negf %154 : vector<1x128xf32>
    %156 = math.exp %155 : vector<1x128xf32>
    %cst_61 = arith.constant 1.000000e+00 : f32
    %157 = vector.broadcast %cst_61 : f32 to vector<1x128xf32>
    %158 = arith.addf %157, %156 : vector<1x128xf32>
    %159 = arith.divf %157, %158 : vector<1x128xf32>
    %160 = vector.extract_strided_slice %147 {offsets = [0, 256], sizes = [1, 128], strides = [1, 1]} : vector<1x512xf32> to vector<1x128xf32>
    %161 = math.tanh %160 : vector<1x128xf32>
    %162 = vector.extract_strided_slice %147 {offsets = [0, 384], sizes = [1, 128], strides = [1, 1]} : vector<1x512xf32> to vector<1x128xf32>
    %163 = arith.negf %162 : vector<1x128xf32>
    %164 = math.exp %163 : vector<1x128xf32>
    %cst_62 = arith.constant 1.000000e+00 : f32
    %165 = vector.broadcast %cst_62 : f32 to vector<1x128xf32>
    %166 = arith.addf %165, %164 : vector<1x128xf32>
    %167 = arith.divf %165, %166 : vector<1x128xf32>
    %168 = arith.mulf %159, %104 : vector<1x128xf32>
    %169 = arith.mulf %153, %161 : vector<1x128xf32>
    %170 = arith.addf %168, %169 : vector<1x128xf32>
    %171 = math.tanh %170 : vector<1x128xf32>
    %172 = arith.mulf %167, %171 : vector<1x128xf32>
    %c2_63 = arith.constant 2 : index
    %c0_64 = arith.constant 0 : index
    %173 = vector.load %arg21[%c2_63, %c0_64] : memref<8x128xf32, #tpu.memory_space<vmem>>, vector<1x128xf32>
    tpu.vector_store %arg21[%c2_63, %c0_64], %172 {strides = array<i32>} : memref<8x128xf32, #tpu.memory_space<vmem>>, vector<1x128xf32>,
    %174 = vector.extract_strided_slice %172 {offsets = [0, 0], sizes = [1, 32], strides = [1, 1]} : vector<1x128xf32> to vector<1x32xf32>
    %c0_65 = arith.constant 0 : index
    %c0_66 = arith.constant 0 : index
    %175 = vector.load %arg5[%c0_65, %c0_66] : memref<32x512xf32, #tpu.memory_space<vmem>>, vector<32x512xf32>
    %cst_67 = arith.constant dense<0.000000e+00> : vector<1x512xf32>
    %176 = tpu.matmul %174, %175, %cst_67 {dimension_numbers = #tpu.dot_dimension_numbers<[1], [0], [0], [1], [0, 0, 1, 1], [], []>} : vector<1x32xf32>, vector<32x512xf32>, vector<1x512xf32> -> vector<1x512xf32>
    %177 = vector.extract_strided_slice %141 {offsets = [0, 0], sizes = [1, 32], strides = [1, 1]} : vector<1x128xf32> to vector<1x32xf32>
    %c0_68 = arith.constant 0 : index
    %c0_69 = arith.constant 0 : index
    %178 = vector.load %arg6[%c0_68, %c0_69] : memref<32x512xf32, #tpu.memory_space<vmem>>, vector<32x512xf32>
    %cst_70 = arith.constant dense<0.000000e+00> : vector<1x512xf32>
    %179 = tpu.matmul %177, %178, %cst_70 {dimension_numbers = #tpu.dot_dimension_numbers<[1], [0], [0], [1], [0, 0, 1, 1], [], []>} : vector<1x32xf32>, vector<32x512xf32>, vector<1x512xf32> -> vector<1x512xf32>
    %180 = arith.addf %176, %179 : vector<1x512xf32>
    %c0_71 = arith.constant 0 : index
    %c0_72 = arith.constant 0 : index
    %181 = vector.load %arg7[%c0_71, %c0_72] : memref<1x512xf32, #tpu.memory_space<vmem>>, vector<1x512xf32>
    %182 = arith.addf %180, %181 : vector<1x512xf32>
    %183 = vector.extract_strided_slice %182 {offsets = [0, 0], sizes = [1, 128], strides = [1, 1]} : vector<1x512xf32> to vector<1x128xf32>
    %184 = arith.negf %183 : vector<1x128xf32>
    %185 = math.exp %184 : vector<1x128xf32>
    %cst_73 = arith.constant 1.000000e+00 : f32
    %186 = vector.broadcast %cst_73 : f32 to vector<1x128xf32>
    %187 = arith.addf %186, %185 : vector<1x128xf32>
    %188 = arith.divf %186, %187 : vector<1x128xf32>
    %189 = vector.extract_strided_slice %182 {offsets = [0, 128], sizes = [1, 128], strides = [1, 1]} : vector<1x512xf32> to vector<1x128xf32>
    %190 = arith.negf %189 : vector<1x128xf32>
    %191 = math.exp %190 : vector<1x128xf32>
    %cst_74 = arith.constant 1.000000e+00 : f32
    %192 = vector.broadcast %cst_74 : f32 to vector<1x128xf32>
    %193 = arith.addf %192, %191 : vector<1x128xf32>
    %194 = arith.divf %192, %193 : vector<1x128xf32>
    %195 = vector.extract_strided_slice %182 {offsets = [0, 256], sizes = [1, 128], strides = [1, 1]} : vector<1x512xf32> to vector<1x128xf32>
    %196 = math.tanh %195 : vector<1x128xf32>
    %197 = vector.extract_strided_slice %182 {offsets = [0, 384], sizes = [1, 128], strides = [1, 1]} : vector<1x512xf32> to vector<1x128xf32>
    %198 = arith.negf %197 : vector<1x128xf32>
    %199 = math.exp %198 : vector<1x128xf32>
    %cst_75 = arith.constant 1.000000e+00 : f32
    %200 = vector.broadcast %cst_75 : f32 to vector<1x128xf32>
    %201 = arith.addf %200, %199 : vector<1x128xf32>
    %202 = arith.divf %200, %201 : vector<1x128xf32>
    %203 = arith.mulf %194, %139 : vector<1x128xf32>
    %204 = arith.mulf %188, %196 : vector<1x128xf32>
    %205 = arith.addf %203, %204 : vector<1x128xf32>
    %206 = math.tanh %205 : vector<1x128xf32>
    %207 = arith.mulf %202, %206 : vector<1x128xf32>
    %c2_76 = arith.constant 2 : index
    %c0_77 = arith.constant 0 : index
    %208 = vector.load %arg22[%c2_76, %c0_77] : memref<8x128xf32, #tpu.memory_space<vmem>>, vector<1x128xf32>
    tpu.vector_store %arg22[%c2_76, %c0_77], %207 {strides = array<i32>} : memref<8x128xf32, #tpu.memory_space<vmem>>, vector<1x128xf32>,
    %c3 = arith.constant 3 : index
    %c0_78 = arith.constant 0 : index
    %209 = vector.load %arg25[%c3, %c0_78] : memref<8x512xf32, #tpu.memory_space<vmem>>, vector<1x512xf32>
    %210 = vector.extract_strided_slice %172 {offsets = [0, 0], sizes = [1, 32], strides = [1, 1]} : vector<1x128xf32> to vector<1x32xf32>
    %c0_79 = arith.constant 0 : index
    %c0_80 = arith.constant 0 : index
    %211 = vector.load %arg3[%c0_79, %c0_80] : memref<32x512xf32, #tpu.memory_space<vmem>>, vector<32x512xf32>
    %cst_81 = arith.constant dense<0.000000e+00> : vector<1x512xf32>
    %212 = tpu.matmul %210, %211, %cst_81 {dimension_numbers = #tpu.dot_dimension_numbers<[1], [0], [0], [1], [0, 0, 1, 1], [], []>} : vector<1x32xf32>, vector<32x512xf32>, vector<1x512xf32> -> vector<1x512xf32>
    %213 = arith.addf %209, %212 : vector<1x512xf32>
    %214 = vector.extract_strided_slice %213 {offsets = [0, 0], sizes = [1, 128], strides = [1, 1]} : vector<1x512xf32> to vector<1x128xf32>
    %215 = arith.negf %214 : vector<1x128xf32>
    %216 = math.exp %215 : vector<1x128xf32>
    %cst_82 = arith.constant 1.000000e+00 : f32
    %217 = vector.broadcast %cst_82 : f32 to vector<1x128xf32>
    %218 = arith.addf %217, %216 : vector<1x128xf32>
    %219 = arith.divf %217, %218 : vector<1x128xf32>
    %220 = vector.extract_strided_slice %213 {offsets = [0, 128], sizes = [1, 128], strides = [1, 1]} : vector<1x512xf32> to vector<1x128xf32>
    %221 = arith.negf %220 : vector<1x128xf32>
    %222 = math.exp %221 : vector<1x128xf32>
    %cst_83 = arith.constant 1.000000e+00 : f32
    %223 = vector.broadcast %cst_83 : f32 to vector<1x128xf32>
    %224 = arith.addf %223, %222 : vector<1x128xf32>
    %225 = arith.divf %223, %224 : vector<1x128xf32>
    %226 = vector.extract_strided_slice %213 {offsets = [0, 256], sizes = [1, 128], strides = [1, 1]} : vector<1x512xf32> to vector<1x128xf32>
    %227 = math.tanh %226 : vector<1x128xf32>
    %228 = vector.extract_strided_slice %213 {offsets = [0, 384], sizes = [1, 128], strides = [1, 1]} : vector<1x512xf32> to vector<1x128xf32>
    %229 = arith.negf %228 : vector<1x128xf32>
    %230 = math.exp %229 : vector<1x128xf32>
    %cst_84 = arith.constant 1.000000e+00 : f32
    %231 = vector.broadcast %cst_84 : f32 to vector<1x128xf32>
    %232 = arith.addf %231, %230 : vector<1x128xf32>
    %233 = arith.divf %231, %232 : vector<1x128xf32>
    %234 = arith.mulf %225, %170 : vector<1x128xf32>
    %235 = arith.mulf %219, %227 : vector<1x128xf32>
    %236 = arith.addf %234, %235 : vector<1x128xf32>
    %237 = math.tanh %236 : vector<1x128xf32>
    %238 = arith.mulf %233, %237 : vector<1x128xf32>
    %c3_85 = arith.constant 3 : index
    %c0_86 = arith.constant 0 : index
    %239 = vector.load %arg21[%c3_85, %c0_86] : memref<8x128xf32, #tpu.memory_space<vmem>>, vector<1x128xf32>
    tpu.vector_store %arg21[%c3_85, %c0_86], %238 {strides = array<i32>} : memref<8x128xf32, #tpu.memory_space<vmem>>, vector<1x128xf32>,
    %240 = vector.extract_strided_slice %238 {offsets = [0, 0], sizes = [1, 32], strides = [1, 1]} : vector<1x128xf32> to vector<1x32xf32>
    %c0_87 = arith.constant 0 : index
    %c0_88 = arith.constant 0 : index
    %241 = vector.load %arg5[%c0_87, %c0_88] : memref<32x512xf32, #tpu.memory_space<vmem>>, vector<32x512xf32>
    %cst_89 = arith.constant dense<0.000000e+00> : vector<1x512xf32>
    %242 = tpu.matmul %240, %241, %cst_89 {dimension_numbers = #tpu.dot_dimension_numbers<[1], [0], [0], [1], [0, 0, 1, 1], [], []>} : vector<1x32xf32>, vector<32x512xf32>, vector<1x512xf32> -> vector<1x512xf32>
    %243 = vector.extract_strided_slice %207 {offsets = [0, 0], sizes = [1, 32], strides = [1, 1]} : vector<1x128xf32> to vector<1x32xf32>
    %c0_90 = arith.constant 0 : index
    %c0_91 = arith.constant 0 : index
    %244 = vector.load %arg6[%c0_90, %c0_91] : memref<32x512xf32, #tpu.memory_space<vmem>>, vector<32x512xf32>
    %cst_92 = arith.constant dense<0.000000e+00> : vector<1x512xf32>
    %245 = tpu.matmul %243, %244, %cst_92 {dimension_numbers = #tpu.dot_dimension_numbers<[1], [0], [0], [1], [0, 0, 1, 1], [], []>} : vector<1x32xf32>, vector<32x512xf32>, vector<1x512xf32> -> vector<1x512xf32>
    %246 = arith.addf %242, %245 : vector<1x512xf32>
    %c0_93 = arith.constant 0 : index
    %c0_94 = arith.constant 0 : index
    %247 = vector.load %arg7[%c0_93, %c0_94] : memref<1x512xf32, #tpu.memory_space<vmem>>, vector<1x512xf32>
    %248 = arith.addf %246, %247 : vector<1x512xf32>
    %249 = vector.extract_strided_slice %248 {offsets = [0, 0], sizes = [1, 128], strides = [1, 1]} : vector<1x512xf32> to vector<1x128xf32>
    %250 = arith.negf %249 : vector<1x128xf32>
    %251 = math.exp %250 : vector<1x128xf32>
    %cst_95 = arith.constant 1.000000e+00 : f32
    %252 = vector.broadcast %cst_95 : f32 to vector<1x128xf32>
    %253 = arith.addf %252, %251 : vector<1x128xf32>
    %254 = arith.divf %252, %253 : vector<1x128xf32>
    %255 = vector.extract_strided_slice %248 {offsets = [0, 128], sizes = [1, 128], strides = [1, 1]} : vector<1x512xf32> to vector<1x128xf32>
    %256 = arith.negf %255 : vector<1x128xf32>
    %257 = math.exp %256 : vector<1x128xf32>
    %cst_96 = arith.constant 1.000000e+00 : f32
    %258 = vector.broadcast %cst_96 : f32 to vector<1x128xf32>
    %259 = arith.addf %258, %257 : vector<1x128xf32>
    %260 = arith.divf %258, %259 : vector<1x128xf32>
    %261 = vector.extract_strided_slice %248 {offsets = [0, 256], sizes = [1, 128], strides = [1, 1]} : vector<1x512xf32> to vector<1x128xf32>
    %262 = math.tanh %261 : vector<1x128xf32>
    %263 = vector.extract_strided_slice %248 {offsets = [0, 384], sizes = [1, 128], strides = [1, 1]} : vector<1x512xf32> to vector<1x128xf32>
    %264 = arith.negf %263 : vector<1x128xf32>
    %265 = math.exp %264 : vector<1x128xf32>
    %cst_97 = arith.constant 1.000000e+00 : f32
    %266 = vector.broadcast %cst_97 : f32 to vector<1x128xf32>
    %267 = arith.addf %266, %265 : vector<1x128xf32>
    %268 = arith.divf %266, %267 : vector<1x128xf32>
    %269 = arith.mulf %260, %205 : vector<1x128xf32>
    %270 = arith.mulf %254, %262 : vector<1x128xf32>
    %271 = arith.addf %269, %270 : vector<1x128xf32>
    %272 = math.tanh %271 : vector<1x128xf32>
    %273 = arith.mulf %268, %272 : vector<1x128xf32>
    %c3_98 = arith.constant 3 : index
    %c0_99 = arith.constant 0 : index
    %274 = vector.load %arg22[%c3_98, %c0_99] : memref<8x128xf32, #tpu.memory_space<vmem>>, vector<1x128xf32>
    tpu.vector_store %arg22[%c3_98, %c0_99], %273 {strides = array<i32>} : memref<8x128xf32, #tpu.memory_space<vmem>>, vector<1x128xf32>,
    %c4 = arith.constant 4 : index
    %c0_100 = arith.constant 0 : index
    %275 = vector.load %arg25[%c4, %c0_100] : memref<8x512xf32, #tpu.memory_space<vmem>>, vector<1x512xf32>
    %276 = vector.extract_strided_slice %238 {offsets = [0, 0], sizes = [1, 32], strides = [1, 1]} : vector<1x128xf32> to vector<1x32xf32>
    %c0_101 = arith.constant 0 : index
    %c0_102 = arith.constant 0 : index
    %277 = vector.load %arg3[%c0_101, %c0_102] : memref<32x512xf32, #tpu.memory_space<vmem>>, vector<32x512xf32>
    %cst_103 = arith.constant dense<0.000000e+00> : vector<1x512xf32>
    %278 = tpu.matmul %276, %277, %cst_103 {dimension_numbers = #tpu.dot_dimension_numbers<[1], [0], [0], [1], [0, 0, 1, 1], [], []>} : vector<1x32xf32>, vector<32x512xf32>, vector<1x512xf32> -> vector<1x512xf32>
    %279 = arith.addf %275, %278 : vector<1x512xf32>
    %280 = vector.extract_strided_slice %279 {offsets = [0, 0], sizes = [1, 128], strides = [1, 1]} : vector<1x512xf32> to vector<1x128xf32>
    %281 = arith.negf %280 : vector<1x128xf32>
    %282 = math.exp %281 : vector<1x128xf32>
    %cst_104 = arith.constant 1.000000e+00 : f32
    %283 = vector.broadcast %cst_104 : f32 to vector<1x128xf32>
    %284 = arith.addf %283, %282 : vector<1x128xf32>
    %285 = arith.divf %283, %284 : vector<1x128xf32>
    %286 = vector.extract_strided_slice %279 {offsets = [0, 128], sizes = [1, 128], strides = [1, 1]} : vector<1x512xf32> to vector<1x128xf32>
    %287 = arith.negf %286 : vector<1x128xf32>
    %288 = math.exp %287 : vector<1x128xf32>
    %cst_105 = arith.constant 1.000000e+00 : f32
    %289 = vector.broadcast %cst_105 : f32 to vector<1x128xf32>
    %290 = arith.addf %289, %288 : vector<1x128xf32>
    %291 = arith.divf %289, %290 : vector<1x128xf32>
    %292 = vector.extract_strided_slice %279 {offsets = [0, 256], sizes = [1, 128], strides = [1, 1]} : vector<1x512xf32> to vector<1x128xf32>
    %293 = math.tanh %292 : vector<1x128xf32>
    %294 = vector.extract_strided_slice %279 {offsets = [0, 384], sizes = [1, 128], strides = [1, 1]} : vector<1x512xf32> to vector<1x128xf32>
    %295 = arith.negf %294 : vector<1x128xf32>
    %296 = math.exp %295 : vector<1x128xf32>
    %cst_106 = arith.constant 1.000000e+00 : f32
    %297 = vector.broadcast %cst_106 : f32 to vector<1x128xf32>
    %298 = arith.addf %297, %296 : vector<1x128xf32>
    %299 = arith.divf %297, %298 : vector<1x128xf32>
    %300 = arith.mulf %291, %236 : vector<1x128xf32>
    %301 = arith.mulf %285, %293 : vector<1x128xf32>
    %302 = arith.addf %300, %301 : vector<1x128xf32>
    %303 = math.tanh %302 : vector<1x128xf32>
    %304 = arith.mulf %299, %303 : vector<1x128xf32>
    %c4_107 = arith.constant 4 : index
    %c0_108 = arith.constant 0 : index
    %305 = vector.load %arg21[%c4_107, %c0_108] : memref<8x128xf32, #tpu.memory_space<vmem>>, vector<1x128xf32>
    tpu.vector_store %arg21[%c4_107, %c0_108], %304 {strides = array<i32>} : memref<8x128xf32, #tpu.memory_space<vmem>>, vector<1x128xf32>,
    %306 = vector.extract_strided_slice %304 {offsets = [0, 0], sizes = [1, 32], strides = [1, 1]} : vector<1x128xf32> to vector<1x32xf32>
    %c0_109 = arith.constant 0 : index
    %c0_110 = arith.constant 0 : index
    %307 = vector.load %arg5[%c0_109, %c0_110] : memref<32x512xf32, #tpu.memory_space<vmem>>, vector<32x512xf32>
    %cst_111 = arith.constant dense<0.000000e+00> : vector<1x512xf32>
    %308 = tpu.matmul %306, %307, %cst_111 {dimension_numbers = #tpu.dot_dimension_numbers<[1], [0], [0], [1], [0, 0, 1, 1], [], []>} : vector<1x32xf32>, vector<32x512xf32>, vector<1x512xf32> -> vector<1x512xf32>
    %309 = vector.extract_strided_slice %273 {offsets = [0, 0], sizes = [1, 32], strides = [1, 1]} : vector<1x128xf32> to vector<1x32xf32>
    %c0_112 = arith.constant 0 : index
    %c0_113 = arith.constant 0 : index
    %310 = vector.load %arg6[%c0_112, %c0_113] : memref<32x512xf32, #tpu.memory_space<vmem>>, vector<32x512xf32>
    %cst_114 = arith.constant dense<0.000000e+00> : vector<1x512xf32>
    %311 = tpu.matmul %309, %310, %cst_114 {dimension_numbers = #tpu.dot_dimension_numbers<[1], [0], [0], [1], [0, 0, 1, 1], [], []>} : vector<1x32xf32>, vector<32x512xf32>, vector<1x512xf32> -> vector<1x512xf32>
    %312 = arith.addf %308, %311 : vector<1x512xf32>
    %c0_115 = arith.constant 0 : index
    %c0_116 = arith.constant 0 : index
    %313 = vector.load %arg7[%c0_115, %c0_116] : memref<1x512xf32, #tpu.memory_space<vmem>>, vector<1x512xf32>
    %314 = arith.addf %312, %313 : vector<1x512xf32>
    %315 = vector.extract_strided_slice %314 {offsets = [0, 0], sizes = [1, 128], strides = [1, 1]} : vector<1x512xf32> to vector<1x128xf32>
    %316 = arith.negf %315 : vector<1x128xf32>
    %317 = math.exp %316 : vector<1x128xf32>
    %cst_117 = arith.constant 1.000000e+00 : f32
    %318 = vector.broadcast %cst_117 : f32 to vector<1x128xf32>
    %319 = arith.addf %318, %317 : vector<1x128xf32>
    %320 = arith.divf %318, %319 : vector<1x128xf32>
    %321 = vector.extract_strided_slice %314 {offsets = [0, 128], sizes = [1, 128], strides = [1, 1]} : vector<1x512xf32> to vector<1x128xf32>
    %322 = arith.negf %321 : vector<1x128xf32>
    %323 = math.exp %322 : vector<1x128xf32>
    %cst_118 = arith.constant 1.000000e+00 : f32
    %324 = vector.broadcast %cst_118 : f32 to vector<1x128xf32>
    %325 = arith.addf %324, %323 : vector<1x128xf32>
    %326 = arith.divf %324, %325 : vector<1x128xf32>
    %327 = vector.extract_strided_slice %314 {offsets = [0, 256], sizes = [1, 128], strides = [1, 1]} : vector<1x512xf32> to vector<1x128xf32>
    %328 = math.tanh %327 : vector<1x128xf32>
    %329 = vector.extract_strided_slice %314 {offsets = [0, 384], sizes = [1, 128], strides = [1, 1]} : vector<1x512xf32> to vector<1x128xf32>
    %330 = arith.negf %329 : vector<1x128xf32>
    %331 = math.exp %330 : vector<1x128xf32>
    %cst_119 = arith.constant 1.000000e+00 : f32
    %332 = vector.broadcast %cst_119 : f32 to vector<1x128xf32>
    %333 = arith.addf %332, %331 : vector<1x128xf32>
    %334 = arith.divf %332, %333 : vector<1x128xf32>
    %335 = arith.mulf %326, %271 : vector<1x128xf32>
    %336 = arith.mulf %320, %328 : vector<1x128xf32>
    %337 = arith.addf %335, %336 : vector<1x128xf32>
    %338 = math.tanh %337 : vector<1x128xf32>
    %339 = arith.mulf %334, %338 : vector<1x128xf32>
    %c4_120 = arith.constant 4 : index
    %c0_121 = arith.constant 0 : index
    %340 = vector.load %arg22[%c4_120, %c0_121] : memref<8x128xf32, #tpu.memory_space<vmem>>, vector<1x128xf32>
    tpu.vector_store %arg22[%c4_120, %c0_121], %339 {strides = array<i32>} : memref<8x128xf32, #tpu.memory_space<vmem>>, vector<1x128xf32>,
    %c5 = arith.constant 5 : index
    %c0_122 = arith.constant 0 : index
    %341 = vector.load %arg25[%c5, %c0_122] : memref<8x512xf32, #tpu.memory_space<vmem>>, vector<1x512xf32>
    %342 = vector.extract_strided_slice %304 {offsets = [0, 0], sizes = [1, 32], strides = [1, 1]} : vector<1x128xf32> to vector<1x32xf32>
    %c0_123 = arith.constant 0 : index
    %c0_124 = arith.constant 0 : index
    %343 = vector.load %arg3[%c0_123, %c0_124] : memref<32x512xf32, #tpu.memory_space<vmem>>, vector<32x512xf32>
    %cst_125 = arith.constant dense<0.000000e+00> : vector<1x512xf32>
    %344 = tpu.matmul %342, %343, %cst_125 {dimension_numbers = #tpu.dot_dimension_numbers<[1], [0], [0], [1], [0, 0, 1, 1], [], []>} : vector<1x32xf32>, vector<32x512xf32>, vector<1x512xf32> -> vector<1x512xf32>
    %345 = arith.addf %341, %344 : vector<1x512xf32>
    %346 = vector.extract_strided_slice %345 {offsets = [0, 0], sizes = [1, 128], strides = [1, 1]} : vector<1x512xf32> to vector<1x128xf32>
    %347 = arith.negf %346 : vector<1x128xf32>
    %348 = math.exp %347 : vector<1x128xf32>
    %cst_126 = arith.constant 1.000000e+00 : f32
    %349 = vector.broadcast %cst_126 : f32 to vector<1x128xf32>
    %350 = arith.addf %349, %348 : vector<1x128xf32>
    %351 = arith.divf %349, %350 : vector<1x128xf32>
    %352 = vector.extract_strided_slice %345 {offsets = [0, 128], sizes = [1, 128], strides = [1, 1]} : vector<1x512xf32> to vector<1x128xf32>
    %353 = arith.negf %352 : vector<1x128xf32>
    %354 = math.exp %353 : vector<1x128xf32>
    %cst_127 = arith.constant 1.000000e+00 : f32
    %355 = vector.broadcast %cst_127 : f32 to vector<1x128xf32>
    %356 = arith.addf %355, %354 : vector<1x128xf32>
    %357 = arith.divf %355, %356 : vector<1x128xf32>
    %358 = vector.extract_strided_slice %345 {offsets = [0, 256], sizes = [1, 128], strides = [1, 1]} : vector<1x512xf32> to vector<1x128xf32>
    %359 = math.tanh %358 : vector<1x128xf32>
    %360 = vector.extract_strided_slice %345 {offsets = [0, 384], sizes = [1, 128], strides = [1, 1]} : vector<1x512xf32> to vector<1x128xf32>
    %361 = arith.negf %360 : vector<1x128xf32>
    %362 = math.exp %361 : vector<1x128xf32>
    %cst_128 = arith.constant 1.000000e+00 : f32
    %363 = vector.broadcast %cst_128 : f32 to vector<1x128xf32>
    %364 = arith.addf %363, %362 : vector<1x128xf32>
    %365 = arith.divf %363, %364 : vector<1x128xf32>
    %366 = arith.mulf %357, %302 : vector<1x128xf32>
    %367 = arith.mulf %351, %359 : vector<1x128xf32>
    %368 = arith.addf %366, %367 : vector<1x128xf32>
    %369 = math.tanh %368 : vector<1x128xf32>
    %370 = arith.mulf %365, %369 : vector<1x128xf32>
    %c5_129 = arith.constant 5 : index
    %c0_130 = arith.constant 0 : index
    %371 = vector.load %arg21[%c5_129, %c0_130] : memref<8x128xf32, #tpu.memory_space<vmem>>, vector<1x128xf32>
    tpu.vector_store %arg21[%c5_129, %c0_130], %370 {strides = array<i32>} : memref<8x128xf32, #tpu.memory_space<vmem>>, vector<1x128xf32>,
    %372 = vector.extract_strided_slice %370 {offsets = [0, 0], sizes = [1, 32], strides = [1, 1]} : vector<1x128xf32> to vector<1x32xf32>
    %c0_131 = arith.constant 0 : index
    %c0_132 = arith.constant 0 : index
    %373 = vector.load %arg5[%c0_131, %c0_132] : memref<32x512xf32, #tpu.memory_space<vmem>>, vector<32x512xf32>
    %cst_133 = arith.constant dense<0.000000e+00> : vector<1x512xf32>
    %374 = tpu.matmul %372, %373, %cst_133 {dimension_numbers = #tpu.dot_dimension_numbers<[1], [0], [0], [1], [0, 0, 1, 1], [], []>} : vector<1x32xf32>, vector<32x512xf32>, vector<1x512xf32> -> vector<1x512xf32>
    %375 = vector.extract_strided_slice %339 {offsets = [0, 0], sizes = [1, 32], strides = [1, 1]} : vector<1x128xf32> to vector<1x32xf32>
    %c0_134 = arith.constant 0 : index
    %c0_135 = arith.constant 0 : index
    %376 = vector.load %arg6[%c0_134, %c0_135] : memref<32x512xf32, #tpu.memory_space<vmem>>, vector<32x512xf32>
    %cst_136 = arith.constant dense<0.000000e+00> : vector<1x512xf32>
    %377 = tpu.matmul %375, %376, %cst_136 {dimension_numbers = #tpu.dot_dimension_numbers<[1], [0], [0], [1], [0, 0, 1, 1], [], []>} : vector<1x32xf32>, vector<32x512xf32>, vector<1x512xf32> -> vector<1x512xf32>
    %378 = arith.addf %374, %377 : vector<1x512xf32>
    %c0_137 = arith.constant 0 : index
    %c0_138 = arith.constant 0 : index
    %379 = vector.load %arg7[%c0_137, %c0_138] : memref<1x512xf32, #tpu.memory_space<vmem>>, vector<1x512xf32>
    %380 = arith.addf %378, %379 : vector<1x512xf32>
    %381 = vector.extract_strided_slice %380 {offsets = [0, 0], sizes = [1, 128], strides = [1, 1]} : vector<1x512xf32> to vector<1x128xf32>
    %382 = arith.negf %381 : vector<1x128xf32>
    %383 = math.exp %382 : vector<1x128xf32>
    %cst_139 = arith.constant 1.000000e+00 : f32
    %384 = vector.broadcast %cst_139 : f32 to vector<1x128xf32>
    %385 = arith.addf %384, %383 : vector<1x128xf32>
    %386 = arith.divf %384, %385 : vector<1x128xf32>
    %387 = vector.extract_strided_slice %380 {offsets = [0, 128], sizes = [1, 128], strides = [1, 1]} : vector<1x512xf32> to vector<1x128xf32>
    %388 = arith.negf %387 : vector<1x128xf32>
    %389 = math.exp %388 : vector<1x128xf32>
    %cst_140 = arith.constant 1.000000e+00 : f32
    %390 = vector.broadcast %cst_140 : f32 to vector<1x128xf32>
    %391 = arith.addf %390, %389 : vector<1x128xf32>
    %392 = arith.divf %390, %391 : vector<1x128xf32>
    %393 = vector.extract_strided_slice %380 {offsets = [0, 256], sizes = [1, 128], strides = [1, 1]} : vector<1x512xf32> to vector<1x128xf32>
    %394 = math.tanh %393 : vector<1x128xf32>
    %395 = vector.extract_strided_slice %380 {offsets = [0, 384], sizes = [1, 128], strides = [1, 1]} : vector<1x512xf32> to vector<1x128xf32>
    %396 = arith.negf %395 : vector<1x128xf32>
    %397 = math.exp %396 : vector<1x128xf32>
    %cst_141 = arith.constant 1.000000e+00 : f32
    %398 = vector.broadcast %cst_141 : f32 to vector<1x128xf32>
    %399 = arith.addf %398, %397 : vector<1x128xf32>
    %400 = arith.divf %398, %399 : vector<1x128xf32>
    %401 = arith.mulf %392, %337 : vector<1x128xf32>
    %402 = arith.mulf %386, %394 : vector<1x128xf32>
    %403 = arith.addf %401, %402 : vector<1x128xf32>
    %404 = math.tanh %403 : vector<1x128xf32>
    %405 = arith.mulf %400, %404 : vector<1x128xf32>
    %c5_142 = arith.constant 5 : index
    %c0_143 = arith.constant 0 : index
    %406 = vector.load %arg22[%c5_142, %c0_143] : memref<8x128xf32, #tpu.memory_space<vmem>>, vector<1x128xf32>
    tpu.vector_store %arg22[%c5_142, %c0_143], %405 {strides = array<i32>} : memref<8x128xf32, #tpu.memory_space<vmem>>, vector<1x128xf32>,
    %c6 = arith.constant 6 : index
    %c0_144 = arith.constant 0 : index
    %407 = vector.load %arg25[%c6, %c0_144] : memref<8x512xf32, #tpu.memory_space<vmem>>, vector<1x512xf32>
    %408 = vector.extract_strided_slice %370 {offsets = [0, 0], sizes = [1, 32], strides = [1, 1]} : vector<1x128xf32> to vector<1x32xf32>
    %c0_145 = arith.constant 0 : index
    %c0_146 = arith.constant 0 : index
    %409 = vector.load %arg3[%c0_145, %c0_146] : memref<32x512xf32, #tpu.memory_space<vmem>>, vector<32x512xf32>
    %cst_147 = arith.constant dense<0.000000e+00> : vector<1x512xf32>
    %410 = tpu.matmul %408, %409, %cst_147 {dimension_numbers = #tpu.dot_dimension_numbers<[1], [0], [0], [1], [0, 0, 1, 1], [], []>} : vector<1x32xf32>, vector<32x512xf32>, vector<1x512xf32> -> vector<1x512xf32>
    %411 = arith.addf %407, %410 : vector<1x512xf32>
    %412 = vector.extract_strided_slice %411 {offsets = [0, 0], sizes = [1, 128], strides = [1, 1]} : vector<1x512xf32> to vector<1x128xf32>
    %413 = arith.negf %412 : vector<1x128xf32>
    %414 = math.exp %413 : vector<1x128xf32>
    %cst_148 = arith.constant 1.000000e+00 : f32
    %415 = vector.broadcast %cst_148 : f32 to vector<1x128xf32>
    %416 = arith.addf %415, %414 : vector<1x128xf32>
    %417 = arith.divf %415, %416 : vector<1x128xf32>
    %418 = vector.extract_strided_slice %411 {offsets = [0, 128], sizes = [1, 128], strides = [1, 1]} : vector<1x512xf32> to vector<1x128xf32>
    %419 = arith.negf %418 : vector<1x128xf32>
    %420 = math.exp %419 : vector<1x128xf32>
    %cst_149 = arith.constant 1.000000e+00 : f32
    %421 = vector.broadcast %cst_149 : f32 to vector<1x128xf32>
    %422 = arith.addf %421, %420 : vector<1x128xf32>
    %423 = arith.divf %421, %422 : vector<1x128xf32>
    %424 = vector.extract_strided_slice %411 {offsets = [0, 256], sizes = [1, 128], strides = [1, 1]} : vector<1x512xf32> to vector<1x128xf32>
    %425 = math.tanh %424 : vector<1x128xf32>
    %426 = vector.extract_strided_slice %411 {offsets = [0, 384], sizes = [1, 128], strides = [1, 1]} : vector<1x512xf32> to vector<1x128xf32>
    %427 = arith.negf %426 : vector<1x128xf32>
    %428 = math.exp %427 : vector<1x128xf32>
    %cst_150 = arith.constant 1.000000e+00 : f32
    %429 = vector.broadcast %cst_150 : f32 to vector<1x128xf32>
    %430 = arith.addf %429, %428 : vector<1x128xf32>
    %431 = arith.divf %429, %430 : vector<1x128xf32>
    %432 = arith.mulf %423, %368 : vector<1x128xf32>
    %433 = arith.mulf %417, %425 : vector<1x128xf32>
    %434 = arith.addf %432, %433 : vector<1x128xf32>
    %435 = math.tanh %434 : vector<1x128xf32>
    %436 = arith.mulf %431, %435 : vector<1x128xf32>
    %c6_151 = arith.constant 6 : index
    %c0_152 = arith.constant 0 : index
    %437 = vector.load %arg21[%c6_151, %c0_152] : memref<8x128xf32, #tpu.memory_space<vmem>>, vector<1x128xf32>
    tpu.vector_store %arg21[%c6_151, %c0_152], %436 {strides = array<i32>} : memref<8x128xf32, #tpu.memory_space<vmem>>, vector<1x128xf32>,
    %438 = vector.extract_strided_slice %436 {offsets = [0, 0], sizes = [1, 32], strides = [1, 1]} : vector<1x128xf32> to vector<1x32xf32>
    %c0_153 = arith.constant 0 : index
    %c0_154 = arith.constant 0 : index
    %439 = vector.load %arg5[%c0_153, %c0_154] : memref<32x512xf32, #tpu.memory_space<vmem>>, vector<32x512xf32>
    %cst_155 = arith.constant dense<0.000000e+00> : vector<1x512xf32>
    %440 = tpu.matmul %438, %439, %cst_155 {dimension_numbers = #tpu.dot_dimension_numbers<[1], [0], [0], [1], [0, 0, 1, 1], [], []>} : vector<1x32xf32>, vector<32x512xf32>, vector<1x512xf32> -> vector<1x512xf32>
    %441 = vector.extract_strided_slice %405 {offsets = [0, 0], sizes = [1, 32], strides = [1, 1]} : vector<1x128xf32> to vector<1x32xf32>
    %c0_156 = arith.constant 0 : index
    %c0_157 = arith.constant 0 : index
    %442 = vector.load %arg6[%c0_156, %c0_157] : memref<32x512xf32, #tpu.memory_space<vmem>>, vector<32x512xf32>
    %cst_158 = arith.constant dense<0.000000e+00> : vector<1x512xf32>
    %443 = tpu.matmul %441, %442, %cst_158 {dimension_numbers = #tpu.dot_dimension_numbers<[1], [0], [0], [1], [0, 0, 1, 1], [], []>} : vector<1x32xf32>, vector<32x512xf32>, vector<1x512xf32> -> vector<1x512xf32>
    %444 = arith.addf %440, %443 : vector<1x512xf32>
    %c0_159 = arith.constant 0 : index
    %c0_160 = arith.constant 0 : index
    %445 = vector.load %arg7[%c0_159, %c0_160] : memref<1x512xf32, #tpu.memory_space<vmem>>, vector<1x512xf32>
    %446 = arith.addf %444, %445 : vector<1x512xf32>
    %447 = vector.extract_strided_slice %446 {offsets = [0, 0], sizes = [1, 128], strides = [1, 1]} : vector<1x512xf32> to vector<1x128xf32>
    %448 = arith.negf %447 : vector<1x128xf32>
    %449 = math.exp %448 : vector<1x128xf32>
    %cst_161 = arith.constant 1.000000e+00 : f32
    %450 = vector.broadcast %cst_161 : f32 to vector<1x128xf32>
    %451 = arith.addf %450, %449 : vector<1x128xf32>
    %452 = arith.divf %450, %451 : vector<1x128xf32>
    %453 = vector.extract_strided_slice %446 {offsets = [0, 128], sizes = [1, 128], strides = [1, 1]} : vector<1x512xf32> to vector<1x128xf32>
    %454 = arith.negf %453 : vector<1x128xf32>
    %455 = math.exp %454 : vector<1x128xf32>
    %cst_162 = arith.constant 1.000000e+00 : f32
    %456 = vector.broadcast %cst_162 : f32 to vector<1x128xf32>
    %457 = arith.addf %456, %455 : vector<1x128xf32>
    %458 = arith.divf %456, %457 : vector<1x128xf32>
    %459 = vector.extract_strided_slice %446 {offsets = [0, 256], sizes = [1, 128], strides = [1, 1]} : vector<1x512xf32> to vector<1x128xf32>
    %460 = math.tanh %459 : vector<1x128xf32>
    %461 = vector.extract_strided_slice %446 {offsets = [0, 384], sizes = [1, 128], strides = [1, 1]} : vector<1x512xf32> to vector<1x128xf32>
    %462 = arith.negf %461 : vector<1x128xf32>
    %463 = math.exp %462 : vector<1x128xf32>
    %cst_163 = arith.constant 1.000000e+00 : f32
    %464 = vector.broadcast %cst_163 : f32 to vector<1x128xf32>
    %465 = arith.addf %464, %463 : vector<1x128xf32>
    %466 = arith.divf %464, %465 : vector<1x128xf32>
    %467 = arith.mulf %458, %403 : vector<1x128xf32>
    %468 = arith.mulf %452, %460 : vector<1x128xf32>
    %469 = arith.addf %467, %468 : vector<1x128xf32>
    %470 = math.tanh %469 : vector<1x128xf32>
    %471 = arith.mulf %466, %470 : vector<1x128xf32>
    %c6_164 = arith.constant 6 : index
    %c0_165 = arith.constant 0 : index
    %472 = vector.load %arg22[%c6_164, %c0_165] : memref<8x128xf32, #tpu.memory_space<vmem>>, vector<1x128xf32>
    tpu.vector_store %arg22[%c6_164, %c0_165], %471 {strides = array<i32>} : memref<8x128xf32, #tpu.memory_space<vmem>>, vector<1x128xf32>,
    %c7 = arith.constant 7 : index
    %c0_166 = arith.constant 0 : index
    %473 = vector.load %arg25[%c7, %c0_166] : memref<8x512xf32, #tpu.memory_space<vmem>>, vector<1x512xf32>
    %474 = vector.extract_strided_slice %436 {offsets = [0, 0], sizes = [1, 32], strides = [1, 1]} : vector<1x128xf32> to vector<1x32xf32>
    %c0_167 = arith.constant 0 : index
    %c0_168 = arith.constant 0 : index
    %475 = vector.load %arg3[%c0_167, %c0_168] : memref<32x512xf32, #tpu.memory_space<vmem>>, vector<32x512xf32>
    %cst_169 = arith.constant dense<0.000000e+00> : vector<1x512xf32>
    %476 = tpu.matmul %474, %475, %cst_169 {dimension_numbers = #tpu.dot_dimension_numbers<[1], [0], [0], [1], [0, 0, 1, 1], [], []>} : vector<1x32xf32>, vector<32x512xf32>, vector<1x512xf32> -> vector<1x512xf32>
    %477 = arith.addf %473, %476 : vector<1x512xf32>
    %478 = vector.extract_strided_slice %477 {offsets = [0, 0], sizes = [1, 128], strides = [1, 1]} : vector<1x512xf32> to vector<1x128xf32>
    %479 = arith.negf %478 : vector<1x128xf32>
    %480 = math.exp %479 : vector<1x128xf32>
    %cst_170 = arith.constant 1.000000e+00 : f32
    %481 = vector.broadcast %cst_170 : f32 to vector<1x128xf32>
    %482 = arith.addf %481, %480 : vector<1x128xf32>
    %483 = arith.divf %481, %482 : vector<1x128xf32>
    %484 = vector.extract_strided_slice %477 {offsets = [0, 128], sizes = [1, 128], strides = [1, 1]} : vector<1x512xf32> to vector<1x128xf32>
    %485 = arith.negf %484 : vector<1x128xf32>
    %486 = math.exp %485 : vector<1x128xf32>
    %cst_171 = arith.constant 1.000000e+00 : f32
    %487 = vector.broadcast %cst_171 : f32 to vector<1x128xf32>
    %488 = arith.addf %487, %486 : vector<1x128xf32>
    %489 = arith.divf %487, %488 : vector<1x128xf32>
    %490 = vector.extract_strided_slice %477 {offsets = [0, 256], sizes = [1, 128], strides = [1, 1]} : vector<1x512xf32> to vector<1x128xf32>
    %491 = math.tanh %490 : vector<1x128xf32>
    %492 = vector.extract_strided_slice %477 {offsets = [0, 384], sizes = [1, 128], strides = [1, 1]} : vector<1x512xf32> to vector<1x128xf32>
    %493 = arith.negf %492 : vector<1x128xf32>
    %494 = math.exp %493 : vector<1x128xf32>
    %cst_172 = arith.constant 1.000000e+00 : f32
    %495 = vector.broadcast %cst_172 : f32 to vector<1x128xf32>
    %496 = arith.addf %495, %494 : vector<1x128xf32>
    %497 = arith.divf %495, %496 : vector<1x128xf32>
    %498 = arith.mulf %489, %434 : vector<1x128xf32>
    %499 = arith.mulf %483, %491 : vector<1x128xf32>
    %500 = arith.addf %498, %499 : vector<1x128xf32>
    %501 = math.tanh %500 : vector<1x128xf32>
    %502 = arith.mulf %497, %501 : vector<1x128xf32>
    %c7_173 = arith.constant 7 : index
    %c0_174 = arith.constant 0 : index
    %503 = vector.load %arg21[%c7_173, %c0_174] : memref<8x128xf32, #tpu.memory_space<vmem>>, vector<1x128xf32>
    tpu.vector_store %arg21[%c7_173, %c0_174], %502 {strides = array<i32>} : memref<8x128xf32, #tpu.memory_space<vmem>>, vector<1x128xf32>,
    %504 = vector.extract_strided_slice %502 {offsets = [0, 0], sizes = [1, 32], strides = [1, 1]} : vector<1x128xf32> to vector<1x32xf32>
    %c0_175 = arith.constant 0 : index
    %c0_176 = arith.constant 0 : index
    %505 = vector.load %arg5[%c0_175, %c0_176] : memref<32x512xf32, #tpu.memory_space<vmem>>, vector<32x512xf32>
    %cst_177 = arith.constant dense<0.000000e+00> : vector<1x512xf32>
    %506 = tpu.matmul %504, %505, %cst_177 {dimension_numbers = #tpu.dot_dimension_numbers<[1], [0], [0], [1], [0, 0, 1, 1], [], []>} : vector<1x32xf32>, vector<32x512xf32>, vector<1x512xf32> -> vector<1x512xf32>
    %507 = vector.extract_strided_slice %471 {offsets = [0, 0], sizes = [1, 32], strides = [1, 1]} : vector<1x128xf32> to vector<1x32xf32>
    %c0_178 = arith.constant 0 : index
    %c0_179 = arith.constant 0 : index
    %508 = vector.load %arg6[%c0_178, %c0_179] : memref<32x512xf32, #tpu.memory_space<vmem>>, vector<32x512xf32>
    %cst_180 = arith.constant dense<0.000000e+00> : vector<1x512xf32>
    %509 = tpu.matmul %507, %508, %cst_180 {dimension_numbers = #tpu.dot_dimension_numbers<[1], [0], [0], [1], [0, 0, 1, 1], [], []>} : vector<1x32xf32>, vector<32x512xf32>, vector<1x512xf32> -> vector<1x512xf32>
    %510 = arith.addf %506, %509 : vector<1x512xf32>
    %c0_181 = arith.constant 0 : index
    %c0_182 = arith.constant 0 : index
    %511 = vector.load %arg7[%c0_181, %c0_182] : memref<1x512xf32, #tpu.memory_space<vmem>>, vector<1x512xf32>
    %512 = arith.addf %510, %511 : vector<1x512xf32>
    %513 = vector.extract_strided_slice %512 {offsets = [0, 0], sizes = [1, 128], strides = [1, 1]} : vector<1x512xf32> to vector<1x128xf32>
    %514 = arith.negf %513 : vector<1x128xf32>
    %515 = math.exp %514 : vector<1x128xf32>
    %cst_183 = arith.constant 1.000000e+00 : f32
    %516 = vector.broadcast %cst_183 : f32 to vector<1x128xf32>
    %517 = arith.addf %516, %515 : vector<1x128xf32>
    %518 = arith.divf %516, %517 : vector<1x128xf32>
    %519 = vector.extract_strided_slice %512 {offsets = [0, 128], sizes = [1, 128], strides = [1, 1]} : vector<1x512xf32> to vector<1x128xf32>
    %520 = arith.negf %519 : vector<1x128xf32>
    %521 = math.exp %520 : vector<1x128xf32>
    %cst_184 = arith.constant 1.000000e+00 : f32
    %522 = vector.broadcast %cst_184 : f32 to vector<1x128xf32>
    %523 = arith.addf %522, %521 : vector<1x128xf32>
    %524 = arith.divf %522, %523 : vector<1x128xf32>
    %525 = vector.extract_strided_slice %512 {offsets = [0, 256], sizes = [1, 128], strides = [1, 1]} : vector<1x512xf32> to vector<1x128xf32>
    %526 = math.tanh %525 : vector<1x128xf32>
    %527 = vector.extract_strided_slice %512 {offsets = [0, 384], sizes = [1, 128], strides = [1, 1]} : vector<1x512xf32> to vector<1x128xf32>
    %528 = arith.negf %527 : vector<1x128xf32>
    %529 = math.exp %528 : vector<1x128xf32>
    %cst_185 = arith.constant 1.000000e+00 : f32
    %530 = vector.broadcast %cst_185 : f32 to vector<1x128xf32>
    %531 = arith.addf %530, %529 : vector<1x128xf32>
    %532 = arith.divf %530, %531 : vector<1x128xf32>
    %533 = arith.mulf %524, %469 : vector<1x128xf32>
    %534 = arith.mulf %518, %526 : vector<1x128xf32>
    %535 = arith.addf %533, %534 : vector<1x128xf32>
    %536 = math.tanh %535 : vector<1x128xf32>
    %537 = arith.mulf %532, %536 : vector<1x128xf32>
    %c7_186 = arith.constant 7 : index
    %c0_187 = arith.constant 0 : index
    %538 = vector.load %arg22[%c7_186, %c0_187] : memref<8x128xf32, #tpu.memory_space<vmem>>, vector<1x128xf32>
    tpu.vector_store %arg22[%c7_186, %c0_187], %537 {strides = array<i32>} : memref<8x128xf32, #tpu.memory_space<vmem>>, vector<1x128xf32>,
    %c0_188 = arith.constant 0 : index
    %c0_189 = arith.constant 0 : index
    %539 = vector.load %arg21[%c0_188, %c0_189] : memref<8x128xf32, #tpu.memory_space<vmem>>, vector<8x128xf32>
    %540 = vector.extract_strided_slice %539 {offsets = [0, 0], sizes = [8, 32], strides = [1, 1]} : vector<8x128xf32> to vector<8x32xf32>
    %c0_190 = arith.constant 0 : index
    %c0_191 = arith.constant 0 : index
    %541 = vector.load %arg8[%c0_190, %c0_191] : memref<32x512xf32, #tpu.memory_space<vmem>>, vector<32x512xf32>
    %cst_192 = arith.constant dense<0.000000e+00> : vector<8x512xf32>
    %542 = tpu.matmul %540, %541, %cst_192 {dimension_numbers = #tpu.dot_dimension_numbers<[1], [0], [0], [1], [0, 0, 1, 1], [], []>} : vector<8x32xf32>, vector<32x512xf32>, vector<8x512xf32> -> vector<8x512xf32>
    %c0_193 = arith.constant 0 : index
    %c0_194 = arith.constant 0 : index
    %543 = vector.load %arg10[%c0_193, %c0_194] : memref<1x512xf32, #tpu.memory_space<vmem>>, vector<1x512xf32>
    %544 = vector.broadcast %543 : vector<1x512xf32> to vector<8x512xf32>
    %545 = arith.addf %542, %544 : vector<8x512xf32>
    %c0_195 = arith.constant 0 : index
    %c0_196 = arith.constant 0 : index
    %546 = vector.load %arg26[%c0_195, %c0_196] : memref<8x512xf32, #tpu.memory_space<vmem>>, vector<8x512xf32>
    tpu.vector_store %arg26[%c0_195, %c0_196], %545 {strides = array<i32>} : memref<8x512xf32, #tpu.memory_space<vmem>>, vector<8x512xf32>,
    %c0_197 = arith.constant 0 : index
    %c0_198 = arith.constant 0 : index
    %547 = vector.load %arg1[%c0_197, %c0_198] : memref<8x32xf32, #tpu.memory_space<vmem>>, vector<8x32xf32>
    %c0_199 = arith.constant 0 : index
    %c0_200 = arith.constant 0 : index
    %548 = vector.load %arg14[%c0_199, %c0_200] : memref<32x512xf32, #tpu.memory_space<vmem>>, vector<32x512xf32>
    %cst_201 = arith.constant dense<0.000000e+00> : vector<8x512xf32>
    %549 = tpu.matmul %547, %548, %cst_201 {dimension_numbers = #tpu.dot_dimension_numbers<[1], [0], [0], [1], [0, 0, 1, 1], [], []>} : vector<8x32xf32>, vector<32x512xf32>, vector<8x512xf32> -> vector<8x512xf32>
    %c0_202 = arith.constant 0 : index
    %c0_203 = arith.constant 0 : index
    %550 = vector.load %arg16[%c0_202, %c0_203] : memref<1x512xf32, #tpu.memory_space<vmem>>, vector<1x512xf32>
    %551 = vector.broadcast %550 : vector<1x512xf32> to vector<8x512xf32>
    %552 = arith.addf %549, %551 : vector<8x512xf32>
    %c0_204 = arith.constant 0 : index
    %c0_205 = arith.constant 0 : index
    %553 = vector.load %arg27[%c0_204, %c0_205] : memref<8x512xf32, #tpu.memory_space<vmem>>, vector<8x512xf32>
    tpu.vector_store %arg27[%c0_204, %c0_205], %552 {strides = array<i32>} : memref<8x512xf32, #tpu.memory_space<vmem>>, vector<8x512xf32>,
    %cst_206 = arith.constant 0.000000e+00 : f32
    %554 = vector.broadcast %cst_206 : f32 to vector<1x128xf32>
    %cst_207 = arith.constant 0.000000e+00 : f32
    %555 = vector.broadcast %cst_207 : f32 to vector<1x128xf32>
    %c7_208 = arith.constant 7 : index
    %c0_209 = arith.constant 0 : index
    %556 = vector.load %arg26[%c7_208, %c0_209] : memref<8x512xf32, #tpu.memory_space<vmem>>, vector<1x512xf32>
    %557 = vector.extract_strided_slice %554 {offsets = [0, 0], sizes = [1, 32], strides = [1, 1]} : vector<1x128xf32> to vector<1x32xf32>
    %c0_210 = arith.constant 0 : index
    %c0_211 = arith.constant 0 : index
    %558 = vector.load %arg9[%c0_210, %c0_211] : memref<32x512xf32, #tpu.memory_space<vmem>>, vector<32x512xf32>
    %cst_212 = arith.constant dense<0.000000e+00> : vector<1x512xf32>
    %559 = tpu.matmul %557, %558, %cst_212 {dimension_numbers = #tpu.dot_dimension_numbers<[1], [0], [0], [1], [0, 0, 1, 1], [], []>} : vector<1x32xf32>, vector<32x512xf32>, vector<1x512xf32> -> vector<1x512xf32>
    %560 = arith.addf %556, %559 : vector<1x512xf32>
    %561 = vector.extract_strided_slice %560 {offsets = [0, 0], sizes = [1, 128], strides = [1, 1]} : vector<1x512xf32> to vector<1x128xf32>
    %562 = arith.negf %561 : vector<1x128xf32>
    %563 = math.exp %562 : vector<1x128xf32>
    %cst_213 = arith.constant 1.000000e+00 : f32
    %564 = vector.broadcast %cst_213 : f32 to vector<1x128xf32>
    %565 = arith.addf %564, %563 : vector<1x128xf32>
    %566 = arith.divf %564, %565 : vector<1x128xf32>
    %567 = vector.extract_strided_slice %560 {offsets = [0, 128], sizes = [1, 128], strides = [1, 1]} : vector<1x512xf32> to vector<1x128xf32>
    %568 = arith.negf %567 : vector<1x128xf32>
    %569 = math.exp %568 : vector<1x128xf32>
    %cst_214 = arith.constant 1.000000e+00 : f32
    %570 = vector.broadcast %cst_214 : f32 to vector<1x128xf32>
    %571 = arith.addf %570, %569 : vector<1x128xf32>
    %572 = arith.divf %570, %571 : vector<1x128xf32>
    %573 = vector.extract_strided_slice %560 {offsets = [0, 256], sizes = [1, 128], strides = [1, 1]} : vector<1x512xf32> to vector<1x128xf32>
    %574 = math.tanh %573 : vector<1x128xf32>
    %575 = vector.extract_strided_slice %560 {offsets = [0, 384], sizes = [1, 128], strides = [1, 1]} : vector<1x512xf32> to vector<1x128xf32>
    %576 = arith.negf %575 : vector<1x128xf32>
    %577 = math.exp %576 : vector<1x128xf32>
    %cst_215 = arith.constant 1.000000e+00 : f32
    %578 = vector.broadcast %cst_215 : f32 to vector<1x128xf32>
    %579 = arith.addf %578, %577 : vector<1x128xf32>
    %580 = arith.divf %578, %579 : vector<1x128xf32>
    %581 = arith.mulf %572, %555 : vector<1x128xf32>
    %582 = arith.mulf %566, %574 : vector<1x128xf32>
    %583 = arith.addf %581, %582 : vector<1x128xf32>
    %584 = math.tanh %583 : vector<1x128xf32>
    %585 = arith.mulf %580, %584 : vector<1x128xf32>
    %c7_216 = arith.constant 7 : index
    %c0_217 = arith.constant 0 : index
    %586 = vector.load %arg23[%c7_216, %c0_217] : memref<8x128xf32, #tpu.memory_space<vmem>>, vector<1x128xf32>
    tpu.vector_store %arg23[%c7_216, %c0_217], %585 {strides = array<i32>} : memref<8x128xf32, #tpu.memory_space<vmem>>, vector<1x128xf32>,
    %c0_218 = arith.constant 0 : index
    %c0_219 = arith.constant 0 : index
    %587 = vector.load %arg27[%c0_218, %c0_219] : memref<8x512xf32, #tpu.memory_space<vmem>>, vector<1x512xf32>
    %588 = vector.extract_strided_slice %502 {offsets = [0, 0], sizes = [1, 32], strides = [1, 1]} : vector<1x128xf32> to vector<1x32xf32>
    %c0_220 = arith.constant 0 : index
    %c0_221 = arith.constant 0 : index
    %589 = vector.load %arg15[%c0_220, %c0_221] : memref<32x512xf32, #tpu.memory_space<vmem>>, vector<32x512xf32>
    %cst_222 = arith.constant dense<0.000000e+00> : vector<1x512xf32>
    %590 = tpu.matmul %588, %589, %cst_222 {dimension_numbers = #tpu.dot_dimension_numbers<[1], [0], [0], [1], [0, 0, 1, 1], [], []>} : vector<1x32xf32>, vector<32x512xf32>, vector<1x512xf32> -> vector<1x512xf32>
    %591 = arith.addf %587, %590 : vector<1x512xf32>
    %592 = vector.extract_strided_slice %591 {offsets = [0, 0], sizes = [1, 128], strides = [1, 1]} : vector<1x512xf32> to vector<1x128xf32>
    %593 = arith.negf %592 : vector<1x128xf32>
    %594 = math.exp %593 : vector<1x128xf32>
    %cst_223 = arith.constant 1.000000e+00 : f32
    %595 = vector.broadcast %cst_223 : f32 to vector<1x128xf32>
    %596 = arith.addf %595, %594 : vector<1x128xf32>
    %597 = arith.divf %595, %596 : vector<1x128xf32>
    %598 = vector.extract_strided_slice %591 {offsets = [0, 128], sizes = [1, 128], strides = [1, 1]} : vector<1x512xf32> to vector<1x128xf32>
    %599 = arith.negf %598 : vector<1x128xf32>
    %600 = math.exp %599 : vector<1x128xf32>
    %cst_224 = arith.constant 1.000000e+00 : f32
    %601 = vector.broadcast %cst_224 : f32 to vector<1x128xf32>
    %602 = arith.addf %601, %600 : vector<1x128xf32>
    %603 = arith.divf %601, %602 : vector<1x128xf32>
    %604 = vector.extract_strided_slice %591 {offsets = [0, 256], sizes = [1, 128], strides = [1, 1]} : vector<1x512xf32> to vector<1x128xf32>
    %605 = math.tanh %604 : vector<1x128xf32>
    %606 = vector.extract_strided_slice %591 {offsets = [0, 384], sizes = [1, 128], strides = [1, 1]} : vector<1x512xf32> to vector<1x128xf32>
    %607 = arith.negf %606 : vector<1x128xf32>
    %608 = math.exp %607 : vector<1x128xf32>
    %cst_225 = arith.constant 1.000000e+00 : f32
    %609 = vector.broadcast %cst_225 : f32 to vector<1x128xf32>
    %610 = arith.addf %609, %608 : vector<1x128xf32>
    %611 = arith.divf %609, %610 : vector<1x128xf32>
    %612 = arith.mulf %603, %500 : vector<1x128xf32>
    %613 = arith.mulf %597, %605 : vector<1x128xf32>
    %614 = arith.addf %612, %613 : vector<1x128xf32>
    %615 = math.tanh %614 : vector<1x128xf32>
    %616 = arith.mulf %611, %615 : vector<1x128xf32>
    %c0_226 = arith.constant 0 : index
    %c0_227 = arith.constant 0 : index
    %617 = vector.load %arg24[%c0_226, %c0_227] : memref<8x128xf32, #tpu.memory_space<vmem>>, vector<1x128xf32>
    tpu.vector_store %arg24[%c0_226, %c0_227], %616 {strides = array<i32>} : memref<8x128xf32, #tpu.memory_space<vmem>>, vector<1x128xf32>,
    %c6_228 = arith.constant 6 : index
    %c0_229 = arith.constant 0 : index
    %618 = vector.load %arg26[%c6_228, %c0_229] : memref<8x512xf32, #tpu.memory_space<vmem>>, vector<1x512xf32>
    %619 = vector.extract_strided_slice %585 {offsets = [0, 0], sizes = [1, 32], strides = [1, 1]} : vector<1x128xf32> to vector<1x32xf32>
    %c0_230 = arith.constant 0 : index
    %c0_231 = arith.constant 0 : index
    %620 = vector.load %arg9[%c0_230, %c0_231] : memref<32x512xf32, #tpu.memory_space<vmem>>, vector<32x512xf32>
    %cst_232 = arith.constant dense<0.000000e+00> : vector<1x512xf32>
    %621 = tpu.matmul %619, %620, %cst_232 {dimension_numbers = #tpu.dot_dimension_numbers<[1], [0], [0], [1], [0, 0, 1, 1], [], []>} : vector<1x32xf32>, vector<32x512xf32>, vector<1x512xf32> -> vector<1x512xf32>
    %622 = arith.addf %618, %621 : vector<1x512xf32>
    %623 = vector.extract_strided_slice %622 {offsets = [0, 0], sizes = [1, 128], strides = [1, 1]} : vector<1x512xf32> to vector<1x128xf32>
    %624 = arith.negf %623 : vector<1x128xf32>
    %625 = math.exp %624 : vector<1x128xf32>
    %cst_233 = arith.constant 1.000000e+00 : f32
    %626 = vector.broadcast %cst_233 : f32 to vector<1x128xf32>
    %627 = arith.addf %626, %625 : vector<1x128xf32>
    %628 = arith.divf %626, %627 : vector<1x128xf32>
    %629 = vector.extract_strided_slice %622 {offsets = [0, 128], sizes = [1, 128], strides = [1, 1]} : vector<1x512xf32> to vector<1x128xf32>
    %630 = arith.negf %629 : vector<1x128xf32>
    %631 = math.exp %630 : vector<1x128xf32>
    %cst_234 = arith.constant 1.000000e+00 : f32
    %632 = vector.broadcast %cst_234 : f32 to vector<1x128xf32>
    %633 = arith.addf %632, %631 : vector<1x128xf32>
    %634 = arith.divf %632, %633 : vector<1x128xf32>
    %635 = vector.extract_strided_slice %622 {offsets = [0, 256], sizes = [1, 128], strides = [1, 1]} : vector<1x512xf32> to vector<1x128xf32>
    %636 = math.tanh %635 : vector<1x128xf32>
    %637 = vector.extract_strided_slice %622 {offsets = [0, 384], sizes = [1, 128], strides = [1, 1]} : vector<1x512xf32> to vector<1x128xf32>
    %638 = arith.negf %637 : vector<1x128xf32>
    %639 = math.exp %638 : vector<1x128xf32>
    %cst_235 = arith.constant 1.000000e+00 : f32
    %640 = vector.broadcast %cst_235 : f32 to vector<1x128xf32>
    %641 = arith.addf %640, %639 : vector<1x128xf32>
    %642 = arith.divf %640, %641 : vector<1x128xf32>
    %643 = arith.mulf %634, %583 : vector<1x128xf32>
    %644 = arith.mulf %628, %636 : vector<1x128xf32>
    %645 = arith.addf %643, %644 : vector<1x128xf32>
    %646 = math.tanh %645 : vector<1x128xf32>
    %647 = arith.mulf %642, %646 : vector<1x128xf32>
    %c6_236 = arith.constant 6 : index
    %c0_237 = arith.constant 0 : index
    %648 = vector.load %arg23[%c6_236, %c0_237] : memref<8x128xf32, #tpu.memory_space<vmem>>, vector<1x128xf32>
    tpu.vector_store %arg23[%c6_236, %c0_237], %647 {strides = array<i32>} : memref<8x128xf32, #tpu.memory_space<vmem>>, vector<1x128xf32>,
    %c1_238 = arith.constant 1 : index
    %c0_239 = arith.constant 0 : index
    %649 = vector.load %arg27[%c1_238, %c0_239] : memref<8x512xf32, #tpu.memory_space<vmem>>, vector<1x512xf32>
    %650 = vector.extract_strided_slice %616 {offsets = [0, 0], sizes = [1, 32], strides = [1, 1]} : vector<1x128xf32> to vector<1x32xf32>
    %c0_240 = arith.constant 0 : index
    %c0_241 = arith.constant 0 : index
    %651 = vector.load %arg15[%c0_240, %c0_241] : memref<32x512xf32, #tpu.memory_space<vmem>>, vector<32x512xf32>
    %cst_242 = arith.constant dense<0.000000e+00> : vector<1x512xf32>
    %652 = tpu.matmul %650, %651, %cst_242 {dimension_numbers = #tpu.dot_dimension_numbers<[1], [0], [0], [1], [0, 0, 1, 1], [], []>} : vector<1x32xf32>, vector<32x512xf32>, vector<1x512xf32> -> vector<1x512xf32>
    %653 = arith.addf %649, %652 : vector<1x512xf32>
    %654 = vector.extract_strided_slice %653 {offsets = [0, 0], sizes = [1, 128], strides = [1, 1]} : vector<1x512xf32> to vector<1x128xf32>
    %655 = arith.negf %654 : vector<1x128xf32>
    %656 = math.exp %655 : vector<1x128xf32>
    %cst_243 = arith.constant 1.000000e+00 : f32
    %657 = vector.broadcast %cst_243 : f32 to vector<1x128xf32>
    %658 = arith.addf %657, %656 : vector<1x128xf32>
    %659 = arith.divf %657, %658 : vector<1x128xf32>
    %660 = vector.extract_strided_slice %653 {offsets = [0, 128], sizes = [1, 128], strides = [1, 1]} : vector<1x512xf32> to vector<1x128xf32>
    %661 = arith.negf %660 : vector<1x128xf32>
    %662 = math.exp %661 : vector<1x128xf32>
    %cst_244 = arith.constant 1.000000e+00 : f32
    %663 = vector.broadcast %cst_244 : f32 to vector<1x128xf32>
    %664 = arith.addf %663, %662 : vector<1x128xf32>
    %665 = arith.divf %663, %664 : vector<1x128xf32>
    %666 = vector.extract_strided_slice %653 {offsets = [0, 256], sizes = [1, 128], strides = [1, 1]} : vector<1x512xf32> to vector<1x128xf32>
    %667 = math.tanh %666 : vector<1x128xf32>
    %668 = vector.extract_strided_slice %653 {offsets = [0, 384], sizes = [1, 128], strides = [1, 1]} : vector<1x512xf32> to vector<1x128xf32>
    %669 = arith.negf %668 : vector<1x128xf32>
    %670 = math.exp %669 : vector<1x128xf32>
    %cst_245 = arith.constant 1.000000e+00 : f32
    %671 = vector.broadcast %cst_245 : f32 to vector<1x128xf32>
    %672 = arith.addf %671, %670 : vector<1x128xf32>
    %673 = arith.divf %671, %672 : vector<1x128xf32>
    %674 = arith.mulf %665, %614 : vector<1x128xf32>
    %675 = arith.mulf %659, %667 : vector<1x128xf32>
    %676 = arith.addf %674, %675 : vector<1x128xf32>
    %677 = math.tanh %676 : vector<1x128xf32>
    %678 = arith.mulf %673, %677 : vector<1x128xf32>
    %c1_246 = arith.constant 1 : index
    %c0_247 = arith.constant 0 : index
    %679 = vector.load %arg24[%c1_246, %c0_247] : memref<8x128xf32, #tpu.memory_space<vmem>>, vector<1x128xf32>
    tpu.vector_store %arg24[%c1_246, %c0_247], %678 {strides = array<i32>} : memref<8x128xf32, #tpu.memory_space<vmem>>, vector<1x128xf32>,
    %c5_248 = arith.constant 5 : index
    %c0_249 = arith.constant 0 : index
    %680 = vector.load %arg26[%c5_248, %c0_249] : memref<8x512xf32, #tpu.memory_space<vmem>>, vector<1x512xf32>
    %681 = vector.extract_strided_slice %647 {offsets = [0, 0], sizes = [1, 32], strides = [1, 1]} : vector<1x128xf32> to vector<1x32xf32>
    %c0_250 = arith.constant 0 : index
    %c0_251 = arith.constant 0 : index
    %682 = vector.load %arg9[%c0_250, %c0_251] : memref<32x512xf32, #tpu.memory_space<vmem>>, vector<32x512xf32>
    %cst_252 = arith.constant dense<0.000000e+00> : vector<1x512xf32>
    %683 = tpu.matmul %681, %682, %cst_252 {dimension_numbers = #tpu.dot_dimension_numbers<[1], [0], [0], [1], [0, 0, 1, 1], [], []>} : vector<1x32xf32>, vector<32x512xf32>, vector<1x512xf32> -> vector<1x512xf32>
    %684 = arith.addf %680, %683 : vector<1x512xf32>
    %685 = vector.extract_strided_slice %684 {offsets = [0, 0], sizes = [1, 128], strides = [1, 1]} : vector<1x512xf32> to vector<1x128xf32>
    %686 = arith.negf %685 : vector<1x128xf32>
    %687 = math.exp %686 : vector<1x128xf32>
    %cst_253 = arith.constant 1.000000e+00 : f32
    %688 = vector.broadcast %cst_253 : f32 to vector<1x128xf32>
    %689 = arith.addf %688, %687 : vector<1x128xf32>
    %690 = arith.divf %688, %689 : vector<1x128xf32>
    %691 = vector.extract_strided_slice %684 {offsets = [0, 128], sizes = [1, 128], strides = [1, 1]} : vector<1x512xf32> to vector<1x128xf32>
    %692 = arith.negf %691 : vector<1x128xf32>
    %693 = math.exp %692 : vector<1x128xf32>
    %cst_254 = arith.constant 1.000000e+00 : f32
    %694 = vector.broadcast %cst_254 : f32 to vector<1x128xf32>
    %695 = arith.addf %694, %693 : vector<1x128xf32>
    %696 = arith.divf %694, %695 : vector<1x128xf32>
    %697 = vector.extract_strided_slice %684 {offsets = [0, 256], sizes = [1, 128], strides = [1, 1]} : vector<1x512xf32> to vector<1x128xf32>
    %698 = math.tanh %697 : vector<1x128xf32>
    %699 = vector.extract_strided_slice %684 {offsets = [0, 384], sizes = [1, 128], strides = [1, 1]} : vector<1x512xf32> to vector<1x128xf32>
    %700 = arith.negf %699 : vector<1x128xf32>
    %701 = math.exp %700 : vector<1x128xf32>
    %cst_255 = arith.constant 1.000000e+00 : f32
    %702 = vector.broadcast %cst_255 : f32 to vector<1x128xf32>
    %703 = arith.addf %702, %701 : vector<1x128xf32>
    %704 = arith.divf %702, %703 : vector<1x128xf32>
    %705 = arith.mulf %696, %645 : vector<1x128xf32>
    %706 = arith.mulf %690, %698 : vector<1x128xf32>
    %707 = arith.addf %705, %706 : vector<1x128xf32>
    %708 = math.tanh %707 : vector<1x128xf32>
    %709 = arith.mulf %704, %708 : vector<1x128xf32>
    %c5_256 = arith.constant 5 : index
    %c0_257 = arith.constant 0 : index
    %710 = vector.load %arg23[%c5_256, %c0_257] : memref<8x128xf32, #tpu.memory_space<vmem>>, vector<1x128xf32>
    tpu.vector_store %arg23[%c5_256, %c0_257], %709 {strides = array<i32>} : memref<8x128xf32, #tpu.memory_space<vmem>>, vector<1x128xf32>,
    %c2_258 = arith.constant 2 : index
    %c0_259 = arith.constant 0 : index
    %711 = vector.load %arg27[%c2_258, %c0_259] : memref<8x512xf32, #tpu.memory_space<vmem>>, vector<1x512xf32>
    %712 = vector.extract_strided_slice %678 {offsets = [0, 0], sizes = [1, 32], strides = [1, 1]} : vector<1x128xf32> to vector<1x32xf32>
    %c0_260 = arith.constant 0 : index
    %c0_261 = arith.constant 0 : index
    %713 = vector.load %arg15[%c0_260, %c0_261] : memref<32x512xf32, #tpu.memory_space<vmem>>, vector<32x512xf32>
    %cst_262 = arith.constant dense<0.000000e+00> : vector<1x512xf32>
    %714 = tpu.matmul %712, %713, %cst_262 {dimension_numbers = #tpu.dot_dimension_numbers<[1], [0], [0], [1], [0, 0, 1, 1], [], []>} : vector<1x32xf32>, vector<32x512xf32>, vector<1x512xf32> -> vector<1x512xf32>
    %715 = arith.addf %711, %714 : vector<1x512xf32>
    %716 = vector.extract_strided_slice %715 {offsets = [0, 0], sizes = [1, 128], strides = [1, 1]} : vector<1x512xf32> to vector<1x128xf32>
    %717 = arith.negf %716 : vector<1x128xf32>
    %718 = math.exp %717 : vector<1x128xf32>
    %cst_263 = arith.constant 1.000000e+00 : f32
    %719 = vector.broadcast %cst_263 : f32 to vector<1x128xf32>
    %720 = arith.addf %719, %718 : vector<1x128xf32>
    %721 = arith.divf %719, %720 : vector<1x128xf32>
    %722 = vector.extract_strided_slice %715 {offsets = [0, 128], sizes = [1, 128], strides = [1, 1]} : vector<1x512xf32> to vector<1x128xf32>
    %723 = arith.negf %722 : vector<1x128xf32>
    %724 = math.exp %723 : vector<1x128xf32>
    %cst_264 = arith.constant 1.000000e+00 : f32
    %725 = vector.broadcast %cst_264 : f32 to vector<1x128xf32>
    %726 = arith.addf %725, %724 : vector<1x128xf32>
    %727 = arith.divf %725, %726 : vector<1x128xf32>
    %728 = vector.extract_strided_slice %715 {offsets = [0, 256], sizes = [1, 128], strides = [1, 1]} : vector<1x512xf32> to vector<1x128xf32>
    %729 = math.tanh %728 : vector<1x128xf32>
    %730 = vector.extract_strided_slice %715 {offsets = [0, 384], sizes = [1, 128], strides = [1, 1]} : vector<1x512xf32> to vector<1x128xf32>
    %731 = arith.negf %730 : vector<1x128xf32>
    %732 = math.exp %731 : vector<1x128xf32>
    %cst_265 = arith.constant 1.000000e+00 : f32
    %733 = vector.broadcast %cst_265 : f32 to vector<1x128xf32>
    %734 = arith.addf %733, %732 : vector<1x128xf32>
    %735 = arith.divf %733, %734 : vector<1x128xf32>
    %736 = arith.mulf %727, %676 : vector<1x128xf32>
    %737 = arith.mulf %721, %729 : vector<1x128xf32>
    %738 = arith.addf %736, %737 : vector<1x128xf32>
    %739 = math.tanh %738 : vector<1x128xf32>
    %740 = arith.mulf %735, %739 : vector<1x128xf32>
    %c2_266 = arith.constant 2 : index
    %c0_267 = arith.constant 0 : index
    %741 = vector.load %arg24[%c2_266, %c0_267] : memref<8x128xf32, #tpu.memory_space<vmem>>, vector<1x128xf32>
    tpu.vector_store %arg24[%c2_266, %c0_267], %740 {strides = array<i32>} : memref<8x128xf32, #tpu.memory_space<vmem>>, vector<1x128xf32>,
    %c4_268 = arith.constant 4 : index
    %c0_269 = arith.constant 0 : index
    %742 = vector.load %arg26[%c4_268, %c0_269] : memref<8x512xf32, #tpu.memory_space<vmem>>, vector<1x512xf32>
    %743 = vector.extract_strided_slice %709 {offsets = [0, 0], sizes = [1, 32], strides = [1, 1]} : vector<1x128xf32> to vector<1x32xf32>
    %c0_270 = arith.constant 0 : index
    %c0_271 = arith.constant 0 : index
    %744 = vector.load %arg9[%c0_270, %c0_271] : memref<32x512xf32, #tpu.memory_space<vmem>>, vector<32x512xf32>
    %cst_272 = arith.constant dense<0.000000e+00> : vector<1x512xf32>
    %745 = tpu.matmul %743, %744, %cst_272 {dimension_numbers = #tpu.dot_dimension_numbers<[1], [0], [0], [1], [0, 0, 1, 1], [], []>} : vector<1x32xf32>, vector<32x512xf32>, vector<1x512xf32> -> vector<1x512xf32>
    %746 = arith.addf %742, %745 : vector<1x512xf32>
    %747 = vector.extract_strided_slice %746 {offsets = [0, 0], sizes = [1, 128], strides = [1, 1]} : vector<1x512xf32> to vector<1x128xf32>
    %748 = arith.negf %747 : vector<1x128xf32>
    %749 = math.exp %748 : vector<1x128xf32>
    %cst_273 = arith.constant 1.000000e+00 : f32
    %750 = vector.broadcast %cst_273 : f32 to vector<1x128xf32>
    %751 = arith.addf %750, %749 : vector<1x128xf32>
    %752 = arith.divf %750, %751 : vector<1x128xf32>
    %753 = vector.extract_strided_slice %746 {offsets = [0, 128], sizes = [1, 128], strides = [1, 1]} : vector<1x512xf32> to vector<1x128xf32>
    %754 = arith.negf %753 : vector<1x128xf32>
    %755 = math.exp %754 : vector<1x128xf32>
    %cst_274 = arith.constant 1.000000e+00 : f32
    %756 = vector.broadcast %cst_274 : f32 to vector<1x128xf32>
    %757 = arith.addf %756, %755 : vector<1x128xf32>
    %758 = arith.divf %756, %757 : vector<1x128xf32>
    %759 = vector.extract_strided_slice %746 {offsets = [0, 256], sizes = [1, 128], strides = [1, 1]} : vector<1x512xf32> to vector<1x128xf32>
    %760 = math.tanh %759 : vector<1x128xf32>
    %761 = vector.extract_strided_slice %746 {offsets = [0, 384], sizes = [1, 128], strides = [1, 1]} : vector<1x512xf32> to vector<1x128xf32>
    %762 = arith.negf %761 : vector<1x128xf32>
    %763 = math.exp %762 : vector<1x128xf32>
    %cst_275 = arith.constant 1.000000e+00 : f32
    %764 = vector.broadcast %cst_275 : f32 to vector<1x128xf32>
    %765 = arith.addf %764, %763 : vector<1x128xf32>
    %766 = arith.divf %764, %765 : vector<1x128xf32>
    %767 = arith.mulf %758, %707 : vector<1x128xf32>
    %768 = arith.mulf %752, %760 : vector<1x128xf32>
    %769 = arith.addf %767, %768 : vector<1x128xf32>
    %770 = math.tanh %769 : vector<1x128xf32>
    %771 = arith.mulf %766, %770 : vector<1x128xf32>
    %c4_276 = arith.constant 4 : index
    %c0_277 = arith.constant 0 : index
    %772 = vector.load %arg23[%c4_276, %c0_277] : memref<8x128xf32, #tpu.memory_space<vmem>>, vector<1x128xf32>
    tpu.vector_store %arg23[%c4_276, %c0_277], %771 {strides = array<i32>} : memref<8x128xf32, #tpu.memory_space<vmem>>, vector<1x128xf32>,
    %c3_278 = arith.constant 3 : index
    %c0_279 = arith.constant 0 : index
    %773 = vector.load %arg27[%c3_278, %c0_279] : memref<8x512xf32, #tpu.memory_space<vmem>>, vector<1x512xf32>
    %774 = vector.extract_strided_slice %740 {offsets = [0, 0], sizes = [1, 32], strides = [1, 1]} : vector<1x128xf32> to vector<1x32xf32>
    %c0_280 = arith.constant 0 : index
    %c0_281 = arith.constant 0 : index
    %775 = vector.load %arg15[%c0_280, %c0_281] : memref<32x512xf32, #tpu.memory_space<vmem>>, vector<32x512xf32>
    %cst_282 = arith.constant dense<0.000000e+00> : vector<1x512xf32>
    %776 = tpu.matmul %774, %775, %cst_282 {dimension_numbers = #tpu.dot_dimension_numbers<[1], [0], [0], [1], [0, 0, 1, 1], [], []>} : vector<1x32xf32>, vector<32x512xf32>, vector<1x512xf32> -> vector<1x512xf32>
    %777 = arith.addf %773, %776 : vector<1x512xf32>
    %778 = vector.extract_strided_slice %777 {offsets = [0, 0], sizes = [1, 128], strides = [1, 1]} : vector<1x512xf32> to vector<1x128xf32>
    %779 = arith.negf %778 : vector<1x128xf32>
    %780 = math.exp %779 : vector<1x128xf32>
    %cst_283 = arith.constant 1.000000e+00 : f32
    %781 = vector.broadcast %cst_283 : f32 to vector<1x128xf32>
    %782 = arith.addf %781, %780 : vector<1x128xf32>
    %783 = arith.divf %781, %782 : vector<1x128xf32>
    %784 = vector.extract_strided_slice %777 {offsets = [0, 128], sizes = [1, 128], strides = [1, 1]} : vector<1x512xf32> to vector<1x128xf32>
    %785 = arith.negf %784 : vector<1x128xf32>
    %786 = math.exp %785 : vector<1x128xf32>
    %cst_284 = arith.constant 1.000000e+00 : f32
    %787 = vector.broadcast %cst_284 : f32 to vector<1x128xf32>
    %788 = arith.addf %787, %786 : vector<1x128xf32>
    %789 = arith.divf %787, %788 : vector<1x128xf32>
    %790 = vector.extract_strided_slice %777 {offsets = [0, 256], sizes = [1, 128], strides = [1, 1]} : vector<1x512xf32> to vector<1x128xf32>
    %791 = math.tanh %790 : vector<1x128xf32>
    %792 = vector.extract_strided_slice %777 {offsets = [0, 384], sizes = [1, 128], strides = [1, 1]} : vector<1x512xf32> to vector<1x128xf32>
    %793 = arith.negf %792 : vector<1x128xf32>
    %794 = math.exp %793 : vector<1x128xf32>
    %cst_285 = arith.constant 1.000000e+00 : f32
    %795 = vector.broadcast %cst_285 : f32 to vector<1x128xf32>
    %796 = arith.addf %795, %794 : vector<1x128xf32>
    %797 = arith.divf %795, %796 : vector<1x128xf32>
    %798 = arith.mulf %789, %738 : vector<1x128xf32>
    %799 = arith.mulf %783, %791 : vector<1x128xf32>
    %800 = arith.addf %798, %799 : vector<1x128xf32>
    %801 = math.tanh %800 : vector<1x128xf32>
    %802 = arith.mulf %797, %801 : vector<1x128xf32>
    %c3_286 = arith.constant 3 : index
    %c0_287 = arith.constant 0 : index
    %803 = vector.load %arg24[%c3_286, %c0_287] : memref<8x128xf32, #tpu.memory_space<vmem>>, vector<1x128xf32>
    tpu.vector_store %arg24[%c3_286, %c0_287], %802 {strides = array<i32>} : memref<8x128xf32, #tpu.memory_space<vmem>>, vector<1x128xf32>,
    %c3_288 = arith.constant 3 : index
    %c0_289 = arith.constant 0 : index
    %804 = vector.load %arg26[%c3_288, %c0_289] : memref<8x512xf32, #tpu.memory_space<vmem>>, vector<1x512xf32>
    %805 = vector.extract_strided_slice %771 {offsets = [0, 0], sizes = [1, 32], strides = [1, 1]} : vector<1x128xf32> to vector<1x32xf32>
    %c0_290 = arith.constant 0 : index
    %c0_291 = arith.constant 0 : index
    %806 = vector.load %arg9[%c0_290, %c0_291] : memref<32x512xf32, #tpu.memory_space<vmem>>, vector<32x512xf32>
    %cst_292 = arith.constant dense<0.000000e+00> : vector<1x512xf32>
    %807 = tpu.matmul %805, %806, %cst_292 {dimension_numbers = #tpu.dot_dimension_numbers<[1], [0], [0], [1], [0, 0, 1, 1], [], []>} : vector<1x32xf32>, vector<32x512xf32>, vector<1x512xf32> -> vector<1x512xf32>
    %808 = arith.addf %804, %807 : vector<1x512xf32>
    %809 = vector.extract_strided_slice %808 {offsets = [0, 0], sizes = [1, 128], strides = [1, 1]} : vector<1x512xf32> to vector<1x128xf32>
    %810 = arith.negf %809 : vector<1x128xf32>
    %811 = math.exp %810 : vector<1x128xf32>
    %cst_293 = arith.constant 1.000000e+00 : f32
    %812 = vector.broadcast %cst_293 : f32 to vector<1x128xf32>
    %813 = arith.addf %812, %811 : vector<1x128xf32>
    %814 = arith.divf %812, %813 : vector<1x128xf32>
    %815 = vector.extract_strided_slice %808 {offsets = [0, 128], sizes = [1, 128], strides = [1, 1]} : vector<1x512xf32> to vector<1x128xf32>
    %816 = arith.negf %815 : vector<1x128xf32>
    %817 = math.exp %816 : vector<1x128xf32>
    %cst_294 = arith.constant 1.000000e+00 : f32
    %818 = vector.broadcast %cst_294 : f32 to vector<1x128xf32>
    %819 = arith.addf %818, %817 : vector<1x128xf32>
    %820 = arith.divf %818, %819 : vector<1x128xf32>
    %821 = vector.extract_strided_slice %808 {offsets = [0, 256], sizes = [1, 128], strides = [1, 1]} : vector<1x512xf32> to vector<1x128xf32>
    %822 = math.tanh %821 : vector<1x128xf32>
    %823 = vector.extract_strided_slice %808 {offsets = [0, 384], sizes = [1, 128], strides = [1, 1]} : vector<1x512xf32> to vector<1x128xf32>
    %824 = arith.negf %823 : vector<1x128xf32>
    %825 = math.exp %824 : vector<1x128xf32>
    %cst_295 = arith.constant 1.000000e+00 : f32
    %826 = vector.broadcast %cst_295 : f32 to vector<1x128xf32>
    %827 = arith.addf %826, %825 : vector<1x128xf32>
    %828 = arith.divf %826, %827 : vector<1x128xf32>
    %829 = arith.mulf %820, %769 : vector<1x128xf32>
    %830 = arith.mulf %814, %822 : vector<1x128xf32>
    %831 = arith.addf %829, %830 : vector<1x128xf32>
    %832 = math.tanh %831 : vector<1x128xf32>
    %833 = arith.mulf %828, %832 : vector<1x128xf32>
    %c3_296 = arith.constant 3 : index
    %c0_297 = arith.constant 0 : index
    %834 = vector.load %arg23[%c3_296, %c0_297] : memref<8x128xf32, #tpu.memory_space<vmem>>, vector<1x128xf32>
    tpu.vector_store %arg23[%c3_296, %c0_297], %833 {strides = array<i32>} : memref<8x128xf32, #tpu.memory_space<vmem>>, vector<1x128xf32>,
    %c4_298 = arith.constant 4 : index
    %c0_299 = arith.constant 0 : index
    %835 = vector.load %arg27[%c4_298, %c0_299] : memref<8x512xf32, #tpu.memory_space<vmem>>, vector<1x512xf32>
    %836 = vector.extract_strided_slice %802 {offsets = [0, 0], sizes = [1, 32], strides = [1, 1]} : vector<1x128xf32> to vector<1x32xf32>
    %c0_300 = arith.constant 0 : index
    %c0_301 = arith.constant 0 : index
    %837 = vector.load %arg15[%c0_300, %c0_301] : memref<32x512xf32, #tpu.memory_space<vmem>>, vector<32x512xf32>
    %cst_302 = arith.constant dense<0.000000e+00> : vector<1x512xf32>
    %838 = tpu.matmul %836, %837, %cst_302 {dimension_numbers = #tpu.dot_dimension_numbers<[1], [0], [0], [1], [0, 0, 1, 1], [], []>} : vector<1x32xf32>, vector<32x512xf32>, vector<1x512xf32> -> vector<1x512xf32>
    %839 = arith.addf %835, %838 : vector<1x512xf32>
    %840 = vector.extract_strided_slice %839 {offsets = [0, 0], sizes = [1, 128], strides = [1, 1]} : vector<1x512xf32> to vector<1x128xf32>
    %841 = arith.negf %840 : vector<1x128xf32>
    %842 = math.exp %841 : vector<1x128xf32>
    %cst_303 = arith.constant 1.000000e+00 : f32
    %843 = vector.broadcast %cst_303 : f32 to vector<1x128xf32>
    %844 = arith.addf %843, %842 : vector<1x128xf32>
    %845 = arith.divf %843, %844 : vector<1x128xf32>
    %846 = vector.extract_strided_slice %839 {offsets = [0, 128], sizes = [1, 128], strides = [1, 1]} : vector<1x512xf32> to vector<1x128xf32>
    %847 = arith.negf %846 : vector<1x128xf32>
    %848 = math.exp %847 : vector<1x128xf32>
    %cst_304 = arith.constant 1.000000e+00 : f32
    %849 = vector.broadcast %cst_304 : f32 to vector<1x128xf32>
    %850 = arith.addf %849, %848 : vector<1x128xf32>
    %851 = arith.divf %849, %850 : vector<1x128xf32>
    %852 = vector.extract_strided_slice %839 {offsets = [0, 256], sizes = [1, 128], strides = [1, 1]} : vector<1x512xf32> to vector<1x128xf32>
    %853 = math.tanh %852 : vector<1x128xf32>
    %854 = vector.extract_strided_slice %839 {offsets = [0, 384], sizes = [1, 128], strides = [1, 1]} : vector<1x512xf32> to vector<1x128xf32>
    %855 = arith.negf %854 : vector<1x128xf32>
    %856 = math.exp %855 : vector<1x128xf32>
    %cst_305 = arith.constant 1.000000e+00 : f32
    %857 = vector.broadcast %cst_305 : f32 to vector<1x128xf32>
    %858 = arith.addf %857, %856 : vector<1x128xf32>
    %859 = arith.divf %857, %858 : vector<1x128xf32>
    %860 = arith.mulf %851, %800 : vector<1x128xf32>
    %861 = arith.mulf %845, %853 : vector<1x128xf32>
    %862 = arith.addf %860, %861 : vector<1x128xf32>
    %863 = math.tanh %862 : vector<1x128xf32>
    %864 = arith.mulf %859, %863 : vector<1x128xf32>
    %c4_306 = arith.constant 4 : index
    %c0_307 = arith.constant 0 : index
    %865 = vector.load %arg24[%c4_306, %c0_307] : memref<8x128xf32, #tpu.memory_space<vmem>>, vector<1x128xf32>
    tpu.vector_store %arg24[%c4_306, %c0_307], %864 {strides = array<i32>} : memref<8x128xf32, #tpu.memory_space<vmem>>, vector<1x128xf32>,
    %c2_308 = arith.constant 2 : index
    %c0_309 = arith.constant 0 : index
    %866 = vector.load %arg26[%c2_308, %c0_309] : memref<8x512xf32, #tpu.memory_space<vmem>>, vector<1x512xf32>
    %867 = vector.extract_strided_slice %833 {offsets = [0, 0], sizes = [1, 32], strides = [1, 1]} : vector<1x128xf32> to vector<1x32xf32>
    %c0_310 = arith.constant 0 : index
    %c0_311 = arith.constant 0 : index
    %868 = vector.load %arg9[%c0_310, %c0_311] : memref<32x512xf32, #tpu.memory_space<vmem>>, vector<32x512xf32>
    %cst_312 = arith.constant dense<0.000000e+00> : vector<1x512xf32>
    %869 = tpu.matmul %867, %868, %cst_312 {dimension_numbers = #tpu.dot_dimension_numbers<[1], [0], [0], [1], [0, 0, 1, 1], [], []>} : vector<1x32xf32>, vector<32x512xf32>, vector<1x512xf32> -> vector<1x512xf32>
    %870 = arith.addf %866, %869 : vector<1x512xf32>
    %871 = vector.extract_strided_slice %870 {offsets = [0, 0], sizes = [1, 128], strides = [1, 1]} : vector<1x512xf32> to vector<1x128xf32>
    %872 = arith.negf %871 : vector<1x128xf32>
    %873 = math.exp %872 : vector<1x128xf32>
    %cst_313 = arith.constant 1.000000e+00 : f32
    %874 = vector.broadcast %cst_313 : f32 to vector<1x128xf32>
    %875 = arith.addf %874, %873 : vector<1x128xf32>
    %876 = arith.divf %874, %875 : vector<1x128xf32>
    %877 = vector.extract_strided_slice %870 {offsets = [0, 128], sizes = [1, 128], strides = [1, 1]} : vector<1x512xf32> to vector<1x128xf32>
    %878 = arith.negf %877 : vector<1x128xf32>
    %879 = math.exp %878 : vector<1x128xf32>
    %cst_314 = arith.constant 1.000000e+00 : f32
    %880 = vector.broadcast %cst_314 : f32 to vector<1x128xf32>
    %881 = arith.addf %880, %879 : vector<1x128xf32>
    %882 = arith.divf %880, %881 : vector<1x128xf32>
    %883 = vector.extract_strided_slice %870 {offsets = [0, 256], sizes = [1, 128], strides = [1, 1]} : vector<1x512xf32> to vector<1x128xf32>
    %884 = math.tanh %883 : vector<1x128xf32>
    %885 = vector.extract_strided_slice %870 {offsets = [0, 384], sizes = [1, 128], strides = [1, 1]} : vector<1x512xf32> to vector<1x128xf32>
    %886 = arith.negf %885 : vector<1x128xf32>
    %887 = math.exp %886 : vector<1x128xf32>
    %cst_315 = arith.constant 1.000000e+00 : f32
    %888 = vector.broadcast %cst_315 : f32 to vector<1x128xf32>
    %889 = arith.addf %888, %887 : vector<1x128xf32>
    %890 = arith.divf %888, %889 : vector<1x128xf32>
    %891 = arith.mulf %882, %831 : vector<1x128xf32>
    %892 = arith.mulf %876, %884 : vector<1x128xf32>
    %893 = arith.addf %891, %892 : vector<1x128xf32>
    %894 = math.tanh %893 : vector<1x128xf32>
    %895 = arith.mulf %890, %894 : vector<1x128xf32>
    %c2_316 = arith.constant 2 : index
    %c0_317 = arith.constant 0 : index
    %896 = vector.load %arg23[%c2_316, %c0_317] : memref<8x128xf32, #tpu.memory_space<vmem>>, vector<1x128xf32>
    tpu.vector_store %arg23[%c2_316, %c0_317], %895 {strides = array<i32>} : memref<8x128xf32, #tpu.memory_space<vmem>>, vector<1x128xf32>,
    %c5_318 = arith.constant 5 : index
    %c0_319 = arith.constant 0 : index
    %897 = vector.load %arg27[%c5_318, %c0_319] : memref<8x512xf32, #tpu.memory_space<vmem>>, vector<1x512xf32>
    %898 = vector.extract_strided_slice %864 {offsets = [0, 0], sizes = [1, 32], strides = [1, 1]} : vector<1x128xf32> to vector<1x32xf32>
    %c0_320 = arith.constant 0 : index
    %c0_321 = arith.constant 0 : index
    %899 = vector.load %arg15[%c0_320, %c0_321] : memref<32x512xf32, #tpu.memory_space<vmem>>, vector<32x512xf32>
    %cst_322 = arith.constant dense<0.000000e+00> : vector<1x512xf32>
    %900 = tpu.matmul %898, %899, %cst_322 {dimension_numbers = #tpu.dot_dimension_numbers<[1], [0], [0], [1], [0, 0, 1, 1], [], []>} : vector<1x32xf32>, vector<32x512xf32>, vector<1x512xf32> -> vector<1x512xf32>
    %901 = arith.addf %897, %900 : vector<1x512xf32>
    %902 = vector.extract_strided_slice %901 {offsets = [0, 0], sizes = [1, 128], strides = [1, 1]} : vector<1x512xf32> to vector<1x128xf32>
    %903 = arith.negf %902 : vector<1x128xf32>
    %904 = math.exp %903 : vector<1x128xf32>
    %cst_323 = arith.constant 1.000000e+00 : f32
    %905 = vector.broadcast %cst_323 : f32 to vector<1x128xf32>
    %906 = arith.addf %905, %904 : vector<1x128xf32>
    %907 = arith.divf %905, %906 : vector<1x128xf32>
    %908 = vector.extract_strided_slice %901 {offsets = [0, 128], sizes = [1, 128], strides = [1, 1]} : vector<1x512xf32> to vector<1x128xf32>
    %909 = arith.negf %908 : vector<1x128xf32>
    %910 = math.exp %909 : vector<1x128xf32>
    %cst_324 = arith.constant 1.000000e+00 : f32
    %911 = vector.broadcast %cst_324 : f32 to vector<1x128xf32>
    %912 = arith.addf %911, %910 : vector<1x128xf32>
    %913 = arith.divf %911, %912 : vector<1x128xf32>
    %914 = vector.extract_strided_slice %901 {offsets = [0, 256], sizes = [1, 128], strides = [1, 1]} : vector<1x512xf32> to vector<1x128xf32>
    %915 = math.tanh %914 : vector<1x128xf32>
    %916 = vector.extract_strided_slice %901 {offsets = [0, 384], sizes = [1, 128], strides = [1, 1]} : vector<1x512xf32> to vector<1x128xf32>
    %917 = arith.negf %916 : vector<1x128xf32>
    %918 = math.exp %917 : vector<1x128xf32>
    %cst_325 = arith.constant 1.000000e+00 : f32
    %919 = vector.broadcast %cst_325 : f32 to vector<1x128xf32>
    %920 = arith.addf %919, %918 : vector<1x128xf32>
    %921 = arith.divf %919, %920 : vector<1x128xf32>
    %922 = arith.mulf %913, %862 : vector<1x128xf32>
    %923 = arith.mulf %907, %915 : vector<1x128xf32>
    %924 = arith.addf %922, %923 : vector<1x128xf32>
    %925 = math.tanh %924 : vector<1x128xf32>
    %926 = arith.mulf %921, %925 : vector<1x128xf32>
    %c5_326 = arith.constant 5 : index
    %c0_327 = arith.constant 0 : index
    %927 = vector.load %arg24[%c5_326, %c0_327] : memref<8x128xf32, #tpu.memory_space<vmem>>, vector<1x128xf32>
    tpu.vector_store %arg24[%c5_326, %c0_327], %926 {strides = array<i32>} : memref<8x128xf32, #tpu.memory_space<vmem>>, vector<1x128xf32>,
    %c1_328 = arith.constant 1 : index
    %c0_329 = arith.constant 0 : index
    %928 = vector.load %arg26[%c1_328, %c0_329] : memref<8x512xf32, #tpu.memory_space<vmem>>, vector<1x512xf32>
    %929 = vector.extract_strided_slice %895 {offsets = [0, 0], sizes = [1, 32], strides = [1, 1]} : vector<1x128xf32> to vector<1x32xf32>
    %c0_330 = arith.constant 0 : index
    %c0_331 = arith.constant 0 : index
    %930 = vector.load %arg9[%c0_330, %c0_331] : memref<32x512xf32, #tpu.memory_space<vmem>>, vector<32x512xf32>
    %cst_332 = arith.constant dense<0.000000e+00> : vector<1x512xf32>
    %931 = tpu.matmul %929, %930, %cst_332 {dimension_numbers = #tpu.dot_dimension_numbers<[1], [0], [0], [1], [0, 0, 1, 1], [], []>} : vector<1x32xf32>, vector<32x512xf32>, vector<1x512xf32> -> vector<1x512xf32>
    %932 = arith.addf %928, %931 : vector<1x512xf32>
    %933 = vector.extract_strided_slice %932 {offsets = [0, 0], sizes = [1, 128], strides = [1, 1]} : vector<1x512xf32> to vector<1x128xf32>
    %934 = arith.negf %933 : vector<1x128xf32>
    %935 = math.exp %934 : vector<1x128xf32>
    %cst_333 = arith.constant 1.000000e+00 : f32
    %936 = vector.broadcast %cst_333 : f32 to vector<1x128xf32>
    %937 = arith.addf %936, %935 : vector<1x128xf32>
    %938 = arith.divf %936, %937 : vector<1x128xf32>
    %939 = vector.extract_strided_slice %932 {offsets = [0, 128], sizes = [1, 128], strides = [1, 1]} : vector<1x512xf32> to vector<1x128xf32>
    %940 = arith.negf %939 : vector<1x128xf32>
    %941 = math.exp %940 : vector<1x128xf32>
    %cst_334 = arith.constant 1.000000e+00 : f32
    %942 = vector.broadcast %cst_334 : f32 to vector<1x128xf32>
    %943 = arith.addf %942, %941 : vector<1x128xf32>
    %944 = arith.divf %942, %943 : vector<1x128xf32>
    %945 = vector.extract_strided_slice %932 {offsets = [0, 256], sizes = [1, 128], strides = [1, 1]} : vector<1x512xf32> to vector<1x128xf32>
    %946 = math.tanh %945 : vector<1x128xf32>
    %947 = vector.extract_strided_slice %932 {offsets = [0, 384], sizes = [1, 128], strides = [1, 1]} : vector<1x512xf32> to vector<1x128xf32>
    %948 = arith.negf %947 : vector<1x128xf32>
    %949 = math.exp %948 : vector<1x128xf32>
    %cst_335 = arith.constant 1.000000e+00 : f32
    %950 = vector.broadcast %cst_335 : f32 to vector<1x128xf32>
    %951 = arith.addf %950, %949 : vector<1x128xf32>
    %952 = arith.divf %950, %951 : vector<1x128xf32>
    %953 = arith.mulf %944, %893 : vector<1x128xf32>
    %954 = arith.mulf %938, %946 : vector<1x128xf32>
    %955 = arith.addf %953, %954 : vector<1x128xf32>
    %956 = math.tanh %955 : vector<1x128xf32>
    %957 = arith.mulf %952, %956 : vector<1x128xf32>
    %c1_336 = arith.constant 1 : index
    %c0_337 = arith.constant 0 : index
    %958 = vector.load %arg23[%c1_336, %c0_337] : memref<8x128xf32, #tpu.memory_space<vmem>>, vector<1x128xf32>
    tpu.vector_store %arg23[%c1_336, %c0_337], %957 {strides = array<i32>} : memref<8x128xf32, #tpu.memory_space<vmem>>, vector<1x128xf32>,
    %c6_338 = arith.constant 6 : index
    %c0_339 = arith.constant 0 : index
    %959 = vector.load %arg27[%c6_338, %c0_339] : memref<8x512xf32, #tpu.memory_space<vmem>>, vector<1x512xf32>
    %960 = vector.extract_strided_slice %926 {offsets = [0, 0], sizes = [1, 32], strides = [1, 1]} : vector<1x128xf32> to vector<1x32xf32>
    %c0_340 = arith.constant 0 : index
    %c0_341 = arith.constant 0 : index
    %961 = vector.load %arg15[%c0_340, %c0_341] : memref<32x512xf32, #tpu.memory_space<vmem>>, vector<32x512xf32>
    %cst_342 = arith.constant dense<0.000000e+00> : vector<1x512xf32>
    %962 = tpu.matmul %960, %961, %cst_342 {dimension_numbers = #tpu.dot_dimension_numbers<[1], [0], [0], [1], [0, 0, 1, 1], [], []>} : vector<1x32xf32>, vector<32x512xf32>, vector<1x512xf32> -> vector<1x512xf32>
    %963 = arith.addf %959, %962 : vector<1x512xf32>
    %964 = vector.extract_strided_slice %963 {offsets = [0, 0], sizes = [1, 128], strides = [1, 1]} : vector<1x512xf32> to vector<1x128xf32>
    %965 = arith.negf %964 : vector<1x128xf32>
    %966 = math.exp %965 : vector<1x128xf32>
    %cst_343 = arith.constant 1.000000e+00 : f32
    %967 = vector.broadcast %cst_343 : f32 to vector<1x128xf32>
    %968 = arith.addf %967, %966 : vector<1x128xf32>
    %969 = arith.divf %967, %968 : vector<1x128xf32>
    %970 = vector.extract_strided_slice %963 {offsets = [0, 128], sizes = [1, 128], strides = [1, 1]} : vector<1x512xf32> to vector<1x128xf32>
    %971 = arith.negf %970 : vector<1x128xf32>
    %972 = math.exp %971 : vector<1x128xf32>
    %cst_344 = arith.constant 1.000000e+00 : f32
    %973 = vector.broadcast %cst_344 : f32 to vector<1x128xf32>
    %974 = arith.addf %973, %972 : vector<1x128xf32>
    %975 = arith.divf %973, %974 : vector<1x128xf32>
    %976 = vector.extract_strided_slice %963 {offsets = [0, 256], sizes = [1, 128], strides = [1, 1]} : vector<1x512xf32> to vector<1x128xf32>
    %977 = math.tanh %976 : vector<1x128xf32>
    %978 = vector.extract_strided_slice %963 {offsets = [0, 384], sizes = [1, 128], strides = [1, 1]} : vector<1x512xf32> to vector<1x128xf32>
    %979 = arith.negf %978 : vector<1x128xf32>
    %980 = math.exp %979 : vector<1x128xf32>
    %cst_345 = arith.constant 1.000000e+00 : f32
    %981 = vector.broadcast %cst_345 : f32 to vector<1x128xf32>
    %982 = arith.addf %981, %980 : vector<1x128xf32>
    %983 = arith.divf %981, %982 : vector<1x128xf32>
    %984 = arith.mulf %975, %924 : vector<1x128xf32>
    %985 = arith.mulf %969, %977 : vector<1x128xf32>
    %986 = arith.addf %984, %985 : vector<1x128xf32>
    %987 = math.tanh %986 : vector<1x128xf32>
    %988 = arith.mulf %983, %987 : vector<1x128xf32>
    %c6_346 = arith.constant 6 : index
    %c0_347 = arith.constant 0 : index
    %989 = vector.load %arg24[%c6_346, %c0_347] : memref<8x128xf32, #tpu.memory_space<vmem>>, vector<1x128xf32>
    tpu.vector_store %arg24[%c6_346, %c0_347], %988 {strides = array<i32>} : memref<8x128xf32, #tpu.memory_space<vmem>>, vector<1x128xf32>,
    %c0_348 = arith.constant 0 : index
    %c0_349 = arith.constant 0 : index
    %990 = vector.load %arg26[%c0_348, %c0_349] : memref<8x512xf32, #tpu.memory_space<vmem>>, vector<1x512xf32>
    %991 = vector.extract_strided_slice %957 {offsets = [0, 0], sizes = [1, 32], strides = [1, 1]} : vector<1x128xf32> to vector<1x32xf32>
    %c0_350 = arith.constant 0 : index
    %c0_351 = arith.constant 0 : index
    %992 = vector.load %arg9[%c0_350, %c0_351] : memref<32x512xf32, #tpu.memory_space<vmem>>, vector<32x512xf32>
    %cst_352 = arith.constant dense<0.000000e+00> : vector<1x512xf32>
    %993 = tpu.matmul %991, %992, %cst_352 {dimension_numbers = #tpu.dot_dimension_numbers<[1], [0], [0], [1], [0, 0, 1, 1], [], []>} : vector<1x32xf32>, vector<32x512xf32>, vector<1x512xf32> -> vector<1x512xf32>
    %994 = arith.addf %990, %993 : vector<1x512xf32>
    %995 = vector.extract_strided_slice %994 {offsets = [0, 0], sizes = [1, 128], strides = [1, 1]} : vector<1x512xf32> to vector<1x128xf32>
    %996 = arith.negf %995 : vector<1x128xf32>
    %997 = math.exp %996 : vector<1x128xf32>
    %cst_353 = arith.constant 1.000000e+00 : f32
    %998 = vector.broadcast %cst_353 : f32 to vector<1x128xf32>
    %999 = arith.addf %998, %997 : vector<1x128xf32>
    %1000 = arith.divf %998, %999 : vector<1x128xf32>
    %1001 = vector.extract_strided_slice %994 {offsets = [0, 128], sizes = [1, 128], strides = [1, 1]} : vector<1x512xf32> to vector<1x128xf32>
    %1002 = arith.negf %1001 : vector<1x128xf32>
    %1003 = math.exp %1002 : vector<1x128xf32>
    %cst_354 = arith.constant 1.000000e+00 : f32
    %1004 = vector.broadcast %cst_354 : f32 to vector<1x128xf32>
    %1005 = arith.addf %1004, %1003 : vector<1x128xf32>
    %1006 = arith.divf %1004, %1005 : vector<1x128xf32>
    %1007 = vector.extract_strided_slice %994 {offsets = [0, 256], sizes = [1, 128], strides = [1, 1]} : vector<1x512xf32> to vector<1x128xf32>
    %1008 = math.tanh %1007 : vector<1x128xf32>
    %1009 = vector.extract_strided_slice %994 {offsets = [0, 384], sizes = [1, 128], strides = [1, 1]} : vector<1x512xf32> to vector<1x128xf32>
    %1010 = arith.negf %1009 : vector<1x128xf32>
    %1011 = math.exp %1010 : vector<1x128xf32>
    %cst_355 = arith.constant 1.000000e+00 : f32
    %1012 = vector.broadcast %cst_355 : f32 to vector<1x128xf32>
    %1013 = arith.addf %1012, %1011 : vector<1x128xf32>
    %1014 = arith.divf %1012, %1013 : vector<1x128xf32>
    %1015 = arith.mulf %1006, %955 : vector<1x128xf32>
    %1016 = arith.mulf %1000, %1008 : vector<1x128xf32>
    %1017 = arith.addf %1015, %1016 : vector<1x128xf32>
    %1018 = math.tanh %1017 : vector<1x128xf32>
    %1019 = arith.mulf %1014, %1018 : vector<1x128xf32>
    %c0_356 = arith.constant 0 : index
    %c0_357 = arith.constant 0 : index
    %1020 = vector.load %arg23[%c0_356, %c0_357] : memref<8x128xf32, #tpu.memory_space<vmem>>, vector<1x128xf32>
    tpu.vector_store %arg23[%c0_356, %c0_357], %1019 {strides = array<i32>} : memref<8x128xf32, #tpu.memory_space<vmem>>, vector<1x128xf32>,
    %c7_358 = arith.constant 7 : index
    %c0_359 = arith.constant 0 : index
    %1021 = vector.load %arg27[%c7_358, %c0_359] : memref<8x512xf32, #tpu.memory_space<vmem>>, vector<1x512xf32>
    %1022 = vector.extract_strided_slice %988 {offsets = [0, 0], sizes = [1, 32], strides = [1, 1]} : vector<1x128xf32> to vector<1x32xf32>
    %c0_360 = arith.constant 0 : index
    %c0_361 = arith.constant 0 : index
    %1023 = vector.load %arg15[%c0_360, %c0_361] : memref<32x512xf32, #tpu.memory_space<vmem>>, vector<32x512xf32>
    %cst_362 = arith.constant dense<0.000000e+00> : vector<1x512xf32>
    %1024 = tpu.matmul %1022, %1023, %cst_362 {dimension_numbers = #tpu.dot_dimension_numbers<[1], [0], [0], [1], [0, 0, 1, 1], [], []>} : vector<1x32xf32>, vector<32x512xf32>, vector<1x512xf32> -> vector<1x512xf32>
    %1025 = arith.addf %1021, %1024 : vector<1x512xf32>
    %1026 = vector.extract_strided_slice %1025 {offsets = [0, 0], sizes = [1, 128], strides = [1, 1]} : vector<1x512xf32> to vector<1x128xf32>
    %1027 = arith.negf %1026 : vector<1x128xf32>
    %1028 = math.exp %1027 : vector<1x128xf32>
    %cst_363 = arith.constant 1.000000e+00 : f32
    %1029 = vector.broadcast %cst_363 : f32 to vector<1x128xf32>
    %1030 = arith.addf %1029, %1028 : vector<1x128xf32>
    %1031 = arith.divf %1029, %1030 : vector<1x128xf32>
    %1032 = vector.extract_strided_slice %1025 {offsets = [0, 128], sizes = [1, 128], strides = [1, 1]} : vector<1x512xf32> to vector<1x128xf32>
    %1033 = arith.negf %1032 : vector<1x128xf32>
    %1034 = math.exp %1033 : vector<1x128xf32>
    %cst_364 = arith.constant 1.000000e+00 : f32
    %1035 = vector.broadcast %cst_364 : f32 to vector<1x128xf32>
    %1036 = arith.addf %1035, %1034 : vector<1x128xf32>
    %1037 = arith.divf %1035, %1036 : vector<1x128xf32>
    %1038 = vector.extract_strided_slice %1025 {offsets = [0, 256], sizes = [1, 128], strides = [1, 1]} : vector<1x512xf32> to vector<1x128xf32>
    %1039 = math.tanh %1038 : vector<1x128xf32>
    %1040 = vector.extract_strided_slice %1025 {offsets = [0, 384], sizes = [1, 128], strides = [1, 1]} : vector<1x512xf32> to vector<1x128xf32>
    %1041 = arith.negf %1040 : vector<1x128xf32>
    %1042 = math.exp %1041 : vector<1x128xf32>
    %cst_365 = arith.constant 1.000000e+00 : f32
    %1043 = vector.broadcast %cst_365 : f32 to vector<1x128xf32>
    %1044 = arith.addf %1043, %1042 : vector<1x128xf32>
    %1045 = arith.divf %1043, %1044 : vector<1x128xf32>
    %1046 = arith.mulf %1037, %986 : vector<1x128xf32>
    %1047 = arith.mulf %1031, %1039 : vector<1x128xf32>
    %1048 = arith.addf %1046, %1047 : vector<1x128xf32>
    %1049 = math.tanh %1048 : vector<1x128xf32>
    %1050 = arith.mulf %1045, %1049 : vector<1x128xf32>
    %c7_366 = arith.constant 7 : index
    %c0_367 = arith.constant 0 : index
    %1051 = vector.load %arg24[%c7_366, %c0_367] : memref<8x128xf32, #tpu.memory_space<vmem>>, vector<1x128xf32>
    tpu.vector_store %arg24[%c7_366, %c0_367], %1050 {strides = array<i32>} : memref<8x128xf32, #tpu.memory_space<vmem>>, vector<1x128xf32>,
    %c0_368 = arith.constant 0 : index
    %c0_369 = arith.constant 0 : index
    %1052 = vector.load %arg22[%c0_368, %c0_369] : memref<8x128xf32, #tpu.memory_space<vmem>>, vector<8x128xf32>
    %c0_370 = arith.constant 0 : index
    %c0_371 = arith.constant 0 : index
    %1053 = vector.load %arg11[%c0_370, %c0_371] : memref<128x128xf32, #tpu.memory_space<vmem>>, vector<128x128xf32>
    %cst_372 = arith.constant dense<0.000000e+00> : vector<8x128xf32>
    %1054 = tpu.matmul %1052, %1053, %cst_372 {dimension_numbers = #tpu.dot_dimension_numbers<[1], [0], [0], [1], [0, 0, 1, 1], [], []>} : vector<8x128xf32>, vector<128x128xf32>, vector<8x128xf32> -> vector<8x128xf32>
    %c0_373 = arith.constant 0 : index
    %c0_374 = arith.constant 0 : index
    %1055 = vector.load %arg23[%c0_373, %c0_374] : memref<8x128xf32, #tpu.memory_space<vmem>>, vector<8x128xf32>
    %c0_375 = arith.constant 0 : index
    %c0_376 = arith.constant 0 : index
    %1056 = vector.load %arg12[%c0_375, %c0_376] : memref<128x128xf32, #tpu.memory_space<vmem>>, vector<128x128xf32>
    %cst_377 = arith.constant dense<0.000000e+00> : vector<8x128xf32>
    %1057 = tpu.matmul %1055, %1056, %cst_377 {dimension_numbers = #tpu.dot_dimension_numbers<[1], [0], [0], [1], [0, 0, 1, 1], [], []>} : vector<8x128xf32>, vector<128x128xf32>, vector<8x128xf32> -> vector<8x128xf32>
    %1058 = arith.addf %1054, %1057 : vector<8x128xf32>
    %c0_378 = arith.constant 0 : index
    %c0_379 = arith.constant 0 : index
    %1059 = vector.load %arg13[%c0_378, %c0_379] : memref<1x128xf32, #tpu.memory_space<vmem>>, vector<1x128xf32>
    %1060 = vector.broadcast %1059 : vector<1x128xf32> to vector<8x128xf32>
    %1061 = arith.addf %1058, %1060 : vector<8x128xf32>
    %cst_380 = arith.constant dense<0xFF800000> : vector<8xf32>
    %1062 = vector.multi_reduction <maximumf>, %1061, %cst_380 [1] : vector<8x128xf32> to vector<8xf32>
    %1063 = vector.shape_cast %1062 : vector<8xf32> to vector<8x1xf32>
    %1064 = vector.broadcast %1063 : vector<8x1xf32> to vector<8x128xf32>
    %1065 = arith.subf %1061, %1064 : vector<8x128xf32>
    %1066 = math.exp %1065 : vector<8x128xf32>
    %cst_381 = arith.constant dense<0.000000e+00> : vector<8xf32>
    %1067 = vector.multi_reduction <add>, %1066, %cst_381 [1] : vector<8x128xf32> to vector<8xf32>
    %1068 = vector.shape_cast %1067 : vector<8xf32> to vector<8x1xf32>
    %1069 = math.log %1068 : vector<8x1xf32>
    %1070 = vector.broadcast %1069 : vector<8x1xf32> to vector<8x128xf32>
    %1071 = arith.subf %1065, %1070 : vector<8x128xf32>
    %c0_382 = arith.constant 0 : index
    %c0_383 = arith.constant 0 : index
    %1072 = vector.load %arg19[%c0_382, %c0_383] : memref<8x128xf32, #tpu.memory_space<vmem>>, vector<8x128xf32>
    tpu.vector_store %arg19[%c0_382, %c0_383], %1071 {strides = array<i32>} : memref<8x128xf32, #tpu.memory_space<vmem>>, vector<8x128xf32>,
    %c0_384 = arith.constant 0 : index
    %c0_385 = arith.constant 0 : index
    %1073 = vector.load %arg24[%c0_384, %c0_385] : memref<8x128xf32, #tpu.memory_space<vmem>>, vector<8x128xf32>
    %c0_386 = arith.constant 0 : index
    %c0_387 = arith.constant 0 : index
    %1074 = vector.load %arg17[%c0_386, %c0_387] : memref<128x128xf32, #tpu.memory_space<vmem>>, vector<128x128xf32>
    %cst_388 = arith.constant dense<0.000000e+00> : vector<8x128xf32>
    %1075 = tpu.matmul %1073, %1074, %cst_388 {dimension_numbers = #tpu.dot_dimension_numbers<[1], [0], [0], [1], [0, 0, 1, 1], [], []>} : vector<8x128xf32>, vector<128x128xf32>, vector<8x128xf32> -> vector<8x128xf32>
    %c0_389 = arith.constant 0 : index
    %c0_390 = arith.constant 0 : index
    %1076 = vector.load %arg18[%c0_389, %c0_390] : memref<1x128xf32, #tpu.memory_space<vmem>>, vector<1x128xf32>
    %1077 = vector.broadcast %1076 : vector<1x128xf32> to vector<8x128xf32>
    %1078 = arith.addf %1075, %1077 : vector<8x128xf32>
    %cst_391 = arith.constant dense<0xFF800000> : vector<8xf32>
    %1079 = vector.multi_reduction <maximumf>, %1078, %cst_391 [1] : vector<8x128xf32> to vector<8xf32>
    %1080 = vector.shape_cast %1079 : vector<8xf32> to vector<8x1xf32>
    %1081 = vector.broadcast %1080 : vector<8x1xf32> to vector<8x128xf32>
    %1082 = arith.subf %1078, %1081 : vector<8x128xf32>
    %1083 = math.exp %1082 : vector<8x128xf32>
    %cst_392 = arith.constant dense<0.000000e+00> : vector<8xf32>
    %1084 = vector.multi_reduction <add>, %1083, %cst_392 [1] : vector<8x128xf32> to vector<8xf32>
    %1085 = vector.shape_cast %1084 : vector<8xf32> to vector<8x1xf32>
    %1086 = math.log %1085 : vector<8x1xf32>
    %1087 = vector.broadcast %1086 : vector<8x1xf32> to vector<8x128xf32>
    %1088 = arith.subf %1082, %1087 : vector<8x128xf32>
    %c0_393 = arith.constant 0 : index
    %c0_394 = arith.constant 0 : index
    %1089 = vector.load %arg20[%c0_393, %c0_394] : memref<8x128xf32, #tpu.memory_space<vmem>>, vector<8x128xf32>
    tpu.vector_store %arg20[%c0_393, %c0_394], %1088 {strides = array<i32>} : memref<8x128xf32, #tpu.memory_space<vmem>>, vector<8x128xf32>,
    return
  }
}

</mosaic_0001>

<bundles_post_ra>
// kernel: seq2seq_forward.1
= control target key start
LH: loop header
LB: loop body
LE: loop exit
PB: predicated region body
PF: predicated region fallthrough
CT: control target
= control target key end

     0   :  { %s11836_s0 = inlined_call_operand.vmem [shape: f32[8,32], index: 0, kind: input, shape index: {}]   ;;  %s11837_s1 = inlined_call_operand.vmem [shape: f32[8,32], index: 1, kind: input, shape index: {}]   ;;  %s11838_s2 = inlined_call_operand.vmem [shape: f32[32,512], index: 2, kind: input, shape index: {}]   ;;  %s11839_s3 = inlined_call_operand.vmem [shape: f32[32,512], index: 3, kind: input, shape index: {}]   ;;  %s11840_s4 = inlined_call_operand.vmem [shape: f32[1,512], index: 4, kind: input, shape index: {}]   ;;  %s11841_s5 = inlined_call_operand.vmem [shape: f32[32,512], index: 5, kind: input, shape index: {}]   ;;  %s11842_s6 = inlined_call_operand.vmem [shape: f32[32,512], index: 6, kind: input, shape index: {}]   ;;  %s11843_s7 = inlined_call_operand.vmem [shape: f32[1,512], index: 7, kind: input, shape index: {}]   ;;  %s11844_s8 = inlined_call_operand.vmem [shape: f32[32,512], index: 8, kind: input, shape index: {}]   ;;  %s11845_s9 = inlined_call_operand.vmem [shape: f32[32,512], index: 9, kind: input, shape index: {}]   ;;  %s11846_s10 = inlined_call_operand.vmem [shape: f32[1,512], index: 10, kind: input, shape index: {}]   ;;  %s11847_s11 = inlined_call_operand.vmem [shape: f32[128,128], index: 11, kind: input, shape index: {}]   ;;  %s11848_s12 = inlined_call_operand.vmem [shape: f32[128,128], index: 12, kind: input, shape index: {}]   ;;  %s11849_s13 = inlined_call_operand.vmem [shape: f32[1,128], index: 13, kind: input, shape index: {}]   ;;  %s11850_s14 = inlined_call_operand.vmem [shape: f32[32,512], index: 14, kind: input, shape index: {}]   ;;  %s11851_s15 = inlined_call_operand.vmem [shape: f32[32,512], index: 15, kind: input, shape index: {}]   ;;  %s11852_s16 = inlined_call_operand.vmem [shape: f32[1,512], index: 16, kind: input, shape index: {}]   ;;  %s11853_s17 = inlined_call_operand.vmem [shape: f32[128,128], index: 17, kind: input, shape index: {}]   ;;  %s11854_s18 = inlined_call_operand.vmem [shape: f32[1,128], index: 18, kind: input, shape index: {}]   ;;  %s11855_s19 = inlined_call_operand.hbm [shape: f32[8,128], index: 19, kind: output, shape index: {0}]   ;;  %s11856_s20 = inlined_call_operand.hbm [shape: f32[8,128], index: 20, kind: output, shape index: {1}]  }
   0x1   :  { %11877 = sst [smem:[#allocation25_spill]] %s11836_s0 }
   0x2   :  { %11878 = sst [smem:[#allocation26_spill]] %s11837_s1 }
   0x3   :  { %11879 = sst [smem:[#allocation27_spill]] %s11838_s2 }
   0x4   :  { %11880 = sst [smem:[#allocation28_spill]] %s11839_s3 }
   0x5   :  { %11881 = sst [smem:[#allocation29_spill]] %s11840_s4 }
   0x6   :  { %26 = vsyncpa [#allocation10], 0  ;;  %s11882_s23 = sld [smem:[#allocation27_spill]]  ;;  %vm93_vm0 = vcmask 261120  }
   0x7   :  { %s11883_s29 = sld [smem:[#allocation25_spill]] }
   0x8   :  { %s11884_s22 = sld [smem:[#allocation28_spill]] }
   0xc   :  { %v79_v0 = vld [vmem:[%s11882_s23 + $0x60] sm:$0xff]  ;;  %v80_v5 = vld [vmem:[%s11882_s23 + $0x68] sm:$0xff] }
   0xd   :  { %v75_v1 = vld [vmem:[%s11882_s23 + $0x40] sm:$0xff]  ;;  %109 = vmatpush.msra.mxu3 %v79_v0  ;;  %v76_v8 = vld [vmem:[%s11882_s23 + $0x48] sm:$0xff] }
   0xe   :  { %v71_v2 = vld [vmem:[%s11882_s23 + $0x20] sm:$0xff]  ;;  %v8139_v6 = vld [vmem:[%s11884_s22 + $0x70] sm:$0xff]  ;;  %v8159_v10 = vld [vmem:[%s11884_s22 + $0x68] sm:$0xff] }
   0xf   :  { %110 = vmatpush.msra.mxu3 %v75_v1  ;;  %v67_v3 = vld [vmem:[%s11882_s23] sm:$0xff]  ;;  %v8144_v7 = vld [vmem:[%s11884_s22 + $0x50] sm:$0xff]  ;;  %253 = vmatpush.msra.mxu2 %v8139_v6  ;;  %v8170_v12 = vld [vmem:[%s11884_s22 + $0x48] sm:$0xff] }
  0x10   :  { %v66_v4 = vld [vmem:[%s11883_s29] sm:$0xff]  ;;  %v8154_v9 = vld [vmem:[%s11884_s22 + $0x30] sm:$0xff]  ;;  %11886 = vst [vmem:[#allocation16_spill] sm:$0xff] %v8170_v12  ;;  %v72_v14 = vld [vmem:[%s11882_s23 + $0x28] sm:$0xff]  ;;  %233 = vmatpush.msra.mxu1 %v8159_v10 }
  0x11   :  { %111 = vmatpush.msra.mxu3 %v71_v2  ;;  %11885 = vst [vmem:[#allocation15_spill] sm:$0xff] %v8154_v9  ;;  %v8164_v11 = vld [vmem:[%s11884_s22 + $0x60] sm:$0xff]  ;;  %254 = vmatpush.msra.mxu2 %v8144_v7  ;;  %v8184_v15 = vld [vmem:[%s11884_s22 + $0x10] sm:$0xff]  ;;  %v8191_v16 = vld [vmem:[%s11884_s22 + $0x28] sm:$0xff] }
  0x12   :  { %v8175_v13 = vld [vmem:[%s11884_s22 + $0x40] sm:$0xff]  ;;  %11888 = vst [vmem:[#allocation18_spill] sm:$0xff] %v8184_v15  ;;  %213 = vmatpush.msra.mxu0 %v8164_v11  ;;  %v68_v17 = vld [vmem:[%s11882_s23 + $0x8] sm:$0xff]  ;;  %234 = vmatpush.msra.mxu1 %v8170_v12 }
  0x13   :  { %112 = vmatpush.msra.mxu3 %v67_v3  ;;  %11887 = vst [vmem:[#allocation17_spill] sm:$0xff] %v8175_v13  ;;  %255 = vmatpush.msra.mxu2 %v8154_v9  ;;  %v8201_v18 = vld [vmem:[%s11884_s22 + $0x20] sm:$0xff] }
  0x14   :  { %7177 = vmatmul.msk.f32.vlgmr.msra.gmra.mxu3 %vm93_vm0, %v66_v4  ;;  %11889 = vst [vmem:[#allocation19_spill] sm:$0xff] %v8191_v16  ;;  %214 = vmatpush.msra.mxu0 %v8175_v13 }
  0x15   :  { %129 = vmatpush.msrb.mxu3 %v80_v5  ;;  %11890 = vst [vmem:[#allocation20_spill] sm:$0xff] %v8201_v18 }
  0x17   :  { %130 = vmatpush.msrb.mxu3 %v76_v8 }
  0x18   :  { %27 = vsyncpa [#allocation12], 0  ;;  %256 = vmatpush.msra.mxu2 %v8184_v15  ;;  %v8207_v19 = vld [vmem:[%s11884_s22 + $0x8] sm:$0xff]  ;;  %v81_v20 = vld [vmem:[%s11882_s23 + $0x70] sm:$0xff]  ;;  %v11859_v21 = vmov 0.0   ;;  %235 = vmatpush.msra.mxu1 %v8191_v16  ;;  %s11895_s2 = sld [smem:[#allocation29_spill]] }
  0x19   :  { %131 = vmatpush.msrb.mxu3 %v72_v14  ;;  %11891 = vst [vmem:[#allocation21_spill] sm:$0xff] %v8207_v19  ;;  %257 = vmatmul.f32.vlgmr.msra.gmra.mxu2 %v11859_v21  ;;  %v8218_v22 = vld [vmem:[%s11884_s22] sm:$0xff]  ;;  %v77_v23 = vld [vmem:[%s11882_s23 + $0x50] sm:$0xff]  ;;  %v82_v26 = vld [vmem:[%s11882_s23 + $0x78] sm:$0xff]  ;;  %vm288_vm1 = vcmask 1040384   ;;  %vm290_vm2 = vcmask 1042434  }
  0x1a   :  { %215 = vmatpush.msra.mxu0 %v8201_v18  ;;  %11892 = vst [vmem:[#allocation22_spill] sm:$0xff] %v8218_v22  ;;  %236 = vmatpush.msra.mxu1 %v8207_v19  ;;  %v73_v24 = vld [vmem:[%s11882_s23 + $0x30] sm:$0xff]  ;;  %v78_v27 = vld [vmem:[%s11882_s23 + $0x58] sm:$0xff]  ;;  %vm292_vm3 = vcmask 1041408   ;;  %v8292_v60 = vld [vmem:[%s11842_s6 + $0x60] sm:$0xff]  ;;  %s11944_s27 = sld [smem:[#allocation26_spill]] }
  0x1b   :  { %132 = vmatpush.msrb.mxu3 %v68_v17  ;;  %237 = vmatmul.f32.vlgmr.msra.gmra.mxu1 %v11859_v21  ;;  %v69_v25 = vld [vmem:[%s11882_s23 + $0x10] sm:$0xff]  ;;  %v74_v28 = vld [vmem:[%s11882_s23 + $0x38] sm:$0xff]  ;;  %v8301_v62 = vld [vmem:[%s11842_s6 + $0x68] sm:$0xff]  ;;  %s8012_s21 = smov [#allocation11]  }
  0x1c   :  { %7178 = vmatmul.msk.f32.vlgmr.msrb.gmra.mxu3 %vm93_vm0, %v66_v4  ;;  %216 = vmatpush.msra.mxu0 %v8218_v22  ;;  %v70_v29 = vld [vmem:[%s11882_s23 + $0x18] sm:$0xff]  ;;  %v8282_v58 = vld [vmem:[%s11842_s6 + $0x70] sm:$0xff]  ;;  %v8318_v1 = vld [vmem:[%s11842_s6 + $0x40] sm:$0xff]  ;;  %s7152_s23 = sshll.u32 %s11855_s19, 4  ;;  %s7161_s1 = sshll.u32 %s8012_s21, 4  ;;  %s7153_s23 = int_to_ptr.hbm [resolvable:$true] %s7152_s23  ;;  %s7162_s1 = int_to_ptr.vmem [resolvable:$true] %s7161_s1 }
  0x1d   :  { %149 = vmatpush.msra.mxu3 %v81_v20  ;;  %217 = vmatmul.f32.vlgmr.msra.gmra.mxu0 %v11859_v21  ;;  %v8250_v30 = vld [vmem:[%s11884_s22 + $0x78] sm:$0xff]  ;;  %v8308_v63 = vld [vmem:[%s11842_s6 + $0x50] sm:$0xff]  ;;  %v8328_v5 = vld [vmem:[%s11842_s6 + $0x48] sm:$0xff] }
  0x1e   :  { %v8256_v31 = vld [vmem:[%s11884_s22 + $0x58] sm:$0xff]  ;;  %v83_v34 = vld [vmem:[%s11895_s2] sm:$0xf]  ;;  %451 = vmatpush.msrb.mxu2 %v8282_v58  ;;  %411 = vmatpush.msrb.mxu0 %v8292_v60  ;;  %v8335_v8 = vld [vmem:[%s11842_s6 + $0x30] sm:$0xff] }
  0x1f   :  { %150 = vmatpush.msra.mxu3 %v77_v23  ;;  %v8262_v32 = vld [vmem:[%s11884_s22 + $0x38] sm:$0xff]  ;;  %v85_v35 = vperm.slane %v83_v34, 0  ;;  %v86_v38 = vperm.slane %v83_v34, 1  ;;  %v87_v41 = vperm.slane %v83_v34, 2  ;;  %v88_v44 = vperm.slane %v83_v34, 3  ;;  %431 = vmatpush.msrb.mxu1 %v8301_v62  ;;  %v8345_v17 = vld [vmem:[%s11842_s6 + $0x20] sm:$0xff] }
  0x20   :  { %11893 = vst [vmem:[#allocation23_spill] sm:$0xff] %v8262_v32  ;;  %v8268_v33 = vld [vmem:[%s11884_s22 + $0x18] sm:$0xff]  ;;  %452 = vmatpush.msrb.mxu2 %v8308_v63  ;;  %412 = vmatpush.msrb.mxu0 %v8318_v1 }
  0x21   :  { %151 = vmatpush.msra.mxu3 %v73_v24  ;;  %11894 = vst [vmem:[#allocation24_spill] sm:$0xff] %v8268_v33  ;;  %v8287_v59 = vld [vmem:[%s11842_s6 + $0x78] sm:$0xff]  ;;  %432 = vmatpush.msrb.mxu1 %v8328_v5  ;;  %v8352_v24 = vld [vmem:[%s11842_s6 + $0x28] sm:$0xff] }
  0x22   :  { %v8313_v0 = vld [vmem:[%s11842_s6 + $0x58] sm:$0xff]  ;;  %453 = vmatpush.msrb.mxu2 %v8335_v8  ;;  %413 = vmatpush.msrb.mxu0 %v8345_v17 }
  0x23   :  { %152 = vmatpush.msra.mxu3 %v69_v25  ;;  %v8340_v14 = vld [vmem:[%s11842_s6 + $0x38] sm:$0xff]  ;;  %433 = vmatpush.msrb.mxu1 %v8352_v24  ;;  %v8359_v25 = vld [vmem:[%s11842_s6 + $0x10] sm:$0xff] }
  0x24   :  { %7179 = vmatmul.msk.f32.vlgmr.msra.gmra.mxu3 %vm93_vm0, %v66_v4  ;;  %454 = vmatpush.msrb.mxu2 %v8359_v25  ;;  %v8388_v34 = vld [vmem:[%s11841_s5 + $0x78] sm:$0xff] }
  0x25   :  { %169 = vmatpush.msrb.mxu3 %v82_v26  ;;  %v8364_v26 = vld [vmem:[%s11842_s6 + $0x18] sm:$0xff]  ;;  %455 = vmatmul.f32.vlgmr.msrb.gmra.mxu2 %v11859_v21 }
  0x27   :  { %170 = vmatpush.msrb.mxu3 %v78_v27  ;;  %v8369_v27 = vld [vmem:[%s11842_s6] sm:$0xff] }
  0x28   :  { %414 = vmatpush.msrb.mxu0 %v8369_v27 }
  0x29   :  { %171 = vmatpush.msrb.mxu3 %v74_v28  ;;  %v8376_v28 = vld [vmem:[%s11842_s6 + $0x8] sm:$0xff]  ;;  %415 = vmatmul.f32.vlgmr.msrb.gmra.mxu0 %v11859_v21 }
  0x2a   :  { %434 = vmatpush.msrb.mxu1 %v8376_v28 }
  0x2b   :  { %172 = vmatpush.msrb.mxu3 %v70_v29  ;;  %v8383_v29 = vld [vmem:[%s11841_s5 + $0x70] sm:$0xff]  ;;  %435 = vmatmul.f32.vlgmr.msrb.gmra.mxu1 %v11859_v21 }
  0x2c   :  { %7180 = vmatmul.msk.f32.vlgmr.msrb.gmra.mxu3 %vm93_vm0, %v66_v4  ;;  %534 = vmatpush.msra.mxu2 %v8383_v29 }
  0x2d   :  { %273 = vmatpush.msra.mxu3 %v8250_v30 }
  0x2f   :  { %274 = vmatpush.msra.mxu3 %v8256_v31 }
  0x31   :  { %275 = vmatpush.msra.mxu3 %v8262_v32 }
  0x33   :  { %276 = vmatpush.msra.mxu3 %v8268_v33 }
  0x34   :  { %277 = vmatmul.f32.vlgmr.msra.gmra.mxu3 %v11859_v21 }
  0x35   :  { %471 = vmatpush.msrb.mxu3 %v8287_v59 }
  0x37   :  { %472 = vmatpush.msrb.mxu3 %v8313_v0 }
  0x39   :  { %473 = vmatpush.msrb.mxu3 %v8340_v14 }
  0x3b   :  { %474 = vmatpush.msrb.mxu3 %v8364_v26 }
  0x3c   :  { %475 = vmatmul.f32.vlgmr.msrb.gmra.mxu3 %v11859_v21 }
  0x3d   :  { %554 = vmatpush.msra.mxu3 %v8388_v34 }
  0x97   :  { %v114_v36 = vpop.f32.mrf.mxu3 }
  0x98   :  { %v115_v37 = vadd.f32 %v114_v36, %v85_v35  ;;  %v238_v47 = vpop.f32.mrf.mxu1  ;;  %v8395_v35 = vld [vmem:[%s11841_s5 + $0x60] sm:$0xff]  ;;  %v8400_v36 = vld [vmem:[%s11841_s5 + $0x68] sm:$0xff] }
  0x99   :  { %v285_v49 = vrot.slane %v238_v47, 7  ;;  %494 = vmatpush.msra.mxu0 %v8395_v35  ;;  %514 = vmatpush.msra.mxu1 %v8400_v36  ;;  %v8450_v47 = vld [vmem:[%s11841_s5 + $0x28] sm:$0xff] }
  0x9a   :  { %177 = vst [vmem:[#allocation6] sm:$0xff] %v115_v37  ;;  %v218_v50 = vpop.f32.mrf.mxu0  ;;  %v8407_v37 = vld [vmem:[%s11841_s5 + $0x50] sm:$0xff] }
  0x9b   :  { %v289_v54 = vsel %vm288_vm1, %v218_v50, %v285_v49  ;;  %535 = vmatpush.msra.mxu2 %v8407_v37  ;;  %v8458_v49 = vld [vmem:[%s11841_s5 + $0x10] sm:$0xff]  ;;  %v8463_v50 = vld [vmem:[%s11841_s5 + $0x18] sm:$0xff] }
  0x9c   :  { %v258_v48 = vpop.f32.mrf.mxu2 }
  0x9d   :  { %v286_v51 = vrot.slane %v258_v48, 6 }
  0x9f   :  { %v134_v39 = vpop.f32.mrf.mxu3 }
  0xa0   :  { %v135_v40 = vadd.f32 %v134_v39, %v86_v38  ;;  %v8412_v38 = vld [vmem:[%s11841_s5 + $0x58] sm:$0xff] }
  0xa1   :  { %555 = vmatpush.msra.mxu3 %v8412_v38 }
  0xa2   :  { %178 = vst [vmem:[#allocation6 + $0x8] sm:$0xff] %v135_v40  ;;  %v8419_v40 = vld [vmem:[%s11841_s5 + $0x40] sm:$0xff] }
  0xa3   :  { %495 = vmatpush.msra.mxu0 %v8419_v40 }
  0xa7   :  { %v154_v42 = vpop.f32.mrf.mxu3 }
  0xa8   :  { %v155_v43 = vadd.f32 %v154_v42, %v87_v41  ;;  %v8424_v41 = vld [vmem:[%s11841_s5 + $0x48] sm:$0xff] }
  0xa9   :  { %515 = vmatpush.msra.mxu1 %v8424_v41 }
  0xaa   :  { %179 = vst [vmem:[#allocation6 + $0x10] sm:$0xff] %v155_v43  ;;  %v8433_v43 = vld [vmem:[%s11841_s5 + $0x30] sm:$0xff] }
  0xab   :  { %536 = vmatpush.msra.mxu2 %v8433_v43  ;;  %516 = vmatpush.msra.mxu1 %v8450_v47 }
  0xad   :  { %537 = vmatpush.msra.mxu2 %v8458_v49 }
  0xaf   :  { %v174_v45 = vpop.f32.mrf.mxu3  ;;  %710 = vmatpush.msrb.mxu2 %v8139_v6 }
  0xb0   :  { %v175_v46 = vadd.f32 %v174_v45, %v88_v44  ;;  %v8438_v44 = vld [vmem:[%s11841_s5 + $0x38] sm:$0xff] }
  0xb1   :  { %556 = vmatpush.msra.mxu3 %v8438_v44  ;;  %711 = vmatpush.msrb.mxu2 %v8144_v7 }
  0xb2   :  { %180 = vst [vmem:[#allocation6 + $0x18] sm:$0xff] %v175_v46  ;;  %v8445_v46 = vld [vmem:[%s11841_s5 + $0x20] sm:$0xff] }
  0xb3   :  { %496 = vmatpush.msra.mxu0 %v8445_v46  ;;  %557 = vmatpush.msra.mxu3 %v8463_v50 }
  0xb4   :  { %712 = vmatpush.msrb.mxu2 %v8154_v9 }
  0xb5   :  { %730 = vmatpush.msrb.mxu3 %v8250_v30 }
  0xb6   :  { %713 = vmatpush.msrb.mxu2 %v8184_v15 }
  0xb7   :  { %v278_v52 = vpop.f32.mrf.mxu3  ;;  %731 = vmatpush.msrb.mxu3 %v8256_v31 }
  0xb8   :  { %v287_v53 = vrot.slane %v278_v52, 5 }
  0xb9   :  { %v181_v55 = vld [vmem:[#allocation6] ss:$8 sm:$0xf]  ;;  %732 = vmatpush.msrb.mxu3 %v8262_v32 }
  0xba   :  { %v291_v56 = vsel %vm290_vm2, %v286_v51, %v287_v53  ;;  %v8472_v53 = vld [vmem:[%s11841_s5] sm:$0xff] }
  0xbb   :  { %v293_v57 = vsel %vm292_vm3, %v289_v54, %v291_v56  ;;  %v8477_v54 = vld [vmem:[%s11841_s5 + $0x8] sm:$0xff]  ;;  %497 = vmatpush.msra.mxu0 %v8472_v53  ;;  %733 = vmatpush.msrb.mxu3 %v8268_v33 }
  0xbc   :  { %v8294_v61 = vadd.f32 %v293_v57, %v181_v55  ;;  %517 = vmatpush.msra.mxu1 %v8477_v54 }
  0xbd   :  { %670 = vmatpush.msrb.mxu0 %v8164_v11 }
  0xbe   :  { %v7181_v2 = vmul.f32 -1.442695, %v8294_v61  ;;  %v316_v3 = vrot.slane %v8294_v61, 1  ;;  %v340_v4 = vrot.slane %v8294_v61, 3  ;;  %690 = vmatpush.msrb.mxu1 %v8159_v10 }
  0xbf   :  { %671 = vmatpush.msrb.mxu0 %v8175_v13 }
  0xc0   :  { %7438 = vpow2.f32 %v7181_v2  ;;  %v7182_v20 = vmul.f32 -1.442695, %v316_v3  ;;  %v7183_v23 = vmul.f32 -1.442695, %v340_v4  ;;  %691 = vmatpush.msrb.mxu1 %v8170_v12  ;;  %v337_v3 = vrot.slane %v8294_v61, 2 }
  0xc1   :  { %672 = vmatpush.msrb.mxu0 %v8201_v18 }
  0xc2   :  { %7440 = vpow2.f32 %v7182_v20  ;;  %692 = vmatpush.msrb.mxu1 %v8191_v16 }
  0xc3   :  { %7442 = vpow2.f32 %v7183_v23  ;;  %673 = vmatpush.msrb.mxu0 %v8218_v22 }
  0xc4   :  { %693 = vmatpush.msrb.mxu1 %v8207_v19 }
  0xc6   :  { %v7439_v39 = vpop.eup %7438 }
  0xc7   :  { %v8426_v42 = vadd.f32 1.0, %v7439_v39 }
  0xc8   :  { %v7441_v45 = vpop.eup %7440 }
  0xc9   :  { %v7443_v48 = vpop.eup %7442  ;;  %7444 = vrcp.f32 %v8426_v42  ;;  %v321_v51 = vadd.f32 1.0, %v7441_v45  ;;  %v311_v39 = vand.u32 2147483648, %v8426_v42  ;;  %v309_v61 = vand.u32 2147483647, %v8426_v42 }
  0xca   :  { %v8465_v52 = vadd.f32 1.0, %v7443_v48  ;;  %vm305_vm5 = vweird.f32 %v8426_v42 }
  0xcb   :  { %7446 = vrcp.f32 %v321_v51  ;;  %v331_v16 = vand.u32 2147483647, %v321_v51  ;;  %v312_v15 = vor.u32 1.1754944e-38, %v311_v39  ;;  %vm310_vm8 = vcmp.eq.f32.partialorder %v309_v61, 8.507059e+37 }
  0xcc   :  { %7448 = vrcp.f32 %v8465_v52  ;;  %vm327_vm9 = vweird.f32 %v321_v51  ;;  %vm351_vm13 = vweird.f32 %v8465_v52 }
  0xcd   :  { %7450 = vtanh.f32 %v337_v3  ;;  %vm332_vm11 = vcmp.eq.f32.partialorder %v331_v16, 8.507059e+37 }
  0xcf   :  { %v7445_v55 = vpop.eup %7444 }
  0xd0   :  { %v301_v56 = vmul.f32 %v7445_v55, %v8426_v42  ;;  %vm306_vm4 = vweird.f32 %v7445_v55 }
  0xd1   :  { %v7447_v57 = vpop.eup %7446  ;;  %vm307_vm6 = vmor %vm305_vm5, %vm306_vm4 }
  0xd2   :  { %v302_v2 = vsub.f32 1.0, %v301_v56  ;;  %v7449_v4 = vpop.eup %7448  ;;  %v323_v20 = vmul.f32 %v7447_v57, %v321_v51  ;;  %vm328_vm7 = vweird.f32 %v7447_v57 }
  0xd3   :  { %v347_v45 = vmul.f32 %v7449_v4, %v8465_v52  ;;  %vm329_vm10 = vmor %vm327_vm9, %vm328_vm7  ;;  %vm352_vm12 = vweird.f32 %v7449_v4 }
  0xd4   :  { %v303_v23 = vmul.f32 %v7445_v55, %v302_v2  ;;  %v324_v48 = vsub.f32 1.0, %v323_v20  ;;  %v333_v2 = vand.u32 2147483648, %v321_v51  ;;  %vm353_vm14 = vmor %vm351_vm13, %vm352_vm12 }
  0xd5   :  { %v348_v32 = vsub.f32 1.0, %v347_v45 }
  0xd6   :  { %v304_v56 = vadd.f32 %v7445_v55, %v303_v23  ;;  %v325_v21 = vmul.f32 %v7447_v57, %v324_v48  ;;  %v334_v22 = vor.u32 1.1754944e-38, %v333_v2  ;;  %v7451_v23 = vpop.eup %7450 }
  0xd7   :  { %v349_v42 = vmul.f32 %v7449_v4, %v348_v32  ;;  %v562_v32 = vld [vmem:[%s11843_s7] sm:$0xf] }
  0xd8   :  { %v308_v18 = vsel %vm307_vm6, %v7445_v55, %v304_v56  ;;  %v326_v33 = vadd.f32 %v7447_v57, %v325_v21  ;;  %v357_v55 = vand.u32 2147483648, %v8465_v52 }
  0xd9   :  { %v313_v20 = vsel %vm310_vm8, %v312_v15, %v308_v18  ;;  %v350_v48 = vadd.f32 %v7449_v4, %v349_v42  ;;  %v355_v15 = vand.u32 2147483647, %v8465_v52 }
  0xda   :  { %v330_v9 = vsel %vm329_vm10, %v7447_v57, %v326_v33  ;;  %v362_v3 = vmul.f32 %v7451_v23, %v313_v20  ;;  %v358_v16 = vor.u32 1.1754944e-38, %v357_v55  ;;  %v456_v33 = vpop.f32.mrf.mxu2  ;;  %v566_v23 = vperm.slane %v562_v32, 2 }
  0xdb   :  { %v335_v19 = vsel %vm332_vm11, %v334_v22, %v330_v9  ;;  %v354_v18 = vsel %vm353_vm14, %v7449_v4, %v350_v48  ;;  %vm356_vm15 = vcmp.eq.f32.partialorder %v355_v15, 8.507059e+37  ;;  %v436_v22 = vpop.f32.mrf.mxu1 }
  0xdc   :  { %v361_v12 = vmul.f32 0.0, %v335_v19  ;;  %v359_v21 = vsel %vm356_vm15, %v358_v16, %v354_v18 }
  0xde   :  { %v8508_v13 = vadd.f32 %v362_v3, %v361_v12  ;;  %v416_v12 = vpop.f32.mrf.mxu0 }
  0xe0   :  { %7452 = vtanh.f32 %v8508_v13 }
  0xe6   :  { %v7453_v9 = vpop.eup %7452 }
  0xe7   :  { %v365_v19 = vmul.f32 %v7453_v9, %v359_v21  ;;  %v641_v21 = vld [vmem:[#allocation6 + $0x1] ss:$8 sm:$0xf] }
  0xe9   :  { %366 = vst [vmem:[#allocation2] sm:$0x1] %v365_v19  ;;  %7184 = vmatmul.msk.f32.vlgmr.msra.gmra.mxu0 %vm93_vm0, %v365_v19  ;;  %7185 = vmatmul.msk.f32.vlgmr.msra.gmra.mxu1 %vm93_vm0, %v365_v19 }
  0xea   :  { %7186 = vmatmul.msk.f32.vlgmr.msra.gmra.mxu2 %vm93_vm0, %v365_v19  ;;  %7187 = vmatmul.msk.f32.vlgmr.msra.gmra.mxu3 %vm93_vm0, %v365_v19 }
  0xeb   :  { %868 = vmatpush.msra.mxu0 %v8292_v60  ;;  %888 = vmatpush.msra.mxu1 %v8301_v62 }
  0xec   :  { %908 = vmatpush.msra.mxu2 %v8282_v58  ;;  %928 = vmatpush.msra.mxu3 %v8287_v59 }
  0xed   :  { %869 = vmatpush.msra.mxu0 %v8318_v1  ;;  %889 = vmatpush.msra.mxu1 %v8328_v5 }
  0xee   :  { %909 = vmatpush.msra.mxu2 %v8308_v63  ;;  %929 = vmatpush.msra.mxu3 %v8313_v0 }
  0xef   :  { %870 = vmatpush.msra.mxu0 %v8345_v17  ;;  %890 = vmatpush.msra.mxu1 %v8352_v24 }
  0xf0   :  { %910 = vmatpush.msra.mxu2 %v8335_v8  ;;  %930 = vmatpush.msra.mxu3 %v8340_v14 }
  0xf1   :  { %7191 = vmatmul.msk.f32.vlgmr.msrb.gmra.mxu0 %vm93_vm0, %v365_v19  ;;  %7192 = vmatmul.msk.f32.vlgmr.msrb.gmra.mxu1 %vm93_vm0, %v365_v19 }
  0xf2   :  { %7193 = vmatmul.msk.f32.vlgmr.msrb.gmra.mxu2 %vm93_vm0, %v365_v19  ;;  %7194 = vmatmul.msk.f32.vlgmr.msrb.gmra.mxu3 %vm93_vm0, %v365_v19 }
  0xf3   :  { %871 = vmatpush.msra.mxu0 %v8369_v27  ;;  %891 = vmatpush.msra.mxu1 %v8376_v28 }
  0xf4   :  { %911 = vmatpush.msra.mxu2 %v8359_v25  ;;  %931 = vmatpush.msra.mxu3 %v8364_v26 }
  0xf5   :  { %951 = vmatpush.msrb.mxu0 %v8395_v35  ;;  %971 = vmatpush.msrb.mxu1 %v8400_v36  ;;  %v565_v35 = vperm.slane %v562_v32, 1 }
  0xf6   :  { %991 = vmatpush.msrb.mxu2 %v8383_v29  ;;  %1011 = vmatpush.msrb.mxu3 %v8388_v34  ;;  %v476_v29 = vpop.f32.mrf.mxu3  ;;  %v564_v34 = vperm.slane %v562_v32, 0 }
  0xf7   :  { %952 = vmatpush.msrb.mxu0 %v8419_v40  ;;  %972 = vmatpush.msrb.mxu1 %v8424_v41 }
  0xf8   :  { %992 = vmatpush.msrb.mxu2 %v8407_v37  ;;  %1012 = vmatpush.msrb.mxu3 %v8412_v38 }
  0xf9   :  { %953 = vmatpush.msrb.mxu0 %v8445_v46  ;;  %973 = vmatpush.msrb.mxu1 %v8450_v47  ;;  %v567_v47 = vperm.slane %v562_v32, 3 }
  0xfa   :  { %993 = vmatpush.msrb.mxu2 %v8433_v43  ;;  %1013 = vmatpush.msrb.mxu3 %v8438_v44 }
  0xfb   :  { %954 = vmatpush.msrb.mxu0 %v8472_v53  ;;  %974 = vmatpush.msrb.mxu1 %v8477_v54 }
  0xfc   :  { %994 = vmatpush.msrb.mxu2 %v8458_v49  ;;  %1014 = vmatpush.msrb.mxu3 %v8463_v50 }
 0x166   :  { %v499_v36 = vpop.f32.mrf.mxu0  ;;  %v519_v37 = vpop.f32.mrf.mxu1 }
 0x167   :  { %v500_v38 = vadd.f32 %v499_v36, %v416_v12  ;;  %v520_v40 = vadd.f32 %v519_v37, %v436_v22 }
 0x169   :  { %v572_v41 = vadd.f32 %v564_v34, %v500_v38  ;;  %v573_v43 = vadd.f32 %v565_v35, %v520_v40 }
 0x16b   :  { %v7188_v44 = vmul.f32 -1.442695, %v572_v41  ;;  %v7189_v46 = vmul.f32 -1.442695, %v573_v43 }
 0x16d   :  { %7454 = vpow2.f32 %v7188_v44  ;;  %v539_v49 = vpop.f32.mrf.mxu2  ;;  %v559_v50 = vpop.f32.mrf.mxu3 }
 0x16e   :  { %7456 = vpow2.f32 %v7189_v46  ;;  %v560_v51 = vadd.f32 %v559_v50, %v476_v29  ;;  %v695_v57 = vpop.f32.mrf.mxu1  ;;  %v540_v20 = vadd.f32 %v539_v49, %v456_v33  ;;  %v675_v48 = vpop.f32.mrf.mxu0 }
 0x16f   :  { %v742_v2 = vrot.slane %v695_v57, 7 }
 0x170   :  { %v575_v52 = vadd.f32 %v567_v47, %v560_v51  ;;  %v574_v16 = vadd.f32 %v566_v23, %v540_v20 }
 0x171   :  { %v745_v15 = vsel %vm288_vm1, %v675_v48, %v742_v2 }
 0x172   :  { %v7190_v53 = vmul.f32 -1.442695, %v575_v52 }
 0x173   :  { %v7455_v54 = vpop.eup %7454 }
 0x174   :  { %v7457_v4 = vpop.eup %7456  ;;  %v579_v39 = vadd.f32 1.0, %v7455_v54  ;;  %7458 = vpow2.f32 %v7190_v53 }
 0x175   :  { %v598_v45 = vadd.f32 1.0, %v7457_v4  ;;  %v715_v61 = vpop.f32.mrf.mxu2  ;;  %v735_v56 = vpop.f32.mrf.mxu3 }
 0x176   :  { %7460 = vrcp.f32 %v579_v39  ;;  %v743_v42 = vrot.slane %v715_v61, 6  ;;  %v744_v3 = vrot.slane %v735_v56, 5  ;;  %v589_v37 = vand.u32 2147483647, %v579_v39 }
 0x177   :  { %7462 = vrcp.f32 %v598_v45  ;;  %v591_v41 = vand.u32 2147483648, %v579_v39  ;;  %v610_v44 = vand.u32 2147483648, %v598_v45  ;;  %v608_v50 = vand.u32 2147483647, %v598_v45 }
 0x178   :  { %v746_v18 = vsel %vm290_vm2, %v743_v42, %v744_v3  ;;  %vm585_vm6 = vweird.f32 %v579_v39  ;;  %vm604_vm7 = vweird.f32 %v598_v45  ;;  %vm590_vm9 = vcmp.eq.f32.partialorder %v589_v37, 8.507059e+37 }
 0x179   :  { %v747_v19 = vsel %vm292_vm3, %v745_v15, %v746_v18  ;;  %v592_v53 = vor.u32 1.1754944e-38, %v591_v41  ;;  %v611_v61 = vor.u32 1.1754944e-38, %v610_v44  ;;  %vm609_vm11 = vcmp.eq.f32.partialorder %v608_v50, 8.507059e+37 }
 0x17a   :  { %v7459_v55 = vpop.eup %7458  ;;  %v8562_v22 = vadd.f32 %v747_v19, %v641_v21 }
 0x17b   :  { %v8559_v9 = vadd.f32 1.0, %v7459_v55 }
 0x17c   :  { %v7461_v12 = vpop.eup %7460  ;;  %v7195_v34 = vmul.f32 -1.442695, %v8562_v22  ;;  %v770_v35 = vrot.slane %v8562_v22, 1  ;;  %v794_v38 = vrot.slane %v8562_v22, 3 }
 0x17d   :  { %v7463_v29 = vpop.eup %7462  ;;  %v581_v33 = vmul.f32 %v7461_v12, %v579_v39  ;;  %7464 = vrcp.f32 %v8559_v9  ;;  %vm586_vm4 = vweird.f32 %v7461_v12  ;;  %vm624_vm13 = vweird.f32 %v8559_v9 }
 0x17e   :  { %v600_v32 = vmul.f32 %v7463_v29, %v598_v45  ;;  %7466 = vtanh.f32 %v574_v16  ;;  %v7196_v43 = vmul.f32 -1.442695, %v770_v35  ;;  %v7197_v47 = vmul.f32 -1.442695, %v794_v38  ;;  %vm587_vm8 = vmor %vm585_vm6, %vm586_vm4 }
 0x17f   :  { %v582_v36 = vsub.f32 1.0, %v581_v33  ;;  %7468 = vpow2.f32 %v7195_v34  ;;  %vm605_vm5 = vweird.f32 %v7463_v29  ;;  %v628_v33 = vand.u32 2147483647, %v8559_v9 }
 0x180   :  { %v601_v40 = vsub.f32 1.0, %v600_v32  ;;  %7470 = vpow2.f32 %v7196_v43  ;;  %vm606_vm10 = vmor %vm604_vm7, %vm605_vm5  ;;  %v791_v43 = vrot.slane %v8562_v22, 2 }
 0x181   :  { %v583_v46 = vmul.f32 %v7461_v12, %v582_v36  ;;  %7472 = vpow2.f32 %v7197_v47  ;;  %vm629_vm15 = vcmp.eq.f32.partialorder %v628_v33, 8.507059e+37 }
 0x182   :  { %v602_v49 = vmul.f32 %v7463_v29, %v601_v40 }
 0x183   :  { %v7465_v51 = vpop.eup %7464  ;;  %v584_v52 = vadd.f32 %v7461_v12, %v583_v46 }
 0x184   :  { %v603_v54 = vadd.f32 %v7463_v29, %v602_v49  ;;  %v620_v57 = vmul.f32 %v7465_v51, %v8559_v9  ;;  %v7467_v4 = vpop.eup %7466  ;;  %vm625_vm12 = vweird.f32 %v7465_v51 }
 0x185   :  { %v588_v56 = vsel %vm587_vm8, %v7461_v12, %v584_v52  ;;  %v7469_v2 = vpop.eup %7468  ;;  %vm626_vm14 = vmor %vm624_vm13, %vm625_vm12 }
 0x186   :  { %v593_v20 = vsel %vm590_vm9, %v592_v53, %v588_v56  ;;  %v607_v23 = vsel %vm606_vm10, %v7463_v29, %v603_v54  ;;  %v621_v42 = vsub.f32 1.0, %v620_v57  ;;  %v753_v48 = vadd.f32 1.0, %v7469_v2  ;;  %v7471_v45 = vpop.eup %7470 }
 0x187   :  { %v612_v3 = vsel %vm609_vm11, %v611_v61, %v607_v23  ;;  %v635_v39 = vmul.f32 %v7467_v4, %v593_v20  ;;  %v7473_v18 = vpop.eup %7472  ;;  %v8572_v21 = vadd.f32 1.0, %v7471_v45  ;;  %v630_v29 = vand.u32 2147483648, %v8559_v9  ;;  %v11899_v20 = vld [vmem:[#allocation16_spill] sm:$0xff] }
 0x188   :  { %v634_v55 = vmul.f32 0.0, %v612_v3  ;;  %v622_v15 = vmul.f32 %v7465_v51, %v621_v42  ;;  %7474 = vrcp.f32 %v753_v48  ;;  %v8574_v19 = vadd.f32 1.0, %v7473_v18 }
 0x189   :  { %v631_v36 = vor.u32 1.1754944e-38, %v630_v29  ;;  %v765_v49 = vand.u32 2147483648, %v753_v48  ;;  %vm759_vm5 = vweird.f32 %v753_v48  ;;  %v763_v52 = vand.u32 2147483647, %v753_v48  ;;  %v11907_v29 = vld [vmem:[#allocation21_spill] sm:$0xff] }
 0x18a   :  { %v8570_v16 = vadd.f32 %v635_v39, %v634_v55  ;;  %v623_v12 = vadd.f32 %v7465_v51, %v622_v15  ;;  %v787_v54 = vand.u32 2147483648, %v8572_v21  ;;  %v785_v61 = vand.u32 2147483647, %v8572_v21  ;;  %v11904_v55 = vld [vmem:[#allocation18_spill] sm:$0xff]  ;;  %v11905_v15 = vld [vmem:[#allocation24_spill] sm:$0xff] }
 0x18b   :  { %v766_v56 = vor.u32 1.1754944e-38, %v765_v49  ;;  %vm764_vm8 = vcmp.eq.f32.partialorder %v763_v52, 8.507059e+37  ;;  %vm781_vm9 = vweird.f32 %v8572_v21  ;;  %vm805_vm13 = vweird.f32 %v8574_v19 }
 0x18c   :  { %7476 = vtanh.f32 %v8570_v16  ;;  %v627_v34 = vsel %vm626_vm14, %v7465_v51, %v623_v12  ;;  %v788_v42 = vor.u32 1.1754944e-38, %v787_v54  ;;  %vm786_vm11 = vcmp.eq.f32.partialorder %v785_v61, 8.507059e+37  ;;  %v11906_v12 = vld [vmem:[#allocation22_spill] sm:$0xff] }
 0x18d   :  { %7478 = vrcp.f32 %v8572_v21  ;;  %v632_v40 = vsel %vm629_vm15, %v631_v36, %v627_v34  ;;  %v811_v34 = vand.u32 2147483648, %v8574_v19 }
 0x18e   :  { %7480 = vrcp.f32 %v8574_v19  ;;  %v7475_v32 = vpop.eup %7474 }
 0x18f   :  { %v755_v35 = vmul.f32 %v7475_v32, %v753_v48  ;;  %vm760_vm4 = vweird.f32 %v7475_v32  ;;  %7482 = vtanh.f32 %v791_v43  ;;  %v812_v36 = vor.u32 1.1754944e-38, %v811_v34 }
 0x190   :  { %vm8592_vm6 = vmor %vm759_vm5, %vm760_vm4 }
 0x191   :  { %v756_v38 = vsub.f32 1.0, %v755_v35  ;;  %v809_v35 = vand.u32 2147483647, %v8574_v19 }
 0x192   :  { %v7477_v37 = vpop.eup %7476 }
 0x193   :  { %v7479_v41 = vpop.eup %7478  ;;  %v638_v44 = vmul.f32 %v7477_v37, %v632_v40  ;;  %v757_v47 = vmul.f32 %v7475_v32, %v756_v38  ;;  %vm810_vm15 = vcmp.eq.f32.partialorder %v809_v35, 8.507059e+37 }
 0x194   :  { %v8583_v46 = vpop.eup %7480  ;;  %v777_v9 = vmul.f32 %v7479_v41, %v8572_v21  ;;  %vm782_vm7 = vweird.f32 %v7479_v41 }
 0x195   :  { %v801_v50 = vmul.f32 %v8583_v46, %v8574_v19  ;;  %639 = vst [vmem:[#allocation3] sm:$0x1] %v638_v44  ;;  %7198 = vmatmul.msk.f32.vlgmr.msra.gmra.mxu0 %vm93_vm0, %v638_v44  ;;  %7199 = vmatmul.msk.f32.vlgmr.msra.gmra.mxu1 %vm93_vm0, %v638_v44  ;;  %v758_v51 = vadd.f32 %v7475_v32, %v757_v47  ;;  %vm783_vm10 = vmor %vm781_vm9, %vm782_vm7  ;;  %v7483_v39 = vpop.eup %7482  ;;  %vm806_vm12 = vweird.f32 %v8583_v46 }
 0x196   :  { %v778_v22 = vsub.f32 1.0, %v777_v9  ;;  %7200 = vmatmul.msk.f32.vlgmr.msra.gmra.mxu2 %vm93_vm0, %v638_v44  ;;  %7201 = vmatmul.msk.f32.vlgmr.msra.gmra.mxu3 %vm93_vm0, %v638_v44  ;;  %vm807_vm14 = vmor %vm805_vm13, %vm806_vm12 }
 0x197   :  { %1167 = vmatpush.msra.mxu2 %v8139_v6  ;;  %1187 = vmatpush.msra.mxu3 %v8250_v30  ;;  %v762_v57 = vsel %vm8592_vm6, %v7475_v32, %v758_v51  ;;  %v802_v2 = vsub.f32 1.0, %v801_v50  ;;  %v11898_v30 = vld [vmem:[#allocation17_spill] sm:$0xff] }
 0x198   :  { %v779_v4 = vmul.f32 %v7479_v41, %v778_v22  ;;  %1127 = vmatpush.msra.mxu0 %v8164_v11  ;;  %1147 = vmatpush.msra.mxu1 %v8159_v10  ;;  %v767_v23 = vsel %vm764_vm8, %v766_v56, %v762_v57  ;;  %v11900_v11 = vld [vmem:[#allocation15_spill] sm:$0xff] }
 0x199   :  { %1168 = vmatpush.msra.mxu2 %v8144_v7  ;;  %1188 = vmatpush.msra.mxu3 %v8256_v31  ;;  %v11901_v10 = vld [vmem:[#allocation23_spill] sm:$0xff]  ;;  %v11902_v7 = vld [vmem:[#allocation20_spill] sm:$0xff]  ;;  %v803_v45 = vmul.f32 %v8583_v46, %v802_v2  ;;  %v816_v21 = vmul.f32 %v7483_v39, %v767_v23 }
 0x19a   :  { %v780_v6 = vadd.f32 %v7479_v41, %v779_v4  ;;  %1128 = vmatpush.msra.mxu0 %v11898_v30  ;;  %1148 = vmatpush.msra.mxu1 %v11899_v20  ;;  %v11903_v31 = vld [vmem:[#allocation19_spill] sm:$0xff] }
 0x19b   :  { %1169 = vmatpush.msra.mxu2 %v11900_v11  ;;  %1189 = vmatpush.msra.mxu3 %v11901_v10  ;;  %v804_v32 = vadd.f32 %v8583_v46, %v803_v45 }
 0x19c   :  { %v784_v3 = vsel %vm783_vm10, %v7479_v41, %v780_v6  ;;  %1129 = vmatpush.msra.mxu0 %v11902_v7  ;;  %1149 = vmatpush.msra.mxu1 %v11903_v31 }
 0x19d   :  { %v789_v48 = vsel %vm786_vm11, %v788_v42, %v784_v3  ;;  %1170 = vmatpush.msra.mxu2 %v11904_v55  ;;  %1190 = vmatpush.msra.mxu3 %v11905_v15  ;;  %v1098_v42 = vld [vmem:[#allocation6 + $0x2] ss:$8 sm:$0xf] }
 0x19e   :  { %v815_v18 = vmul.f32 %v789_v48, %v8508_v13  ;;  %1130 = vmatpush.msra.mxu0 %v11906_v12  ;;  %1150 = vmatpush.msra.mxu1 %v11907_v29  ;;  %v808_v13 = vsel %vm807_vm14, %v8583_v46, %v804_v32 }
 0x19f   :  { %v813_v38 = vsel %vm810_vm15, %v812_v36, %v808_v13 }
 0x1a0   :  { %v8619_v33 = vadd.f32 %v816_v21, %v815_v18 }
 0x1a2   :  { %7484 = vtanh.f32 %v8619_v33 }
 0x1a8   :  { %v7485_v37 = vpop.eup %7484 }
 0x1a9   :  { %v819_v40 = vmul.f32 %v7485_v37, %v813_v38 }
 0x1ab   :  { %820 = vst [vmem:[#allocation2 + $0x1] sm:$0x1] %v819_v40  ;;  %7202 = vmatmul.msk.f32.vlgmr.msrb.gmra.mxu0 %vm93_vm0, %v819_v40  ;;  %7203 = vmatmul.msk.f32.vlgmr.msrb.gmra.mxu1 %vm93_vm0, %v819_v40 }
 0x1ac   :  { %7204 = vmatmul.msk.f32.vlgmr.msrb.gmra.mxu2 %vm93_vm0, %v819_v40  ;;  %7205 = vmatmul.msk.f32.vlgmr.msrb.gmra.mxu3 %vm93_vm0, %v819_v40 }
 0x1ad   :  { %1325 = vmatpush.msrb.mxu0 %v8292_v60  ;;  %1345 = vmatpush.msrb.mxu1 %v8301_v62  ;;  %v1019_v60 = vld [vmem:[%s11843_s7] sm:$0xf] }
 0x1ae   :  { %1365 = vmatpush.msrb.mxu2 %v8282_v58  ;;  %1385 = vmatpush.msrb.mxu3 %v8287_v59  ;;  %v1024_v19 = vperm.slane %v1019_v60, 3  ;;  %v1023_v54 = vperm.slane %v1019_v60, 2 }
 0x1af   :  { %1326 = vmatpush.msrb.mxu0 %v8318_v1  ;;  %1346 = vmatpush.msrb.mxu1 %v8328_v5  ;;  %v1022_v1 = vperm.slane %v1019_v60, 1 }
 0x1b0   :  { %1366 = vmatpush.msrb.mxu2 %v8308_v63  ;;  %1386 = vmatpush.msrb.mxu3 %v8313_v0  ;;  %v1021_v0 = vperm.slane %v1019_v60, 0 }
 0x1b1   :  { %1327 = vmatpush.msrb.mxu0 %v8345_v17  ;;  %1347 = vmatpush.msrb.mxu1 %v8352_v24 }
 0x1b2   :  { %1367 = vmatpush.msrb.mxu2 %v8335_v8  ;;  %1387 = vmatpush.msrb.mxu3 %v8340_v14 }
 0x1b3   :  { %7209 = vmatmul.msk.f32.vlgmr.msra.gmra.mxu0 %vm93_vm0, %v819_v40  ;;  %7210 = vmatmul.msk.f32.vlgmr.msra.gmra.mxu1 %vm93_vm0, %v819_v40 }
 0x1b4   :  { %7211 = vmatmul.msk.f32.vlgmr.msra.gmra.mxu2 %vm93_vm0, %v819_v40  ;;  %7212 = vmatmul.msk.f32.vlgmr.msra.gmra.mxu3 %vm93_vm0, %v819_v40  ;;  %v8847_v40 = vld [vmem:[%s11884_s22 + $0x50] sm:$0xff] }
 0x1b5   :  { %1328 = vmatpush.msrb.mxu0 %v8369_v27  ;;  %1348 = vmatpush.msrb.mxu1 %v8376_v28 }
 0x1b6   :  { %1368 = vmatpush.msrb.mxu2 %v8359_v25  ;;  %1388 = vmatpush.msrb.mxu3 %v8364_v26 }
 0x212   :  { %v873_v58 = vpop.f32.mrf.mxu0  ;;  %v893_v59 = vpop.f32.mrf.mxu1 }
 0x219   :  { %v913_v62 = vpop.f32.mrf.mxu2  ;;  %v933_v63 = vpop.f32.mrf.mxu3 }
 0x228   :  { %v956_v5 = vpop.f32.mrf.mxu0  ;;  %v976_v8 = vpop.f32.mrf.mxu1 }
 0x229   :  { %v957_v14 = vadd.f32 %v956_v5, %v873_v58  ;;  %v977_v17 = vadd.f32 %v976_v8, %v893_v59  ;;  %v8870_v5 = vld [vmem:[%s11884_s22 + $0x48] sm:$0xff] }
 0x22b   :  { %v1029_v24 = vadd.f32 %v1021_v0, %v957_v14  ;;  %v1030_v27 = vadd.f32 %v1022_v1, %v977_v17  ;;  %v8690_v0 = vld [vmem:[%s11841_s5 + $0x78] sm:$0xff]  ;;  %v8695_v1 = vld [vmem:[%s11841_s5 + $0x60] sm:$0xff]  ;;  %v8709_v17 = vld [vmem:[%s11841_s5 + $0x68] sm:$0xff] }
 0x22c   :  { %1468 = vmatpush.msra.mxu3 %v8690_v0  ;;  %1408 = vmatpush.msra.mxu0 %v8695_v1 }
 0x22d   :  { %v7206_v28 = vmul.f32 -1.442695, %v1029_v24  ;;  %v7207_v25 = vmul.f32 -1.442695, %v1030_v27  ;;  %1428 = vmatpush.msra.mxu1 %v8709_v17 }
 0x22f   :  { %7486 = vpow2.f32 %v7206_v28  ;;  %v996_v26 = vpop.f32.mrf.mxu2  ;;  %v1016_v41 = vpop.f32.mrf.mxu3 }
 0x230   :  { %7488 = vpow2.f32 %v7207_v25  ;;  %v1017_v43 = vadd.f32 %v1016_v41, %v933_v63  ;;  %v1152_v9 = vpop.f32.mrf.mxu1  ;;  %v997_v53 = vadd.f32 %v996_v26, %v913_v62  ;;  %v1132_v56 = vpop.f32.mrf.mxu0  ;;  %v8685_v63 = vld [vmem:[%s11841_s5 + $0x70] sm:$0xff]  ;;  %v8723_v26 = vld [vmem:[%s11841_s5 + $0x58] sm:$0xff]  ;;  %v8728_v41 = vld [vmem:[%s11841_s5 + $0x40] sm:$0xff] }
 0x231   :  { %v1199_v57 = vrot.slane %v1152_v9, 7  ;;  %1448 = vmatpush.msra.mxu2 %v8685_v63  ;;  %1469 = vmatpush.msra.mxu3 %v8723_v26 }
 0x232   :  { %v1032_v44 = vadd.f32 %v1024_v19, %v1017_v43  ;;  %v1031_v6 = vadd.f32 %v1023_v54, %v997_v53  ;;  %v8718_v19 = vld [vmem:[%s11841_s5 + $0x50] sm:$0xff]  ;;  %1409 = vmatpush.msra.mxu0 %v8728_v41  ;;  %v8764_v53 = vld [vmem:[%s11841_s5 + $0x28] sm:$0xff] }
 0x233   :  { %v1202_v30 = vsel %vm288_vm1, %v1132_v56, %v1199_v57  ;;  %1449 = vmatpush.msra.mxu2 %v8718_v19  ;;  %v8782_v56 = vld [vmem:[%s11841_s5 + $0x18] sm:$0xff] }
 0x234   :  { %v7208_v46 = vmul.f32 -1.442695, %v1032_v44 }
 0x235   :  { %v7487_v47 = vpop.eup %7486 }
 0x236   :  { %v7489_v49 = vpop.eup %7488  ;;  %v1036_v50 = vadd.f32 1.0, %v7487_v47  ;;  %7490 = vpow2.f32 %v7208_v46  ;;  %v8737_v47 = vld [vmem:[%s11841_s5 + $0x48] sm:$0xff] }
 0x237   :  { %v8655_v51 = vadd.f32 1.0, %v7489_v49  ;;  %v1172_v52 = vpop.f32.mrf.mxu2  ;;  %v1192_v22 = vpop.f32.mrf.mxu3  ;;  %1429 = vmatpush.msra.mxu1 %v8737_v47 }
 0x238   :  { %7492 = vrcp.f32 %v1036_v50  ;;  %v1200_v4 = vrot.slane %v1172_v52, 6  ;;  %v1201_v61 = vrot.slane %v1192_v22, 5  ;;  %vm1042_vm4 = vweird.f32 %v1036_v50  ;;  %v8751_v52 = vld [vmem:[%s11841_s5 + $0x38] sm:$0xff] }
 0x239   :  { %7494 = vrcp.f32 %v8655_v51  ;;  %v1048_v15 = vand.u32 2147483648, %v1036_v50  ;;  %v1067_v29 = vand.u32 2147483648, %v8655_v51  ;;  %v1046_v34 = vand.u32 2147483647, %v1036_v50  ;;  %1470 = vmatpush.msra.mxu3 %v8751_v52  ;;  %1430 = vmatpush.msra.mxu1 %v8764_v53 }
 0x23a   :  { %v1203_v20 = vsel %vm290_vm2, %v1200_v4, %v1201_v61  ;;  %v1065_v36 = vand.u32 2147483647, %v8655_v51  ;;  %vm1061_vm8 = vweird.f32 %v8655_v51  ;;  %v8777_v61 = vld [vmem:[%s11841_s5 + $0x10] sm:$0xff] }
 0x23b   :  { %v1204_v11 = vsel %vm292_vm3, %v1202_v30, %v1203_v20  ;;  %v1049_v59 = vor.u32 1.1754944e-38, %v1048_v15  ;;  %v1068_v8 = vor.u32 1.1754944e-38, %v1067_v29  ;;  %vm1047_vm10 = vcmp.eq.f32.partialorder %v1046_v34, 8.507059e+37  ;;  %1471 = vmatpush.msra.mxu3 %v8782_v56  ;;  %v8796_v30 = vld [vmem:[%s11841_s5 + $0x8] sm:$0xff]  ;;  %v8818_v29 = vld [vmem:[%s11884_s22 + $0x70] sm:$0xff] }
 0x23c   :  { %v7491_v2 = vpop.eup %7490  ;;  %v8663_v3 = vadd.f32 %v1204_v11, %v1098_v42  ;;  %vm1066_vm11 = vcmp.eq.f32.partialorder %v1065_v36, 8.507059e+37  ;;  %1431 = vmatpush.msra.mxu1 %v8796_v30 }
 0x23d   :  { %v8660_v23 = vadd.f32 1.0, %v7491_v2  ;;  %v8787_v2 = vld [vmem:[%s11841_s5] sm:$0xff] }
 0x23e   :  { %v7493_v10 = vpop.eup %7492  ;;  %v7213_v48 = vmul.f32 -1.442695, %v8663_v3  ;;  %v1227_v45 = vrot.slane %v8663_v3, 1  ;;  %v1251_v18 = vrot.slane %v8663_v3, 3  ;;  %v1248_v15 = vrot.slane %v8663_v3, 2 }
 0x23f   :  { %v7495_v7 = vpop.eup %7494  ;;  %v1038_v31 = vmul.f32 %v7493_v10, %v1036_v50  ;;  %7496 = vrcp.f32 %v8660_v23  ;;  %vm1043_vm5 = vweird.f32 %v7493_v10  ;;  %v1087_v20 = vand.u32 2147483648, %v8660_v23 }
 0x240   :  { %v1057_v39 = vmul.f32 %v7495_v7, %v8655_v51  ;;  %7498 = vtanh.f32 %v1031_v6  ;;  %v7214_v12 = vmul.f32 -1.442695, %v1227_v45  ;;  %v7215_v35 = vmul.f32 -1.442695, %v1251_v18  ;;  %vm8675_vm7 = vmor %vm1042_vm4, %vm1043_vm5  ;;  %v8746_v51 = vld [vmem:[%s11841_s5 + $0x30] sm:$0xff] }
 0x241   :  { %v1039_v55 = vsub.f32 1.0, %v1038_v31  ;;  %7500 = vpow2.f32 %v7213_v48  ;;  %vm1062_vm6 = vweird.f32 %v7495_v7  ;;  %1450 = vmatpush.msra.mxu2 %v8746_v51  ;;  %vm1081_vm13 = vweird.f32 %v8660_v23 }
 0x242   :  { %v1058_v21 = vsub.f32 1.0, %v1057_v39  ;;  %7502 = vpow2.f32 %v7214_v12  ;;  %vm8698_vm9 = vmor %vm1061_vm8, %vm1062_vm6  ;;  %v1085_v42 = vand.u32 2147483647, %v8660_v23  ;;  %v1088_v31 = vor.u32 1.1754944e-38, %v1087_v20  ;;  %v8927_v20 = vld [vmem:[%s11884_s22 + $0x8] sm:$0xff] }
 0x243   :  { %v1040_v32 = vmul.f32 %v7493_v10, %v1039_v55  ;;  %7504 = vpow2.f32 %v7215_v35  ;;  %1451 = vmatpush.msra.mxu2 %v8777_v61  ;;  %v8833_v35 = vld [vmem:[%s11884_s22 + $0x60] sm:$0xff] }
 0x244   :  { %v1059_v13 = vmul.f32 %v7495_v7, %v1058_v21  ;;  %vm1086_vm15 = vcmp.eq.f32.partialorder %v1085_v42, 8.507059e+37 }
 0x245   :  { %v8672_v37 = vpop.eup %7496  ;;  %v1041_v38 = vadd.f32 %v7493_v10, %v1040_v32  ;;  %v8823_v32 = vld [vmem:[%s11884_s22 + $0x78] sm:$0xff] }
 0x246   :  { %v7499_v58 = vpop.eup %7498  ;;  %v1060_v60 = vadd.f32 %v7495_v7, %v1059_v13  ;;  %v1077_v62 = vmul.f32 %v8672_v37, %v8660_v23  ;;  %vm1082_vm12 = vweird.f32 %v8672_v37  ;;  %v8838_v13 = vld [vmem:[%s11884_s22 + $0x68] sm:$0xff] }
 0x247   :  { %v1045_v14 = vsel %vm8675_vm7, %v7493_v10, %v1041_v38  ;;  %v7501_v24 = vpop.eup %7500  ;;  %vm1083_vm14 = vmor %vm1081_vm13, %vm1082_vm12 }
 0x248   :  { %v1050_v27 = vsel %vm1047_vm10, %v1049_v59, %v1045_v14  ;;  %v1064_v28 = vsel %vm8698_vm9, %v7495_v7, %v1060_v60  ;;  %v1078_v25 = vsub.f32 1.0, %v1077_v62  ;;  %v8730_v46 = vadd.f32 1.0, %v7501_v24  ;;  %v7503_v9 = vpop.eup %7502  ;;  %v8865_v62 = vld [vmem:[%s11884_s22 + $0x40] sm:$0xff] }
 0x249   :  { %v1069_v43 = vsel %vm1066_vm11, %v1068_v8, %v1064_v28  ;;  %v1092_v44 = vmul.f32 %v7499_v58, %v1050_v27  ;;  %v7505_v22 = vpop.eup %7504  ;;  %v8768_v57 = vadd.f32 1.0, %v7503_v9  ;;  %v8852_v58 = vld [vmem:[%s11884_s22 + $0x58] sm:$0xff]  ;;  %v8882_v27 = vld [vmem:[%s11884_s22 + $0x30] sm:$0xff] }
 0x24a   :  { %v1091_v49 = vmul.f32 %v1069_v43, %v8570_v16  ;;  %v1079_v50 = vmul.f32 %v8672_v37, %v1078_v25  ;;  %v8756_v16 = vld [vmem:[%s11841_s5 + $0x20] sm:$0xff]  ;;  %7506 = vrcp.f32 %v8730_v46  ;;  %v8770_v4 = vadd.f32 1.0, %v7505_v22  ;;  %v8887_v28 = vld [vmem:[%s11884_s22 + $0x38] sm:$0xff] }
 0x24b   :  { %1410 = vmatpush.msra.mxu0 %v8756_v16  ;;  %v1222_v3 = vand.u32 2147483648, %v8730_v46  ;;  %vm1216_vm5 = vweird.f32 %v8730_v46  ;;  %v1244_v60 = vand.u32 2147483648, %v8768_v57  ;;  %v1242_v24 = vand.u32 2147483647, %v8768_v57 }
 0x24c   :  { %v8766_v54 = vadd.f32 %v1092_v44, %v1091_v49  ;;  %v1080_v6 = vadd.f32 %v8672_v37, %v1079_v50  ;;  %v8894_v44 = vld [vmem:[%s11884_s22 + $0x20] sm:$0xff]  ;;  %vm1238_vm9 = vweird.f32 %v8768_v57  ;;  %v8908_v49 = vld [vmem:[%s11884_s22 + $0x10] sm:$0xff]  ;;  %v8913_v50 = vld [vmem:[%s11884_s22 + $0x18] sm:$0xff]  ;;  %vm1262_vm13 = vweird.f32 %v8770_v4 }
 0x24d   :  { %1411 = vmatpush.msra.mxu0 %v8787_v2  ;;  %v1223_v25 = vor.u32 1.1754944e-38, %v1222_v3  ;;  %vm1243_vm11 = vcmp.eq.f32.partialorder %v1242_v24, 8.507059e+37 }
 0x24e   :  { %7508 = vtanh.f32 %v8766_v54  ;;  %v1084_v10 = vsel %vm1083_vm14, %v8672_v37, %v1080_v6  ;;  %v1220_v37 = vand.u32 2147483647, %v8730_v46  ;;  %v1245_v6 = vor.u32 1.1754944e-38, %v1244_v60 }
 0x24f   :  { %7510 = vrcp.f32 %v8768_v57  ;;  %v1089_v45 = vsel %vm1086_vm15, %v1088_v31, %v1084_v10 }
 0x250   :  { %7512 = vrcp.f32 %v8770_v4  ;;  %v7507_v11 = vpop.eup %7506  ;;  %vm1221_vm8 = vcmp.eq.f32.partialorder %v1220_v37, 8.507059e+37 }
 0x251   :  { %v1212_v7 = vmul.f32 %v7507_v11, %v8730_v46  ;;  %vm1217_vm4 = vweird.f32 %v7507_v11  ;;  %7514 = vtanh.f32 %v1248_v15  ;;  %v8899_v46 = vld [vmem:[%s11884_s22 + $0x28] sm:$0xff]  ;;  %v1266_v15 = vand.u32 2147483647, %v8770_v4 }
 0x252   :  { %vm8855_vm6 = vmor %vm1216_vm5, %vm1217_vm4 }
 0x253   :  { %v1213_v48 = vsub.f32 1.0, %v1212_v7  ;;  %vm1267_vm15 = vcmp.eq.f32.partialorder %v1266_v15, 8.507059e+37 }
 0x254   :  { %v7509_v39 = vpop.eup %7508 }
 0x255   :  { %v8808_v55 = vpop.eup %7510  ;;  %v1095_v18 = vmul.f32 %v7509_v39, %v1089_v45  ;;  %v1214_v23 = vmul.f32 %v7507_v11, %v1213_v48 }
 0x256   :  { %v8811_v21 = vpop.eup %7512  ;;  %v1234_v12 = vmul.f32 %v8808_v55, %v8768_v57  ;;  %vm1239_vm7 = vweird.f32 %v8808_v55  ;;  %v8922_v57 = vld [vmem:[%s11884_s22] sm:$0xff] }
 0x257   :  { %v1258_v34 = vmul.f32 %v8811_v21, %v8770_v4  ;;  %1096 = vst [vmem:[#allocation3 + $0x1] sm:$0x1] %v1095_v18  ;;  %7216 = vmatmul.msk.f32.vlgmr.msrb.gmra.mxu0 %vm93_vm0, %v1095_v18  ;;  %7217 = vmatmul.msk.f32.vlgmr.msrb.gmra.mxu1 %vm93_vm0, %v1095_v18  ;;  %v1215_v36 = vadd.f32 %v7507_v11, %v1214_v23  ;;  %vm1240_vm10 = vmor %vm1238_vm9, %vm1239_vm7  ;;  %vm1263_vm12 = vweird.f32 %v8811_v21 }
 0x258   :  { %v1235_v38 = vsub.f32 1.0, %v1234_v12  ;;  %7218 = vmatmul.msk.f32.vlgmr.msrb.gmra.mxu2 %vm93_vm0, %v1095_v18  ;;  %7219 = vmatmul.msk.f32.vlgmr.msrb.gmra.mxu3 %vm93_vm0, %v1095_v18  ;;  %vm1264_vm14 = vmor %vm1262_vm13, %vm1263_vm12 }
 0x259   :  { %1624 = vmatpush.msrb.mxu2 %v8818_v29  ;;  %1644 = vmatpush.msrb.mxu3 %v8823_v32  ;;  %v1219_v8 = vsel %vm8855_vm6, %v7507_v11, %v1215_v36  ;;  %v1259_v43 = vsub.f32 1.0, %v1258_v34  ;;  %v7515_v11 = vpop.eup %7514  ;;  %v8958_v34 = vld [vmem:[%s11843_s7] sm:$0xf] }
 0x25a   :  { %v1236_v14 = vmul.f32 %v8808_v55, %v1235_v38  ;;  %1584 = vmatpush.msrb.mxu0 %v8833_v35  ;;  %1604 = vmatpush.msrb.mxu1 %v8838_v13  ;;  %v1224_v22 = vsel %vm1221_vm8, %v1223_v25, %v1219_v8  ;;  %v1478_v38 = vperm.slane %v8958_v34, 0  ;;  %v1479_v59 = vperm.slane %v8958_v34, 1 }
 0x25b   :  { %1625 = vmatpush.msrb.mxu2 %v8847_v40  ;;  %1645 = vmatpush.msrb.mxu3 %v8852_v58  ;;  %v1260_v7 = vmul.f32 %v8811_v21, %v1259_v43  ;;  %v1273_v39 = vmul.f32 %v7515_v11, %v1224_v22 }
 0x25c   :  { %v1237_v9 = vadd.f32 %v8808_v55, %v1236_v14  ;;  %1585 = vmatpush.msrb.mxu0 %v8865_v62  ;;  %1605 = vmatpush.msrb.mxu1 %v8870_v5 }
 0x25d   :  { %1626 = vmatpush.msrb.mxu2 %v8882_v27  ;;  %1646 = vmatpush.msrb.mxu3 %v8887_v28  ;;  %v1261_v45 = vadd.f32 %v8811_v21, %v1260_v7 }
 0x25e   :  { %v1241_v42 = vsel %vm1240_vm10, %v8808_v55, %v1237_v9  ;;  %1586 = vmatpush.msrb.mxu0 %v8894_v44  ;;  %1606 = vmatpush.msrb.mxu1 %v8899_v46  ;;  %v1268_v55 = vand.u32 2147483648, %v8770_v4 }
 0x25f   :  { %v1246_v10 = vsel %vm1243_vm11, %v1245_v6, %v1241_v42  ;;  %1627 = vmatpush.msrb.mxu2 %v8908_v49  ;;  %1647 = vmatpush.msrb.mxu3 %v8913_v50  ;;  %v1481_v6 = vperm.slane %v8958_v34, 3 }
 0x260   :  { %v1272_v31 = vmul.f32 %v1246_v10, %v8619_v33  ;;  %1587 = vmatpush.msrb.mxu0 %v8922_v57  ;;  %1607 = vmatpush.msrb.mxu1 %v8927_v20  ;;  %v1265_v33 = vsel %vm1264_vm14, %v8811_v21, %v1261_v45  ;;  %v1269_v18 = vor.u32 1.1754944e-38, %v1268_v55  ;;  %v8971_v45 = vld [vmem:[%s11842_s6 + $0x68] sm:$0xff]  ;;  %v8976_v55 = vld [vmem:[%s11842_s6 + $0x70] sm:$0xff] }
 0x262   :  { %v8938_v48 = vadd.f32 %v1273_v39, %v1272_v31  ;;  %v1270_v12 = vsel %vm1267_vm15, %v1269_v18, %v1265_v33  ;;  %v8966_v39 = vld [vmem:[%s11842_s6 + $0x60] sm:$0xff]  ;;  %v8983_v18 = vld [vmem:[%s11842_s6 + $0x78] sm:$0xff] }
 0x264   :  { %7516 = vtanh.f32 %v8938_v48 }
 0x26a   :  { %v7517_v23 = vpop.eup %7516 }
 0x26b   :  { %v1276_v3 = vmul.f32 %v7517_v23, %v1270_v12 }
 0x26d   :  { %1277 = vst [vmem:[#allocation2 + $0x2] sm:$0x1] %v1276_v3  ;;  %7220 = vmatmul.msk.f32.vlgmr.msra.gmra.mxu0 %vm93_vm0, %v1276_v3  ;;  %7221 = vmatmul.msk.f32.vlgmr.msra.gmra.mxu1 %vm93_vm0, %v1276_v3 }
 0x26e   :  { %7222 = vmatmul.msk.f32.vlgmr.msra.gmra.mxu2 %vm93_vm0, %v1276_v3  ;;  %7223 = vmatmul.msk.f32.vlgmr.msra.gmra.mxu3 %vm93_vm0, %v1276_v3 }
 0x26f   :  { %1782 = vmatpush.msra.mxu0 %v8966_v39  ;;  %1802 = vmatpush.msra.mxu1 %v8971_v45 }
 0x270   :  { %1822 = vmatpush.msra.mxu2 %v8976_v55  ;;  %1842 = vmatpush.msra.mxu3 %v8983_v18 }
 0x275   :  { %7227 = vmatmul.msk.f32.vlgmr.msrb.gmra.mxu0 %vm93_vm0, %v1276_v3  ;;  %7228 = vmatmul.msk.f32.vlgmr.msrb.gmra.mxu1 %vm93_vm0, %v1276_v3 }
 0x276   :  { %7229 = vmatmul.msk.f32.vlgmr.msrb.gmra.mxu2 %vm93_vm0, %v1276_v3  ;;  %7230 = vmatmul.msk.f32.vlgmr.msrb.gmra.mxu3 %vm93_vm0, %v1276_v3  ;;  %v8992_v3 = vld [vmem:[%s11842_s6 + $0x40] sm:$0xff] }
 0x277   :  { %1783 = vmatpush.msra.mxu0 %v8992_v3 }
 0x2d4   :  { %v1330_v4 = vpop.f32.mrf.mxu0  ;;  %v1350_v21 = vpop.f32.mrf.mxu1 }
 0x2db   :  { %v1370_v36 = vpop.f32.mrf.mxu2  ;;  %v1390_v37 = vpop.f32.mrf.mxu3 }
 0x2ea   :  { %v1413_v60 = vpop.f32.mrf.mxu0  ;;  %v1433_v8 = vpop.f32.mrf.mxu1 }
 0x2eb   :  { %v1414_v14 = vadd.f32 %v1413_v60, %v1330_v4  ;;  %v1434_v24 = vadd.f32 %v1433_v8, %v1350_v21  ;;  %v8997_v4 = vld [vmem:[%s11842_s6 + $0x48] sm:$0xff]  ;;  %v9002_v21 = vld [vmem:[%s11842_s6 + $0x50] sm:$0xff]  ;;  %v9011_v60 = vld [vmem:[%s11842_s6 + $0x58] sm:$0xff] }
 0x2ec   :  { %1803 = vmatpush.msra.mxu1 %v8997_v4  ;;  %1823 = vmatpush.msra.mxu2 %v9002_v21 }
 0x2ed   :  { %v1486_v25 = vadd.f32 %v1478_v38, %v1414_v14  ;;  %v1487_v43 = vadd.f32 %v1479_v59, %v1434_v24  ;;  %1843 = vmatpush.msra.mxu3 %v9011_v60  ;;  %v9019_v14 = vld [vmem:[%s11842_s6 + $0x20] sm:$0xff]  ;;  %v9024_v24 = vld [vmem:[%s11842_s6 + $0x28] sm:$0xff] }
 0x2ee   :  { %1784 = vmatpush.msra.mxu0 %v9019_v14  ;;  %1804 = vmatpush.msra.mxu1 %v9024_v24 }
 0x2ef   :  { %v7224_v9 = vmul.f32 -1.442695, %v1486_v25  ;;  %v7225_v22 = vmul.f32 -1.442695, %v1487_v43  ;;  %v9029_v25 = vld [vmem:[%s11842_s6 + $0x30] sm:$0xff] }
 0x2f0   :  { %1824 = vmatpush.msra.mxu2 %v9029_v25 }
 0x2f1   :  { %7518 = vpow2.f32 %v7224_v9  ;;  %v1453_v42 = vpop.f32.mrf.mxu2  ;;  %v1473_v11 = vpop.f32.mrf.mxu3  ;;  %v1480_v9 = vperm.slane %v8958_v34, 2  ;;  %v9050_v34 = vld [vmem:[%s11842_s6 + $0x8] sm:$0xff] }
 0x2f2   :  { %7520 = vpow2.f32 %v7225_v22  ;;  %v1474_v10 = vadd.f32 %v1473_v11, %v1390_v37  ;;  %v1609_v33 = vpop.f32.mrf.mxu1  ;;  %v1454_v43 = vadd.f32 %v1453_v42, %v1370_v36  ;;  %v9038_v22 = vld [vmem:[%s11842_s6 + $0x38] sm:$0xff]  ;;  %v9045_v36 = vld [vmem:[%s11842_s6] sm:$0xff]  ;;  %11916 = vst [vmem:[#allocation15_spill] sm:$0xff] %v9050_v34  ;;  %v1589_v42 = vpop.f32.mrf.mxu0  ;;  %1805 = vmatpush.msra.mxu1 %v9050_v34 }
 0x2f3   :  { %v1656_v8 = vrot.slane %v1609_v33, 7  ;;  %11914 = vst [vmem:[#allocation17_spill] sm:$0xff] %v9038_v22  ;;  %1844 = vmatpush.msra.mxu3 %v9038_v22  ;;  %1785 = vmatpush.msra.mxu0 %v9045_v36 }
 0x2f4   :  { %v1489_v7 = vadd.f32 %v1481_v6, %v1474_v10  ;;  %11915 = vst [vmem:[#allocation16_spill] sm:$0xff] %v9045_v36  ;;  %v9057_v10 = vld [vmem:[%s11842_s6 + $0x10] sm:$0xff]  ;;  %1885 = vmatpush.msrb.mxu1 %v8709_v17 }
 0x2f5   :  { %1825 = vmatpush.msra.mxu2 %v9057_v10  ;;  %1865 = vmatpush.msrb.mxu0 %v8695_v1 }
 0x2f6   :  { %v7226_v31 = vmul.f32 -1.442695, %v1489_v7  ;;  %v9062_v7 = vld [vmem:[%s11842_s6 + $0x18] sm:$0xff]  ;;  %1886 = vmatpush.msrb.mxu1 %v8737_v47 }
 0x2f7   :  { %v7519_v15 = vpop.eup %7518  ;;  %1845 = vmatpush.msra.mxu3 %v9062_v7  ;;  %1905 = vmatpush.msrb.mxu2 %v8685_v63 }
 0x2f8   :  { %v7521_v23 = vpop.eup %7520  ;;  %v8985_v12 = vadd.f32 1.0, %v7519_v15  ;;  %7522 = vpow2.f32 %v7226_v31  ;;  %v1659_v15 = vsel %vm288_vm1, %v1589_v42, %v1656_v8  ;;  %1866 = vmatpush.msrb.mxu0 %v8728_v41  ;;  %1887 = vmatpush.msrb.mxu1 %v8764_v53 }
 0x2f9   :  { %v9004_v37 = vadd.f32 1.0, %v7521_v23  ;;  %v1629_v38 = vpop.f32.mrf.mxu2  ;;  %v1649_v59 = vpop.f32.mrf.mxu3  ;;  %v1488_v23 = vadd.f32 %v1480_v9, %v1454_v43  ;;  %1925 = vmatpush.msrb.mxu3 %v8690_v0  ;;  %1906 = vmatpush.msrb.mxu2 %v8718_v19 }
 0x2fa   :  { %7524 = vrcp.f32 %v8985_v12  ;;  %v1657_v6 = vrot.slane %v1629_v38, 6  ;;  %v1658_v11 = vrot.slane %v1649_v59, 5  ;;  %v1555_v59 = vld [vmem:[#allocation6 + $0x3] ss:$8 sm:$0xf]  ;;  %1867 = vmatpush.msrb.mxu0 %v8756_v16  ;;  %1888 = vmatpush.msrb.mxu1 %v8796_v30  ;;  %vm1499_vm6 = vweird.f32 %v8985_v12 }
 0x2fb   :  { %7526 = vrcp.f32 %v9004_v37  ;;  %1926 = vmatpush.msrb.mxu3 %v8723_v26  ;;  %v1503_v17 = vand.u32 2147483647, %v8985_v12  ;;  %1907 = vmatpush.msrb.mxu2 %v8746_v51  ;;  %v1505_v26 = vand.u32 2147483648, %v8985_v12  ;;  %v1524_v41 = vand.u32 2147483648, %v9004_v37 }
 0x2fc   :  { %v1660_v33 = vsel %vm290_vm2, %v1657_v6, %v1658_v11  ;;  %1868 = vmatpush.msrb.mxu0 %v8787_v2  ;;  %vm1518_vm7 = vweird.f32 %v9004_v37 }
 0x2fd   :  { %v1661_v34 = vsel %vm292_vm3, %v1659_v15, %v1660_v33  ;;  %1927 = vmatpush.msrb.mxu3 %v8751_v52  ;;  %1908 = vmatpush.msrb.mxu2 %v8777_v61  ;;  %v1522_v52 = vand.u32 2147483647, %v9004_v37  ;;  %v1506_v61 = vor.u32 1.1754944e-38, %v1505_v26  ;;  %v1525_v15 = vor.u32 1.1754944e-38, %v1524_v41 }
 0x2fe   :  { %v7523_v31 = vpop.eup %7522  ;;  %v9073_v22 = vadd.f32 %v1661_v34, %v1555_v59  ;;  %vm1504_vm10 = vcmp.eq.f32.partialorder %v1503_v17, 8.507059e+37 }
 0x2ff   :  { %v9068_v38 = vadd.f32 1.0, %v7523_v31  ;;  %1928 = vmatpush.msrb.mxu3 %v8782_v56  ;;  %vm1523_vm11 = vcmp.eq.f32.partialorder %v1522_v52, 8.507059e+37 }
 0x300   :  { %v7525_v36 = vpop.eup %7524  ;;  %v7231_v0 = vmul.f32 -1.442695, %v9073_v22  ;;  %v1684_v43 = vrot.slane %v9073_v22, 1  ;;  %v1708_v9 = vrot.slane %v9073_v22, 3 }
 0x301   :  { %v7527_v8 = vpop.eup %7526  ;;  %v1495_v6 = vmul.f32 %v7525_v36, %v8985_v12  ;;  %7528 = vrcp.f32 %v9068_v38  ;;  %vm1500_vm4 = vweird.f32 %v7525_v36  ;;  %vm1538_vm13 = vweird.f32 %v9068_v38 }
 0x302   :  { %v1514_v63 = vmul.f32 %v7527_v8, %v9004_v37  ;;  %7530 = vtanh.f32 %v1488_v23  ;;  %v7232_v11 = vmul.f32 -1.442695, %v1684_v43  ;;  %v7233_v34 = vmul.f32 -1.442695, %v1708_v9  ;;  %vm1501_vm8 = vmor %vm1499_vm6, %vm1500_vm4 }
 0x303   :  { %v1496_v1 = vsub.f32 1.0, %v1495_v6  ;;  %7532 = vpow2.f32 %v7231_v0  ;;  %vm1519_vm5 = vweird.f32 %v7527_v8 }
 0x304   :  { %v1515_v19 = vsub.f32 1.0, %v1514_v63  ;;  %7534 = vpow2.f32 %v7232_v11  ;;  %vm1520_vm9 = vmor %vm1518_vm7, %vm1519_vm5 }
 0x305   :  { %v1497_v47 = vmul.f32 %v7525_v36, %v1496_v1  ;;  %7536 = vpow2.f32 %v7233_v34 }
 0x306   :  { %v1516_v51 = vmul.f32 %v7527_v8, %v1515_v19 }
 0x307   :  { %v7529_v16 = vpop.eup %7528  ;;  %v1498_v53 = vadd.f32 %v7525_v36, %v1497_v47 }
 0x308   :  { %v1517_v56 = vadd.f32 %v7527_v8, %v1516_v51  ;;  %v1534_v42 = vmul.f32 %v7529_v16, %v9068_v38  ;;  %v7531_v31 = vpop.eup %7530  ;;  %vm1539_vm12 = vweird.f32 %v7529_v16 }
 0x309   :  { %v1502_v2 = vsel %vm1501_vm8, %v7525_v36, %v1498_v53  ;;  %v7533_v30 = vpop.eup %7532  ;;  %vm1540_vm14 = vmor %vm1538_vm13, %vm1539_vm12 }
 0x30a   :  { %v1507_v33 = vsel %vm1504_vm10, %v1506_v61, %v1502_v2  ;;  %v1521_v23 = vsel %vm1520_vm9, %v7527_v8, %v1517_v56  ;;  %v1535_v12 = vsub.f32 1.0, %v1534_v42  ;;  %v1667_v37 = vadd.f32 1.0, %v7533_v30  ;;  %v7535_v63 = vpop.eup %7534 }
 0x30b   :  { %v1526_v59 = vsel %vm1523_vm11, %v1525_v15, %v1521_v23  ;;  %v1549_v6 = vmul.f32 %v7531_v31, %v1507_v33  ;;  %v7537_v1 = vpop.eup %7536  ;;  %v9107_v19 = vadd.f32 1.0, %v7535_v63  ;;  %v1544_v8 = vand.u32 2147483648, %v9068_v38 }
 0x30c   :  { %v1548_v0 = vmul.f32 %v1526_v59, %v8766_v54  ;;  %v1536_v43 = vmul.f32 %v7529_v16, %v1535_v12  ;;  %7538 = vrcp.f32 %v1667_v37  ;;  %v9109_v36 = vadd.f32 1.0, %v7537_v1 }
 0x30d   :  { %v1542_v54 = vand.u32 2147483647, %v9068_v38  ;;  %v1545_v47 = vor.u32 1.1754944e-38, %v1544_v8  ;;  %v1705_v61 = vrot.slane %v9073_v22, 2  ;;  %v1679_v15 = vand.u32 2147483648, %v1667_v37 }
 0x30e   :  { %v9105_v9 = vadd.f32 %v1549_v6, %v1548_v0  ;;  %v1537_v17 = vadd.f32 %v7529_v16, %v1536_v43  ;;  %vm1673_vm5 = vweird.f32 %v1667_v37  ;;  %v1677_v30 = vand.u32 2147483647, %v1667_v37 }
 0x30f   :  { %vm1543_vm15 = vcmp.eq.f32.partialorder %v1542_v54, 8.507059e+37  ;;  %v1701_v23 = vand.u32 2147483648, %v9107_v19  ;;  %v1699_v6 = vand.u32 2147483647, %v9107_v19  ;;  %vm1695_vm9 = vweird.f32 %v9107_v19 }
 0x310   :  { %7540 = vtanh.f32 %v9105_v9  ;;  %v1541_v11 = vsel %vm1540_vm14, %v7529_v16, %v1537_v17  ;;  %vm1678_vm8 = vcmp.eq.f32.partialorder %v1677_v30, 8.507059e+37  ;;  %vm1719_vm13 = vweird.f32 %v9109_v36 }
 0x311   :  { %7542 = vrcp.f32 %v9107_v19  ;;  %v1546_v52 = vsel %vm1543_vm15, %v1545_v47, %v1541_v11  ;;  %v1702_v0 = vor.u32 1.1754944e-38, %v1701_v23  ;;  %vm1700_vm11 = vcmp.eq.f32.partialorder %v1699_v6, 8.507059e+37  ;;  %v2012_v6 = vld [vmem:[#allocation6 + $0x4] ss:$8 sm:$0xf] }
 0x312   :  { %7544 = vrcp.f32 %v9109_v36  ;;  %v7539_v26 = vpop.eup %7538 }
 0x313   :  { %v1669_v41 = vmul.f32 %v7539_v26, %v1667_v37  ;;  %vm1674_vm4 = vweird.f32 %v7539_v26  ;;  %7546 = vtanh.f32 %v1705_v61  ;;  %v1680_v37 = vor.u32 1.1754944e-38, %v1679_v15 }
 0x314   :  { %vm9127_vm6 = vmor %vm1673_vm5, %vm1674_vm4 }
 0x315   :  { %v1670_v51 = vsub.f32 1.0, %v1669_v41 }
 0x316   :  { %v7541_v34 = vpop.eup %7540 }
 0x317   :  { %v7543_v53 = vpop.eup %7542  ;;  %v1552_v56 = vmul.f32 %v7541_v34, %v1546_v52  ;;  %v1671_v31 = vmul.f32 %v7539_v26, %v1670_v51 }
 0x318   :  { %v9118_v42 = vpop.eup %7544  ;;  %v1691_v38 = vmul.f32 %v7543_v53, %v9107_v19  ;;  %vm1696_vm7 = vweird.f32 %v7543_v53 }
 0x319   :  { %v1715_v16 = vmul.f32 %v9118_v42, %v9109_v36  ;;  %1553 = vst [vmem:[#allocation3 + $0x2] sm:$0x1] %v1552_v56  ;;  %7234 = vmatmul.msk.f32.vlgmr.msra.gmra.mxu0 %vm93_vm0, %v1552_v56  ;;  %7235 = vmatmul.msk.f32.vlgmr.msra.gmra.mxu1 %vm93_vm0, %v1552_v56  ;;  %v1672_v2 = vadd.f32 %v7539_v26, %v1671_v31  ;;  %vm1697_vm10 = vmor %vm1695_vm9, %vm1696_vm7  ;;  %vm1720_vm12 = vweird.f32 %v9118_v42 }
 0x31a   :  { %v1692_v22 = vsub.f32 1.0, %v1691_v38  ;;  %7236 = vmatmul.msk.f32.vlgmr.msra.gmra.mxu2 %vm93_vm0, %v1552_v56  ;;  %7237 = vmatmul.msk.f32.vlgmr.msra.gmra.mxu3 %vm93_vm0, %v1552_v56  ;;  %vm1721_vm14 = vmor %vm1719_vm13, %vm1720_vm12 }
 0x31b   :  { %2081 = vmatpush.msra.mxu2 %v8818_v29  ;;  %2101 = vmatpush.msra.mxu3 %v8823_v32  ;;  %v1676_v12 = vsel %vm9127_vm6, %v7539_v26, %v1672_v2  ;;  %v1716_v63 = vsub.f32 1.0, %v1715_v16 }
 0x31c   :  { %v1693_v59 = vmul.f32 %v7543_v53, %v1692_v22  ;;  %2041 = vmatpush.msra.mxu0 %v8833_v35  ;;  %2061 = vmatpush.msra.mxu1 %v8838_v13  ;;  %v1681_v32 = vsel %vm1678_vm8, %v1680_v37, %v1676_v12  ;;  %v7547_v13 = vpop.eup %7546 }
 0x31d   :  { %2082 = vmatpush.msra.mxu2 %v8847_v40  ;;  %2102 = vmatpush.msra.mxu3 %v8852_v58  ;;  %v1717_v58 = vmul.f32 %v9118_v42, %v1716_v63 }
 0x31e   :  { %v1694_v29 = vadd.f32 %v7543_v53, %v1693_v59  ;;  %2042 = vmatpush.msra.mxu0 %v8865_v62  ;;  %2062 = vmatpush.msra.mxu1 %v8870_v5  ;;  %v1730_v5 = vmul.f32 %v7547_v13, %v1681_v32 }
 0x31f   :  { %2083 = vmatpush.msra.mxu2 %v8882_v27  ;;  %2103 = vmatpush.msra.mxu3 %v8887_v28  ;;  %v1718_v28 = vadd.f32 %v9118_v42, %v1717_v58 }
 0x320   :  { %v1698_v35 = vsel %vm1697_vm10, %v7543_v53, %v1694_v29  ;;  %2043 = vmatpush.msra.mxu0 %v8894_v44  ;;  %2063 = vmatpush.msra.mxu1 %v8899_v46  ;;  %v1725_v44 = vand.u32 2147483648, %v9109_v36  ;;  %v1723_v46 = vand.u32 2147483647, %v9109_v36 }
 0x321   :  { %v1703_v40 = vsel %vm1700_vm11, %v1702_v0, %v1698_v35  ;;  %2084 = vmatpush.msra.mxu2 %v8908_v49  ;;  %2104 = vmatpush.msra.mxu3 %v8913_v50  ;;  %v1722_v49 = vsel %vm1721_vm14, %v9118_v42, %v1718_v28 }
 0x322   :  { %v1729_v62 = vmul.f32 %v1703_v40, %v8938_v48  ;;  %2044 = vmatpush.msra.mxu0 %v8922_v57  ;;  %2064 = vmatpush.msra.mxu1 %v8927_v20  ;;  %v1726_v50 = vor.u32 1.1754944e-38, %v1725_v44  ;;  %vm1724_vm15 = vcmp.eq.f32.partialorder %v1723_v46, 8.507059e+37 }
 0x324   :  { %v9154_v27 = vadd.f32 %v1730_v5, %v1729_v62  ;;  %v1727_v20 = vsel %vm1724_vm15, %v1726_v50, %v1722_v49 }
 0x326   :  { %7548 = vtanh.f32 %v9154_v27 }
 0x32c   :  { %v7549_v57 = vpop.eup %7548 }
 0x32d   :  { %v1733_v48 = vmul.f32 %v7549_v57, %v1727_v20 }
 0x32f   :  { %1734 = vst [vmem:[#allocation2 + $0x3] sm:$0x1] %v1733_v48  ;;  %7238 = vmatmul.msk.f32.vlgmr.msrb.gmra.mxu0 %vm93_vm0, %v1733_v48  ;;  %7239 = vmatmul.msk.f32.vlgmr.msrb.gmra.mxu1 %vm93_vm0, %v1733_v48 }
 0x330   :  { %7240 = vmatmul.msk.f32.vlgmr.msrb.gmra.mxu2 %vm93_vm0, %v1733_v48  ;;  %7241 = vmatmul.msk.f32.vlgmr.msrb.gmra.mxu3 %vm93_vm0, %v1733_v48 }
 0x331   :  { %2239 = vmatpush.msrb.mxu0 %v8966_v39  ;;  %2259 = vmatpush.msrb.mxu1 %v8971_v45  ;;  %v11919_v39 = vld [vmem:[#allocation17_spill] sm:$0xff]  ;;  %v11920_v45 = vld [vmem:[#allocation16_spill] sm:$0xff] }
 0x332   :  { %2279 = vmatpush.msrb.mxu2 %v8976_v55  ;;  %2299 = vmatpush.msrb.mxu3 %v8983_v18  ;;  %v11921_v55 = vld [vmem:[#allocation15_spill] sm:$0xff] }
 0x333   :  { %2240 = vmatpush.msrb.mxu0 %v8992_v3  ;;  %2260 = vmatpush.msrb.mxu1 %v8997_v4  ;;  %v1933_v4 = vld [vmem:[%s11843_s7] sm:$0xf] }
 0x334   :  { %2280 = vmatpush.msrb.mxu2 %v9002_v21  ;;  %2300 = vmatpush.msrb.mxu3 %v9011_v60  ;;  %v1938_v54 = vperm.slane %v1933_v4, 3  ;;  %v1937_v38 = vperm.slane %v1933_v4, 2 }
 0x335   :  { %2241 = vmatpush.msrb.mxu0 %v9019_v14  ;;  %2261 = vmatpush.msrb.mxu1 %v9024_v24  ;;  %v1935_v14 = vperm.slane %v1933_v4, 0  ;;  %v1936_v24 = vperm.slane %v1933_v4, 1 }
 0x336   :  { %2281 = vmatpush.msrb.mxu2 %v9029_v25  ;;  %2301 = vmatpush.msrb.mxu3 %v11919_v39 }
 0x337   :  { %7245 = vmatmul.msk.f32.vlgmr.msra.gmra.mxu0 %vm93_vm0, %v1733_v48  ;;  %7246 = vmatmul.msk.f32.vlgmr.msra.gmra.mxu1 %vm93_vm0, %v1733_v48 }
 0x338   :  { %7247 = vmatmul.msk.f32.vlgmr.msra.gmra.mxu2 %vm93_vm0, %v1733_v48  ;;  %7248 = vmatmul.msk.f32.vlgmr.msra.gmra.mxu3 %vm93_vm0, %v1733_v48 }
 0x339   :  { %2242 = vmatpush.msrb.mxu0 %v11920_v45  ;;  %2262 = vmatpush.msrb.mxu1 %v11921_v55  ;;  %v9382_v55 = vld [vmem:[%s11884_s22 + $0x50] sm:$0xff] }
 0x33a   :  { %2282 = vmatpush.msrb.mxu2 %v9057_v10  ;;  %2302 = vmatpush.msrb.mxu3 %v9062_v7 }
 0x396   :  { %v1787_v18 = vpop.f32.mrf.mxu0  ;;  %v1807_v3 = vpop.f32.mrf.mxu1 }
 0x39d   :  { %v1827_v21 = vpop.f32.mrf.mxu2  ;;  %v1847_v60 = vpop.f32.mrf.mxu3 }
 0x3ac   :  { %v1870_v25 = vpop.f32.mrf.mxu0  ;;  %v1890_v43 = vpop.f32.mrf.mxu1 }
 0x3ad   :  { %v1871_v1 = vadd.f32 %v1870_v25, %v1787_v18  ;;  %v1891_v19 = vadd.f32 %v1890_v43, %v1807_v3  ;;  %v9405_v25 = vld [vmem:[%s11884_s22 + $0x48] sm:$0xff] }
 0x3af   :  { %v1943_v36 = vadd.f32 %v1935_v14, %v1871_v1  ;;  %v1944_v17 = vadd.f32 %v1936_v24, %v1891_v19  ;;  %v9225_v14 = vld [vmem:[%s11841_s5 + $0x78] sm:$0xff]  ;;  %v9230_v24 = vld [vmem:[%s11841_s5 + $0x60] sm:$0xff]  ;;  %v9244_v19 = vld [vmem:[%s11841_s5 + $0x68] sm:$0xff] }
 0x3b0   :  { %2382 = vmatpush.msra.mxu3 %v9225_v14  ;;  %2322 = vmatpush.msra.mxu0 %v9230_v24 }
 0x3b1   :  { %v7242_v8 = vmul.f32 -1.442695, %v1943_v36  ;;  %v7243_v10 = vmul.f32 -1.442695, %v1944_v17  ;;  %2342 = vmatpush.msra.mxu1 %v9244_v19 }
 0x3b3   :  { %7550 = vpow2.f32 %v7242_v8  ;;  %v1910_v7 = vpop.f32.mrf.mxu2  ;;  %v1930_v26 = vpop.f32.mrf.mxu3 }
 0x3b4   :  { %7552 = vpow2.f32 %v7243_v10  ;;  %v1931_v11 = vadd.f32 %v1930_v26, %v1847_v60  ;;  %v2066_v51 = vpop.f32.mrf.mxu1  ;;  %v1911_v31 = vadd.f32 %v1910_v7, %v1827_v21  ;;  %v2046_v30 = vpop.f32.mrf.mxu0  ;;  %v9220_v60 = vld [vmem:[%s11841_s5 + $0x70] sm:$0xff]  ;;  %v9258_v7 = vld [vmem:[%s11841_s5 + $0x58] sm:$0xff]  ;;  %v9263_v26 = vld [vmem:[%s11841_s5 + $0x40] sm:$0xff] }
 0x3b5   :  { %v2113_v15 = vrot.slane %v2066_v51, 7  ;;  %2362 = vmatpush.msra.mxu2 %v9220_v60  ;;  %2383 = vmatpush.msra.mxu3 %v9258_v7 }
 0x3b6   :  { %v1946_v41 = vadd.f32 %v1938_v54, %v1931_v11  ;;  %v1945_v33 = vadd.f32 %v1937_v38, %v1911_v31  ;;  %v9253_v54 = vld [vmem:[%s11841_s5 + $0x50] sm:$0xff]  ;;  %2323 = vmatpush.msra.mxu0 %v9263_v26  ;;  %v9299_v31 = vld [vmem:[%s11841_s5 + $0x28] sm:$0xff] }
 0x3b7   :  { %v2116_v23 = vsel %vm288_vm1, %v2046_v30, %v2113_v15  ;;  %2363 = vmatpush.msra.mxu2 %v9253_v54  ;;  %v9317_v30 = vld [vmem:[%s11841_s5 + $0x18] sm:$0xff] }
 0x3b8   :  { %v7244_v47 = vmul.f32 -1.442695, %v1946_v41 }
 0x3b9   :  { %v7551_v34 = vpop.eup %7550 }
 0x3ba   :  { %v7553_v52 = vpop.eup %7552  ;;  %v1950_v53 = vadd.f32 1.0, %v7551_v34  ;;  %7554 = vpow2.f32 %v7244_v47  ;;  %v9272_v34 = vld [vmem:[%s11841_s5 + $0x48] sm:$0xff] }
 0x3bb   :  { %v9190_v61 = vadd.f32 1.0, %v7553_v52  ;;  %v2086_v56 = vpop.f32.mrf.mxu2  ;;  %v2106_v42 = vpop.f32.mrf.mxu3  ;;  %2343 = vmatpush.msra.mxu1 %v9272_v34 }
 0x3bc   :  { %7556 = vrcp.f32 %v1950_v53  ;;  %v2114_v16 = vrot.slane %v2086_v56, 6  ;;  %v2115_v2 = vrot.slane %v2106_v42, 5  ;;  %vm1956_vm4 = vweird.f32 %v1950_v53  ;;  %v9286_v56 = vld [vmem:[%s11841_s5 + $0x38] sm:$0xff] }
 0x3bd   :  { %7558 = vrcp.f32 %v9190_v61  ;;  %v1962_v62 = vand.u32 2147483648, %v1950_v53  ;;  %v1981_v46 = vand.u32 2147483648, %v9190_v61  ;;  %v1960_v50 = vand.u32 2147483647, %v1950_v53  ;;  %2384 = vmatpush.msra.mxu3 %v9286_v56  ;;  %2344 = vmatpush.msra.mxu1 %v9299_v31 }
 0x3be   :  { %v2117_v12 = vsel %vm290_vm2, %v2114_v16, %v2115_v2  ;;  %v1979_v48 = vand.u32 2147483647, %v9190_v61  ;;  %vm1975_vm8 = vweird.f32 %v9190_v61  ;;  %v9312_v2 = vld [vmem:[%s11841_s5 + $0x10] sm:$0xff] }
 0x3bf   :  { %v2118_v37 = vsel %vm292_vm3, %v2116_v23, %v2117_v12  ;;  %v1963_v3 = vor.u32 1.1754944e-38, %v1962_v62  ;;  %v1982_v43 = vor.u32 1.1754944e-38, %v1981_v46  ;;  %vm1961_vm10 = vcmp.eq.f32.partialorder %v1960_v50, 8.507059e+37  ;;  %2385 = vmatpush.msra.mxu3 %v9317_v30  ;;  %v9331_v23 = vld [vmem:[%s11841_s5 + $0x8] sm:$0xff]  ;;  %v9353_v46 = vld [vmem:[%s11884_s22 + $0x70] sm:$0xff] }
 0x3c0   :  { %v7555_v22 = vpop.eup %7554  ;;  %v9198_v29 = vadd.f32 %v2118_v37, %v2012_v6  ;;  %vm1980_vm11 = vcmp.eq.f32.partialorder %v1979_v48, 8.507059e+37  ;;  %2345 = vmatpush.msra.mxu1 %v9331_v23 }
 0x3c1   :  { %v9195_v59 = vadd.f32 1.0, %v7555_v22  ;;  %v9322_v22 = vld [vmem:[%s11841_s5] sm:$0xff] }
 0x3c2   :  { %v7557_v63 = vpop.eup %7556  ;;  %v7249_v13 = vmul.f32 -1.442695, %v9198_v29  ;;  %v2141_v40 = vrot.slane %v9198_v29, 1  ;;  %v2165_v5 = vrot.slane %v9198_v29, 3  ;;  %v2162_v62 = vrot.slane %v9198_v29, 2 }
 0x3c3   :  { %v7559_v32 = vpop.eup %7558  ;;  %v1952_v0 = vmul.f32 %v7557_v63, %v1950_v53  ;;  %7560 = vrcp.f32 %v9195_v59  ;;  %vm1957_vm5 = vweird.f32 %v7557_v63  ;;  %v2001_v12 = vand.u32 2147483648, %v9195_v59 }
 0x3c4   :  { %v1971_v35 = vmul.f32 %v7559_v32, %v9190_v61  ;;  %7562 = vtanh.f32 %v1945_v33  ;;  %v7250_v44 = vmul.f32 -1.442695, %v2141_v40  ;;  %v7251_v57 = vmul.f32 -1.442695, %v2165_v5  ;;  %vm9210_vm7 = vmor %vm1956_vm4, %vm1957_vm5  ;;  %v9281_v61 = vld [vmem:[%s11841_s5 + $0x30] sm:$0xff] }
 0x3c5   :  { %v1953_v58 = vsub.f32 1.0, %v1952_v0  ;;  %7564 = vpow2.f32 %v7249_v13  ;;  %vm1976_vm6 = vweird.f32 %v7559_v32  ;;  %2364 = vmatpush.msra.mxu2 %v9281_v61  ;;  %vm1995_vm13 = vweird.f32 %v9195_v59 }
 0x3c6   :  { %v1972_v28 = vsub.f32 1.0, %v1971_v35  ;;  %7566 = vpow2.f32 %v7250_v44  ;;  %vm9233_vm9 = vmor %vm1975_vm8, %vm1976_vm6  ;;  %v1999_v6 = vand.u32 2147483647, %v9195_v59  ;;  %v2002_v0 = vor.u32 1.1754944e-38, %v2001_v12  ;;  %v9462_v12 = vld [vmem:[%s11884_s22 + $0x8] sm:$0xff] }
 0x3c7   :  { %v1954_v49 = vmul.f32 %v7557_v63, %v1953_v58  ;;  %7568 = vpow2.f32 %v7251_v57  ;;  %2365 = vmatpush.msra.mxu2 %v9312_v2  ;;  %v9368_v57 = vld [vmem:[%s11884_s22 + $0x60] sm:$0xff] }
 0x3c8   :  { %v1973_v20 = vmul.f32 %v7559_v32, %v1972_v28  ;;  %vm2000_vm15 = vcmp.eq.f32.partialorder %v1999_v6, 8.507059e+37 }
 0x3c9   :  { %v9207_v39 = vpop.eup %7560  ;;  %v1955_v45 = vadd.f32 %v7557_v63, %v1954_v49  ;;  %v9358_v49 = vld [vmem:[%s11884_s22 + $0x78] sm:$0xff] }
 0x3ca   :  { %v7563_v18 = vpop.eup %7562  ;;  %v1974_v4 = vadd.f32 %v7559_v32, %v1973_v20  ;;  %v1991_v21 = vmul.f32 %v9207_v39, %v9195_v59  ;;  %vm1996_vm12 = vweird.f32 %v9207_v39  ;;  %v9373_v20 = vld [vmem:[%s11884_s22 + $0x68] sm:$0xff] }
 0x3cb   :  { %v1959_v1 = vsel %vm9210_vm7, %v7557_v63, %v1955_v45  ;;  %v7565_v36 = vpop.eup %7564  ;;  %vm1997_vm14 = vmor %vm1995_vm13, %vm1996_vm12 }
 0x3cc   :  { %v1964_v17 = vsel %vm1961_vm10, %v1963_v3, %v1959_v1  ;;  %v1978_v8 = vsel %vm9233_vm9, %v7559_v32, %v1974_v4  ;;  %v1992_v10 = vsub.f32 1.0, %v1991_v21  ;;  %v9265_v47 = vadd.f32 1.0, %v7565_v36  ;;  %v7567_v51 = vpop.eup %7566  ;;  %v9400_v21 = vld [vmem:[%s11884_s22 + $0x40] sm:$0xff] }
 0x3cd   :  { %v1983_v11 = vsel %vm1980_vm11, %v1982_v43, %v1978_v8  ;;  %v2006_v41 = vmul.f32 %v7563_v18, %v1964_v17  ;;  %v7569_v42 = vpop.eup %7568  ;;  %v9303_v15 = vadd.f32 1.0, %v7567_v51  ;;  %v9387_v18 = vld [vmem:[%s11884_s22 + $0x58] sm:$0xff]  ;;  %v9417_v17 = vld [vmem:[%s11884_s22 + $0x30] sm:$0xff] }
 0x3ce   :  { %v2005_v52 = vmul.f32 %v1983_v11, %v9105_v9  ;;  %v1993_v53 = vmul.f32 %v9207_v39, %v1992_v10  ;;  %v9291_v9 = vld [vmem:[%s11841_s5 + $0x20] sm:$0xff]  ;;  %7570 = vrcp.f32 %v9265_v47  ;;  %v9305_v16 = vadd.f32 1.0, %v7569_v42  ;;  %v9422_v8 = vld [vmem:[%s11884_s22 + $0x38] sm:$0xff] }
 0x3cf   :  { %2324 = vmatpush.msra.mxu0 %v9291_v9  ;;  %v2136_v29 = vand.u32 2147483648, %v9265_v47  ;;  %vm2130_vm5 = vweird.f32 %v9265_v47  ;;  %v2158_v4 = vand.u32 2147483648, %v9303_v15  ;;  %v2156_v36 = vand.u32 2147483647, %v9303_v15 }
 0x3d0   :  { %v9301_v38 = vadd.f32 %v2006_v41, %v2005_v52  ;;  %v1994_v33 = vadd.f32 %v9207_v39, %v1993_v53  ;;  %v9429_v41 = vld [vmem:[%s11884_s22 + $0x20] sm:$0xff]  ;;  %vm2152_vm9 = vweird.f32 %v9303_v15  ;;  %v9443_v52 = vld [vmem:[%s11884_s22 + $0x10] sm:$0xff]  ;;  %v9448_v53 = vld [vmem:[%s11884_s22 + $0x18] sm:$0xff]  ;;  %vm2176_vm13 = vweird.f32 %v9305_v16 }
 0x3d1   :  { %2325 = vmatpush.msra.mxu0 %v9322_v22  ;;  %v2137_v10 = vor.u32 1.1754944e-38, %v2136_v29  ;;  %vm2157_vm11 = vcmp.eq.f32.partialorder %v2156_v36, 8.507059e+37 }
 0x3d2   :  { %7572 = vtanh.f32 %v9301_v38  ;;  %v1998_v63 = vsel %vm1997_vm14, %v9207_v39, %v1994_v33  ;;  %v2134_v39 = vand.u32 2147483647, %v9265_v47  ;;  %v2159_v33 = vor.u32 1.1754944e-38, %v2158_v4 }
 0x3d3   :  { %7574 = vrcp.f32 %v9303_v15  ;;  %v2003_v40 = vsel %vm2000_vm15, %v2002_v0, %v1998_v63 }
 0x3d4   :  { %7576 = vrcp.f32 %v9305_v16  ;;  %v7571_v37 = vpop.eup %7570  ;;  %vm2135_vm8 = vcmp.eq.f32.partialorder %v2134_v39, 8.507059e+37 }
 0x3d5   :  { %v2126_v32 = vmul.f32 %v7571_v37, %v9265_v47  ;;  %vm2131_vm4 = vweird.f32 %v7571_v37  ;;  %7578 = vtanh.f32 %v2162_v62  ;;  %v9434_v47 = vld [vmem:[%s11884_s22 + $0x28] sm:$0xff]  ;;  %v2180_v62 = vand.u32 2147483647, %v9305_v16 }
 0x3d6   :  { %vm9390_vm6 = vmor %vm2130_vm5, %vm2131_vm4 }
 0x3d7   :  { %v2127_v13 = vsub.f32 1.0, %v2126_v32  ;;  %vm2181_vm15 = vcmp.eq.f32.partialorder %v2180_v62, 8.507059e+37 }
 0x3d8   :  { %v7573_v35 = vpop.eup %7572 }
 0x3d9   :  { %v9343_v58 = vpop.eup %7574  ;;  %v2009_v5 = vmul.f32 %v7573_v35, %v2003_v40  ;;  %v2128_v59 = vmul.f32 %v7571_v37, %v2127_v13 }
 0x3da   :  { %v9346_v28 = vpop.eup %7576  ;;  %v2148_v44 = vmul.f32 %v9343_v58, %v9303_v15  ;;  %vm2153_vm7 = vweird.f32 %v9343_v58  ;;  %v9457_v15 = vld [vmem:[%s11884_s22] sm:$0xff] }
 0x3db   :  { %v2172_v50 = vmul.f32 %v9346_v28, %v9305_v16  ;;  %2010 = vst [vmem:[#allocation3 + $0x3] sm:$0x1] %v2009_v5  ;;  %7252 = vmatmul.msk.f32.vlgmr.msrb.gmra.mxu0 %vm93_vm0, %v2009_v5  ;;  %7253 = vmatmul.msk.f32.vlgmr.msrb.gmra.mxu1 %vm93_vm0, %v2009_v5  ;;  %v2129_v48 = vadd.f32 %v7571_v37, %v2128_v59  ;;  %vm2154_vm10 = vmor %vm2152_vm9, %vm2153_vm7  ;;  %vm2177_vm12 = vweird.f32 %v9346_v28 }
 0x3dc   :  { %v2149_v45 = vsub.f32 1.0, %v2148_v44  ;;  %7254 = vmatmul.msk.f32.vlgmr.msrb.gmra.mxu2 %vm93_vm0, %v2009_v5  ;;  %7255 = vmatmul.msk.f32.vlgmr.msrb.gmra.mxu3 %vm93_vm0, %v2009_v5  ;;  %vm2178_vm14 = vmor %vm2176_vm13, %vm2177_vm12 }
 0x3dd   :  { %2538 = vmatpush.msrb.mxu2 %v9353_v46  ;;  %2558 = vmatpush.msrb.mxu3 %v9358_v49  ;;  %v2133_v43 = vsel %vm9390_vm6, %v7571_v37, %v2129_v48  ;;  %v2173_v11 = vsub.f32 1.0, %v2172_v50  ;;  %v7579_v37 = vpop.eup %7578  ;;  %v9493_v50 = vld [vmem:[%s11843_s7] sm:$0xf] }
 0x3de   :  { %v2150_v1 = vmul.f32 %v9343_v58, %v2149_v45  ;;  %2498 = vmatpush.msrb.mxu0 %v9368_v57  ;;  %2518 = vmatpush.msrb.mxu1 %v9373_v20  ;;  %v2138_v42 = vsel %vm2135_vm8, %v2137_v10, %v2133_v43  ;;  %v2392_v45 = vperm.slane %v9493_v50, 0  ;;  %v2393_v3 = vperm.slane %v9493_v50, 1 }
 0x3df   :  { %2539 = vmatpush.msrb.mxu2 %v9382_v55  ;;  %2559 = vmatpush.msrb.mxu3 %v9387_v18  ;;  %v2174_v32 = vmul.f32 %v9346_v28, %v2173_v11  ;;  %v2187_v35 = vmul.f32 %v7579_v37, %v2138_v42 }
 0x3e0   :  { %v2151_v51 = vadd.f32 %v9343_v58, %v2150_v1  ;;  %2499 = vmatpush.msrb.mxu0 %v9400_v21  ;;  %2519 = vmatpush.msrb.mxu1 %v9405_v25 }
 0x3e1   :  { %2540 = vmatpush.msrb.mxu2 %v9417_v17  ;;  %2560 = vmatpush.msrb.mxu3 %v9422_v8  ;;  %v2175_v40 = vadd.f32 %v9346_v28, %v2174_v32 }
 0x3e2   :  { %v2155_v6 = vsel %vm2154_vm10, %v9343_v58, %v2151_v51  ;;  %2500 = vmatpush.msrb.mxu0 %v9429_v41  ;;  %2520 = vmatpush.msrb.mxu1 %v9434_v47  ;;  %v2182_v58 = vand.u32 2147483648, %v9305_v16 }
 0x3e3   :  { %v2160_v63 = vsel %vm2157_vm11, %v2159_v33, %v2155_v6  ;;  %2541 = vmatpush.msrb.mxu2 %v9443_v52  ;;  %2561 = vmatpush.msrb.mxu3 %v9448_v53  ;;  %v2395_v33 = vperm.slane %v9493_v50, 3 }
 0x3e4   :  { %v2186_v0 = vmul.f32 %v2160_v63, %v9154_v27  ;;  %2501 = vmatpush.msrb.mxu0 %v9457_v15  ;;  %2521 = vmatpush.msrb.mxu1 %v9462_v12  ;;  %v2179_v27 = vsel %vm2178_vm14, %v9346_v28, %v2175_v40  ;;  %v2183_v5 = vor.u32 1.1754944e-38, %v2182_v58  ;;  %v9506_v40 = vld [vmem:[%s11842_s6 + $0x68] sm:$0xff]  ;;  %v9511_v58 = vld [vmem:[%s11842_s6 + $0x70] sm:$0xff] }
 0x3e6   :  { %v9473_v13 = vadd.f32 %v2187_v35, %v2186_v0  ;;  %v2184_v44 = vsel %vm2181_vm15, %v2183_v5, %v2179_v27  ;;  %v9501_v35 = vld [vmem:[%s11842_s6 + $0x60] sm:$0xff]  ;;  %v9518_v5 = vld [vmem:[%s11842_s6 + $0x78] sm:$0xff] }
 0x3e8   :  { %7580 = vtanh.f32 %v9473_v13 }
 0x3ee   :  { %v7581_v59 = vpop.eup %7580 }
 0x3ef   :  { %v2190_v29 = vmul.f32 %v7581_v59, %v2184_v44 }
 0x3f1   :  { %2191 = vst [vmem:[#allocation2 + $0x4] sm:$0x1] %v2190_v29  ;;  %7256 = vmatmul.msk.f32.vlgmr.msra.gmra.mxu0 %vm93_vm0, %v2190_v29  ;;  %7257 = vmatmul.msk.f32.vlgmr.msra.gmra.mxu1 %vm93_vm0, %v2190_v29 }
 0x3f2   :  { %7258 = vmatmul.msk.f32.vlgmr.msra.gmra.mxu2 %vm93_vm0, %v2190_v29  ;;  %7259 = vmatmul.msk.f32.vlgmr.msra.gmra.mxu3 %vm93_vm0, %v2190_v29 }
 0x3f3   :  { %2696 = vmatpush.msra.mxu0 %v9501_v35  ;;  %2716 = vmatpush.msra.mxu1 %v9506_v40 }
 0x3f4   :  { %2736 = vmatpush.msra.mxu2 %v9511_v58  ;;  %2756 = vmatpush.msra.mxu3 %v9518_v5 }
 0x3f9   :  { %7263 = vmatmul.msk.f32.vlgmr.msrb.gmra.mxu0 %vm93_vm0, %v2190_v29  ;;  %7264 = vmatmul.msk.f32.vlgmr.msrb.gmra.mxu1 %vm93_vm0, %v2190_v29 }
 0x3fa   :  { %7265 = vmatmul.msk.f32.vlgmr.msrb.gmra.mxu2 %vm93_vm0, %v2190_v29  ;;  %7266 = vmatmul.msk.f32.vlgmr.msrb.gmra.mxu3 %vm93_vm0, %v2190_v29  ;;  %v9527_v29 = vld [vmem:[%s11842_s6 + $0x40] sm:$0xff] }
 0x3fb   :  { %2697 = vmatpush.msra.mxu0 %v9527_v29 }
 0x458   :  { %v2244_v16 = vpop.f32.mrf.mxu0  ;;  %v2264_v28 = vpop.f32.mrf.mxu1 }
 0x45f   :  { %v2284_v48 = vpop.f32.mrf.mxu2  ;;  %v2304_v39 = vpop.f32.mrf.mxu3 }
 0x46e   :  { %v2327_v4 = vpop.f32.mrf.mxu0  ;;  %v2347_v43 = vpop.f32.mrf.mxu1 }
 0x46f   :  { %v2328_v1 = vadd.f32 %v2327_v4, %v2244_v16  ;;  %v2348_v36 = vadd.f32 %v2347_v43, %v2264_v28  ;;  %v9532_v16 = vld [vmem:[%s11842_s6 + $0x48] sm:$0xff]  ;;  %v9537_v28 = vld [vmem:[%s11842_s6 + $0x50] sm:$0xff]  ;;  %v9546_v4 = vld [vmem:[%s11842_s6 + $0x58] sm:$0xff] }
 0x470   :  { %2717 = vmatpush.msra.mxu1 %v9532_v16  ;;  %2737 = vmatpush.msra.mxu2 %v9537_v28 }
 0x471   :  { %v2400_v10 = vadd.f32 %v2392_v45, %v2328_v1  ;;  %v2401_v11 = vadd.f32 %v2393_v3, %v2348_v36  ;;  %2757 = vmatpush.msra.mxu3 %v9546_v4  ;;  %v9554_v1 = vld [vmem:[%s11842_s6 + $0x20] sm:$0xff]  ;;  %v9559_v36 = vld [vmem:[%s11842_s6 + $0x28] sm:$0xff] }
 0x472   :  { %2698 = vmatpush.msra.mxu0 %v9554_v1  ;;  %2718 = vmatpush.msra.mxu1 %v9559_v36 }
 0x473   :  { %v7260_v51 = vmul.f32 -1.442695, %v2400_v10  ;;  %v7261_v42 = vmul.f32 -1.442695, %v2401_v11  ;;  %v9564_v10 = vld [vmem:[%s11842_s6 + $0x30] sm:$0xff] }
 0x474   :  { %2738 = vmatpush.msra.mxu2 %v9564_v10 }
 0x475   :  { %7582 = vpow2.f32 %v7260_v51  ;;  %v2367_v6 = vpop.f32.mrf.mxu2  ;;  %v2387_v37 = vpop.f32.mrf.mxu3  ;;  %v2394_v51 = vperm.slane %v9493_v50, 2  ;;  %v9585_v50 = vld [vmem:[%s11842_s6 + $0x8] sm:$0xff] }
 0x476   :  { %7584 = vpow2.f32 %v7261_v42  ;;  %v2388_v63 = vadd.f32 %v2387_v37, %v2304_v39  ;;  %v2523_v27 = vpop.f32.mrf.mxu1  ;;  %v2368_v11 = vadd.f32 %v2367_v6, %v2284_v48  ;;  %v9573_v42 = vld [vmem:[%s11842_s6 + $0x38] sm:$0xff]  ;;  %v9580_v48 = vld [vmem:[%s11842_s6] sm:$0xff]  ;;  %11930 = vst [vmem:[#allocation19_spill] sm:$0xff] %v9585_v50  ;;  %v2503_v6 = vpop.f32.mrf.mxu0  ;;  %2719 = vmatpush.msra.mxu1 %v9585_v50 }
 0x477   :  { %v2570_v43 = vrot.slane %v2523_v27, 7  ;;  %11928 = vst [vmem:[#allocation23_spill] sm:$0xff] %v9573_v42  ;;  %2758 = vmatpush.msra.mxu3 %v9573_v42  ;;  %2699 = vmatpush.msra.mxu0 %v9580_v48 }
 0x478   :  { %v2403_v32 = vadd.f32 %v2395_v33, %v2388_v63  ;;  %11929 = vst [vmem:[#allocation20_spill] sm:$0xff] %v9580_v48  ;;  %v9592_v63 = vld [vmem:[%s11842_s6 + $0x10] sm:$0xff]  ;;  %2799 = vmatpush.msrb.mxu1 %v9244_v19 }
 0x479   :  { %2739 = vmatpush.msra.mxu2 %v9592_v63  ;;  %2779 = vmatpush.msrb.mxu0 %v9230_v24 }
 0x47a   :  { %v7262_v0 = vmul.f32 -1.442695, %v2403_v32  ;;  %v9597_v32 = vld [vmem:[%s11842_s6 + $0x18] sm:$0xff]  ;;  %2800 = vmatpush.msrb.mxu1 %v9272_v34 }
 0x47b   :  { %v7583_v62 = vpop.eup %7582  ;;  %2759 = vmatpush.msra.mxu3 %v9597_v32  ;;  %2819 = vmatpush.msrb.mxu2 %v9220_v60 }
 0x47c   :  { %v7585_v59 = vpop.eup %7584  ;;  %v9520_v44 = vadd.f32 1.0, %v7583_v62  ;;  %7586 = vpow2.f32 %v7262_v0  ;;  %v2573_v62 = vsel %vm288_vm1, %v2503_v6, %v2570_v43  ;;  %2780 = vmatpush.msrb.mxu0 %v9263_v26  ;;  %2801 = vmatpush.msrb.mxu1 %v9299_v31 }
 0x47d   :  { %v9539_v39 = vadd.f32 1.0, %v7585_v59  ;;  %v2543_v45 = vpop.f32.mrf.mxu2  ;;  %v2563_v3 = vpop.f32.mrf.mxu3  ;;  %v2402_v59 = vadd.f32 %v2394_v51, %v2368_v11  ;;  %2839 = vmatpush.msrb.mxu3 %v9225_v14  ;;  %2820 = vmatpush.msrb.mxu2 %v9253_v54 }
 0x47e   :  { %7588 = vrcp.f32 %v9520_v44  ;;  %v2571_v33 = vrot.slane %v2543_v45, 6  ;;  %v2572_v37 = vrot.slane %v2563_v3, 5  ;;  %v2469_v3 = vld [vmem:[#allocation6 + $0x5] ss:$8 sm:$0xf]  ;;  %2781 = vmatpush.msrb.mxu0 %v9291_v9  ;;  %2802 = vmatpush.msrb.mxu1 %v9331_v23  ;;  %vm2413_vm6 = vweird.f32 %v9520_v44 }
 0x47f   :  { %7590 = vrcp.f32 %v9539_v39  ;;  %2840 = vmatpush.msrb.mxu3 %v9258_v7  ;;  %v2417_v19 = vand.u32 2147483647, %v9520_v44  ;;  %2821 = vmatpush.msrb.mxu2 %v9281_v61  ;;  %v2419_v7 = vand.u32 2147483648, %v9520_v44  ;;  %v2438_v26 = vand.u32 2147483648, %v9539_v39 }
 0x480   :  { %v2574_v27 = vsel %vm290_vm2, %v2571_v33, %v2572_v37  ;;  %2782 = vmatpush.msrb.mxu0 %v9322_v22  ;;  %vm2432_vm7 = vweird.f32 %v9539_v39 }
 0x481   :  { %v2575_v50 = vsel %vm292_vm3, %v2573_v62, %v2574_v27  ;;  %2841 = vmatpush.msrb.mxu3 %v9286_v56  ;;  %2822 = vmatpush.msrb.mxu2 %v9312_v2  ;;  %v2436_v56 = vand.u32 2147483647, %v9539_v39  ;;  %v2420_v2 = vor.u32 1.1754944e-38, %v2419_v7  ;;  %v2439_v62 = vor.u32 1.1754944e-38, %v2438_v26 }
 0x482   :  { %v7587_v0 = vpop.eup %7586  ;;  %v9608_v42 = vadd.f32 %v2575_v50, %v2469_v3  ;;  %vm2418_vm10 = vcmp.eq.f32.partialorder %v2417_v19, 8.507059e+37 }
 0x483   :  { %v9603_v45 = vadd.f32 1.0, %v7587_v0  ;;  %2842 = vmatpush.msrb.mxu3 %v9317_v30  ;;  %vm2437_vm11 = vcmp.eq.f32.partialorder %v2436_v56, 8.507059e+37 }
 0x484   :  { %v7589_v48 = vpop.eup %7588  ;;  %v7267_v14 = vmul.f32 -1.442695, %v9608_v42  ;;  %v2598_v11 = vrot.slane %v9608_v42, 1  ;;  %v2622_v51 = vrot.slane %v9608_v42, 3 }
 0x485   :  { %v7591_v43 = vpop.eup %7590  ;;  %v2409_v33 = vmul.f32 %v7589_v48, %v9520_v44  ;;  %7592 = vrcp.f32 %v9603_v45  ;;  %vm2414_vm4 = vweird.f32 %v7589_v48  ;;  %vm2452_vm13 = vweird.f32 %v9603_v45 }
 0x486   :  { %v2428_v60 = vmul.f32 %v7591_v43, %v9539_v39  ;;  %7594 = vtanh.f32 %v2402_v59  ;;  %v7268_v37 = vmul.f32 -1.442695, %v2598_v11  ;;  %v7269_v50 = vmul.f32 -1.442695, %v2622_v51  ;;  %vm2415_vm8 = vmor %vm2413_vm6, %vm2414_vm4 }
 0x487   :  { %v2410_v24 = vsub.f32 1.0, %v2409_v33  ;;  %7596 = vpow2.f32 %v7267_v14  ;;  %vm2433_vm5 = vweird.f32 %v7591_v43 }
 0x488   :  { %v2429_v54 = vsub.f32 1.0, %v2428_v60  ;;  %7598 = vpow2.f32 %v7268_v37  ;;  %vm2434_vm9 = vmor %vm2432_vm7, %vm2433_vm5 }
 0x489   :  { %v2411_v34 = vmul.f32 %v7589_v48, %v2410_v24  ;;  %7600 = vpow2.f32 %v7269_v50 }
 0x48a   :  { %v2430_v61 = vmul.f32 %v7591_v43, %v2429_v54 }
 0x48b   :  { %v7593_v9 = vpop.eup %7592  ;;  %v2412_v31 = vadd.f32 %v7589_v48, %v2411_v34 }
 0x48c   :  { %v2431_v30 = vadd.f32 %v7591_v43, %v2430_v61  ;;  %v2448_v6 = vmul.f32 %v7593_v9, %v9603_v45  ;;  %v7595_v0 = vpop.eup %7594  ;;  %vm2453_vm12 = vweird.f32 %v7593_v9 }
 0x48d   :  { %v2416_v22 = vsel %vm2415_vm8, %v7589_v48, %v2412_v31  ;;  %v7597_v23 = vpop.eup %7596  ;;  %vm2454_vm14 = vmor %vm2452_vm13, %vm2453_vm12 }
 0x48e   :  { %v2421_v27 = vsel %vm2418_vm10, %v2420_v2, %v2416_v22  ;;  %v2435_v59 = vsel %vm2434_vm9, %v7591_v43, %v2431_v30  ;;  %v2449_v44 = vsub.f32 1.0, %v2448_v6  ;;  %v2581_v39 = vadd.f32 1.0, %v7597_v23  ;;  %v7599_v60 = vpop.eup %7598 }
 0x48f   :  { %v2440_v3 = vsel %vm2437_vm11, %v2439_v62, %v2435_v59  ;;  %v2463_v33 = vmul.f32 %v7595_v0, %v2421_v27  ;;  %v7601_v24 = vpop.eup %7600  ;;  %v9642_v54 = vadd.f32 1.0, %v7599_v60  ;;  %v2458_v43 = vand.u32 2147483648, %v9603_v45 }
 0x490   :  { %v2462_v14 = vmul.f32 %v2440_v3, %v9301_v38  ;;  %v2450_v11 = vmul.f32 %v7593_v9, %v2449_v44  ;;  %7602 = vrcp.f32 %v2581_v39  ;;  %v9644_v48 = vadd.f32 1.0, %v7601_v24 }
 0x491   :  { %v2456_v38 = vand.u32 2147483647, %v9603_v45  ;;  %v2459_v34 = vor.u32 1.1754944e-38, %v2458_v43  ;;  %v2619_v2 = vrot.slane %v9608_v42, 2  ;;  %v2593_v62 = vand.u32 2147483648, %v2581_v39 }
 0x492   :  { %v9640_v51 = vadd.f32 %v2463_v33, %v2462_v14  ;;  %v2451_v19 = vadd.f32 %v7593_v9, %v2450_v11  ;;  %vm2587_vm5 = vweird.f32 %v2581_v39  ;;  %v2591_v23 = vand.u32 2147483647, %v2581_v39 }
 0x493   :  { %vm2457_vm15 = vcmp.eq.f32.partialorder %v2456_v38, 8.507059e+37  ;;  %v2615_v59 = vand.u32 2147483648, %v9642_v54  ;;  %v2613_v33 = vand.u32 2147483647, %v9642_v54  ;;  %vm2609_vm9 = vweird.f32 %v9642_v54 }
 0x494   :  { %7604 = vtanh.f32 %v9640_v51  ;;  %v2455_v37 = vsel %vm2454_vm14, %v7593_v9, %v2451_v19  ;;  %vm2592_vm8 = vcmp.eq.f32.partialorder %v2591_v23, 8.507059e+37  ;;  %vm2633_vm13 = vweird.f32 %v9644_v48 }
 0x495   :  { %7606 = vrcp.f32 %v9642_v54  ;;  %v2460_v56 = vsel %vm2457_vm15, %v2459_v34, %v2455_v37  ;;  %v2616_v14 = vor.u32 1.1754944e-38, %v2615_v59  ;;  %vm2614_vm11 = vcmp.eq.f32.partialorder %v2613_v33, 8.507059e+37  ;;  %v2926_v33 = vld [vmem:[#allocation6 + $0x6] ss:$8 sm:$0xf] }
 0x496   :  { %7608 = vrcp.f32 %v9644_v48  ;;  %v7603_v7 = vpop.eup %7602 }
 0x497   :  { %v2583_v26 = vmul.f32 %v7603_v7, %v2581_v39  ;;  %vm2588_vm4 = vweird.f32 %v7603_v7  ;;  %7610 = vtanh.f32 %v2619_v2  ;;  %v2594_v39 = vor.u32 1.1754944e-38, %v2593_v62 }
 0x498   :  { %vm9662_vm6 = vmor %vm2587_vm5, %vm2588_vm4 }
 0x499   :  { %v2584_v61 = vsub.f32 1.0, %v2583_v26 }
 0x49a   :  { %v7605_v50 = vpop.eup %7604 }
 0x49b   :  { %v7607_v31 = vpop.eup %7606  ;;  %v2466_v30 = vmul.f32 %v7605_v50, %v2460_v56  ;;  %v2585_v0 = vmul.f32 %v7603_v7, %v2584_v61 }
 0x49c   :  { %v9653_v6 = vpop.eup %7608  ;;  %v2605_v45 = vmul.f32 %v7607_v31, %v9642_v54  ;;  %vm2610_vm7 = vweird.f32 %v7607_v31 }
 0x49d   :  { %v2629_v9 = vmul.f32 %v9653_v6, %v9644_v48  ;;  %2467 = vst [vmem:[#allocation3 + $0x4] sm:$0x1] %v2466_v30  ;;  %7270 = vmatmul.msk.f32.vlgmr.msra.gmra.mxu0 %vm93_vm0, %v2466_v30  ;;  %7271 = vmatmul.msk.f32.vlgmr.msra.gmra.mxu1 %vm93_vm0, %v2466_v30  ;;  %v2586_v22 = vadd.f32 %v7603_v7, %v2585_v0  ;;  %vm2611_vm10 = vmor %vm2609_vm9, %vm2610_vm7  ;;  %vm2634_vm12 = vweird.f32 %v9653_v6 }
 0x49e   :  { %v2606_v42 = vsub.f32 1.0, %v2605_v45  ;;  %7272 = vmatmul.msk.f32.vlgmr.msra.gmra.mxu2 %vm93_vm0, %v2466_v30  ;;  %7273 = vmatmul.msk.f32.vlgmr.msra.gmra.mxu3 %vm93_vm0, %v2466_v30  ;;  %vm2635_vm14 = vmor %vm2633_vm13, %vm2634_vm12 }
 0x49f   :  { %2995 = vmatpush.msra.mxu2 %v9353_v46  ;;  %3015 = vmatpush.msra.mxu3 %v9358_v49  ;;  %v2590_v44 = vsel %vm9662_vm6, %v7603_v7, %v2586_v22  ;;  %v2630_v60 = vsub.f32 1.0, %v2629_v9 }
 0x4a0   :  { %v2607_v3 = vmul.f32 %v7607_v31, %v2606_v42  ;;  %2955 = vmatpush.msra.mxu0 %v9368_v57  ;;  %2975 = vmatpush.msra.mxu1 %v9373_v20  ;;  %v2595_v49 = vsel %vm2592_vm8, %v2594_v39, %v2590_v44  ;;  %v7611_v20 = vpop.eup %7610 }
 0x4a1   :  { %2996 = vmatpush.msra.mxu2 %v9382_v55  ;;  %3016 = vmatpush.msra.mxu3 %v9387_v18  ;;  %v2631_v18 = vmul.f32 %v9653_v6, %v2630_v60 }
 0x4a2   :  { %v2608_v46 = vadd.f32 %v7607_v31, %v2607_v3  ;;  %2956 = vmatpush.msra.mxu0 %v9400_v21  ;;  %2976 = vmatpush.msra.mxu1 %v9405_v25  ;;  %v2644_v25 = vmul.f32 %v7611_v20, %v2595_v49 }
 0x4a3   :  { %2997 = vmatpush.msra.mxu2 %v9417_v17  ;;  %3017 = vmatpush.msra.mxu3 %v9422_v8  ;;  %v2632_v8 = vadd.f32 %v9653_v6, %v2631_v18 }
 0x4a4   :  { %v2612_v57 = vsel %vm2611_vm10, %v7607_v31, %v2608_v46  ;;  %2957 = vmatpush.msra.mxu0 %v9429_v41  ;;  %2977 = vmatpush.msra.mxu1 %v9434_v47  ;;  %v2639_v41 = vand.u32 2147483648, %v9644_v48  ;;  %v2637_v47 = vand.u32 2147483647, %v9644_v48 }
 0x4a5   :  { %v2617_v55 = vsel %vm2614_vm11, %v2616_v14, %v2612_v57  ;;  %2998 = vmatpush.msra.mxu2 %v9443_v52  ;;  %3018 = vmatpush.msra.mxu3 %v9448_v53  ;;  %v2636_v52 = vsel %vm2635_vm14, %v9653_v6, %v2632_v8 }
 0x4a6   :  { %v2643_v21 = vmul.f32 %v2617_v55, %v9473_v13  ;;  %2958 = vmatpush.msra.mxu0 %v9457_v15  ;;  %2978 = vmatpush.msra.mxu1 %v9462_v12  ;;  %v2640_v53 = vor.u32 1.1754944e-38, %v2639_v41  ;;  %vm2638_vm15 = vcmp.eq.f32.partialorder %v2637_v47, 8.507059e+37 }
 0x4a8   :  { %v9689_v17 = vadd.f32 %v2644_v25, %v2643_v21  ;;  %v2641_v12 = vsel %vm2638_vm15, %v2640_v53, %v2636_v52 }
 0x4aa   :  { %7612 = vtanh.f32 %v9689_v17 }
 0x4b0   :  { %v7613_v15 = vpop.eup %7612 }
 0x4b1   :  { %v2647_v13 = vmul.f32 %v7613_v15, %v2641_v12 }
 0x4b3   :  { %2648 = vst [vmem:[#allocation2 + $0x5] sm:$0x1] %v2647_v13  ;;  %7274 = vmatmul.msk.f32.vlgmr.msrb.gmra.mxu0 %vm93_vm0, %v2647_v13  ;;  %7275 = vmatmul.msk.f32.vlgmr.msrb.gmra.mxu1 %vm93_vm0, %v2647_v13 }
 0x4b4   :  { %7276 = vmatmul.msk.f32.vlgmr.msrb.gmra.mxu2 %vm93_vm0, %v2647_v13  ;;  %7277 = vmatmul.msk.f32.vlgmr.msrb.gmra.mxu3 %vm93_vm0, %v2647_v13 }
 0x4b5   :  { %3153 = vmatpush.msrb.mxu0 %v9501_v35  ;;  %3173 = vmatpush.msrb.mxu1 %v9506_v40  ;;  %v11933_v35 = vld [vmem:[#allocation23_spill] sm:$0xff]  ;;  %v11934_v40 = vld [vmem:[#allocation20_spill] sm:$0xff] }
 0x4b6   :  { %3193 = vmatpush.msrb.mxu2 %v9511_v58  ;;  %3213 = vmatpush.msrb.mxu3 %v9518_v5  ;;  %v11935_v58 = vld [vmem:[#allocation19_spill] sm:$0xff] }
 0x4b7   :  { %3154 = vmatpush.msrb.mxu0 %v9527_v29  ;;  %3174 = vmatpush.msrb.mxu1 %v9532_v16  ;;  %v2847_v16 = vld [vmem:[%s11843_s7] sm:$0xf] }
 0x4b8   :  { %3194 = vmatpush.msrb.mxu2 %v9537_v28  ;;  %3214 = vmatpush.msrb.mxu3 %v9546_v4  ;;  %v2852_v38 = vperm.slane %v2847_v16, 3  ;;  %v2851_v45 = vperm.slane %v2847_v16, 2 }
 0x4b9   :  { %3155 = vmatpush.msrb.mxu0 %v9554_v1  ;;  %3175 = vmatpush.msrb.mxu1 %v9559_v36  ;;  %v2849_v1 = vperm.slane %v2847_v16, 0  ;;  %v2850_v36 = vperm.slane %v2847_v16, 1 }
 0x4ba   :  { %3195 = vmatpush.msrb.mxu2 %v9564_v10  ;;  %3215 = vmatpush.msrb.mxu3 %v11933_v35 }
 0x4bb   :  { %7281 = vmatmul.msk.f32.vlgmr.msra.gmra.mxu0 %vm93_vm0, %v2647_v13  ;;  %7282 = vmatmul.msk.f32.vlgmr.msra.gmra.mxu1 %vm93_vm0, %v2647_v13 }
 0x4bc   :  { %7283 = vmatmul.msk.f32.vlgmr.msra.gmra.mxu2 %vm93_vm0, %v2647_v13  ;;  %7284 = vmatmul.msk.f32.vlgmr.msra.gmra.mxu3 %vm93_vm0, %v2647_v13 }
 0x4bd   :  { %3156 = vmatpush.msrb.mxu0 %v11934_v40  ;;  %3176 = vmatpush.msrb.mxu1 %v11935_v58  ;;  %v3394_v58 = vld [vmem:[%s11884_s22 + $0x50] sm:$0xff] }
 0x4be   :  { %3196 = vmatpush.msrb.mxu2 %v9592_v63  ;;  %3216 = vmatpush.msrb.mxu3 %v9597_v32 }
 0x51a   :  { %v2701_v5 = vpop.f32.mrf.mxu0  ;;  %v2721_v29 = vpop.f32.mrf.mxu1 }
 0x521   :  { %v2741_v28 = vpop.f32.mrf.mxu2  ;;  %v2761_v4 = vpop.f32.mrf.mxu3 }
 0x530   :  { %v2784_v10 = vpop.f32.mrf.mxu0  ;;  %v2804_v11 = vpop.f32.mrf.mxu1 }
 0x531   :  { %v2785_v24 = vadd.f32 %v2784_v10, %v2701_v5  ;;  %v2805_v54 = vadd.f32 %v2804_v11, %v2721_v29  ;;  %v3393_v10 = vld [vmem:[%s11884_s22 + $0x48] sm:$0xff] }
 0x533   :  { %v2857_v48 = vadd.f32 %v2849_v1, %v2785_v24  ;;  %v2858_v19 = vadd.f32 %v2850_v36, %v2805_v54  ;;  %v9760_v1 = vld [vmem:[%s11841_s5 + $0x78] sm:$0xff]  ;;  %v9765_v36 = vld [vmem:[%s11841_s5 + $0x60] sm:$0xff]  ;;  %v9779_v54 = vld [vmem:[%s11841_s5 + $0x68] sm:$0xff] }
 0x534   :  { %3296 = vmatpush.msra.mxu3 %v9760_v1  ;;  %3236 = vmatpush.msra.mxu0 %v9765_v36 }
 0x535   :  { %v7278_v43 = vmul.f32 -1.442695, %v2857_v48  ;;  %v7279_v63 = vmul.f32 -1.442695, %v2858_v19  ;;  %3256 = vmatpush.msra.mxu1 %v9779_v54 }
 0x537   :  { %7614 = vpow2.f32 %v7278_v43  ;;  %v2824_v32 = vpop.f32.mrf.mxu2  ;;  %v2844_v7 = vpop.f32.mrf.mxu3 }
 0x538   :  { %7616 = vpow2.f32 %v7279_v63  ;;  %v2845_v37 = vadd.f32 %v2844_v7, %v2761_v4  ;;  %v2980_v61 = vpop.f32.mrf.mxu1  ;;  %v2825_v0 = vadd.f32 %v2824_v32, %v2741_v28  ;;  %v2960_v23 = vpop.f32.mrf.mxu0  ;;  %v9755_v4 = vld [vmem:[%s11841_s5 + $0x70] sm:$0xff]  ;;  %v9793_v32 = vld [vmem:[%s11841_s5 + $0x58] sm:$0xff]  ;;  %v9798_v7 = vld [vmem:[%s11841_s5 + $0x40] sm:$0xff] }
 0x539   :  { %v3027_v62 = vrot.slane %v2980_v61, 7  ;;  %3276 = vmatpush.msra.mxu2 %v9755_v4  ;;  %3297 = vmatpush.msra.mxu3 %v9793_v32 }
 0x53a   :  { %v2860_v26 = vadd.f32 %v2852_v38, %v2845_v37  ;;  %v2859_v27 = vadd.f32 %v2851_v45, %v2825_v0  ;;  %v9788_v38 = vld [vmem:[%s11841_s5 + $0x50] sm:$0xff]  ;;  %3237 = vmatpush.msra.mxu0 %v9798_v7  ;;  %v9834_v0 = vld [vmem:[%s11841_s5 + $0x28] sm:$0xff] }
 0x53b   :  { %v3030_v59 = vsel %vm288_vm1, %v2960_v23, %v3027_v62  ;;  %3277 = vmatpush.msra.mxu2 %v9788_v38  ;;  %v9852_v23 = vld [vmem:[%s11841_s5 + $0x18] sm:$0xff] }
 0x53c   :  { %v7280_v34 = vmul.f32 -1.442695, %v2860_v26 }
 0x53d   :  { %v7615_v50 = vpop.eup %7614 }
 0x53e   :  { %v7617_v56 = vpop.eup %7616  ;;  %v2864_v31 = vadd.f32 1.0, %v7615_v50  ;;  %7618 = vpow2.f32 %v7280_v34  ;;  %v9807_v50 = vld [vmem:[%s11841_s5 + $0x48] sm:$0xff] }
 0x53f   :  { %v9725_v2 = vadd.f32 1.0, %v7617_v56  ;;  %v3000_v30 = vpop.f32.mrf.mxu2  ;;  %v3020_v6 = vpop.f32.mrf.mxu3  ;;  %3257 = vmatpush.msra.mxu1 %v9807_v50 }
 0x540   :  { %7620 = vrcp.f32 %v2864_v31  ;;  %v3028_v9 = vrot.slane %v3000_v30, 6  ;;  %v3029_v22 = vrot.slane %v3020_v6, 5  ;;  %vm2870_vm4 = vweird.f32 %v2864_v31  ;;  %v9821_v30 = vld [vmem:[%s11841_s5 + $0x38] sm:$0xff] }
 0x541   :  { %7622 = vrcp.f32 %v9725_v2  ;;  %v2876_v21 = vand.u32 2147483648, %v2864_v31  ;;  %v2895_v47 = vand.u32 2147483648, %v9725_v2  ;;  %v2874_v53 = vand.u32 2147483647, %v2864_v31  ;;  %3298 = vmatpush.msra.mxu3 %v9821_v30  ;;  %3258 = vmatpush.msra.mxu1 %v9834_v0 }
 0x542   :  { %v3031_v44 = vsel %vm290_vm2, %v3028_v9, %v3029_v22  ;;  %v2893_v13 = vand.u32 2147483647, %v9725_v2  ;;  %vm2889_vm8 = vweird.f32 %v9725_v2  ;;  %v9847_v22 = vld [vmem:[%s11841_s5 + $0x10] sm:$0xff] }
 0x543   :  { %v3032_v39 = vsel %vm292_vm3, %v3030_v59, %v3031_v44  ;;  %v2877_v29 = vor.u32 1.1754944e-38, %v2876_v21  ;;  %v2896_v11 = vor.u32 1.1754944e-38, %v2895_v47  ;;  %vm2875_vm10 = vcmp.eq.f32.partialorder %v2874_v53, 8.507059e+37  ;;  %3299 = vmatpush.msra.mxu3 %v9852_v23  ;;  %v9866_v59 = vld [vmem:[%s11841_s5 + $0x8] sm:$0xff]  ;;  %v3398_v47 = vld [vmem:[%s11884_s22 + $0x70] sm:$0xff] }
 0x544   :  { %v7619_v42 = vpop.eup %7618  ;;  %v9733_v46 = vadd.f32 %v3032_v39, %v2926_v33  ;;  %vm2894_vm11 = vcmp.eq.f32.partialorder %v2893_v13, 8.507059e+37  ;;  %3259 = vmatpush.msra.mxu1 %v9866_v59 }
 0x545   :  { %v9730_v3 = vadd.f32 1.0, %v7619_v42  ;;  %v9857_v42 = vld [vmem:[%s11841_s5] sm:$0xff] }
 0x546   :  { %v7621_v60 = vpop.eup %7620  ;;  %v7285_v20 = vmul.f32 -1.442695, %v9733_v46  ;;  %v3055_v55 = vrot.slane %v9733_v46, 1  ;;  %v3079_v25 = vrot.slane %v9733_v46, 3  ;;  %v3076_v21 = vrot.slane %v9733_v46, 2 }
 0x547   :  { %v7623_v49 = vpop.eup %7622  ;;  %v2866_v14 = vmul.f32 %v7621_v60, %v2864_v31  ;;  %7624 = vrcp.f32 %v9730_v3  ;;  %vm2871_vm5 = vweird.f32 %v7621_v60  ;;  %v2915_v44 = vand.u32 2147483648, %v9730_v3 }
 0x548   :  { %v2885_v57 = vmul.f32 %v7623_v49, %v9725_v2  ;;  %7626 = vtanh.f32 %v2859_v27  ;;  %v7286_v41 = vmul.f32 -1.442695, %v3055_v55  ;;  %v7287_v15 = vmul.f32 -1.442695, %v3079_v25  ;;  %vm9745_vm7 = vmor %vm2870_vm4, %vm2871_vm5  ;;  %v9816_v2 = vld [vmem:[%s11841_s5 + $0x30] sm:$0xff] }
 0x549   :  { %v2867_v18 = vsub.f32 1.0, %v2866_v14  ;;  %7628 = vpow2.f32 %v7285_v20  ;;  %vm2890_vm6 = vweird.f32 %v7623_v49  ;;  %3278 = vmatpush.msra.mxu2 %v9816_v2  ;;  %vm2909_vm13 = vweird.f32 %v9730_v3 }
 0x54a   :  { %v2886_v8 = vsub.f32 1.0, %v2885_v57  ;;  %7630 = vpow2.f32 %v7286_v41  ;;  %vm9768_vm9 = vmor %vm2889_vm8, %vm2890_vm6  ;;  %v2913_v33 = vand.u32 2147483647, %v9730_v3  ;;  %v2916_v14 = vor.u32 1.1754944e-38, %v2915_v44  ;;  %v3385_v44 = vld [vmem:[%s11884_s22 + $0x8] sm:$0xff] }
 0x54b   :  { %v2868_v52 = vmul.f32 %v7621_v60, %v2867_v18  ;;  %7632 = vpow2.f32 %v7287_v15  ;;  %3279 = vmatpush.msra.mxu2 %v9847_v22  ;;  %v3396_v15 = vld [vmem:[%s11884_s22 + $0x60] sm:$0xff] }
 0x54c   :  { %v2887_v12 = vmul.f32 %v7623_v49, %v2886_v8  ;;  %vm2914_vm15 = vcmp.eq.f32.partialorder %v2913_v33, 8.507059e+37 }
 0x54d   :  { %v9742_v35 = vpop.eup %7624  ;;  %v2869_v40 = vadd.f32 %v7621_v60, %v2868_v52  ;;  %v3399_v52 = vld [vmem:[%s11884_s22 + $0x78] sm:$0xff] }
 0x54e   :  { %v7627_v5 = vpop.eup %7626  ;;  %v2888_v16 = vadd.f32 %v7623_v49, %v2887_v12  ;;  %v2905_v28 = vmul.f32 %v9742_v35, %v9730_v3  ;;  %vm2910_vm12 = vweird.f32 %v9742_v35  ;;  %v3397_v12 = vld [vmem:[%s11884_s22 + $0x68] sm:$0xff] }
 0x54f   :  { %v2873_v24 = vsel %vm9745_vm7, %v7621_v60, %v2869_v40  ;;  %v7629_v48 = vpop.eup %7628  ;;  %vm2911_vm14 = vmor %vm2909_vm13, %vm2910_vm12 }
 0x550   :  { %v2878_v19 = vsel %vm2875_vm10, %v2877_v29, %v2873_v24  ;;  %v2892_v43 = vsel %vm9768_vm9, %v7623_v49, %v2888_v16  ;;  %v2906_v63 = vsub.f32 1.0, %v2905_v28  ;;  %v9800_v34 = vadd.f32 1.0, %v7629_v48  ;;  %v7631_v61 = vpop.eup %7630  ;;  %v3392_v28 = vld [vmem:[%s11884_s22 + $0x40] sm:$0xff] }
 0x551   :  { %v2897_v37 = vsel %vm2894_vm11, %v2896_v11, %v2892_v43  ;;  %v2920_v26 = vmul.f32 %v7627_v5, %v2878_v19  ;;  %v7633_v6 = vpop.eup %7632  ;;  %v9838_v62 = vadd.f32 1.0, %v7631_v61  ;;  %v3395_v5 = vld [vmem:[%s11884_s22 + $0x58] sm:$0xff]  ;;  %v3390_v19 = vld [vmem:[%s11884_s22 + $0x30] sm:$0xff] }
 0x552   :  { %v2919_v56 = vmul.f32 %v2897_v37, %v9640_v51  ;;  %v2907_v31 = vmul.f32 %v9742_v35, %v2906_v63  ;;  %v9826_v51 = vld [vmem:[%s11841_s5 + $0x20] sm:$0xff]  ;;  %7634 = vrcp.f32 %v9800_v34  ;;  %v9840_v9 = vadd.f32 1.0, %v7633_v6  ;;  %v3391_v43 = vld [vmem:[%s11884_s22 + $0x38] sm:$0xff] }
 0x553   :  { %3238 = vmatpush.msra.mxu0 %v9826_v51  ;;  %v3050_v53 = vand.u32 2147483648, %v9800_v34  ;;  %vm3044_vm5 = vweird.f32 %v9800_v34  ;;  %v3072_v16 = vand.u32 2147483648, %v9838_v62  ;;  %v3070_v48 = vand.u32 2147483647, %v9838_v62 }
 0x554   :  { %v9836_v45 = vadd.f32 %v2920_v26, %v2919_v56  ;;  %v2908_v27 = vadd.f32 %v9742_v35, %v2907_v31  ;;  %v3388_v26 = vld [vmem:[%s11884_s22 + $0x20] sm:$0xff]  ;;  %vm3066_vm9 = vweird.f32 %v9838_v62  ;;  %v3386_v56 = vld [vmem:[%s11884_s22 + $0x10] sm:$0xff]  ;;  %v3387_v31 = vld [vmem:[%s11884_s22 + $0x18] sm:$0xff]  ;;  %vm3090_vm13 = vweird.f32 %v9840_v9 }
 0x555   :  { %3239 = vmatpush.msra.mxu0 %v9857_v42  ;;  %v3051_v63 = vor.u32 1.1754944e-38, %v3050_v53  ;;  %vm3071_vm11 = vcmp.eq.f32.partialorder %v3070_v48, 8.507059e+37 }
 0x556   :  { %7636 = vtanh.f32 %v9836_v45  ;;  %v2912_v60 = vsel %vm2911_vm14, %v9742_v35, %v2908_v27  ;;  %v3048_v35 = vand.u32 2147483647, %v9800_v34  ;;  %v3073_v27 = vor.u32 1.1754944e-38, %v3072_v16 }
 0x557   :  { %7638 = vrcp.f32 %v9838_v62  ;;  %v2917_v55 = vsel %vm2914_vm15, %v2916_v14, %v2912_v60 }
 0x558   :  { %7640 = vrcp.f32 %v9840_v9  ;;  %v7635_v39 = vpop.eup %7634  ;;  %vm3049_vm8 = vcmp.eq.f32.partialorder %v3048_v35, 8.507059e+37 }
 0x559   :  { %v3040_v49 = vmul.f32 %v7635_v39, %v9800_v34  ;;  %vm3045_vm4 = vweird.f32 %v7635_v39  ;;  %7642 = vtanh.f32 %v3076_v21  ;;  %v3389_v34 = vld [vmem:[%s11884_s22 + $0x28] sm:$0xff]  ;;  %v3094_v21 = vand.u32 2147483647, %v9840_v9 }
 0x55a   :  { %vm9913_vm6 = vmor %vm3044_vm5, %vm3045_vm4 }
 0x55b   :  { %v3041_v20 = vsub.f32 1.0, %v3040_v49  ;;  %vm3095_vm15 = vcmp.eq.f32.partialorder %v3094_v21, 8.507059e+37  ;;  %v3584_v21 = vld [vmem:[%s11842_s6 + $0x28] sm:$0xff] }
 0x55c   :  { %v7637_v57 = vpop.eup %7636 }
 0x55d   :  { %v9878_v18 = vpop.eup %7638  ;;  %v2923_v25 = vmul.f32 %v7637_v57, %v2917_v55  ;;  %v3042_v3 = vmul.f32 %v7635_v39, %v3041_v20 }
 0x55e   :  { %v9881_v8 = vpop.eup %7640  ;;  %v3062_v41 = vmul.f32 %v9878_v18, %v9838_v62  ;;  %vm3067_vm7 = vweird.f32 %v9878_v18  ;;  %v3384_v62 = vld [vmem:[%s11884_s22] sm:$0xff] }
 0x55f   :  { %v3086_v46 = vmul.f32 %v9881_v8, %v9840_v9  ;;  %2924 = vst [vmem:[#allocation3 + $0x5] sm:$0x1] %v2923_v25  ;;  %7288 = vmatmul.msk.f32.vlgmr.msrb.gmra.mxu0 %vm93_vm0, %v2923_v25  ;;  %7289 = vmatmul.msk.f32.vlgmr.msrb.gmra.mxu1 %vm93_vm0, %v2923_v25  ;;  %v3043_v13 = vadd.f32 %v7635_v39, %v3042_v3  ;;  %vm3068_vm10 = vmor %vm3066_vm9, %vm3067_vm7  ;;  %vm3091_vm12 = vweird.f32 %v9881_v8 }
 0x560   :  { %v3063_v40 = vsub.f32 1.0, %v3062_v41  ;;  %7290 = vmatmul.msk.f32.vlgmr.msrb.gmra.mxu2 %vm93_vm0, %v2923_v25  ;;  %7291 = vmatmul.msk.f32.vlgmr.msrb.gmra.mxu3 %vm93_vm0, %v2923_v25  ;;  %vm3092_vm14 = vmor %vm3090_vm13, %vm3091_vm12 }
 0x561   :  { %3452 = vmatpush.msrb.mxu2 %v3398_v47  ;;  %3472 = vmatpush.msrb.mxu3 %v3399_v52  ;;  %v3047_v11 = vsel %vm9913_vm6, %v7635_v39, %v3043_v13  ;;  %v3087_v37 = vsub.f32 1.0, %v3086_v46  ;;  %v7643_v39 = vpop.eup %7642  ;;  %v9980_v52 = vld [vmem:[%s11843_s7] sm:$0xf] }
 0x562   :  { %v3064_v24 = vmul.f32 %v9878_v18, %v3063_v40  ;;  %3412 = vmatpush.msrb.mxu0 %v3396_v15  ;;  %3432 = vmatpush.msrb.mxu1 %v3397_v12  ;;  %v3052_v6 = vsel %vm3049_vm8, %v3051_v63, %v3047_v11  ;;  %v3306_v15 = vperm.slane %v9980_v52, 0  ;;  %v3307_v12 = vperm.slane %v9980_v52, 1  ;;  %v3591_v63 = vld [vmem:[%s11842_s6 + $0x60] sm:$0xff] }
 0x563   :  { %3453 = vmatpush.msrb.mxu2 %v3394_v58  ;;  %3473 = vmatpush.msrb.mxu3 %v3395_v5  ;;  %v3088_v49 = vmul.f32 %v9881_v8, %v3087_v37  ;;  %v3101_v57 = vmul.f32 %v7643_v39, %v3052_v6  ;;  %v3592_v37 = vld [vmem:[%s11842_s6 + $0x68] sm:$0xff] }
 0x564   :  { %v3065_v61 = vadd.f32 %v9878_v18, %v3064_v24  ;;  %3413 = vmatpush.msrb.mxu0 %v3392_v28  ;;  %3433 = vmatpush.msrb.mxu1 %v3393_v10  ;;  %v3309_v10 = vperm.slane %v9980_v52, 3 }
 0x565   :  { %3454 = vmatpush.msrb.mxu2 %v3390_v19  ;;  %3474 = vmatpush.msrb.mxu3 %v3391_v43  ;;  %v3089_v55 = vadd.f32 %v9881_v8, %v3088_v49  ;;  %v3590_v49 = vld [vmem:[%s11842_s6 + $0x58] sm:$0xff] }
 0x566   :  { %v3069_v33 = vsel %vm3068_vm10, %v9878_v18, %v3065_v61  ;;  %3414 = vmatpush.msrb.mxu0 %v3388_v26  ;;  %3434 = vmatpush.msrb.mxu1 %v3389_v34  ;;  %v3096_v18 = vand.u32 2147483648, %v9840_v9  ;;  %v3593_v26 = vld [vmem:[%s11842_s6 + $0x70] sm:$0xff] }
 0x567   :  { %v3074_v60 = vsel %vm3071_vm11, %v3073_v27, %v3069_v33  ;;  %3455 = vmatpush.msrb.mxu2 %v3386_v56  ;;  %3475 = vmatpush.msrb.mxu3 %v3387_v31  ;;  %v3594_v56 = vld [vmem:[%s11842_s6 + $0x78] sm:$0xff]  ;;  %v3587_v27 = vld [vmem:[%s11842_s6 + $0x40] sm:$0xff] }
 0x568   :  { %v3100_v14 = vmul.f32 %v3074_v60, %v9689_v17  ;;  %3415 = vmatpush.msrb.mxu0 %v3384_v62  ;;  %3435 = vmatpush.msrb.mxu1 %v3385_v44  ;;  %v3093_v17 = vsel %vm3092_vm14, %v9881_v8, %v3089_v55  ;;  %v3097_v25 = vor.u32 1.1754944e-38, %v3096_v18  ;;  %v3588_v62 = vld [vmem:[%s11842_s6 + $0x48] sm:$0xff]  ;;  %v3589_v44 = vld [vmem:[%s11842_s6 + $0x50] sm:$0xff]  ;;  %v3583_v18 = vld [vmem:[%s11842_s6 + $0x20] sm:$0xff] }
 0x56a   :  { %v9960_v20 = vadd.f32 %v3101_v57, %v3100_v14  ;;  %v3098_v41 = vsel %vm3095_vm15, %v3097_v25, %v3093_v17  ;;  %v3308_v57 = vperm.slane %v9980_v52, 2  ;;  %v3585_v17 = vld [vmem:[%s11842_s6 + $0x30] sm:$0xff]  ;;  %v3586_v25 = vld [vmem:[%s11842_s6 + $0x38] sm:$0xff] }
 0x56b   :  { %v3581_v52 = vld [vmem:[%s11842_s6 + $0x10] sm:$0xff] }
 0x56c   :  { %7644 = vtanh.f32 %v9960_v20 }
 0x572   :  { %v7645_v3 = vpop.eup %7644 }
 0x573   :  { %v3104_v47 = vmul.f32 %v7645_v3, %v3098_v41 }
 0x575   :  { %3105 = vst [vmem:[#allocation2 + $0x6] sm:$0x1] %v3104_v47  ;;  %7292 = vmatmul.msk.f32.vlgmr.msra.gmra.mxu0 %vm93_vm0, %v3104_v47  ;;  %7293 = vmatmul.msk.f32.vlgmr.msra.gmra.mxu1 %vm93_vm0, %v3104_v47 }
 0x576   :  { %7294 = vmatmul.msk.f32.vlgmr.msra.gmra.mxu2 %vm93_vm0, %v3104_v47  ;;  %7295 = vmatmul.msk.f32.vlgmr.msra.gmra.mxu3 %vm93_vm0, %v3104_v47 }
 0x577   :  { %3610 = vmatpush.msra.mxu0 %v3591_v63  ;;  %3630 = vmatpush.msra.mxu1 %v3592_v37 }
 0x578   :  { %3650 = vmatpush.msra.mxu2 %v3593_v26  ;;  %3670 = vmatpush.msra.mxu3 %v3594_v56 }
 0x579   :  { %3611 = vmatpush.msra.mxu0 %v3587_v27  ;;  %3631 = vmatpush.msra.mxu1 %v3588_v62 }
 0x57a   :  { %3651 = vmatpush.msra.mxu2 %v3589_v44  ;;  %3671 = vmatpush.msra.mxu3 %v3590_v49 }
 0x57b   :  { %3612 = vmatpush.msra.mxu0 %v3583_v18  ;;  %3632 = vmatpush.msra.mxu1 %v3584_v21 }
 0x57c   :  { %3652 = vmatpush.msra.mxu2 %v3585_v17  ;;  %3672 = vmatpush.msra.mxu3 %v3586_v25 }
 0x57d   :  { %7299 = vmatmul.msk.f32.vlgmr.msrb.gmra.mxu0 %vm93_vm0, %v3104_v47  ;;  %7300 = vmatmul.msk.f32.vlgmr.msrb.gmra.mxu1 %vm93_vm0, %v3104_v47 }
 0x57e   :  { %7301 = vmatmul.msk.f32.vlgmr.msrb.gmra.mxu2 %vm93_vm0, %v3104_v47  ;;  %7302 = vmatmul.msk.f32.vlgmr.msrb.gmra.mxu3 %vm93_vm0, %v3104_v47  ;;  %v3579_v47 = vld [vmem:[%s11842_s6] sm:$0xff] }
 0x57f   :  { %3613 = vmatpush.msra.mxu0 %v3579_v47  ;;  %3653 = vmatpush.msra.mxu2 %v3581_v52 }
 0x581   :  { %3733 = vmatpush.msrb.mxu2 %v9755_v4  ;;  %3693 = vmatpush.msrb.mxu0 %v9765_v36 }
 0x583   :  { %3734 = vmatpush.msrb.mxu2 %v9788_v38  ;;  %3694 = vmatpush.msrb.mxu0 %v9798_v7 }
 0x585   :  { %3735 = vmatpush.msrb.mxu2 %v9816_v2  ;;  %3695 = vmatpush.msrb.mxu0 %v9826_v51 }
 0x587   :  { %3736 = vmatpush.msrb.mxu2 %v9847_v22  ;;  %3696 = vmatpush.msrb.mxu0 %v9857_v42 }
 0x5dc   :  { %v3158_v9 = vpop.f32.mrf.mxu0  ;;  %v3178_v8 = vpop.f32.mrf.mxu1 }
 0x5e3   :  { %v3198_v53 = vpop.f32.mrf.mxu2  ;;  %v3218_v46 = vpop.f32.mrf.mxu3 }
 0x5f2   :  { %v3241_v13 = vpop.f32.mrf.mxu0  ;;  %v3261_v35 = vpop.f32.mrf.mxu1 }
 0x5f3   :  { %v3242_v40 = vadd.f32 %v3241_v13, %v3158_v9  ;;  %v3262_v58 = vadd.f32 %v3261_v35, %v3178_v8  ;;  %v3580_v9 = vld [vmem:[%s11842_s6 + $0x8] sm:$0xff] }
 0x5f4   :  { %3633 = vmatpush.msra.mxu1 %v3580_v9 }
 0x5f5   :  { %v3314_v5 = vadd.f32 %v3306_v15, %v3242_v40  ;;  %v3315_v29 = vadd.f32 %v3307_v12, %v3262_v58  ;;  %v3383_v40 = vld [vmem:[#allocation6 + $0x7] ss:$8 sm:$0xf] }
 0x5f6   :  { %3713 = vmatpush.msrb.mxu1 %v9779_v54 }
 0x5f7   :  { %v7296_v16 = vmul.f32 -1.442695, %v3314_v5  ;;  %v7297_v28 = vmul.f32 -1.442695, %v3315_v29 }
 0x5f8   :  { %3714 = vmatpush.msrb.mxu1 %v9807_v50 }
 0x5f9   :  { %7646 = vpow2.f32 %v7296_v16  ;;  %v3281_v11 = vpop.f32.mrf.mxu2  ;;  %v3301_v24 = vpop.f32.mrf.mxu3 }
 0x5fa   :  { %7648 = vpow2.f32 %v7297_v28  ;;  %v3302_v48 = vadd.f32 %v3301_v24, %v3218_v46  ;;  %v3437_v61 = vpop.f32.mrf.mxu1  ;;  %v3282_v14 = vadd.f32 %v3281_v11, %v3198_v53  ;;  %v3417_v8 = vpop.f32.mrf.mxu0  ;;  %v3582_v53 = vld [vmem:[%s11842_s6 + $0x18] sm:$0xff]  ;;  %3715 = vmatpush.msrb.mxu1 %v9834_v0 }
 0x5fb   :  { %v3484_v55 = vrot.slane %v3437_v61, 7  ;;  %3673 = vmatpush.msra.mxu3 %v3582_v53 }
 0x5fc   :  { %v3317_v19 = vadd.f32 %v3309_v10, %v3302_v48  ;;  %v3316_v15 = vadd.f32 %v3308_v57, %v3282_v14  ;;  %3716 = vmatpush.msrb.mxu1 %v9866_v59 }
 0x5fd   :  { %v3487_v12 = vsel %vm288_vm1, %v3417_v8, %v3484_v55  ;;  %3753 = vmatpush.msrb.mxu3 %v9760_v1 }
 0x5fe   :  { %v7298_v43 = vmul.f32 -1.442695, %v3317_v19 }
 0x5ff   :  { %v7647_v34 = vpop.eup %7646  ;;  %3754 = vmatpush.msrb.mxu3 %v9793_v32 }
 0x600   :  { %v7649_v31 = vpop.eup %7648  ;;  %v9997_v6 = vadd.f32 1.0, %v7647_v34  ;;  %7650 = vpow2.f32 %v7298_v43 }
 0x601   :  { %v10008_v33 = vadd.f32 1.0, %v7649_v31  ;;  %v3457_v39 = vpop.f32.mrf.mxu2  ;;  %v3477_v60 = vpop.f32.mrf.mxu3  ;;  %3755 = vmatpush.msrb.mxu3 %v9821_v30 }
 0x602   :  { %7652 = vrcp.f32 %v9997_v6  ;;  %v3485_v3 = vrot.slane %v3457_v39, 6  ;;  %v3486_v41 = vrot.slane %v3477_v60, 5  ;;  %v3331_v54 = vand.u32 2147483647, %v9997_v6 }
 0x603   :  { %7654 = vrcp.f32 %v10008_v33  ;;  %v3352_v32 = vand.u32 2147483648, %v10008_v33  ;;  %v3333_v24 = vand.u32 2147483648, %v9997_v6  ;;  %3756 = vmatpush.msrb.mxu3 %v9852_v23  ;;  %v3350_v30 = vand.u32 2147483647, %v10008_v33 }
 0x604   :  { %v3488_v13 = vsel %vm290_vm2, %v3485_v3, %v3486_v41  ;;  %vm3346_vm6 = vweird.f32 %v10008_v33  ;;  %vm3327_vm7 = vweird.f32 %v9997_v6  ;;  %vm3332_vm10 = vcmp.eq.f32.partialorder %v3331_v54, 8.507059e+37  ;;  %v3849_v54 = vld [vmem:[%s11844_s8 + $0x48] sm:$0xff] }
 0x605   :  { %v3489_v58 = vsel %vm292_vm3, %v3487_v12, %v3488_v13  ;;  %v3334_v22 = vor.u32 1.1754944e-38, %v3333_v24  ;;  %v3353_v42 = vor.u32 1.1754944e-38, %v3352_v32  ;;  %vm3351_vm11 = vcmp.eq.f32.partialorder %v3350_v30, 8.507059e+37  ;;  %v3846_v32 = vld [vmem:[%s11844_s8 + $0x30] sm:$0xff]  ;;  %v3847_v24 = vld [vmem:[%s11844_s8 + $0x38] sm:$0xff] }
 0x606   :  { %v7651_v46 = vpop.eup %7650  ;;  %v10047_v29 = vadd.f32 %v3489_v58, %v3383_v40  ;;  %v3853_v40 = vld [vmem:[%s11844_s8 + $0x68] sm:$0xff] }
 0x607   :  { %v10042_v35 = vadd.f32 1.0, %v7651_v46  ;;  %v3854_v46 = vld [vmem:[%s11844_s8 + $0x70] sm:$0xff] }
 0x608   :  { %v7653_v5 = vpop.eup %7652  ;;  %v7303_v1 = vmul.f32 -1.442695, %v10047_v29  ;;  %v3512_v10 = vrot.slane %v10047_v29, 1  ;;  %v3536_v11 = vrot.slane %v10047_v29, 3  ;;  %v3533_v47 = vrot.slane %v10047_v29, 2 }
 0x609   :  { %v7655_v16 = vpop.eup %7654  ;;  %v3323_v28 = vmul.f32 %v7653_v5, %v9997_v6  ;;  %7656 = vrcp.f32 %v10042_v35  ;;  %vm3328_vm4 = vweird.f32 %v7653_v5  ;;  %v3372_v14 = vand.u32 2147483648, %v10042_v35 }
 0x60a   :  { %v3342_v4 = vmul.f32 %v7655_v16, %v10008_v33  ;;  %7658 = vtanh.f32 %v3316_v15  ;;  %v7304_v50 = vmul.f32 -1.442695, %v3512_v10  ;;  %v7305_v48 = vmul.f32 -1.442695, %v3536_v11  ;;  %vm3329_vm8 = vmor %vm3327_vm7, %vm3328_vm4  ;;  %v3855_v15 = vld [vmem:[%s11844_s8 + $0x78] sm:$0xff] }
 0x60b   :  { %v3324_v36 = vsub.f32 1.0, %v3323_v28  ;;  %7660 = vpow2.f32 %v7303_v1  ;;  %vm3347_vm5 = vweird.f32 %v7655_v16  ;;  %vm3366_vm13 = vweird.f32 %v10042_v35  ;;  %v3851_v28 = vld [vmem:[%s11844_s8 + $0x58] sm:$0xff] }
 0x60c   :  { %v3343_v38 = vsub.f32 1.0, %v3342_v4  ;;  %7662 = vpow2.f32 %v7304_v50  ;;  %vm3348_vm9 = vmor %vm3346_vm6, %vm3347_vm5  ;;  %v3373_v21 = vor.u32 1.1754944e-38, %v3372_v14  ;;  %v3969_v14 = vld [vmem:[%s11850_s14 + $0x78] sm:$0xff]  ;;  %v10315_v4 = vld [vmem:[%s11845_s9 + $0x20] sm:$0xff] }
 0x60d   :  { %v3325_v7 = vmul.f32 %v7653_v5, %v3324_v36  ;;  %7664 = vpow2.f32 %v7305_v48  ;;  %v3848_v36 = vld [vmem:[%s11844_s8 + $0x40] sm:$0xff] }
 0x60e   :  { %v3344_v2 = vmul.f32 %v7655_v16, %v3343_v38  ;;  %v3844_v48 = vld [vmem:[%s11844_s8 + $0x20] sm:$0xff] }
 0x60f   :  { %v7657_v19 = vpop.eup %7656  ;;  %v3326_v51 = vadd.f32 %v7653_v5, %v3325_v7 }
 0x610   :  { %v7659_v0 = vpop.eup %7658  ;;  %v3345_v23 = vadd.f32 %v7655_v16, %v3344_v2  ;;  %v3362_v43 = vmul.f32 %v7657_v19, %v10042_v35  ;;  %vm3367_vm12 = vweird.f32 %v7657_v19  ;;  %v3845_v2 = vld [vmem:[%s11844_s8 + $0x28] sm:$0xff] }
 0x611   :  { %v3330_v63 = vsel %vm3329_vm8, %v7653_v5, %v3326_v51  ;;  %v7661_v59 = vpop.eup %7660  ;;  %vm3368_vm14 = vmor %vm3366_vm13, %vm3367_vm12  ;;  %v3843_v51 = vld [vmem:[%s11844_s8 + $0x18] sm:$0xff] }
 0x612   :  { %v3335_v37 = vsel %vm3332_vm10, %v3334_v22, %v3330_v63  ;;  %v3349_v26 = vsel %vm3348_vm9, %v7655_v16, %v3345_v23  ;;  %v3363_v34 = vsub.f32 1.0, %v3362_v43  ;;  %v10078_v31 = vadd.f32 1.0, %v7661_v59  ;;  %v7663_v62 = vpop.eup %7662  ;;  %v3850_v16 = vld [vmem:[%s11844_s8 + $0x50] sm:$0xff]  ;;  %v3840_v23 = vld [vmem:[%s11844_s8] sm:$0xff]  ;;  %v3841_v43 = vld [vmem:[%s11844_s8 + $0x8] sm:$0xff] }
 0x613   :  { %v3354_v61 = vsel %vm3351_vm11, %v3353_v42, %v3349_v26  ;;  %v3377_v56 = vmul.f32 %v7659_v0, %v3335_v37  ;;  %v7665_v44 = vpop.eup %7664  ;;  %v10084_v39 = vadd.f32 1.0, %v7663_v62 }
 0x614   :  { %v3376_v6 = vmul.f32 %v3354_v61, %v9836_v45  ;;  %v3364_v27 = vmul.f32 %v7657_v19, %v3363_v34  ;;  %7666 = vrcp.f32 %v10078_v31  ;;  %v10086_v60 = vadd.f32 1.0, %v7665_v44 }
 0x615   :  { %v3370_v45 = vand.u32 2147483647, %v10042_v35  ;;  %v3507_v12 = vand.u32 2147483648, %v10078_v31  ;;  %v3852_v35 = vld [vmem:[%s11844_s8 + $0x60] sm:$0xff]  ;;  %vm3501_vm5 = vweird.f32 %v10078_v31  ;;  %v3505_v5 = vand.u32 2147483647, %v10078_v31 }
 0x616   :  { %v10082_v33 = vadd.f32 %v3377_v56, %v3376_v6  ;;  %v3365_v49 = vadd.f32 %v7657_v19, %v3364_v27  ;;  %v3529_v1 = vand.u32 2147483648, %v10084_v39  ;;  %v3527_v38 = vand.u32 2147483647, %v10084_v39 }
 0x617   :  { %vm3371_vm15 = vcmp.eq.f32.partialorder %v3370_v45, 8.507059e+37  ;;  %v3508_v7 = vor.u32 1.1754944e-38, %v3507_v12  ;;  %vm3506_vm8 = vcmp.eq.f32.partialorder %v3505_v5, 8.507059e+37  ;;  %vm3523_vm9 = vweird.f32 %v10084_v39  ;;  %v3967_v45 = vld [vmem:[%s11850_s14 + $0x68] sm:$0xff]  ;;  %v10262_v12 = vld [vmem:[%s11845_s9 + $0x60] sm:$0xff] }
 0x618   :  { %7668 = vtanh.f32 %v10082_v33  ;;  %v3369_v55 = vsel %vm3368_vm14, %v7657_v19, %v3365_v49  ;;  %v3842_v19 = vld [vmem:[%s11844_s8 + $0x10] sm:$0xff]  ;;  %v3530_v22 = vor.u32 1.1754944e-38, %v3529_v1  ;;  %vm3528_vm11 = vcmp.eq.f32.partialorder %v3527_v38, 8.507059e+37  ;;  %v10289_v5 = vld [vmem:[%s11845_s9 + $0x48] sm:$0xff] }
 0x619   :  { %7670 = vrcp.f32 %v10084_v39  ;;  %v3374_v3 = vsel %vm3371_vm15, %v3373_v21, %v3369_v55  ;;  %vm3547_vm13 = vweird.f32 %v10086_v60  ;;  %v3551_v6 = vand.u32 2147483647, %v10086_v60  ;;  %v3968_v49 = vld [vmem:[%s11850_s14 + $0x70] sm:$0xff]  ;;  %v3965_v55 = vld [vmem:[%s11850_s14 + $0x58] sm:$0xff]  ;;  %v3963_v21 = vld [vmem:[%s11850_s14 + $0x48] sm:$0xff] }
 0x61a   :  { %7672 = vrcp.f32 %v10086_v60  ;;  %v7667_v57 = vpop.eup %7666  ;;  %v10320_v1 = vld [vmem:[%s11845_s9 + $0x28] sm:$0xff]  ;;  %v4263_v38 = vld [vmem:[%s11851_s15 + $0x70] sm:$0xff] }
 0x61b   :  { %v3497_v18 = vmul.f32 %v7667_v57, %v10078_v31  ;;  %vm3502_vm4 = vweird.f32 %v7667_v57  ;;  %7674 = vtanh.f32 %v3533_v47  ;;  %v3553_v31 = vand.u32 2147483648, %v10086_v60 }
 0x61c   :  { %vm10130_vm6 = vmor %vm3501_vm5, %vm3502_vm4  ;;  %vm3552_vm15 = vcmp.eq.f32.partialorder %v3551_v6, 8.507059e+37 }
 0x61d   :  { %v3498_v25 = vsub.f32 1.0, %v3497_v18  ;;  %v3554_v27 = vor.u32 1.1754944e-38, %v3553_v31  ;;  %v3962_v18 = vld [vmem:[%s11850_s14 + $0x40] sm:$0xff] }
 0x61e   :  { %v7669_v17 = vpop.eup %7668 }
 0x61f   :  { %v10095_v41 = vpop.eup %7670  ;;  %v3380_v9 = vmul.f32 %v7669_v17, %v3374_v3  ;;  %v3499_v52 = vmul.f32 %v7667_v57, %v3498_v25  ;;  %v3960_v17 = vld [vmem:[%s11850_s14 + $0x30] sm:$0xff]  ;;  %v3961_v25 = vld [vmem:[%s11850_s14 + $0x38] sm:$0xff]  ;;  %v3958_v3 = vld [vmem:[%s11850_s14 + $0x20] sm:$0xff] }
 0x620   :  { %v10098_v8 = vpop.eup %7672  ;;  %v3519_v53 = vmul.f32 %v10095_v41, %v10084_v39  ;;  %vm3524_vm7 = vweird.f32 %v10095_v41 }
 0x621   :  { %v3543_v13 = vmul.f32 %v10098_v8, %v10086_v60  ;;  %3381 = vst [vmem:[#allocation3 + $0x6] sm:$0x1] %v3380_v9  ;;  %7306 = vmatmul.msk.f32.vlgmr.msra.gmra.mxu0 %vm93_vm0, %v3380_v9  ;;  %7307 = vmatmul.msk.f32.vlgmr.msra.gmra.mxu1 %vm93_vm0, %v3380_v9  ;;  %v3500_v58 = vadd.f32 %v7667_v57, %v3499_v52  ;;  %vm3525_vm10 = vmor %vm3523_vm9, %vm3524_vm7  ;;  %v7675_v63 = vpop.eup %7674  ;;  %vm3548_vm12 = vweird.f32 %v10098_v8  ;;  %v3966_v60 = vld [vmem:[%s11850_s14 + $0x60] sm:$0xff] }
 0x622   :  { %v3520_v29 = vsub.f32 1.0, %v3519_v53  ;;  %7308 = vmatmul.msk.f32.vlgmr.msra.gmra.mxu2 %vm93_vm0, %v3380_v9  ;;  %7309 = vmatmul.msk.f32.vlgmr.msra.gmra.mxu3 %vm93_vm0, %v3380_v9  ;;  %vm3549_vm14 = vmor %vm3547_vm13, %vm3548_vm12  ;;  %v3956_v9 = vld [vmem:[%s11850_s14 + $0x10] sm:$0xff]  ;;  %v3954_v52 = vld [vmem:[%s11850_s14] sm:$0xff] }
 0x623   :  { %3921 = vmatpush.msra.mxu2 %v3854_v46  ;;  %3941 = vmatpush.msra.mxu3 %v3855_v15  ;;  %v3504_v10 = vsel %vm10130_vm6, %v7667_v57, %v3500_v58  ;;  %v3544_v50 = vsub.f32 1.0, %v3543_v13  ;;  %v3964_v57 = vld [vmem:[%s11850_s14 + $0x50] sm:$0xff]  ;;  %v3955_v53 = vld [vmem:[%s11850_s14 + $0x8] sm:$0xff]  ;;  %v10257_v15 = vld [vmem:[%s11845_s9 + $0x78] sm:$0xff] }
 0x624   :  { %v3521_v11 = vmul.f32 %v10095_v41, %v3520_v29  ;;  %3881 = vmatpush.msra.mxu0 %v3852_v35  ;;  %3901 = vmatpush.msra.mxu1 %v3853_v40  ;;  %v3509_v0 = vsel %vm3506_vm8, %v3508_v7, %v3504_v10  ;;  %v10252_v46 = vld [vmem:[%s11845_s9 + $0x70] sm:$0xff]  ;;  %v10267_v13 = vld [vmem:[%s11845_s9 + $0x68] sm:$0xff]  ;;  %v10277_v40 = vld [vmem:[%s11845_s9 + $0x58] sm:$0xff] }
 0x625   :  { %3922 = vmatpush.msra.mxu2 %v3850_v16  ;;  %3942 = vmatpush.msra.mxu3 %v3851_v28  ;;  %v3545_v37 = vmul.f32 %v10098_v8, %v3544_v50  ;;  %v3558_v34 = vmul.f32 %v7675_v63, %v3509_v0  ;;  %v10272_v35 = vld [vmem:[%s11845_s9 + $0x50] sm:$0xff]  ;;  %v10284_v58 = vld [vmem:[%s11845_s9 + $0x40] sm:$0xff]  ;;  %v10308_v28 = vld [vmem:[%s11845_s9 + $0x38] sm:$0xff] }
 0x626   :  { %v3522_v30 = vadd.f32 %v10095_v41, %v3521_v11  ;;  %3882 = vmatpush.msra.mxu0 %v3848_v36  ;;  %3902 = vmatpush.msra.mxu1 %v3849_v54  ;;  %v3953_v29 = vld [vmem:[%s11944_s27] sm:$0xff]  ;;  %v10303_v16 = vld [vmem:[%s11845_s9 + $0x30] sm:$0xff]  ;;  %v10332_v54 = vld [vmem:[%s11845_s9 + $0x18] sm:$0xff] }
 0x627   :  { %3923 = vmatpush.msra.mxu2 %v3846_v32  ;;  %3943 = vmatpush.msra.mxu3 %v3847_v24  ;;  %v3546_v56 = vadd.f32 %v10098_v8, %v3545_v37  ;;  %v10327_v36 = vld [vmem:[%s11845_s9 + $0x10] sm:$0xff]  ;;  %v4069_v10 = vld [vmem:[%s11845_s9] sm:$0xff]  ;;  %v4070_v11 = vld [vmem:[%s11845_s9 + $0x8] sm:$0xff] }
 0x628   :  { %v3526_v42 = vsel %vm3525_vm10, %v10095_v41, %v3522_v30  ;;  %3883 = vmatpush.msra.mxu0 %v3844_v48  ;;  %3903 = vmatpush.msra.mxu1 %v3845_v2  ;;  %v3959_v41 = vld [vmem:[%s11850_s14 + $0x28] sm:$0xff]  ;;  %v4264_v32 = vld [vmem:[%s11851_s15 + $0x78] sm:$0xff]  ;;  %v4261_v24 = vld [vmem:[%s11851_s15 + $0x60] sm:$0xff]  ;;  %v11945_v2 = vmov 0.0  }
 0x629   :  { %v3531_v59 = vsel %vm3528_vm11, %v3530_v22, %v3526_v42  ;;  %3924 = vmatpush.msra.mxu2 %v3842_v19  ;;  %3944 = vmatpush.msra.mxu3 %v3843_v51  ;;  %v4262_v7 = vld [vmem:[%s11851_s15 + $0x68] sm:$0xff]  ;;  %v4259_v50 = vld [vmem:[%s11851_s15 + $0x50] sm:$0xff]  ;;  %v4260_v48 = vld [vmem:[%s11851_s15 + $0x58] sm:$0xff] }
 0x62a   :  { %v3557_v26 = vmul.f32 %v3531_v59, %v9960_v20  ;;  %3884 = vmatpush.msra.mxu0 %v3840_v23  ;;  %3904 = vmatpush.msra.mxu1 %v3841_v43  ;;  %v3550_v20 = vsel %vm3549_vm14, %v10098_v8, %v3546_v56  ;;  %v3957_v8 = vld [vmem:[%s11850_s14 + $0x18] sm:$0xff]  ;;  %v4257_v30 = vld [vmem:[%s11851_s15 + $0x40] sm:$0xff]  ;;  %v4258_v19 = vld [vmem:[%s11851_s15 + $0x48] sm:$0xff] }
 0x62b   :  { %v3555_v44 = vsel %vm3552_vm15, %v3554_v27, %v3550_v20  ;;  %v4255_v51 = vld [vmem:[%s11851_s15 + $0x30] sm:$0xff]  ;;  %v4256_v0 = vld [vmem:[%s11851_s15 + $0x38] sm:$0xff]  ;;  %v4253_v22 = vld [vmem:[%s11851_s15 + $0x20] sm:$0xff] }
 0x62c   :  { %v10177_v61 = vadd.f32 %v3558_v34, %v3557_v26  ;;  %v4254_v23 = vld [vmem:[%s11851_s15 + $0x28] sm:$0xff]  ;;  %v4251_v43 = vld [vmem:[%s11851_s15 + $0x10] sm:$0xff]  ;;  %v4252_v42 = vld [vmem:[%s11851_s15 + $0x18] sm:$0xff] }
 0x62d   :  { %v4249_v63 = vld [vmem:[%s11851_s15] sm:$0xff]  ;;  %v4250_v59 = vld [vmem:[%s11851_s15 + $0x8] sm:$0xff] }
 0x62e   :  { %7676 = vtanh.f32 %v10177_v61  ;;  %v3761_v34 = vld [vmem:[%s11843_s7] sm:$0xf] }
 0x62f   :  { %v3763_v6 = vperm.slane %v3761_v34, 0  ;;  %v3764_v20 = vperm.slane %v3761_v34, 1 }
 0x634   :  { %v7677_v62 = vpop.eup %7676 }
 0x635   :  { %v10186_v39 = vmul.f32 %v7677_v62, %v3555_v44 }
 0x637   :  { %3562 = vst [vmem:[#allocation2 + $0x7] sm:$0x1] %v10186_v39  ;;  %7310 = vmatmul.msk.f32.vlgmr.msrb.gmra.mxu0 %vm93_vm0, %v10186_v39  ;;  %7311 = vmatmul.msk.f32.vlgmr.msrb.gmra.mxu1 %vm93_vm0, %v10186_v39 }
 0x638   :  { %7312 = vmatmul.msk.f32.vlgmr.msrb.gmra.mxu2 %vm93_vm0, %v10186_v39  ;;  %7313 = vmatmul.msk.f32.vlgmr.msrb.gmra.mxu3 %vm93_vm0, %v10186_v39 }
 0x639   :  { %4035 = vmatpush.msrb.mxu2 %v3968_v49  ;;  %4055 = vmatpush.msrb.mxu3 %v3969_v14  ;;  %v3856_v49 = vld [vmem:[%s11846_s10] sm:$0xf]  ;;  %s7163_s10 = sshll.u32 %s11856_s20, 4  ;;  %s7164_s10 = int_to_ptr.hbm [resolvable:$true] %s7163_s10 }
 0x63a   :  { %3995 = vmatpush.msrb.mxu0 %v3966_v60  ;;  %4015 = vmatpush.msrb.mxu1 %v3967_v45 }
 0x63b   :  { %4036 = vmatpush.msrb.mxu2 %v3964_v57  ;;  %4056 = vmatpush.msrb.mxu3 %v3965_v55  ;;  %v3858_v55 = vperm.slane %v3856_v49, 0 }
 0x63c   :  { %3996 = vmatpush.msrb.mxu0 %v3962_v18  ;;  %4016 = vmatpush.msrb.mxu1 %v3963_v21  ;;  %v3859_v18 = vperm.slane %v3856_v49, 1  ;;  %v3766_v21 = vperm.slane %v3761_v34, 3 }
 0x63d   :  { %4037 = vmatpush.msrb.mxu2 %v3960_v17  ;;  %4057 = vmatpush.msrb.mxu3 %v3961_v25 }
 0x63e   :  { %v3839_v47 = vld [vmem:[#allocation2] sm:$0xff]  ;;  %3997 = vmatpush.msrb.mxu0 %v3958_v3  ;;  %4017 = vmatpush.msrb.mxu1 %v3959_v41 }
 0x63f   :  { %7317 = vmatmul.msk.f32.vlgmr.msra.gmra.mxu0 %vm93_vm0, %v3839_v47  ;;  %7318 = vmatmul.msk.f32.vlgmr.msra.gmra.mxu1 %vm93_vm0, %v3839_v47 }
 0x640   :  { %7319 = vmatmul.msk.f32.vlgmr.msra.gmra.mxu2 %vm93_vm0, %v3839_v47  ;;  %7320 = vmatmul.msk.f32.vlgmr.msra.gmra.mxu3 %vm93_vm0, %v3839_v47 }
 0x641   :  { %4038 = vmatpush.msrb.mxu2 %v3956_v9  ;;  %4058 = vmatpush.msrb.mxu3 %v3957_v8 }
 0x642   :  { %3998 = vmatpush.msrb.mxu0 %v3954_v52  ;;  %4018 = vmatpush.msrb.mxu1 %v3955_v53 }
 0x643   :  { %4137 = vmatpush.msra.mxu2 %v10252_v46  ;;  %4157 = vmatpush.msra.mxu3 %v10257_v15 }
 0x644   :  { %4097 = vmatpush.msra.mxu0 %v10262_v12  ;;  %4117 = vmatpush.msra.mxu1 %v10267_v13 }
 0x645   :  { %4138 = vmatpush.msra.mxu2 %v10272_v35  ;;  %4158 = vmatpush.msra.mxu3 %v10277_v40 }
 0x646   :  { %4098 = vmatpush.msra.mxu0 %v10284_v58  ;;  %4118 = vmatpush.msra.mxu1 %v10289_v5 }
 0x647   :  { %7321 = vmatmul.msk.f32.vlgmr.msrb.gmra.mxu0 %vm93_vm0, %v3953_v29  ;;  %7322 = vmatmul.msk.f32.vlgmr.msrb.gmra.mxu1 %vm93_vm0, %v3953_v29 }
 0x648   :  { %7323 = vmatmul.msk.f32.vlgmr.msrb.gmra.mxu2 %vm93_vm0, %v3953_v29  ;;  %7324 = vmatmul.msk.f32.vlgmr.msrb.gmra.mxu3 %vm93_vm0, %v3953_v29 }
 0x649   :  { %4139 = vmatpush.msra.mxu2 %v10303_v16  ;;  %4159 = vmatpush.msra.mxu3 %v10308_v28 }
 0x64a   :  { %4099 = vmatpush.msra.mxu0 %v10315_v4  ;;  %4119 = vmatpush.msra.mxu1 %v10320_v1 }
 0x64b   :  { %4140 = vmatpush.msra.mxu2 %v10327_v36  ;;  %4160 = vmatpush.msra.mxu3 %v10332_v54 }
 0x64c   :  { %4100 = vmatpush.msra.mxu0 %v4069_v10  ;;  %4120 = vmatpush.msra.mxu1 %v4070_v11 }
 0x64d   :  { %4317 = vmatpush.msrb.mxu2 %v4263_v38  ;;  %4337 = vmatpush.msrb.mxu3 %v4264_v32 }
 0x64e   :  { %4277 = vmatpush.msrb.mxu0 %v4261_v24  ;;  %4297 = vmatpush.msrb.mxu1 %v4262_v7 }
 0x64f   :  { %4101 = vmatmul.f32.vlgmr.msra.gmra.mxu0 %v11945_v2  ;;  %4121 = vmatmul.f32.vlgmr.msra.gmra.mxu1 %v11945_v2 }
 0x650   :  { %4141 = vmatmul.f32.vlgmr.msra.gmra.mxu2 %v11945_v2  ;;  %4161 = vmatmul.f32.vlgmr.msra.gmra.mxu3 %v11945_v2 }
 0x651   :  { %4318 = vmatpush.msrb.mxu2 %v4259_v50  ;;  %4338 = vmatpush.msrb.mxu3 %v4260_v48 }
 0x652   :  { %4278 = vmatpush.msrb.mxu0 %v4257_v30  ;;  %4298 = vmatpush.msrb.mxu1 %v4258_v19 }
 0x653   :  { %4319 = vmatpush.msrb.mxu2 %v4255_v51  ;;  %4339 = vmatpush.msrb.mxu3 %v4256_v0 }
 0x654   :  { %4279 = vmatpush.msrb.mxu0 %v4253_v22  ;;  %4299 = vmatpush.msrb.mxu1 %v4254_v23 }
 0x655   :  { %4320 = vmatpush.msrb.mxu2 %v4251_v43  ;;  %4340 = vmatpush.msrb.mxu3 %v4252_v42 }
 0x656   :  { %4280 = vmatpush.msrb.mxu0 %v4249_v63  ;;  %4300 = vmatpush.msrb.mxu1 %v4250_v59 }
 0x657   :  { %7328 = vmatmul.msk.f32.vlgmr.msrb.gmra.mxu0 %vm93_vm0, %v10186_v39  ;;  %7329 = vmatmul.msk.f32.vlgmr.msrb.gmra.mxu1 %vm93_vm0, %v10186_v39 }
 0x658   :  { %7330 = vmatmul.msk.f32.vlgmr.msrb.gmra.mxu2 %vm93_vm0, %v10186_v39  ;;  %7331 = vmatmul.msk.f32.vlgmr.msrb.gmra.mxu3 %vm93_vm0, %v10186_v39 }
 0x659   :  { %4501 = vmatpush.msra.mxu2 %v10252_v46  ;;  %4521 = vmatpush.msra.mxu3 %v10257_v15  ;;  %v3970_v46 = vld [vmem:[%s11852_s16] sm:$0xf] }
 0x65a   :  { %4461 = vmatpush.msra.mxu0 %v10262_v12  ;;  %4481 = vmatpush.msra.mxu1 %v10267_v13 }
 0x65b   :  { %4502 = vmatpush.msra.mxu2 %v10272_v35  ;;  %4522 = vmatpush.msra.mxu3 %v10277_v40  ;;  %v3860_v35 = vperm.slane %v3856_v49, 2  ;;  %v3861_v40 = vperm.slane %v3856_v49, 3 }
 0x65c   :  { %4462 = vmatpush.msra.mxu0 %v10284_v58  ;;  %4482 = vmatpush.msra.mxu1 %v10289_v5 }
 0x65d   :  { %4503 = vmatpush.msra.mxu2 %v10303_v16  ;;  %4523 = vmatpush.msra.mxu3 %v10308_v28  ;;  %v3972_v16 = vperm.slane %v3970_v46, 0  ;;  %v3973_v28 = vperm.slane %v3970_v46, 1 }
 0x65e   :  { %4463 = vmatpush.msra.mxu0 %v10315_v4  ;;  %4483 = vmatpush.msra.mxu1 %v10320_v1 }
 0x65f   :  { %4504 = vmatpush.msra.mxu2 %v10327_v36  ;;  %4524 = vmatpush.msra.mxu3 %v10332_v54  ;;  %v3765_v36 = vperm.slane %v3761_v34, 2 }
 0x660   :  { %4464 = vmatpush.msra.mxu0 %v4069_v10  ;;  %4484 = vmatpush.msra.mxu1 %v4070_v11 }
 0x661   :  { %4685 = vmatpush.msrb.mxu2 %v4263_v38  ;;  %4705 = vmatpush.msrb.mxu3 %v4264_v32 }
 0x662   :  { %4645 = vmatpush.msrb.mxu0 %v4261_v24  ;;  %4665 = vmatpush.msrb.mxu1 %v4262_v7 }
 0x663   :  { %4686 = vmatpush.msrb.mxu2 %v4259_v50  ;;  %4706 = vmatpush.msrb.mxu3 %v4260_v48  ;;  %v3974_v50 = vperm.slane %v3970_v46, 2  ;;  %v3975_v48 = vperm.slane %v3970_v46, 3 }
 0x664   :  { %4646 = vmatpush.msrb.mxu0 %v4257_v30  ;;  %4666 = vmatpush.msrb.mxu1 %v4258_v19 }
 0x665   :  { %4687 = vmatpush.msrb.mxu2 %v4255_v51  ;;  %4707 = vmatpush.msrb.mxu3 %v4256_v0 }
 0x666   :  { %4647 = vmatpush.msrb.mxu0 %v4253_v22  ;;  %4667 = vmatpush.msrb.mxu1 %v4254_v23 }
 0x667   :  { %4688 = vmatpush.msrb.mxu2 %v4251_v43  ;;  %4708 = vmatpush.msrb.mxu3 %v4252_v42 }
 0x668   :  { %4648 = vmatpush.msrb.mxu0 %v4249_v63  ;;  %4668 = vmatpush.msrb.mxu1 %v4250_v59 }
 0x69e   :  { %v3615_v37 = vpop.f32.mrf.mxu0  ;;  %v3635_v26 = vpop.f32.mrf.mxu1 }
 0x6a5   :  { %v3655_v56 = vpop.f32.mrf.mxu2  ;;  %v3675_v31 = vpop.f32.mrf.mxu3 }
 0x6b4   :  { %v3698_v27 = vpop.f32.mrf.mxu0  ;;  %v3718_v62 = vpop.f32.mrf.mxu1 }
 0x6b5   :  { %v3699_v44 = vadd.f32 %v3698_v27, %v3615_v37  ;;  %v3719_v39 = vadd.f32 %v3718_v62, %v3635_v26 }
 0x6b7   :  { %v3771_v14 = vadd.f32 %v3763_v6, %v3699_v44  ;;  %v3772_v60 = vadd.f32 %v3764_v20, %v3719_v39 }
 0x6b9   :  { %v7314_v45 = vmul.f32 -1.442695, %v3771_v14  ;;  %v7315_v57 = vmul.f32 -1.442695, %v3772_v60 }
 0x6bb   :  { %7678 = vpow2.f32 %v7314_v45  ;;  %v3738_v17 = vpop.f32.mrf.mxu2  ;;  %v3758_v25 = vpop.f32.mrf.mxu3 }
 0x6bc   :  { %7680 = vpow2.f32 %v7315_v57  ;;  %v3759_v3 = vadd.f32 %v3758_v25, %v3675_v31  ;;  %v3886_v41 = vpop.f32.mrf.mxu0  ;;  %v3906_v47 = vpop.f32.mrf.mxu1  ;;  %v3739_v1 = vadd.f32 %v3738_v17, %v3655_v56 }
 0x6bd   :  { %v3887_v9 = vadd.f32 %v3886_v41, %v3858_v55  ;;  %v3907_v8 = vadd.f32 %v3906_v47, %v3859_v18 }
 0x6be   :  { %v3774_v52 = vadd.f32 %v3766_v21, %v3759_v3  ;;  %v3773_v30 = vadd.f32 %v3765_v36, %v3739_v1 }
 0x6bf   :  { %3949 = vst [vmem:[#allocation7] sm:$0xff] %v3887_v9 }
 0x6c0   :  { %v7316_v53 = vmul.f32 -1.442695, %v3774_v52  ;;  %3950 = vst [vmem:[#allocation7 + $0x8] sm:$0xff] %v3907_v8 }
 0x6c1   :  { %v7679_v15 = vpop.eup %7678 }
 0x6c2   :  { %v7681_v12 = vpop.eup %7680  ;;  %v10429_v13 = vadd.f32 1.0, %v7679_v15  ;;  %7682 = vpow2.f32 %v7316_v53 }
 0x6c3   :  { %v3797_v58 = vadd.f32 1.0, %v7681_v12  ;;  %v3926_v5 = vpop.f32.mrf.mxu2  ;;  %v3946_v29 = vpop.f32.mrf.mxu3 }
 0x6c4   :  { %7684 = vrcp.f32 %v10429_v13  ;;  %v4020_v4 = vpop.f32.mrf.mxu1  ;;  %v3927_v54 = vadd.f32 %v3926_v5, %v3860_v35  ;;  %v3947_v10 = vadd.f32 %v3946_v29, %v3861_v40  ;;  %v4000_v11 = vpop.f32.mrf.mxu0  ;;  %v3788_v26 = vand.u32 2147483647, %v10429_v13 }
 0x6c5   :  { %7686 = vrcp.f32 %v3797_v58  ;;  %v4001_v38 = vadd.f32 %v4000_v11, %v3972_v16  ;;  %v4021_v32 = vadd.f32 %v4020_v4, %v3973_v28  ;;  %v3790_v34 = vand.u32 2147483648, %v10429_v13 }
 0x6c6   :  { %3951 = vst [vmem:[#allocation7 + $0x10] sm:$0xff] %v3927_v54  ;;  %v3809_v56 = vand.u32 2147483648, %v3797_v58  ;;  %v3807_v6 = vand.u32 2147483647, %v3797_v58  ;;  %vm3784_vm6 = vweird.f32 %v10429_v13  ;;  %vm3803_vm7 = vweird.f32 %v3797_v58 }
 0x6c7   :  { %3952 = vst [vmem:[#allocation7 + $0x18] sm:$0xff] %v3947_v10  ;;  %v3791_v39 = vor.u32 1.1754944e-38, %v3790_v34  ;;  %vm3789_vm10 = vcmp.eq.f32.partialorder %v3788_v26, 8.507059e+37 }
 0x6c8   :  { %v7683_v24 = vpop.eup %7682  ;;  %4063 = vst [vmem:[#allocation8] sm:$0xff] %v4001_v38  ;;  %v3810_v45 = vor.u32 1.1754944e-38, %v3809_v56  ;;  %vm3808_vm11 = vcmp.eq.f32.partialorder %v3807_v6, 8.507059e+37 }
 0x6c9   :  { %v10432_v7 = vadd.f32 1.0, %v7683_v24  ;;  %4064 = vst [vmem:[#allocation8 + $0x8] sm:$0xff] %v4021_v32 }
 0x6ca   :  { %v7685_v2 = vpop.eup %7684 }
 0x6cb   :  { %v7687_v19 = vpop.eup %7686  ;;  %v3780_v51 = vmul.f32 %v7685_v2, %v10429_v13  ;;  %7688 = vrcp.f32 %v10432_v7  ;;  %v4040_v0 = vpop.f32.mrf.mxu2  ;;  %vm3785_vm4 = vweird.f32 %v7685_v2  ;;  %v3829_v29 = vand.u32 2147483648, %v10432_v7 }
 0x6cc   :  { %v4060_v22 = vpop.f32.mrf.mxu3  ;;  %v3799_v23 = vmul.f32 %v7687_v19, %v3797_v58  ;;  %v4041_v42 = vadd.f32 %v4040_v0, %v3974_v50  ;;  %v4122_v59 = vpop.f32.mrf.mxu1  ;;  %7690 = vtanh.f32 %v3773_v30  ;;  %vm3804_vm5 = vweird.f32 %v7687_v19  ;;  %vm3786_vm8 = vmor %vm3784_vm6, %vm3785_vm4 }
 0x6cd   :  { %v3781_v43 = vsub.f32 1.0, %v3780_v51  ;;  %v4061_v63 = vadd.f32 %v4060_v22, %v3975_v48  ;;  %v4169_v44 = vrot.slane %v4122_v59, 7  ;;  %v4102_v60 = vpop.f32.mrf.mxu0  ;;  %vm3805_vm9 = vmor %vm3803_vm7, %vm3804_vm5  ;;  %vm3823_vm13 = vweird.f32 %v10432_v7 }
 0x6ce   :  { %v3800_v37 = vsub.f32 1.0, %v3799_v23  ;;  %4065 = vst [vmem:[#allocation8 + $0x10] sm:$0xff] %v4041_v42  ;;  %v4068_v35 = vld [vmem:[#allocation7 + $0x7] ss:$8 sm:$0xf]  ;;  %v3830_v50 = vor.u32 1.1754944e-38, %v3829_v29 }
 0x6cf   :  { %v3782_v31 = vmul.f32 %v7685_v2, %v3781_v43  ;;  %4066 = vst [vmem:[#allocation8 + $0x18] sm:$0xff] %v4061_v63  ;;  %v4172_v8 = vsel %vm288_vm1, %v4102_v60, %v4169_v44 }
 0x6d0   :  { %v3801_v20 = vmul.f32 %v7687_v19, %v3800_v37 }
 0x6d1   :  { %v10438_v27 = vpop.eup %7688  ;;  %v3783_v62 = vadd.f32 %v7685_v2, %v3782_v31 }
 0x6d2   :  { %v3802_v49 = vadd.f32 %v7687_v19, %v3801_v20  ;;  %v3819_v14 = vmul.f32 %v10438_v27, %v10432_v7  ;;  %v7691_v21 = vpop.eup %7690  ;;  %vm3824_vm12 = vweird.f32 %v10438_v27 }
 0x6d3   :  { %v3787_v57 = vsel %vm3786_vm8, %v7685_v2, %v3783_v62  ;;  %v4142_v55 = vpop.f32.mrf.mxu2  ;;  %vm10457_vm14 = vmor %vm3823_vm13, %vm3824_vm12 }
 0x6d4   :  { %v4162_v18 = vpop.f32.mrf.mxu3  ;;  %v3792_v17 = vsel %vm3789_vm10, %v3791_v39, %v3787_v57  ;;  %v3806_v25 = vsel %vm3805_vm9, %v7687_v19, %v3802_v49  ;;  %v3820_v3 = vsub.f32 1.0, %v3819_v14  ;;  %v4170_v41 = vrot.slane %v4142_v55, 6  ;;  %v4302_v12 = vpop.f32.mrf.mxu1 }
 0x6d5   :  { %v3811_v47 = vsel %vm3808_vm11, %v3810_v45, %v3806_v25  ;;  %v3834_v9 = vmul.f32 %v7691_v21, %v3792_v17  ;;  %v4171_v52 = vrot.slane %v4162_v18, 5  ;;  %v4349_v16 = vrot.slane %v4302_v12, 7 }
 0x6d6   :  { %v3833_v53 = vmul.f32 %v3811_v47, %v10082_v33  ;;  %v3821_v46 = vmul.f32 %v10438_v27, %v3820_v3  ;;  %v3827_v33 = vand.u32 2147483647, %v10432_v7  ;;  %v4282_v7 = vpop.f32.mrf.mxu0  ;;  %v4248_v19 = vld [vmem:[#allocation8] ss:$8 sm:$0xf] }
 0x6d7   :  { %v4173_v15 = vsel %vm290_vm2, %v4170_v41, %v4171_v52  ;;  %v4352_v2 = vsel %vm288_vm1, %v4282_v7, %v4349_v16 }
 0x6d8   :  { %v3835_v13 = vadd.f32 %v3834_v9, %v3833_v53  ;;  %v4174_v40 = vsel %vm292_vm3, %v4172_v8, %v4173_v15  ;;  %v3822_v58 = vadd.f32 %v10438_v27, %v3821_v46  ;;  %vm3828_vm15 = vcmp.eq.f32.partialorder %v3827_v33, 8.507059e+37 }
 0x6d9   :  { %v10450_v5 = vadd.f32 %v4174_v40, %v4068_v35 }
 0x6da   :  { %7692 = vtanh.f32 %v3835_v13  ;;  %v3826_v32 = vsel %vm10457_vm14, %v10438_v27, %v3822_v58 }
 0x6db   :  { %v7325_v28 = vmul.f32 -1.442695, %v10450_v5  ;;  %v4197_v4 = vrot.slane %v10450_v5, 1  ;;  %v4322_v1 = vpop.f32.mrf.mxu2  ;;  %v4221_v10 = vrot.slane %v10450_v5, 3  ;;  %v3831_v22 = vsel %vm3828_vm15, %v3830_v50, %v3826_v32 }
 0x6dc   :  { %v4342_v36 = vpop.f32.mrf.mxu3  ;;  %v4350_v11 = vrot.slane %v4322_v1, 6  ;;  %v4218_v18 = vrot.slane %v10450_v5, 2 }
 0x6dd   :  { %v4351_v38 = vrot.slane %v4342_v36, 5  ;;  %7694 = vpow2.f32 %v7325_v28  ;;  %v7326_v24 = vmul.f32 -1.442695, %v4197_v4  ;;  %v7327_v48 = vmul.f32 -1.442695, %v4221_v10 }
 0x6df   :  { %v4353_v30 = vsel %vm290_vm2, %v4350_v11, %v4351_v38  ;;  %7696 = vpow2.f32 %v7326_v24 }
 0x6e0   :  { %v4354_v51 = vsel %vm292_vm3, %v4352_v2, %v4353_v30  ;;  %v7693_v0 = vpop.eup %7692  ;;  %7698 = vpow2.f32 %v7327_v48 }
 0x6e1   :  { %v10468_v23 = vadd.f32 %v4354_v51, %v4248_v19  ;;  %v3837_v43 = vmul.f32 %v7693_v0, %v3831_v22  ;;  %v10556_v51 = vld [vmem:[%s11845_s9 + $0x70] sm:$0xff] }
 0x6e3   :  { %v7332_v42 = vmul.f32 -1.442695, %v10468_v23  ;;  %v4377_v63 = vrot.slane %v10468_v23, 1  ;;  %v4401_v59 = vrot.slane %v10468_v23, 3  ;;  %v7695_v37 = vpop.eup %7694  ;;  %3838 = vst [vmem:[#allocation3 + $0x7] sm:$0x1] %v3837_v43 }
 0x6e4   :  { %v4180_v26 = vadd.f32 1.0, %v7695_v37  ;;  %v4398_v35 = vrot.slane %v10468_v23, 2 }
 0x6e5   :  { %7700 = vpow2.f32 %v7332_v42  ;;  %v7333_v34 = vmul.f32 -1.442695, %v4377_v63  ;;  %v7334_v56 = vmul.f32 -1.442695, %v4401_v59  ;;  %v7697_v31 = vpop.eup %7696 }
 0x6e6   :  { %v7699_v6 = vpop.eup %7698  ;;  %7702 = vrcp.f32 %v4180_v26  ;;  %v4202_v20 = vadd.f32 1.0, %v7697_v31  ;;  %v4190_v25 = vand.u32 2147483647, %v4180_v26  ;;  %v4192_v47 = vand.u32 2147483648, %v4180_v26 }
 0x6e7   :  { %v10473_v27 = vadd.f32 1.0, %v7699_v6  ;;  %7704 = vpow2.f32 %v7333_v34  ;;  %vm4186_vm5 = vweird.f32 %v4180_v26 }
 0x6e8   :  { %7706 = vpow2.f32 %v7334_v56  ;;  %v4212_v8 = vand.u32 2147483647, %v4202_v20  ;;  %v4214_v15 = vand.u32 2147483648, %v4202_v20  ;;  %vm4191_vm8 = vcmp.eq.f32.partialorder %v4190_v25, 8.507059e+37 }
 0x6e9   :  { %7708 = vrcp.f32 %v4202_v20  ;;  %v4193_v58 = vor.u32 1.1754944e-38, %v4192_v47  ;;  %vm4208_vm9 = vweird.f32 %v4202_v20  ;;  %v4238_v23 = vand.u32 2147483648, %v10473_v27 }
 0x6ea   :  { %7710 = vrcp.f32 %v10473_v27  ;;  %vm4213_vm10 = vcmp.eq.f32.partialorder %v4212_v8, 8.507059e+37  ;;  %v4215_v4 = vor.u32 1.1754944e-38, %v4214_v15  ;;  %v4236_v6 = vand.u32 2147483647, %v10473_v27 }
 0x6eb   :  { %v7701_v62 = vpop.eup %7700 }
 0x6ec   :  { %v10476_v44 = vadd.f32 1.0, %v7701_v62  ;;  %v7703_v39 = vpop.eup %7702 }
 0x6ed   :  { %v7705_v49 = vpop.eup %7704  ;;  %v4182_v14 = vmul.f32 %v7703_v39, %v4180_v26  ;;  %vm4187_vm4 = vweird.f32 %v7703_v39 }
 0x6ee   :  { %7712 = vrcp.f32 %v10476_v44  ;;  %v7707_v60 = vpop.eup %7706  ;;  %v10479_v45 = vadd.f32 1.0, %v7705_v49  ;;  %vm4188_vm6 = vmor %vm4186_vm5, %vm4187_vm4  ;;  %vm4366_vm12 = vweird.f32 %v10476_v44  ;;  %v4370_v1 = vand.u32 2147483647, %v10476_v44 }
 0x6ef   :  { %v7709_v57 = vpop.eup %7708  ;;  %v4183_v55 = vsub.f32 1.0, %v4182_v14  ;;  %v10482_v21 = vadd.f32 1.0, %v7707_v60  ;;  %v4372_v24 = vand.u32 2147483648, %v10476_v44 }
 0x6f0   :  { %v10484_v17 = vpop.eup %7710  ;;  %v4204_v3 = vmul.f32 %v7709_v57, %v4202_v20  ;;  %7714 = vrcp.f32 %v10479_v45  ;;  %vm4209_vm7 = vweird.f32 %v7709_v57  ;;  %v4392_v0 = vand.u32 2147483647, %v10479_v45 }
 0x6f1   :  { %v4184_v41 = vmul.f32 %v7703_v39, %v4183_v55  ;;  %7716 = vrcp.f32 %v10482_v21  ;;  %v4228_v52 = vmul.f32 %v10484_v17, %v10473_v27  ;;  %vm4210_vm11 = vmor %vm4208_vm9, %vm4209_vm7  ;;  %v4394_v22 = vand.u32 2147483648, %v10479_v45 }
 0x6f2   :  { %v4205_v9 = vsub.f32 1.0, %v4204_v3  ;;  %7718 = vtanh.f32 %v4218_v18  ;;  %v4373_v59 = vor.u32 1.1754944e-38, %v4372_v24  ;;  %vm4233_vm4 = vweird.f32 %v10484_v17 }
 0x6f3   :  { %v4185_v46 = vadd.f32 %v7703_v39, %v4184_v41  ;;  %v4229_v5 = vsub.f32 1.0, %v4228_v52  ;;  %7720 = vtanh.f32 %v4398_v35  ;;  %vm4371_vm5 = vcmp.eq.f32.partialorder %v4370_v1, 8.507059e+37 }
 0x6f4   :  { %v7713_v53 = vpop.eup %7712  ;;  %v4206_v12 = vmul.f32 %v7709_v57, %v4205_v9  ;;  %v4395_v31 = vor.u32 1.1754944e-38, %v4394_v22  ;;  %vm4393_vm9 = vcmp.eq.f32.partialorder %v4392_v0, 8.507059e+37  ;;  %v4418_v3 = vand.u32 2147483648, %v10482_v21  ;;  %v10561_v0 = vld [vmem:[%s11845_s9 + $0x78] sm:$0xff]  ;;  %v10566_v22 = vld [vmem:[%s11845_s9 + $0x60] sm:$0xff] }
 0x6f5   :  { %v4362_v13 = vmul.f32 %v7713_v53, %v10476_v44  ;;  %v4189_v40 = vsel %vm4188_vm6, %v7703_v39, %v4185_v46  ;;  %vm4367_vm13 = vweird.f32 %v7713_v53  ;;  %v4230_v7 = vmul.f32 %v10484_v17, %v4229_v5 }
 0x6f6   :  { %v4207_v29 = vadd.f32 %v7709_v57, %v4206_v12  ;;  %v7715_v33 = vpop.eup %7714  ;;  %v4194_v28 = vsel %vm4191_vm8, %v4193_v58, %v4189_v40  ;;  %vm10503_vm14 = vmor %vm4366_vm12, %vm4367_vm13  ;;  %vm4388_vm6 = vweird.f32 %v10479_v45  ;;  %vm4232_vm8 = vweird.f32 %v10473_v27  ;;  %v4429_v58 = vld [vmem:[#allocation7 + $0x6] ss:$8 sm:$0xf] }
 0x6f7   :  { %v4363_v16 = vsub.f32 1.0, %v4362_v13  ;;  %v10494_v36 = vpop.eup %7716  ;;  %v4384_v11 = vmul.f32 %v7715_v33, %v10479_v45  ;;  %vm4389_vm15 = vweird.f32 %v7715_v33  ;;  %v4231_v37 = vadd.f32 %v10484_v17, %v4230_v7 }
 0x6f8   :  { %v4211_v54 = vsel %vm4210_vm11, %v7709_v57, %v4207_v29  ;;  %v7719_v38 = vpop.eup %7718  ;;  %v4408_v50 = vmul.f32 %v10494_v36, %v10482_v21  ;;  %vm4390_vm7 = vmor %vm4388_vm6, %vm4389_vm15  ;;  %v4239_v45 = vor.u32 1.1754944e-38, %v4238_v23  ;;  %vm4237_vm11 = vcmp.eq.f32.partialorder %v4236_v6, 8.507059e+37 }
 0x6f9   :  { %v4364_v10 = vmul.f32 %v7713_v53, %v4363_v16  ;;  %v4216_v32 = vsel %vm4213_vm10, %v4215_v4, %v4211_v54  ;;  %v4243_v2 = vmul.f32 %v7719_v38, %v4194_v28  ;;  %v4385_v19 = vsub.f32 1.0, %v4384_v11  ;;  %vm4234_vm10 = vmor %vm4232_vm8, %vm4233_vm4  ;;  %v7721_v62 = vpop.eup %7720 }
 0x6fa   :  { %v4242_v48 = vmul.f32 0.0, %v4216_v32  ;;  %v4409_v26 = vsub.f32 1.0, %v4408_v50  ;;  %v4235_v39 = vsel %vm4234_vm10, %v10484_v17, %v4231_v37  ;;  %vm4413_vm12 = vweird.f32 %v10494_v36 }
 0x6fb   :  { %v4365_v30 = vadd.f32 %v7713_v53, %v4364_v10  ;;  %v4386_v63 = vmul.f32 %v7715_v33, %v4385_v19  ;;  %v4240_v18 = vsel %vm4237_vm11, %v4239_v45, %v4235_v39  ;;  %vm4412_vm13 = vweird.f32 %v10482_v21  ;;  %v10626_v45 = vld [vmem:[%s11845_s9 + $0x20] sm:$0xff] }
 0x6fc   :  { %v10510_v43 = vadd.f32 %v4243_v2, %v4242_v48  ;;  %v4410_v49 = vmul.f32 %v10494_v36, %v4409_v26  ;;  %v4419_v41 = vor.u32 1.1754944e-38, %v4418_v3  ;;  %v4613_v48 = vld [vmem:[#allocation8 + $0x1] ss:$8 sm:$0xf] }
 0x6fd   :  { %v4369_v42 = vsel %vm10503_vm14, %v7713_v53, %v4365_v30  ;;  %v4387_v34 = vadd.f32 %v7715_v33, %v4386_v63  ;;  %vm4414_vm14 = vmor %vm4412_vm13, %vm4413_vm12  ;;  %v10657_v3 = vld [vmem:[%s11845_s9 + $0x8] sm:$0xff] }
 0x6fe   :  { %7722 = vtanh.f32 %v10510_v43  ;;  %v4374_v56 = vsel %vm4371_vm5, %v4373_v59, %v4369_v42  ;;  %v4411_v27 = vadd.f32 %v10494_v36, %v4410_v49  ;;  %v10577_v59 = vld [vmem:[%s11845_s9 + $0x68] sm:$0xff]  ;;  %v10614_v49 = vld [vmem:[%s11845_s9 + $0x30] sm:$0xff] }
 0x6ff   :  { %v4391_v20 = vsel %vm4390_vm7, %v7715_v33, %v4387_v34  ;;  %v4423_v60 = vmul.f32 %v7721_v62, %v4374_v56  ;;  %v10585_v34 = vld [vmem:[%s11845_s9 + $0x50] sm:$0xff]  ;;  %v10590_v56 = vld [vmem:[%s11845_s9 + $0x58] sm:$0xff] }
 0x700   :  { %v4396_v44 = vsel %vm4393_vm9, %v4395_v31, %v4391_v20  ;;  %v4415_v17 = vsel %vm4414_vm14, %v10494_v36, %v4411_v27  ;;  %v10595_v31 = vld [vmem:[%s11845_s9 + $0x40] sm:$0xff]  ;;  %v10603_v20 = vld [vmem:[%s11845_s9 + $0x48] sm:$0xff] }
 0x701   :  { %v4422_v14 = vmul.f32 %v4396_v44, %v10177_v61  ;;  %v4416_v61 = vand.u32 2147483647, %v10482_v21  ;;  %v10649_v27 = vld [vmem:[%s11845_s9] sm:$0xff] }
 0x703   :  { %v10523_v55 = vadd.f32 %v4423_v60, %v4422_v14  ;;  %vm4417_vm15 = vcmp.eq.f32.partialorder %v4416_v61, 8.507059e+37  ;;  %v10619_v14 = vld [vmem:[%s11845_s9 + $0x38] sm:$0xff]  ;;  %v10662_v61 = vld [vmem:[%s11851_s15 + $0x70] sm:$0xff] }
 0x704   :  { %v7723_v57 = vpop.eup %7722  ;;  %v4420_v9 = vsel %vm4417_vm15, %v4419_v41, %v4415_v17  ;;  %v10667_v17 = vld [vmem:[%s11851_s15 + $0x78] sm:$0xff]  ;;  %v10674_v41 = vld [vmem:[%s11851_s15 + $0x60] sm:$0xff] }
 0x705   :  { %v4246_v25 = vmul.f32 %v7723_v57, %v4240_v18  ;;  %7724 = vtanh.f32 %v10523_v55  ;;  %v10631_v57 = vld [vmem:[%s11845_s9 + $0x28] sm:$0xff]  ;;  %v10639_v18 = vld [vmem:[%s11845_s9 + $0x10] sm:$0xff] }
 0x707   :  { %4247 = vst [vmem:[#allocation4 + $0x7] sm:$0x1] %v4246_v25  ;;  %7335 = vmatmul.msk.f32.vlgmr.msra.gmra.mxu0 %vm93_vm0, %v4246_v25  ;;  %7336 = vmatmul.msk.f32.vlgmr.msra.gmra.mxu1 %vm93_vm0, %v4246_v25 }
 0x708   :  { %7337 = vmatmul.msk.f32.vlgmr.msra.gmra.mxu2 %vm93_vm0, %v4246_v25  ;;  %7338 = vmatmul.msk.f32.vlgmr.msra.gmra.mxu3 %vm93_vm0, %v4246_v25  ;;  %v10644_v25 = vld [vmem:[%s11845_s9 + $0x18] sm:$0xff] }
 0x709   :  { %4869 = vmatpush.msra.mxu2 %v10556_v51  ;;  %4889 = vmatpush.msra.mxu3 %v10561_v0 }
 0x70a   :  { %4829 = vmatpush.msra.mxu0 %v10566_v22  ;;  %4849 = vmatpush.msra.mxu1 %v10577_v59 }
 0x70b   :  { %v7725_v47 = vpop.eup %7724  ;;  %4870 = vmatpush.msra.mxu2 %v10585_v34  ;;  %4890 = vmatpush.msra.mxu3 %v10590_v56 }
 0x70c   :  { %v4426_v8 = vmul.f32 %v7725_v47, %v4420_v9  ;;  %4830 = vmatpush.msra.mxu0 %v10595_v31  ;;  %4850 = vmatpush.msra.mxu1 %v10603_v20  ;;  %v10679_v47 = vld [vmem:[%s11851_s15 + $0x68] sm:$0xff]  ;;  %v10684_v9 = vld [vmem:[%s11851_s15 + $0x50] sm:$0xff] }
 0x70d   :  { %4871 = vmatpush.msra.mxu2 %v10614_v49  ;;  %4891 = vmatpush.msra.mxu3 %v10619_v14 }
 0x70e   :  { %4427 = vst [vmem:[#allocation5] sm:$0x1] %v4426_v8  ;;  %4831 = vmatpush.msra.mxu0 %v10626_v45  ;;  %4851 = vmatpush.msra.mxu1 %v10631_v57 }
 0x70f   :  { %7342 = vmatmul.msk.f32.vlgmr.msrb.gmra.mxu0 %vm93_vm0, %v4426_v8  ;;  %7343 = vmatmul.msk.f32.vlgmr.msrb.gmra.mxu1 %vm93_vm0, %v4426_v8 }
 0x710   :  { %7344 = vmatmul.msk.f32.vlgmr.msrb.gmra.mxu2 %vm93_vm0, %v4426_v8  ;;  %7345 = vmatmul.msk.f32.vlgmr.msrb.gmra.mxu3 %vm93_vm0, %v4426_v8 }
 0x711   :  { %4872 = vmatpush.msra.mxu2 %v10639_v18  ;;  %4892 = vmatpush.msra.mxu3 %v10644_v25 }
 0x712   :  { %4832 = vmatpush.msra.mxu0 %v10649_v27  ;;  %4852 = vmatpush.msra.mxu1 %v10657_v3 }
 0x713   :  { %5053 = vmatpush.msrb.mxu2 %v10662_v61  ;;  %5073 = vmatpush.msrb.mxu3 %v10667_v17 }
 0x714   :  { %5013 = vmatpush.msrb.mxu0 %v10674_v41  ;;  %5033 = vmatpush.msrb.mxu1 %v10679_v47 }
 0x715   :  { %5054 = vmatpush.msrb.mxu2 %v10684_v9 }
 0x784   :  { %v4486_v21 = vpop.f32.mrf.mxu1  ;;  %v4466_v15 = vpop.f32.mrf.mxu0 }
 0x785   :  { %v4533_v52 = vrot.slane %v4486_v21, 7  ;;  %v10693_v21 = vld [vmem:[%s11851_s15 + $0x58] sm:$0xff] }
 0x786   :  { %5074 = vmatpush.msrb.mxu3 %v10693_v21 }
 0x787   :  { %v4536_v35 = vsel %vm288_vm1, %v4466_v15, %v4533_v52  ;;  %v10698_v52 = vld [vmem:[%s11851_s15 + $0x40] sm:$0xff] }
 0x788   :  { %5014 = vmatpush.msrb.mxu0 %v10698_v52 }
 0x78b   :  { %v4506_v53 = vpop.f32.mrf.mxu2  ;;  %v4526_v46 = vpop.f32.mrf.mxu3 }
 0x78c   :  { %v4534_v12 = vrot.slane %v4506_v53, 6  ;;  %v4535_v13 = vrot.slane %v4526_v46, 5  ;;  %v4670_v16 = vpop.f32.mrf.mxu1  ;;  %v4650_v24 = vpop.f32.mrf.mxu0  ;;  %v10703_v53 = vld [vmem:[%s11851_s15 + $0x48] sm:$0xff] }
 0x78d   :  { %v4717_v1 = vrot.slane %v4670_v16, 7  ;;  %5034 = vmatpush.msrb.mxu1 %v10703_v53 }
 0x78e   :  { %v4537_v40 = vsel %vm290_vm2, %v4534_v12, %v4535_v13  ;;  %v10712_v12 = vld [vmem:[%s11851_s15 + $0x30] sm:$0xff]  ;;  %v10717_v13 = vld [vmem:[%s11851_s15 + $0x38] sm:$0xff] }
 0x78f   :  { %v4538_v5 = vsel %vm292_vm3, %v4536_v35, %v4537_v40  ;;  %v4720_v7 = vsel %vm288_vm1, %v4650_v24, %v4717_v1  ;;  %5055 = vmatpush.msrb.mxu2 %v10712_v12  ;;  %5075 = vmatpush.msrb.mxu3 %v10717_v13 }
 0x790   :  { %v10543_v29 = vadd.f32 %v4538_v5, %v4429_v58  ;;  %v10727_v58 = vld [vmem:[%s11851_s15 + $0x20] sm:$0xff]  ;;  %v10732_v5 = vld [vmem:[%s11851_s15 + $0x28] sm:$0xff] }
 0x791   :  { %5015 = vmatpush.msrb.mxu0 %v10727_v58  ;;  %5035 = vmatpush.msrb.mxu1 %v10732_v5 }
 0x792   :  { %v7339_v33 = vmul.f32 -1.442695, %v10543_v29  ;;  %v4561_v28 = vrot.slane %v10543_v29, 1  ;;  %v4585_v4 = vrot.slane %v10543_v29, 3  ;;  %v4582_v35 = vrot.slane %v10543_v29, 2  ;;  %v10739_v29 = vld [vmem:[%s11851_s15 + $0x10] sm:$0xff] }
 0x793   :  { %v4690_v36 = vpop.f32.mrf.mxu2  ;;  %v4710_v54 = vpop.f32.mrf.mxu3  ;;  %5056 = vmatpush.msrb.mxu2 %v10739_v29 }
 0x794   :  { %7726 = vpow2.f32 %v7339_v33  ;;  %v7340_v10 = vmul.f32 -1.442695, %v4561_v28  ;;  %v7341_v11 = vmul.f32 -1.442695, %v4585_v4  ;;  %v4718_v38 = vrot.slane %v4690_v36, 6  ;;  %v10744_v28 = vld [vmem:[%s11851_s15 + $0x18] sm:$0xff] }
 0x795   :  { %v4719_v32 = vrot.slane %v4710_v54, 5  ;;  %v10755_v36 = vld [vmem:[%s11851_s15] sm:$0xff]  ;;  %v10760_v54 = vld [vmem:[%s11851_s15 + $0x8] sm:$0xff]  ;;  %5076 = vmatpush.msrb.mxu3 %v10744_v28 }
 0x796   :  { %7728 = vpow2.f32 %v7340_v10  ;;  %5016 = vmatpush.msrb.mxu0 %v10755_v36  ;;  %5036 = vmatpush.msrb.mxu1 %v10760_v54 }
 0x797   :  { %7730 = vpow2.f32 %v7341_v11  ;;  %v4721_v50 = vsel %vm290_vm2, %v4718_v38, %v4719_v32 }
 0x798   :  { %v4722_v2 = vsel %vm292_vm3, %v4720_v7, %v4721_v50 }
 0x799   :  { %v10551_v30 = vadd.f32 %v4722_v2, %v4613_v48 }
 0x79a   :  { %v7727_v19 = vpop.eup %7726 }
 0x79b   :  { %v10568_v23 = vadd.f32 1.0, %v7727_v19  ;;  %v7346_v42 = vmul.f32 -1.442695, %v10551_v30  ;;  %v4745_v63 = vrot.slane %v10551_v30, 1  ;;  %v4769_v26 = vrot.slane %v10551_v30, 3 }
 0x79c   :  { %v7729_v37 = vpop.eup %7728 }
 0x79d   :  { %v7731_v6 = vpop.eup %7730  ;;  %7732 = vrcp.f32 %v10568_v23  ;;  %v10605_v62 = vadd.f32 1.0, %v7729_v37  ;;  %v7347_v39 = vmul.f32 -1.442695, %v4745_v63  ;;  %v7348_v60 = vmul.f32 -1.442695, %v4769_v26 }
 0x79e   :  { %v10607_v44 = vadd.f32 1.0, %v7731_v6  ;;  %7734 = vpow2.f32 %v7346_v42  ;;  %v4556_v38 = vand.u32 2147483648, %v10568_v23  ;;  %v4554_v7 = vand.u32 2147483647, %v10568_v23 }
 0x79f   :  { %7736 = vrcp.f32 %v10605_v62  ;;  %vm4550_vm5 = vweird.f32 %v10568_v23  ;;  %v4578_v19 = vand.u32 2147483648, %v10605_v62  ;;  %v4576_v37 = vand.u32 2147483647, %v10605_v62 }
 0x7a0   :  { %7738 = vrcp.f32 %v10607_v44  ;;  %vm4555_vm8 = vcmp.eq.f32.partialorder %v4554_v7, 8.507059e+37  ;;  %vm4572_vm9 = vweird.f32 %v10605_v62  ;;  %vm4596_vm12 = vweird.f32 %v10607_v44 }
 0x7a1   :  { %7740 = vpow2.f32 %v7347_v39  ;;  %vm4577_vm11 = vcmp.eq.f32.partialorder %v4576_v37, 8.507059e+37 }
 0x7a2   :  { %7742 = vpow2.f32 %v7348_v60 }
 0x7a3   :  { %v10686_v8 = vpop.eup %7732 }
 0x7a4   :  { %v7735_v46 = vpop.eup %7734  ;;  %v4546_v15 = vmul.f32 %v10686_v8, %v10568_v23  ;;  %vm4551_vm4 = vweird.f32 %v10686_v8  ;;  %v4557_v23 = vor.u32 1.1754944e-38, %v4556_v38 }
 0x7a5   :  { %v10720_v40 = vadd.f32 1.0, %v7735_v46  ;;  %v7737_v16 = vpop.eup %7736  ;;  %vm4552_vm6 = vmor %vm4550_vm5, %vm4551_vm4  ;;  %v4766_v46 = vrot.slane %v10551_v30, 2 }
 0x7a6   :  { %v4547_v33 = vsub.f32 1.0, %v4546_v15  ;;  %v10746_v4 = vpop.eup %7738  ;;  %v4568_v1 = vmul.f32 %v7737_v16, %v10605_v62  ;;  %vm4573_vm7 = vweird.f32 %v7737_v16 }
 0x7a7   :  { %7744 = vrcp.f32 %v10720_v40  ;;  %v7741_v10 = vpop.eup %7740  ;;  %v4592_v32 = vmul.f32 %v10746_v4, %v10607_v44  ;;  %vm4574_vm10 = vmor %vm4572_vm9, %vm4573_vm7  ;;  %vm4734_vm13 = vweird.f32 %v10720_v40  ;;  %vm4597_vm15 = vweird.f32 %v10746_v4 }
 0x7a8   :  { %v4548_v11 = vmul.f32 %v10686_v8, %v4547_v33  ;;  %v7743_v24 = vpop.eup %7742  ;;  %v4569_v50 = vsub.f32 1.0, %v4568_v1  ;;  %7746 = vtanh.f32 %v4582_v35  ;;  %v10770_v48 = vadd.f32 1.0, %v7741_v10 }
 0x7a9   :  { %v10777_v42 = vadd.f32 1.0, %v7743_v24  ;;  %v4593_v6 = vsub.f32 1.0, %v4592_v32  ;;  %v4579_v35 = vor.u32 1.1754944e-38, %v4578_v19  ;;  %v4740_v19 = vand.u32 2147483648, %v10720_v40 }
 0x7aa   :  { %v4549_v2 = vadd.f32 %v10686_v8, %v4548_v11  ;;  %v4570_v63 = vmul.f32 %v7737_v16, %v4569_v50  ;;  %7748 = vrcp.f32 %v10770_v48 }
 0x7ab   :  { %7750 = vrcp.f32 %v10777_v42  ;;  %v4594_v38 = vmul.f32 %v10746_v4, %v4593_v6  ;;  %v4762_v6 = vand.u32 2147483648, %v10770_v48 }
 0x7ac   :  { %v4553_v26 = vsel %vm4552_vm6, %v10686_v8, %v4549_v2  ;;  %v4571_v60 = vadd.f32 %v7737_v16, %v4570_v63  ;;  %7752 = vtanh.f32 %v4766_v46  ;;  %v4738_v2 = vand.u32 2147483647, %v10720_v40  ;;  %vm10818_vm6 = vmor %vm4596_vm12, %vm4597_vm15 }
 0x7ad   :  { %v7745_v39 = vpop.eup %7744  ;;  %v4558_v15 = vsel %vm4555_vm8, %v4557_v23, %v4553_v26  ;;  %v4595_v26 = vadd.f32 %v10746_v4, %v4594_v38  ;;  %v4602_v46 = vand.u32 2147483648, %v10607_v44  ;;  %vm4756_vm8 = vweird.f32 %v10770_v48 }
 0x7ae   :  { %v4730_v33 = vmul.f32 %v7745_v39, %v10720_v40  ;;  %v7747_v1 = vpop.eup %7746  ;;  %v4575_v10 = vsel %vm4574_vm10, %v7737_v16, %v4571_v60  ;;  %vm4735_vm14 = vweird.f32 %v7745_v39  ;;  %v4600_v60 = vand.u32 2147483647, %v10607_v44 }
 0x7af   :  { %v4580_v8 = vsel %vm4577_vm11, %v4579_v35, %v4575_v10  ;;  %v4607_v7 = vmul.f32 %v7747_v1, %v4558_v15  ;;  %vm10805_vm4 = vmor %vm4734_vm13, %vm4735_vm14  ;;  %v4760_v35 = vand.u32 2147483647, %v10770_v48  ;;  %v4741_v1 = vor.u32 1.1754944e-38, %v4740_v19 }
 0x7b0   :  { %v4731_v11 = vsub.f32 1.0, %v4730_v33  ;;  %v7749_v32 = vpop.eup %7748  ;;  %v4606_v24 = vmul.f32 %v4580_v8, %v10510_v43  ;;  %vm4739_vm7 = vcmp.eq.f32.partialorder %v4738_v2, 8.507059e+37  ;;  %vm4601_vm11 = vcmp.eq.f32.partialorder %v4600_v60, 8.507059e+37 }
 0x7b1   :  { %v10793_v30 = vpop.eup %7750  ;;  %v4752_v16 = vmul.f32 %v7749_v32, %v10770_v48  ;;  %vm4757_vm5 = vweird.f32 %v7749_v32  ;;  %vm4761_vm10 = vcmp.eq.f32.partialorder %v4760_v35, 8.507059e+37  ;;  %vm4780_vm13 = vweird.f32 %v10777_v42 }
 0x7b2   :  { %v4732_v62 = vmul.f32 %v7745_v39, %v4731_v11  ;;  %v10797_v50 = vadd.f32 %v4607_v7, %v4606_v24  ;;  %v4776_v43 = vmul.f32 %v10793_v30, %v10777_v42  ;;  %v7753_v33 = vpop.eup %7752  ;;  %vm4758_vm9 = vmor %vm4756_vm8, %vm4757_vm5  ;;  %v4763_v24 = vor.u32 1.1754944e-38, %v4762_v6 }
 0x7b3   :  { %v4753_v37 = vsub.f32 1.0, %v4752_v16  ;;  %v4603_v7 = vor.u32 1.1754944e-38, %v4602_v46  ;;  %vm4781_vm12 = vweird.f32 %v10793_v30 }
 0x7b4   :  { %v4733_v63 = vadd.f32 %v7745_v39, %v4732_v62  ;;  %7754 = vtanh.f32 %v10797_v50  ;;  %v4777_v8 = vsub.f32 1.0, %v4776_v43  ;;  %vm4782_vm14 = vmor %vm4780_vm13, %vm4781_vm12 }
 0x7b5   :  { %v4754_v15 = vmul.f32 %v7749_v32, %v4753_v37 }
 0x7b6   :  { %v4737_v40 = vsel %vm10805_vm4, %v7745_v39, %v4733_v63  ;;  %v4599_v39 = vsel %vm10818_vm6, %v10746_v4, %v4595_v26  ;;  %v4778_v43 = vmul.f32 %v10793_v30, %v4777_v8 }
 0x7b7   :  { %v4755_v11 = vadd.f32 %v7749_v32, %v4754_v15  ;;  %v4742_v38 = vsel %vm4739_vm7, %v4741_v1, %v4737_v40  ;;  %v4604_v19 = vsel %vm4601_vm11, %v4603_v7, %v4599_v39 }
 0x7b8   :  { %v4791_v63 = vmul.f32 %v7753_v33, %v4742_v38  ;;  %v4779_v4 = vadd.f32 %v10793_v30, %v4778_v43 }
 0x7b9   :  { %v4759_v62 = vsel %vm4758_vm9, %v7749_v32, %v4755_v11  ;;  %v4786_v32 = vand.u32 2147483648, %v10777_v42  ;;  %v4797_v11 = vld [vmem:[#allocation7 + $0x5] ss:$8 sm:$0xf] }
 0x7ba   :  { %v7755_v44 = vpop.eup %7754  ;;  %v4764_v16 = vsel %vm4761_vm10, %v4763_v24, %v4759_v62  ;;  %v4783_v26 = vsel %vm4782_vm14, %v10793_v30, %v4779_v4 }
 0x7bb   :  { %v4790_v2 = vmul.f32 %v4764_v16, %v10523_v55  ;;  %v4610_v48 = vmul.f32 %v7755_v44, %v4604_v19  ;;  %v4784_v55 = vand.u32 2147483647, %v10777_v42  ;;  %v4787_v23 = vor.u32 1.1754944e-38, %v4786_v32 }
 0x7bd   :  { %v10828_v37 = vadd.f32 %v4791_v63, %v4790_v2  ;;  %4611 = vst [vmem:[#allocation4 + $0x6] sm:$0x1] %v4610_v48  ;;  %7349 = vmatmul.msk.f32.vlgmr.msra.gmra.mxu0 %vm93_vm0, %v4610_v48  ;;  %7350 = vmatmul.msk.f32.vlgmr.msra.gmra.mxu1 %vm93_vm0, %v4610_v48  ;;  %vm4785_vm15 = vcmp.eq.f32.partialorder %v4784_v55, 8.507059e+37 }
 0x7be   :  { %7351 = vmatmul.msk.f32.vlgmr.msra.gmra.mxu2 %vm93_vm0, %v4610_v48  ;;  %7352 = vmatmul.msk.f32.vlgmr.msra.gmra.mxu3 %vm93_vm0, %v4610_v48  ;;  %v4788_v6 = vsel %vm4785_vm15, %v4787_v23, %v4783_v26 }
 0x7bf   :  { %7756 = vtanh.f32 %v10828_v37  ;;  %5237 = vmatpush.msra.mxu2 %v10556_v51  ;;  %5257 = vmatpush.msra.mxu3 %v10561_v0 }
 0x7c0   :  { %5197 = vmatpush.msra.mxu0 %v10566_v22  ;;  %5217 = vmatpush.msra.mxu1 %v10577_v59 }
 0x7c1   :  { %5238 = vmatpush.msra.mxu2 %v10585_v34  ;;  %5258 = vmatpush.msra.mxu3 %v10590_v56 }
 0x7c2   :  { %5198 = vmatpush.msra.mxu0 %v10595_v31  ;;  %5218 = vmatpush.msra.mxu1 %v10603_v20 }
 0x7c3   :  { %5239 = vmatpush.msra.mxu2 %v10614_v49  ;;  %5259 = vmatpush.msra.mxu3 %v10619_v14 }
 0x7c4   :  { %5199 = vmatpush.msra.mxu0 %v10626_v45  ;;  %5219 = vmatpush.msra.mxu1 %v10631_v57 }
 0x7c5   :  { %v7757_v42 = vpop.eup %7756  ;;  %5240 = vmatpush.msra.mxu2 %v10639_v18  ;;  %5260 = vmatpush.msra.mxu3 %v10644_v25 }
 0x7c6   :  { %v4794_v30 = vmul.f32 %v7757_v42, %v4788_v6  ;;  %5200 = vmatpush.msra.mxu0 %v10649_v27  ;;  %5220 = vmatpush.msra.mxu1 %v10657_v3  ;;  %v4981_v42 = vld [vmem:[#allocation8 + $0x2] ss:$8 sm:$0xf] }
 0x7c8   :  { %4795 = vst [vmem:[#allocation5 + $0x1] sm:$0x1] %v4794_v30  ;;  %7356 = vmatmul.msk.f32.vlgmr.msrb.gmra.mxu0 %vm93_vm0, %v4794_v30  ;;  %7357 = vmatmul.msk.f32.vlgmr.msrb.gmra.mxu1 %vm93_vm0, %v4794_v30 }
 0x7c9   :  { %7358 = vmatmul.msk.f32.vlgmr.msrb.gmra.mxu2 %vm93_vm0, %v4794_v30  ;;  %7359 = vmatmul.msk.f32.vlgmr.msrb.gmra.mxu3 %vm93_vm0, %v4794_v30 }
 0x7ca   :  { %5421 = vmatpush.msrb.mxu2 %v10662_v61  ;;  %5441 = vmatpush.msrb.mxu3 %v10667_v17 }
 0x7cb   :  { %5381 = vmatpush.msrb.mxu0 %v10674_v41  ;;  %5401 = vmatpush.msrb.mxu1 %v10679_v47 }
 0x7cc   :  { %5422 = vmatpush.msrb.mxu2 %v10684_v9  ;;  %5442 = vmatpush.msrb.mxu3 %v10693_v21 }
 0x7cd   :  { %5382 = vmatpush.msrb.mxu0 %v10698_v52  ;;  %5402 = vmatpush.msrb.mxu1 %v10703_v53 }
 0x7ce   :  { %5423 = vmatpush.msrb.mxu2 %v10712_v12  ;;  %5443 = vmatpush.msrb.mxu3 %v10717_v13 }
 0x7cf   :  { %5383 = vmatpush.msrb.mxu0 %v10727_v58  ;;  %5403 = vmatpush.msrb.mxu1 %v10732_v5 }
 0x7d0   :  { %5424 = vmatpush.msrb.mxu2 %v10739_v29  ;;  %5444 = vmatpush.msrb.mxu3 %v10744_v28 }
 0x7d1   :  { %5384 = vmatpush.msrb.mxu0 %v10755_v36  ;;  %5404 = vmatpush.msrb.mxu1 %v10760_v54 }
 0x83a   :  { %v4854_v60 = vpop.f32.mrf.mxu1  ;;  %v4834_v1 = vpop.f32.mrf.mxu0 }
 0x83b   :  { %v4901_v46 = vrot.slane %v4854_v60, 7 }
 0x83d   :  { %v4904_v10 = vsel %vm288_vm1, %v4834_v1, %v4901_v46 }
 0x841   :  { %v4874_v40 = vpop.f32.mrf.mxu2  ;;  %v4894_v15 = vpop.f32.mrf.mxu3 }
 0x842   :  { %v4902_v35 = vrot.slane %v4874_v40, 6  ;;  %v4903_v33 = vrot.slane %v4894_v15, 5 }
 0x844   :  { %v4905_v8 = vsel %vm290_vm2, %v4902_v35, %v4903_v33 }
 0x845   :  { %v4906_v39 = vsel %vm292_vm3, %v4904_v10, %v4905_v8  ;;  %v5038_v44 = vpop.f32.mrf.mxu1  ;;  %v5018_v32 = vpop.f32.mrf.mxu0 }
 0x846   :  { %v4908_v38 = vadd.f32 %v4906_v39, %v4797_v11  ;;  %v5085_v43 = vrot.slane %v5038_v44, 7 }
 0x848   :  { %v7353_v24 = vmul.f32 -1.442695, %v4908_v38  ;;  %v4929_v7 = vrot.slane %v4908_v38, 1  ;;  %v4953_v62 = vrot.slane %v4908_v38, 3  ;;  %v5088_v55 = vsel %vm288_vm1, %v5018_v32, %v5085_v43 }
 0x84a   :  { %7758 = vpow2.f32 %v7353_v24  ;;  %v7354_v16 = vmul.f32 -1.442695, %v4929_v7  ;;  %v7355_v19 = vmul.f32 -1.442695, %v4953_v62  ;;  %v4950_v7 = vrot.slane %v4908_v38, 2 }
 0x84c   :  { %7760 = vpow2.f32 %v7354_v16  ;;  %v5058_v2 = vpop.f32.mrf.mxu2  ;;  %v5078_v63 = vpop.f32.mrf.mxu3 }
 0x84d   :  { %7762 = vpow2.f32 %v7355_v19  ;;  %v5086_v48 = vrot.slane %v5058_v2, 6  ;;  %v5087_v4 = vrot.slane %v5078_v63, 5 }
 0x84f   :  { %v5089_v26 = vsel %vm290_vm2, %v5086_v48, %v5087_v4 }
 0x850   :  { %v7759_v23 = vpop.eup %7758  ;;  %v5090_v6 = vsel %vm292_vm3, %v5088_v55, %v5089_v26 }
 0x851   :  { %v4912_v30 = vadd.f32 1.0, %v7759_v23  ;;  %v10883_v60 = vadd.f32 %v5090_v6, %v4981_v42 }
 0x852   :  { %v7761_v46 = vpop.eup %7760 }
 0x853   :  { %v7763_v40 = vpop.eup %7762  ;;  %7764 = vrcp.f32 %v4912_v30  ;;  %v4934_v15 = vadd.f32 1.0, %v7761_v46  ;;  %v7360_v33 = vmul.f32 -1.442695, %v10883_v60  ;;  %v5113_v1 = vrot.slane %v10883_v60, 1 }
 0x854   :  { %v10885_v35 = vadd.f32 1.0, %v7763_v40  ;;  %v5137_v10 = vrot.slane %v10883_v60, 3  ;;  %v4924_v63 = vand.u32 2147483648, %v4912_v30  ;;  %v4922_v32 = vand.u32 2147483647, %v4912_v30 }
 0x855   :  { %7766 = vrcp.f32 %v4934_v15  ;;  %v7361_v8 = vmul.f32 -1.442695, %v5113_v1  ;;  %vm4918_vm5 = vweird.f32 %v4912_v30  ;;  %v4946_v23 = vand.u32 2147483648, %v4934_v15 }
 0x856   :  { %7768 = vrcp.f32 %v10885_v35  ;;  %v7362_v11 = vmul.f32 -1.442695, %v5137_v10  ;;  %v4944_v40 = vand.u32 2147483647, %v4934_v15  ;;  %v4925_v1 = vor.u32 1.1754944e-38, %v4924_v63 }
 0x857   :  { %7770 = vpow2.f32 %v7360_v33  ;;  %vm4923_vm8 = vcmp.eq.f32.partialorder %v4922_v32, 8.507059e+37  ;;  %vm4940_vm9 = vweird.f32 %v4934_v15  ;;  %vm4964_vm12 = vweird.f32 %v10885_v35 }
 0x858   :  { %7772 = vpow2.f32 %v7361_v8  ;;  %vm4945_vm11 = vcmp.eq.f32.partialorder %v4944_v40, 8.507059e+37 }
 0x859   :  { %v7765_v39 = vpop.eup %7764  ;;  %7774 = vpow2.f32 %v7362_v11 }
 0x85a   :  { %v4914_v24 = vmul.f32 %v7765_v39, %v4912_v30  ;;  %vm4919_vm4 = vweird.f32 %v7765_v39  ;;  %7776 = vtanh.f32 %v4950_v7  ;;  %v4947_v30 = vor.u32 1.1754944e-38, %v4946_v23 }
 0x85b   :  { %v7767_v62 = vpop.eup %7766  ;;  %vm4920_vm6 = vmor %vm4918_vm5, %vm4919_vm4 }
 0x85c   :  { %v4915_v44 = vsub.f32 1.0, %v4914_v24  ;;  %v10891_v16 = vpop.eup %7768  ;;  %v4936_v19 = vmul.f32 %v7767_v62, %v4934_v15  ;;  %vm4941_vm7 = vweird.f32 %v7767_v62 }
 0x85d   :  { %v7771_v43 = vpop.eup %7770  ;;  %v4960_v48 = vmul.f32 %v10891_v16, %v10885_v35  ;;  %vm4942_vm10 = vmor %vm4940_vm9, %vm4941_vm7  ;;  %vm4965_vm13 = vweird.f32 %v10891_v16 }
 0x85e   :  { %v4916_v2 = vmul.f32 %v7765_v39, %v4915_v44  ;;  %v7773_v4 = vpop.eup %7772  ;;  %v4937_v55 = vsub.f32 1.0, %v4936_v19  ;;  %v10895_v26 = vadd.f32 1.0, %v7771_v43  ;;  %v5134_v43 = vrot.slane %v10883_v60, 2  ;;  %vm10925_vm4 = vmor %vm4964_vm12, %vm4965_vm13 }
 0x85f   :  { %v10897_v42 = vadd.f32 1.0, %v7773_v4  ;;  %v7775_v6 = vpop.eup %7774  ;;  %v4961_v10 = vsub.f32 1.0, %v4960_v48 }
 0x860   :  { %v4917_v38 = vadd.f32 %v7765_v39, %v4916_v2  ;;  %v4938_v46 = vmul.f32 %v7767_v62, %v4937_v55  ;;  %7778 = vrcp.f32 %v10895_v26  ;;  %v10901_v24 = vadd.f32 1.0, %v7775_v6  ;;  %v7777_v7 = vpop.eup %7776 }
 0x861   :  { %7780 = vrcp.f32 %v10897_v42  ;;  %v4968_v6 = vand.u32 2147483647, %v10885_v35  ;;  %vm5102_vm5 = vweird.f32 %v10895_v26  ;;  %vm5124_vm7 = vweird.f32 %v10897_v42 }
 0x862   :  { %v4921_v33 = vsel %vm4920_vm6, %v7765_v39, %v4917_v38  ;;  %v4939_v8 = vadd.f32 %v7767_v62, %v4938_v46  ;;  %7782 = vrcp.f32 %v10901_v24  ;;  %v4962_v39 = vmul.f32 %v10891_v16, %v4961_v10 }
 0x863   :  { %v4926_v11 = vsel %vm4923_vm8, %v4925_v1, %v4921_v33  ;;  %7784 = vtanh.f32 %v5134_v43  ;;  %v5106_v33 = vand.u32 2147483647, %v10895_v26  ;;  %v5130_v1 = vand.u32 2147483648, %v10897_v42 }
 0x864   :  { %v4943_v44 = vsel %vm4942_vm10, %v7767_v62, %v4939_v8  ;;  %v4975_v48 = vmul.f32 %v7777_v7, %v4926_v11  ;;  %v4970_v62 = vand.u32 2147483648, %v10885_v35  ;;  %v4963_v38 = vadd.f32 %v10891_v16, %v4962_v39 }
 0x865   :  { %v4948_v19 = vsel %vm4945_vm11, %v4947_v30, %v4943_v44  ;;  %v5128_v8 = vand.u32 2147483647, %v10897_v42  ;;  %vm5107_vm8 = vcmp.eq.f32.partialorder %v5106_v33, 8.507059e+37  ;;  %vm4969_vm10 = vcmp.eq.f32.partialorder %v4968_v6, 8.507059e+37 }
 0x866   :  { %v7779_v2 = vpop.eup %7778  ;;  %v4974_v63 = vmul.f32 %v4948_v19, %v10797_v50  ;;  %v5108_v50 = vand.u32 2147483648, %v10895_v26  ;;  %v4967_v44 = vsel %vm10925_vm4, %v10891_v16, %v4963_v38  ;;  %v4971_v19 = vor.u32 1.1754944e-38, %v4970_v62 }
 0x867   :  { %v7781_v15 = vpop.eup %7780  ;;  %v5098_v4 = vmul.f32 %v7779_v2, %v10895_v26  ;;  %vm5103_vm14 = vweird.f32 %v7779_v2  ;;  %vm5129_vm11 = vcmp.eq.f32.partialorder %v5128_v8, 8.507059e+37  ;;  %vm5148_vm13 = vweird.f32 %v10901_v24 }
 0x868   :  { %v10908_v32 = vadd.f32 %v4975_v48, %v4974_v63  ;;  %v5120_v55 = vmul.f32 %v7781_v15, %v10897_v42  ;;  %v10918_v46 = vpop.eup %7782  ;;  %vm5125_vm15 = vweird.f32 %v7781_v15  ;;  %vm5104_vm6 = vmor %vm5102_vm5, %vm5103_vm14  ;;  %v5109_v43 = vor.u32 1.1754944e-38, %v5108_v50 }
 0x869   :  { %v5099_v60 = vsub.f32 1.0, %v5098_v4  ;;  %v5144_v30 = vmul.f32 %v10918_v46, %v10901_v24  ;;  %v7785_v63 = vpop.eup %7784  ;;  %vm5126_vm9 = vmor %vm5124_vm7, %vm5125_vm15  ;;  %v5131_v4 = vor.u32 1.1754944e-38, %v5130_v1  ;;  %vm5149_vm12 = vweird.f32 %v10918_v46 }
 0x86a   :  { %v5121_v23 = vsub.f32 1.0, %v5120_v55  ;;  %7786 = vtanh.f32 %v10908_v32  ;;  %v5152_v6 = vand.u32 2147483647, %v10901_v24  ;;  %vm5150_vm14 = vmor %vm5148_vm13, %vm5149_vm12 }
 0x86b   :  { %v5100_v40 = vmul.f32 %v7779_v2, %v5099_v60  ;;  %v5145_v35 = vsub.f32 1.0, %v5144_v30 }
 0x86c   :  { %v5122_v10 = vmul.f32 %v7781_v15, %v5121_v23  ;;  %v4972_v23 = vsel %vm4969_vm10, %v4971_v19, %v4967_v44  ;;  %vm5153_vm15 = vcmp.eq.f32.partialorder %v5152_v6, 8.507059e+37 }
 0x86d   :  { %v5101_v7 = vadd.f32 %v7779_v2, %v5100_v40  ;;  %v5146_v38 = vmul.f32 %v10918_v46, %v5145_v35 }
 0x86e   :  { %v5123_v39 = vadd.f32 %v7781_v15, %v5122_v10 }
 0x86f   :  { %v5105_v48 = vsel %vm5104_vm6, %v7779_v2, %v5101_v7 }
 0x870   :  { %v7787_v55 = vpop.eup %7786  ;;  %v5110_v26 = vsel %vm5107_vm8, %v5109_v43, %v5105_v48  ;;  %v5127_v60 = vsel %vm5126_vm9, %v7781_v15, %v5123_v39  ;;  %v5147_v15 = vadd.f32 %v10918_v46, %v5146_v38 }
 0x871   :  { %v5132_v16 = vsel %vm5129_vm11, %v5131_v4, %v5127_v60  ;;  %v4978_v62 = vmul.f32 %v7787_v55, %v4972_v23  ;;  %v5159_v42 = vmul.f32 %v7785_v63, %v5110_v26 }
 0x872   :  { %v5158_v50 = vmul.f32 %v5132_v16, %v10828_v37  ;;  %v5154_v37 = vand.u32 2147483648, %v10901_v24 }
 0x873   :  { %4979 = vst [vmem:[#allocation4 + $0x5] sm:$0x1] %v4978_v62  ;;  %7363 = vmatmul.msk.f32.vlgmr.msra.gmra.mxu0 %vm93_vm0, %v4978_v62  ;;  %7364 = vmatmul.msk.f32.vlgmr.msra.gmra.mxu1 %vm93_vm0, %v4978_v62 }
 0x874   :  { %v10941_v2 = vadd.f32 %v5159_v42, %v5158_v50  ;;  %7365 = vmatmul.msk.f32.vlgmr.msra.gmra.mxu2 %vm93_vm0, %v4978_v62  ;;  %7366 = vmatmul.msk.f32.vlgmr.msra.gmra.mxu3 %vm93_vm0, %v4978_v62 }
 0x875   :  { %5605 = vmatpush.msra.mxu2 %v10556_v51  ;;  %5625 = vmatpush.msra.mxu3 %v10561_v0  ;;  %v5151_v51 = vsel %vm5150_vm14, %v10918_v46, %v5147_v15  ;;  %v5155_v0 = vor.u32 1.1754944e-38, %v5154_v37  ;;  %v5349_v46 = vld [vmem:[#allocation8 + $0x3] ss:$8 sm:$0xf] }
 0x876   :  { %7788 = vtanh.f32 %v10941_v2  ;;  %5565 = vmatpush.msra.mxu0 %v10566_v22  ;;  %5585 = vmatpush.msra.mxu1 %v10577_v59 }
 0x877   :  { %5606 = vmatpush.msra.mxu2 %v10585_v34  ;;  %5626 = vmatpush.msra.mxu3 %v10590_v56  ;;  %v5156_v59 = vsel %vm5153_vm15, %v5155_v0, %v5151_v51 }
 0x878   :  { %5566 = vmatpush.msra.mxu0 %v10595_v31  ;;  %5586 = vmatpush.msra.mxu1 %v10603_v20 }
 0x879   :  { %5607 = vmatpush.msra.mxu2 %v10614_v49  ;;  %5627 = vmatpush.msra.mxu3 %v10619_v14 }
 0x87a   :  { %5567 = vmatpush.msra.mxu0 %v10626_v45  ;;  %5587 = vmatpush.msra.mxu1 %v10631_v57 }
 0x87b   :  { %5608 = vmatpush.msra.mxu2 %v10639_v18  ;;  %5628 = vmatpush.msra.mxu3 %v10644_v25 }
 0x87c   :  { %v7789_v22 = vpop.eup %7788  ;;  %5568 = vmatpush.msra.mxu0 %v10649_v27  ;;  %5588 = vmatpush.msra.mxu1 %v10657_v3  ;;  %v5165_v27 = vld [vmem:[#allocation7 + $0x4] ss:$8 sm:$0xf] }
 0x87d   :  { %v5162_v34 = vmul.f32 %v7789_v22, %v5156_v59 }
 0x87f   :  { %5163 = vst [vmem:[#allocation5 + $0x2] sm:$0x1] %v5162_v34  ;;  %7370 = vmatmul.msk.f32.vlgmr.msrb.gmra.mxu0 %vm93_vm0, %v5162_v34  ;;  %7371 = vmatmul.msk.f32.vlgmr.msrb.gmra.mxu1 %vm93_vm0, %v5162_v34 }
 0x880   :  { %7372 = vmatmul.msk.f32.vlgmr.msrb.gmra.mxu2 %vm93_vm0, %v5162_v34  ;;  %7373 = vmatmul.msk.f32.vlgmr.msrb.gmra.mxu3 %vm93_vm0, %v5162_v34 }
 0x881   :  { %5789 = vmatpush.msrb.mxu2 %v10662_v61  ;;  %5809 = vmatpush.msrb.mxu3 %v10667_v17 }
 0x882   :  { %5749 = vmatpush.msrb.mxu0 %v10674_v41  ;;  %5769 = vmatpush.msrb.mxu1 %v10679_v47 }
 0x883   :  { %5790 = vmatpush.msrb.mxu2 %v10684_v9  ;;  %5810 = vmatpush.msrb.mxu3 %v10693_v21 }
 0x884   :  { %5750 = vmatpush.msrb.mxu0 %v10698_v52  ;;  %5770 = vmatpush.msrb.mxu1 %v10703_v53 }
 0x885   :  { %5791 = vmatpush.msrb.mxu2 %v10712_v12  ;;  %5811 = vmatpush.msrb.mxu3 %v10717_v13 }
 0x886   :  { %5751 = vmatpush.msrb.mxu0 %v10727_v58  ;;  %5771 = vmatpush.msrb.mxu1 %v10732_v5 }
 0x887   :  { %5792 = vmatpush.msrb.mxu2 %v10739_v29  ;;  %5812 = vmatpush.msrb.mxu3 %v10744_v28 }
 0x888   :  { %5752 = vmatpush.msrb.mxu0 %v10755_v36  ;;  %5772 = vmatpush.msrb.mxu1 %v10760_v54 }
 0x8f0   :  { %v5222_v56 = vpop.f32.mrf.mxu1  ;;  %v5202_v57 = vpop.f32.mrf.mxu0 }
 0x8f1   :  { %v5269_v31 = vrot.slane %v5222_v56, 7 }
 0x8f3   :  { %v5272_v18 = vsel %vm288_vm1, %v5202_v57, %v5269_v31 }
 0x8f7   :  { %v5242_v20 = vpop.f32.mrf.mxu2  ;;  %v5262_v49 = vpop.f32.mrf.mxu3 }
 0x8f8   :  { %v5270_v14 = vrot.slane %v5242_v20, 6  ;;  %v5271_v45 = vrot.slane %v5262_v49, 5 }
 0x8fa   :  { %v5273_v25 = vsel %vm290_vm2, %v5270_v14, %v5271_v45 }
 0x8fb   :  { %v5274_v3 = vsel %vm292_vm3, %v5272_v18, %v5273_v25 }
 0x8fc   :  { %v5276_v61 = vadd.f32 %v5274_v3, %v5165_v27  ;;  %v5406_v9 = vpop.f32.mrf.mxu1  ;;  %v5386_v29 = vpop.f32.mrf.mxu0 }
 0x8fd   :  { %v5453_v53 = vrot.slane %v5406_v9, 7 }
 0x8fe   :  { %v7367_v17 = vmul.f32 -1.442695, %v5276_v61  ;;  %v5297_v41 = vrot.slane %v5276_v61, 1  ;;  %v5321_v47 = vrot.slane %v5276_v61, 3  ;;  %v5318_v63 = vrot.slane %v5276_v61, 2 }
 0x8ff   :  { %v5456_v36 = vsel %vm288_vm1, %v5386_v29, %v5453_v53 }
 0x900   :  { %7790 = vpow2.f32 %v7367_v17  ;;  %v7368_v21 = vmul.f32 -1.442695, %v5297_v41  ;;  %v7369_v52 = vmul.f32 -1.442695, %v5321_v47 }
 0x902   :  { %7792 = vpow2.f32 %v7368_v21 }
 0x903   :  { %7794 = vpow2.f32 %v7369_v52  ;;  %v5426_v12 = vpop.f32.mrf.mxu2  ;;  %v5446_v13 = vpop.f32.mrf.mxu3 }
 0x904   :  { %v5454_v58 = vrot.slane %v5426_v12, 6  ;;  %v5455_v5 = vrot.slane %v5446_v13, 5 }
 0x906   :  { %v7791_v28 = vpop.eup %7790  ;;  %v5457_v54 = vsel %vm290_vm2, %v5454_v58, %v5455_v5 }
 0x907   :  { %v5280_v24 = vadd.f32 1.0, %v7791_v28  ;;  %v5458_v40 = vsel %vm292_vm3, %v5456_v36, %v5457_v54 }
 0x908   :  { %v7793_v33 = vpop.eup %7792  ;;  %v10994_v1 = vadd.f32 %v5458_v40, %v5349_v46 }
 0x909   :  { %v7795_v10 = vpop.eup %7794  ;;  %7796 = vrcp.f32 %v5280_v24  ;;  %v5302_v8 = vadd.f32 1.0, %v7793_v33  ;;  %v5292_v16 = vand.u32 2147483648, %v5280_v24  ;;  %v5290_v50 = vand.u32 2147483647, %v5280_v24 }
 0x90a   :  { %v10996_v11 = vadd.f32 1.0, %v7795_v10  ;;  %v7374_v30 = vmul.f32 -1.442695, %v10994_v1  ;;  %v5481_v7 = vrot.slane %v10994_v1, 1  ;;  %v5505_v44 = vrot.slane %v10994_v1, 3 }
 0x90b   :  { %7798 = vrcp.f32 %v5302_v8  ;;  %vm5286_vm5 = vweird.f32 %v5280_v24  ;;  %v5314_v6 = vand.u32 2147483648, %v5302_v8  ;;  %v5312_v59 = vand.u32 2147483647, %v5302_v8 }
 0x90c   :  { %7800 = vrcp.f32 %v10996_v11  ;;  %v7375_v19 = vmul.f32 -1.442695, %v5481_v7  ;;  %v7376_v43 = vmul.f32 -1.442695, %v5505_v44  ;;  %v5293_v56 = vor.u32 1.1754944e-38, %v5292_v16 }
 0x90d   :  { %7802 = vpow2.f32 %v7374_v30  ;;  %vm5291_vm8 = vcmp.eq.f32.partialorder %v5290_v50, 8.507059e+37  ;;  %vm5308_vm9 = vweird.f32 %v5302_v8  ;;  %v5315_v14 = vor.u32 1.1754944e-38, %v5314_v6 }
 0x90e   :  { %7804 = vpow2.f32 %v7375_v19  ;;  %vm5313_vm11 = vcmp.eq.f32.partialorder %v5312_v59, 8.507059e+37  ;;  %v5502_v27 = vrot.slane %v10994_v1, 2  ;;  %vm5332_vm12 = vweird.f32 %v10996_v11 }
 0x90f   :  { %v7797_v39 = vpop.eup %7796  ;;  %7806 = vpow2.f32 %v7376_v43  ;;  %v5338_v53 = vand.u32 2147483648, %v10996_v11  ;;  %v5336_v5 = vand.u32 2147483647, %v10996_v11 }
 0x910   :  { %v5282_v35 = vmul.f32 %v7797_v39, %v5280_v24  ;;  %vm5287_vm4 = vweird.f32 %v7797_v39  ;;  %7808 = vtanh.f32 %v5318_v63 }
 0x911   :  { %v7799_v48 = vpop.eup %7798  ;;  %vm5288_vm6 = vmor %vm5286_vm5, %vm5287_vm4 }
 0x912   :  { %v5283_v4 = vsub.f32 1.0, %v5282_v35  ;;  %v11002_v55 = vpop.eup %7800  ;;  %v5304_v26 = vmul.f32 %v7799_v48, %v5302_v8  ;;  %vm5309_vm7 = vweird.f32 %v7799_v48  ;;  %v5339_v8 = vor.u32 1.1754944e-38, %v5338_v53 }
 0x913   :  { %v7803_v60 = vpop.eup %7802  ;;  %v5328_v62 = vmul.f32 %v11002_v55, %v10996_v11  ;;  %vm5310_vm10 = vmor %vm5308_vm9, %vm5309_vm7  ;;  %vm5333_vm13 = vweird.f32 %v11002_v55 }
 0x914   :  { %v5284_v23 = vmul.f32 %v7797_v39, %v5283_v4  ;;  %v7805_v38 = vpop.eup %7804  ;;  %v5305_v42 = vsub.f32 1.0, %v5304_v26  ;;  %v11006_v15 = vadd.f32 1.0, %v7803_v60  ;;  %vm11034_vm4 = vmor %vm5332_vm12, %vm5333_vm13 }
 0x915   :  { %v11008_v51 = vadd.f32 1.0, %v7805_v38  ;;  %v7807_v0 = vpop.eup %7806  ;;  %v5329_v31 = vsub.f32 1.0, %v5328_v62 }
 0x916   :  { %v5285_v37 = vadd.f32 %v7797_v39, %v5284_v23  ;;  %v5306_v22 = vmul.f32 %v7799_v48, %v5305_v42  ;;  %7810 = vrcp.f32 %v11006_v15  ;;  %v11012_v45 = vadd.f32 1.0, %v7807_v0  ;;  %v7809_v57 = vpop.eup %7808 }
 0x917   :  { %7812 = vrcp.f32 %v11008_v51  ;;  %v5330_v3 = vmul.f32 %v11002_v55, %v5329_v31  ;;  %v5474_v36 = vand.u32 2147483647, %v11006_v15  ;;  %v5498_v54 = vand.u32 2147483648, %v11008_v51 }
 0x918   :  { %v5289_v34 = vsel %vm5288_vm6, %v7797_v39, %v5285_v37  ;;  %v5307_v20 = vadd.f32 %v7799_v48, %v5306_v22  ;;  %7814 = vrcp.f32 %v11012_v45  ;;  %v5496_v46 = vand.u32 2147483647, %v11008_v51 }
 0x919   :  { %v5294_v49 = vsel %vm5291_vm8, %v5293_v56, %v5289_v34  ;;  %7816 = vtanh.f32 %v5502_v27  ;;  %v5331_v13 = vadd.f32 %v11002_v55, %v5330_v3  ;;  %vm5470_vm5 = vweird.f32 %v11006_v15 }
 0x91a   :  { %v5311_v18 = vsel %vm5310_vm10, %v7799_v48, %v5307_v20  ;;  %v5343_v41 = vmul.f32 %v7809_v57, %v5294_v49  ;;  %vm5492_vm7 = vweird.f32 %v11008_v51  ;;  %vm5475_vm8 = vcmp.eq.f32.partialorder %v5474_v36, 8.507059e+37 }
 0x91b   :  { %v5316_v25 = vsel %vm5313_vm11, %v5315_v14, %v5311_v18  ;;  %v5335_v10 = vsel %vm11034_vm4, %v11002_v55, %v5331_v13  ;;  %v5499_v43 = vor.u32 1.1754944e-38, %v5498_v54  ;;  %vm5337_vm10 = vcmp.eq.f32.partialorder %v5336_v5, 8.507059e+37  ;;  %v5533_v14 = vld [vmem:[#allocation7 + $0x3] ss:$8 sm:$0xf] }
 0x91c   :  { %v7811_v61 = vpop.eup %7810  ;;  %v5342_v17 = vmul.f32 %v5316_v25, %v10908_v32  ;;  %v5476_v32 = vand.u32 2147483648, %v11006_v15  ;;  %vm5497_vm11 = vcmp.eq.f32.partialorder %v5496_v46, 8.507059e+37  ;;  %v5340_v48 = vsel %vm5337_vm10, %v5339_v8, %v5335_v10  ;;  %v11085_v10 = vld [vmem:[%s11845_s9 + $0x70] sm:$0xff] }
 0x91d   :  { %v7813_v47 = vpop.eup %7812  ;;  %v5466_v9 = vmul.f32 %v7811_v61, %v11006_v15  ;;  %vm5471_vm14 = vweird.f32 %v7811_v61  ;;  %v5522_v38 = vand.u32 2147483648, %v11012_v45  ;;  %vm5516_vm13 = vweird.f32 %v11012_v45 }
 0x91e   :  { %v11019_v21 = vadd.f32 %v5343_v41, %v5342_v17  ;;  %v5488_v52 = vmul.f32 %v7813_v47, %v11008_v51  ;;  %v7815_v29 = vpop.eup %7814  ;;  %vm5493_vm15 = vweird.f32 %v7813_v47  ;;  %vm5472_vm6 = vmor %vm5470_vm5, %vm5471_vm14  ;;  %v5477_v30 = vor.u32 1.1754944e-38, %v5476_v32 }
 0x91f   :  { %v5467_v12 = vsub.f32 1.0, %v5466_v9  ;;  %v5512_v33 = vmul.f32 %v7815_v29, %v11012_v45  ;;  %v7817_v44 = vpop.eup %7816  ;;  %vm5494_vm9 = vmor %vm5492_vm7, %vm5493_vm15  ;;  %vm5517_vm12 = vweird.f32 %v7815_v29  ;;  %v5523_v42 = vor.u32 1.1754944e-38, %v5522_v38 }
 0x920   :  { %v5489_v58 = vsub.f32 1.0, %v5488_v52  ;;  %7818 = vtanh.f32 %v11019_v21  ;;  %vm5518_vm14 = vmor %vm5516_vm13, %vm5517_vm12 }
 0x921   :  { %v5468_v28 = vmul.f32 %v7811_v61, %v5467_v12  ;;  %v5513_v11 = vsub.f32 1.0, %v5512_v33 }
 0x922   :  { %v5490_v24 = vmul.f32 %v7813_v47, %v5489_v58 }
 0x923   :  { %v5469_v1 = vadd.f32 %v7811_v61, %v5468_v28  ;;  %v5514_v26 = vmul.f32 %v7815_v29, %v5513_v11  ;;  %v11105_v11 = vld [vmem:[%s11845_s9 + $0x68] sm:$0xff] }
 0x924   :  { %v5491_v7 = vadd.f32 %v7813_v47, %v5490_v24 }
 0x925   :  { %v5473_v19 = vsel %vm5472_vm6, %v7811_v61, %v5469_v1  ;;  %v5515_v62 = vadd.f32 %v7815_v29, %v5514_v26 }
 0x926   :  { %v7819_v39 = vpop.eup %7818  ;;  %v5478_v35 = vsel %vm5475_vm8, %v5477_v30, %v5473_v19  ;;  %v5495_v63 = vsel %vm5494_vm9, %v7813_v47, %v5491_v7  ;;  %v11092_v30 = vld [vmem:[%s11845_s9 + $0x78] sm:$0xff]  ;;  %v11097_v7 = vld [vmem:[%s11845_s9 + $0x60] sm:$0xff] }
 0x927   :  { %v5500_v4 = vsel %vm5497_vm11, %v5499_v43, %v5495_v63  ;;  %v5346_v55 = vmul.f32 %v7819_v39, %v5340_v48  ;;  %v5527_v23 = vmul.f32 %v7817_v44, %v5478_v35  ;;  %v5519_v50 = vsel %vm5518_vm14, %v7815_v29, %v5515_v62  ;;  %v5717_v29 = vld [vmem:[#allocation8 + $0x4] ss:$8 sm:$0xf] }
 0x928   :  { %v5526_v60 = vmul.f32 %v5500_v4, %v10941_v2  ;;  %v5520_v2 = vand.u32 2147483647, %v11012_v45  ;;  %v11110_v44 = vld [vmem:[%s11845_s9 + $0x50] sm:$0xff]  ;;  %v11115_v19 = vld [vmem:[%s11845_s9 + $0x58] sm:$0xff]  ;;  %v11123_v35 = vld [vmem:[%s11845_s9 + $0x40] sm:$0xff] }
 0x929   :  { %5347 = vst [vmem:[#allocation4 + $0x4] sm:$0x1] %v5346_v55  ;;  %7377 = vmatmul.msk.f32.vlgmr.msra.gmra.mxu0 %vm93_vm0, %v5346_v55  ;;  %7378 = vmatmul.msk.f32.vlgmr.msra.gmra.mxu1 %vm93_vm0, %v5346_v55  ;;  %v11128_v63 = vld [vmem:[%s11845_s9 + $0x48] sm:$0xff]  ;;  %v11135_v48 = vld [vmem:[%s11845_s9 + $0x30] sm:$0xff]  ;;  %v11140_v4 = vld [vmem:[%s11845_s9 + $0x38] sm:$0xff] }
 0x92a   :  { %v11048_v16 = vadd.f32 %v5527_v23, %v5526_v60  ;;  %7379 = vmatmul.msk.f32.vlgmr.msra.gmra.mxu2 %vm93_vm0, %v5346_v55  ;;  %7380 = vmatmul.msk.f32.vlgmr.msra.gmra.mxu3 %vm93_vm0, %v5346_v55  ;;  %vm5521_vm15 = vcmp.eq.f32.partialorder %v5520_v2, 8.507059e+37  ;;  %v11145_v55 = vld [vmem:[%s11845_s9 + $0x20] sm:$0xff]  ;;  %v11154_v60 = vld [vmem:[%s11845_s9 + $0x28] sm:$0xff]  ;;  %v11159_v23 = vld [vmem:[%s11845_s9 + $0x10] sm:$0xff] }
 0x92b   :  { %v5524_v37 = vsel %vm5521_vm15, %v5523_v42, %v5519_v50  ;;  %5973 = vmatpush.msra.mxu2 %v11085_v10  ;;  %5993 = vmatpush.msra.mxu3 %v11092_v30  ;;  %v11164_v62 = vld [vmem:[%s11845_s9 + $0x18] sm:$0xff]  ;;  %v11173_v2 = vld [vmem:[%s11845_s9] sm:$0xff]  ;;  %v11178_v50 = vld [vmem:[%s11845_s9 + $0x8] sm:$0xff] }
 0x92c   :  { %7820 = vtanh.f32 %v11048_v16  ;;  %5933 = vmatpush.msra.mxu0 %v11097_v7  ;;  %5953 = vmatpush.msra.mxu1 %v11105_v11  ;;  %v11183_v42 = vld [vmem:[%s11851_s15 + $0x70] sm:$0xff] }
 0x92d   :  { %5974 = vmatpush.msra.mxu2 %v11110_v44  ;;  %5994 = vmatpush.msra.mxu3 %v11115_v19 }
 0x92e   :  { %5934 = vmatpush.msra.mxu0 %v11123_v35  ;;  %5954 = vmatpush.msra.mxu1 %v11128_v63 }
 0x92f   :  { %5975 = vmatpush.msra.mxu2 %v11135_v48  ;;  %5995 = vmatpush.msra.mxu3 %v11140_v4 }
 0x930   :  { %5935 = vmatpush.msra.mxu0 %v11145_v55  ;;  %5955 = vmatpush.msra.mxu1 %v11154_v60 }
 0x931   :  { %5976 = vmatpush.msra.mxu2 %v11159_v23  ;;  %5996 = vmatpush.msra.mxu3 %v11164_v62 }
 0x932   :  { %v7821_v15 = vpop.eup %7820  ;;  %5936 = vmatpush.msra.mxu0 %v11173_v2  ;;  %5956 = vmatpush.msra.mxu1 %v11178_v50 }
 0x933   :  { %v5530_v6 = vmul.f32 %v7821_v15, %v5524_v37  ;;  %v11191_v37 = vld [vmem:[%s11851_s15 + $0x78] sm:$0xff] }
 0x935   :  { %5531 = vst [vmem:[#allocation5 + $0x3] sm:$0x1] %v5530_v6  ;;  %7384 = vmatmul.msk.f32.vlgmr.msrb.gmra.mxu0 %vm93_vm0, %v5530_v6  ;;  %7385 = vmatmul.msk.f32.vlgmr.msrb.gmra.mxu1 %vm93_vm0, %v5530_v6 }
 0x936   :  { %7386 = vmatmul.msk.f32.vlgmr.msrb.gmra.mxu2 %vm93_vm0, %v5530_v6  ;;  %7387 = vmatmul.msk.f32.vlgmr.msrb.gmra.mxu3 %vm93_vm0, %v5530_v6  ;;  %v11196_v6 = vld [vmem:[%s11851_s15 + $0x60] sm:$0xff] }
 0x937   :  { %6157 = vmatpush.msrb.mxu2 %v11183_v42  ;;  %6177 = vmatpush.msrb.mxu3 %v11191_v37 }
 0x938   :  { %6117 = vmatpush.msrb.mxu0 %v11196_v6 }
 0x9a6   :  { %v5590_v51 = vpop.f32.mrf.mxu1  ;;  %v5570_v31 = vpop.f32.mrf.mxu0 }
 0x9a7   :  { %v5637_v0 = vrot.slane %v5590_v51, 7 }
 0x9a9   :  { %v5640_v20 = vsel %vm288_vm1, %v5570_v31, %v5637_v0  ;;  %v11221_v31 = vld [vmem:[%s11851_s15 + $0x58] sm:$0xff] }
 0x9aa   :  { %6178 = vmatpush.msrb.mxu3 %v11221_v31 }
 0x9ad   :  { %v5610_v22 = vpop.f32.mrf.mxu2  ;;  %v5630_v59 = vpop.f32.mrf.mxu3 }
 0x9ae   :  { %v5638_v34 = vrot.slane %v5610_v22, 6  ;;  %v5639_v56 = vrot.slane %v5630_v59, 5  ;;  %v11205_v22 = vld [vmem:[%s11851_s15 + $0x68] sm:$0xff]  ;;  %v11210_v59 = vld [vmem:[%s11851_s15 + $0x50] sm:$0xff] }
 0x9af   :  { %6137 = vmatpush.msrb.mxu1 %v11205_v22  ;;  %6158 = vmatpush.msrb.mxu2 %v11210_v59 }
 0x9b0   :  { %v5641_v49 = vsel %vm290_vm2, %v5638_v34, %v5639_v56 }
 0x9b1   :  { %v5642_v45 = vsel %vm292_vm3, %v5640_v20, %v5641_v49  ;;  %v11226_v20 = vld [vmem:[%s11851_s15 + $0x40] sm:$0xff] }
 0x9b2   :  { %v11063_v57 = vadd.f32 %v5642_v45, %v5533_v14  ;;  %v5774_v3 = vpop.f32.mrf.mxu1  ;;  %v5754_v12 = vpop.f32.mrf.mxu0  ;;  %6118 = vmatpush.msrb.mxu0 %v11226_v20 }
 0x9b3   :  { %v5821_v41 = vrot.slane %v5774_v3, 7 }
 0x9b4   :  { %v7381_v18 = vmul.f32 -1.442695, %v11063_v57  ;;  %v5665_v25 = vrot.slane %v11063_v57, 1  ;;  %v5689_v27 = vrot.slane %v11063_v57, 3  ;;  %v5686_v15 = vrot.slane %v11063_v57, 2 }
 0x9b5   :  { %v5824_v32 = vsel %vm288_vm1, %v5754_v12, %v5821_v41  ;;  %v11253_v41 = vld [vmem:[%s11851_s15 + $0x38] sm:$0xff]  ;;  %v11270_v12 = vld [vmem:[%s11851_s15 + $0x28] sm:$0xff] }
 0x9b6   :  { %7822 = vpow2.f32 %v7381_v18  ;;  %v7382_v61 = vmul.f32 -1.442695, %v5665_v25  ;;  %v7383_v17 = vmul.f32 -1.442695, %v5689_v27  ;;  %v11238_v18 = vld [vmem:[%s11851_s15 + $0x48] sm:$0xff]  ;;  %v11243_v25 = vld [vmem:[%s11851_s15 + $0x30] sm:$0xff]  ;;  %6179 = vmatpush.msrb.mxu3 %v11253_v41 }
 0x9b7   :  { %6138 = vmatpush.msrb.mxu1 %v11238_v18  ;;  %6159 = vmatpush.msrb.mxu2 %v11243_v25 }
 0x9b8   :  { %7824 = vpow2.f32 %v7382_v61 }
 0x9b9   :  { %7826 = vpow2.f32 %v7383_v17  ;;  %v5794_v47 = vpop.f32.mrf.mxu2  ;;  %v5814_v9 = vpop.f32.mrf.mxu3  ;;  %6139 = vmatpush.msrb.mxu1 %v11270_v12 }
 0x9ba   :  { %v5822_v52 = vrot.slane %v5794_v47, 6  ;;  %v5823_v53 = vrot.slane %v5814_v9, 5  ;;  %v11258_v47 = vld [vmem:[%s11851_s15 + $0x20] sm:$0xff] }
 0x9bb   :  { %6119 = vmatpush.msrb.mxu0 %v11258_v47 }
 0x9bc   :  { %v7823_v13 = vpop.eup %7822  ;;  %v5825_v58 = vsel %vm290_vm2, %v5822_v52, %v5823_v53 }
 0x9bd   :  { %v11070_v5 = vadd.f32 1.0, %v7823_v13  ;;  %v5826_v28 = vsel %vm292_vm3, %v5824_v32, %v5825_v58  ;;  %v11275_v13 = vld [vmem:[%s11851_s15 + $0x10] sm:$0xff] }
 0x9be   :  { %v7825_v36 = vpop.eup %7824  ;;  %v11073_v54 = vadd.f32 %v5826_v28, %v5717_v29  ;;  %v11292_v28 = vld [vmem:[%s11851_s15 + $0x18] sm:$0xff]  ;;  %6160 = vmatpush.msrb.mxu2 %v11275_v13 }
 0x9bf   :  { %v7827_v24 = vpop.eup %7826  ;;  %7828 = vrcp.f32 %v11070_v5  ;;  %v11076_v46 = vadd.f32 1.0, %v7825_v36  ;;  %v5660_v45 = vand.u32 2147483648, %v11070_v5  ;;  %v5658_v3 = vand.u32 2147483647, %v11070_v5  ;;  %v11297_v36 = vld [vmem:[%s11851_s15] sm:$0xff]  ;;  %6180 = vmatpush.msrb.mxu3 %v11292_v28 }
 0x9c0   :  { %v11078_v40 = vadd.f32 1.0, %v7827_v24  ;;  %v7388_v33 = vmul.f32 -1.442695, %v11073_v54  ;;  %v5849_v1 = vrot.slane %v11073_v54, 1  ;;  %v5873_v8 = vrot.slane %v11073_v54, 3  ;;  %6120 = vmatpush.msrb.mxu0 %v11297_v36 }
 0x9c1   :  { %7830 = vrcp.f32 %v11076_v46  ;;  %vm5654_vm5 = vweird.f32 %v11070_v5  ;;  %v5682_v52 = vand.u32 2147483648, %v11076_v46  ;;  %v5680_v29 = vand.u32 2147483647, %v11076_v46 }
 0x9c2   :  { %7832 = vrcp.f32 %v11078_v40  ;;  %v7389_v43 = vmul.f32 -1.442695, %v5849_v1  ;;  %v7390_v39 = vmul.f32 -1.442695, %v5873_v8  ;;  %v11308_v8 = vld [vmem:[%s11851_s15 + $0x8] sm:$0xff]  ;;  %vm5659_vm8 = vcmp.eq.f32.partialorder %v5658_v3, 8.507059e+37 }
 0x9c3   :  { %7834 = vpow2.f32 %v7388_v33  ;;  %v5661_v33 = vor.u32 1.1754944e-38, %v5660_v45  ;;  %vm5676_vm9 = vweird.f32 %v11076_v46  ;;  %vm5681_vm11 = vcmp.eq.f32.partialorder %v5680_v29, 8.507059e+37  ;;  %6140 = vmatpush.msrb.mxu1 %v11308_v8 }
 0x9c4   :  { %7836 = vpow2.f32 %v7389_v43  ;;  %vm5700_vm12 = vweird.f32 %v11078_v40  ;;  %v5704_v58 = vand.u32 2147483647, %v11078_v40 }
 0x9c5   :  { %v11147_v26 = vpop.eup %7828  ;;  %7838 = vpow2.f32 %v7390_v39 }
 0x9c6   :  { %v5650_v38 = vmul.f32 %v11147_v26, %v11070_v5  ;;  %vm5655_vm4 = vweird.f32 %v11147_v26  ;;  %7840 = vtanh.f32 %v5686_v15 }
 0x9c7   :  { %v11198_v51 = vpop.eup %7830  ;;  %vm11279_vm6 = vmor %vm5654_vm5, %vm5655_vm4 }
 0x9c8   :  { %v5651_v0 = vsub.f32 1.0, %v5650_v38  ;;  %v11212_v34 = vpop.eup %7832  ;;  %v5672_v56 = vmul.f32 %v11198_v51, %v11076_v46  ;;  %vm5677_vm7 = vweird.f32 %v11198_v51 }
 0x9c9   :  { %v7835_v49 = vpop.eup %7834  ;;  %v5696_v57 = vmul.f32 %v11212_v34, %v11078_v40  ;;  %vm5678_vm10 = vmor %vm5676_vm9, %vm5677_vm7  ;;  %vm5701_vm13 = vweird.f32 %v11212_v34 }
 0x9ca   :  { %v5652_v14 = vmul.f32 %v11147_v26, %v5651_v0  ;;  %v7837_v27 = vpop.eup %7836  ;;  %v5673_v61 = vsub.f32 1.0, %v5672_v56  ;;  %v11246_v17 = vadd.f32 1.0, %v7835_v49  ;;  %v5870_v56 = vrot.slane %v11073_v54, 2  ;;  %vm11344_vm4 = vmor %vm5700_vm12, %vm5701_vm13 }
 0x9cb   :  { %v11263_v53 = vadd.f32 1.0, %v7837_v27  ;;  %v7839_v32 = vpop.eup %7838  ;;  %v5697_v1 = vsub.f32 1.0, %v5696_v57 }
 0x9cc   :  { %v5653_v9 = vadd.f32 %v11147_v26, %v5652_v14  ;;  %v5674_v5 = vmul.f32 %v11198_v51, %v5673_v61  ;;  %7842 = vrcp.f32 %v11246_v17  ;;  %v11316_v38 = vadd.f32 1.0, %v7839_v32  ;;  %v7841_v15 = vpop.eup %7840 }
 0x9cd   :  { %7844 = vrcp.f32 %v11263_v53  ;;  %v5698_v49 = vmul.f32 %v11212_v34, %v5697_v1  ;;  %vm5838_vm5 = vweird.f32 %v11246_v17  ;;  %vm5860_vm7 = vweird.f32 %v11263_v53 }
 0x9ce   :  { %v5657_v24 = vsel %vm11279_vm6, %v11147_v26, %v5653_v9  ;;  %v5675_v43 = vadd.f32 %v11198_v51, %v5674_v5  ;;  %v5683_v26 = vor.u32 1.1754944e-38, %v5682_v52  ;;  %7846 = vrcp.f32 %v11316_v38 }
 0x9cf   :  { %v5662_v39 = vsel %vm5659_vm8, %v5661_v33, %v5657_v24  ;;  %v5706_v9 = vand.u32 2147483648, %v11078_v40  ;;  %7848 = vtanh.f32 %v5870_v56  ;;  %v5699_v52 = vadd.f32 %v11212_v34, %v5698_v49 }
 0x9d0   :  { %v5679_v0 = vsel %vm5678_vm10, %v11198_v51, %v5675_v43  ;;  %v5711_v57 = vmul.f32 %v7841_v15, %v5662_v39  ;;  %v5842_v24 = vand.u32 2147483647, %v11246_v17  ;;  %v5866_v33 = vand.u32 2147483648, %v11263_v53 }
 0x9d1   :  { %v5684_v46 = vsel %vm5681_vm11, %v5683_v26, %v5679_v0  ;;  %v5864_v43 = vand.u32 2147483647, %v11263_v53  ;;  %v5703_v0 = vsel %vm11344_vm4, %v11212_v34, %v5699_v52  ;;  %vm5705_vm10 = vcmp.eq.f32.partialorder %v5704_v58, 8.507059e+37 }
 0x9d2   :  { %v7843_v14 = vpop.eup %7842  ;;  %v5710_v45 = vmul.f32 %v5684_v46, %v11019_v21  ;;  %v5844_v21 = vand.u32 2147483648, %v11246_v17  ;;  %v5707_v46 = vor.u32 1.1754944e-38, %v5706_v9  ;;  %vm5843_vm8 = vcmp.eq.f32.partialorder %v5842_v24, 8.507059e+37 }
 0x9d3   :  { %v7845_v27 = vpop.eup %7844  ;;  %v5834_v3 = vmul.f32 %v7843_v14, %v11246_v17  ;;  %vm5839_vm14 = vweird.f32 %v7843_v14  ;;  %vm5865_vm11 = vcmp.eq.f32.partialorder %v5864_v43, 8.507059e+37  ;;  %vm5884_vm13 = vweird.f32 %v11316_v38 }
 0x9d4   :  { %v11327_v61 = vadd.f32 %v5711_v57, %v5710_v45  ;;  %v5856_v51 = vmul.f32 %v7845_v27, %v11263_v53  ;;  %v11337_v5 = vpop.eup %7846  ;;  %vm5861_vm15 = vweird.f32 %v7845_v27  ;;  %vm5840_vm6 = vmor %vm5838_vm5, %vm5839_vm14  ;;  %v5845_v56 = vor.u32 1.1754944e-38, %v5844_v21 }
 0x9d5   :  { %v5835_v54 = vsub.f32 1.0, %v5834_v3  ;;  %v5880_v26 = vmul.f32 %v11337_v5, %v11316_v38  ;;  %v7849_v45 = vpop.eup %7848  ;;  %vm5862_vm9 = vmor %vm5860_vm7, %vm5861_vm15  ;;  %v5867_v3 = vor.u32 1.1754944e-38, %v5866_v33  ;;  %vm5885_vm12 = vweird.f32 %v11337_v5 }
 0x9d6   :  { %v5857_v32 = vsub.f32 1.0, %v5856_v51  ;;  %7850 = vtanh.f32 %v11327_v61  ;;  %v5888_v58 = vand.u32 2147483647, %v11316_v38  ;;  %vm5886_vm14 = vmor %vm5884_vm13, %vm5885_vm12 }
 0x9d7   :  { %v5836_v29 = vmul.f32 %v7843_v14, %v5835_v54  ;;  %v5881_v40 = vsub.f32 1.0, %v5880_v26 }
 0x9d8   :  { %v5858_v1 = vmul.f32 %v7845_v27, %v5857_v32  ;;  %v5708_v32 = vsel %vm5705_vm10, %v5707_v46, %v5703_v0  ;;  %vm5889_vm15 = vcmp.eq.f32.partialorder %v5888_v58, 8.507059e+37 }
 0x9d9   :  { %v5837_v15 = vadd.f32 %v7843_v14, %v5836_v29  ;;  %v5882_v52 = vmul.f32 %v11337_v5, %v5881_v40  ;;  %v5901_v40 = vld [vmem:[#allocation7 + $0x2] ss:$8 sm:$0xf] }
 0x9da   :  { %v5859_v49 = vadd.f32 %v7845_v27, %v5858_v1 }
 0x9db   :  { %v5841_v57 = vsel %vm5840_vm6, %v7843_v14, %v5837_v15 }
 0x9dc   :  { %v7851_v51 = vpop.eup %7850  ;;  %v5846_v17 = vsel %vm5843_vm8, %v5845_v56, %v5841_v57  ;;  %v5863_v54 = vsel %vm5862_vm9, %v7845_v27, %v5859_v49  ;;  %v5883_v27 = vadd.f32 %v11337_v5, %v5882_v52 }
 0x9dd   :  { %v5868_v34 = vsel %vm5865_vm11, %v5867_v3, %v5863_v54  ;;  %v5714_v9 = vmul.f32 %v7851_v51, %v5708_v32  ;;  %v5895_v53 = vmul.f32 %v7849_v45, %v5846_v17 }
 0x9de   :  { %v5894_v21 = vmul.f32 %v5868_v34, %v11048_v16  ;;  %v5890_v16 = vand.u32 2147483648, %v11316_v38  ;;  %v5887_v29 = vsel %vm5886_vm14, %v11337_v5, %v5883_v27 }
 0x9df   :  { %5715 = vst [vmem:[#allocation4 + $0x3] sm:$0x1] %v5714_v9  ;;  %7391 = vmatmul.msk.f32.vlgmr.msra.gmra.mxu0 %vm93_vm0, %v5714_v9  ;;  %7392 = vmatmul.msk.f32.vlgmr.msra.gmra.mxu1 %vm93_vm0, %v5714_v9 }
 0x9e0   :  { %v11360_v14 = vadd.f32 %v5895_v53, %v5894_v21  ;;  %7393 = vmatmul.msk.f32.vlgmr.msra.gmra.mxu2 %vm93_vm0, %v5714_v9  ;;  %7394 = vmatmul.msk.f32.vlgmr.msra.gmra.mxu3 %vm93_vm0, %v5714_v9  ;;  %v5891_v24 = vor.u32 1.1754944e-38, %v5890_v16 }
 0x9e1   :  { %6341 = vmatpush.msra.mxu2 %v11085_v10  ;;  %6361 = vmatpush.msra.mxu3 %v11092_v30 }
 0x9e2   :  { %7852 = vtanh.f32 %v11360_v14  ;;  %6301 = vmatpush.msra.mxu0 %v11097_v7  ;;  %6321 = vmatpush.msra.mxu1 %v11105_v11  ;;  %v5892_v33 = vsel %vm5889_vm15, %v5891_v24, %v5887_v29 }
 0x9e3   :  { %6342 = vmatpush.msra.mxu2 %v11110_v44  ;;  %6362 = vmatpush.msra.mxu3 %v11115_v19 }
 0x9e4   :  { %6302 = vmatpush.msra.mxu0 %v11123_v35  ;;  %6322 = vmatpush.msra.mxu1 %v11128_v63 }
 0x9e5   :  { %6343 = vmatpush.msra.mxu2 %v11135_v48  ;;  %6363 = vmatpush.msra.mxu3 %v11140_v4 }
 0x9e6   :  { %6303 = vmatpush.msra.mxu0 %v11145_v55  ;;  %6323 = vmatpush.msra.mxu1 %v11154_v60 }
 0x9e7   :  { %6344 = vmatpush.msra.mxu2 %v11159_v23  ;;  %6364 = vmatpush.msra.mxu3 %v11164_v62 }
 0x9e8   :  { %v7853_v38 = vpop.eup %7852  ;;  %6304 = vmatpush.msra.mxu0 %v11173_v2  ;;  %6324 = vmatpush.msra.mxu1 %v11178_v50 }
 0x9e9   :  { %v5898_v5 = vmul.f32 %v7853_v38, %v5892_v33  ;;  %v6085_v33 = vld [vmem:[#allocation8 + $0x5] ss:$8 sm:$0xf] }
 0x9eb   :  { %5899 = vst [vmem:[#allocation5 + $0x4] sm:$0x1] %v5898_v5  ;;  %7398 = vmatmul.msk.f32.vlgmr.msrb.gmra.mxu0 %vm93_vm0, %v5898_v5  ;;  %7399 = vmatmul.msk.f32.vlgmr.msrb.gmra.mxu1 %vm93_vm0, %v5898_v5 }
 0x9ec   :  { %7400 = vmatmul.msk.f32.vlgmr.msrb.gmra.mxu2 %vm93_vm0, %v5898_v5  ;;  %7401 = vmatmul.msk.f32.vlgmr.msrb.gmra.mxu3 %vm93_vm0, %v5898_v5 }
 0x9ed   :  { %6525 = vmatpush.msrb.mxu2 %v11183_v42  ;;  %6545 = vmatpush.msrb.mxu3 %v11191_v37 }
 0x9ee   :  { %6485 = vmatpush.msrb.mxu0 %v11196_v6  ;;  %6505 = vmatpush.msrb.mxu1 %v11205_v22 }
 0x9ef   :  { %6526 = vmatpush.msrb.mxu2 %v11210_v59  ;;  %6546 = vmatpush.msrb.mxu3 %v11221_v31 }
 0x9f0   :  { %6486 = vmatpush.msrb.mxu0 %v11226_v20  ;;  %6506 = vmatpush.msrb.mxu1 %v11238_v18 }
 0x9f1   :  { %6527 = vmatpush.msrb.mxu2 %v11243_v25  ;;  %6547 = vmatpush.msrb.mxu3 %v11253_v41 }
 0x9f2   :  { %6487 = vmatpush.msrb.mxu0 %v11258_v47  ;;  %6507 = vmatpush.msrb.mxu1 %v11270_v12 }
 0x9f3   :  { %6528 = vmatpush.msrb.mxu2 %v11275_v13  ;;  %6548 = vmatpush.msrb.mxu3 %v11292_v28 }
 0x9f4   :  { %6488 = vmatpush.msrb.mxu0 %v11297_v36  ;;  %6508 = vmatpush.msrb.mxu1 %v11308_v8 }
 0xa5c   :  { %v5958_v1 = vpop.f32.mrf.mxu1  ;;  %v5938_v46 = vpop.f32.mrf.mxu0 }
 0xa5d   :  { %v6005_v43 = vrot.slane %v5958_v1, 7 }
 0xa5f   :  { %v6008_v56 = vsel %vm288_vm1, %v5938_v46, %v6005_v43 }
 0xa63   :  { %v5978_v39 = vpop.f32.mrf.mxu2  ;;  %v5998_v26 = vpop.f32.mrf.mxu3 }
 0xa64   :  { %v6006_v15 = vrot.slane %v5978_v39, 6  ;;  %v6007_v0 = vrot.slane %v5998_v26, 5 }
 0xa66   :  { %v6009_v49 = vsel %vm290_vm2, %v6006_v15, %v6007_v0 }
 0xa67   :  { %v6010_v45 = vsel %vm292_vm3, %v6008_v56, %v6009_v49 }
 0xa68   :  { %v6012_v57 = vadd.f32 %v6010_v45, %v5901_v40  ;;  %v6142_v54 = vpop.f32.mrf.mxu1  ;;  %v6122_v16 = vpop.f32.mrf.mxu0 }
 0xa69   :  { %v6189_v9 = vrot.slane %v6142_v54, 7 }
 0xa6a   :  { %v7395_v3 = vmul.f32 -1.442695, %v6012_v57  ;;  %v6033_v51 = vrot.slane %v6012_v57, 1  ;;  %v6057_v17 = vrot.slane %v6012_v57, 3 }
 0xa6b   :  { %v6192_v29 = vsel %vm288_vm1, %v6122_v16, %v6189_v9 }
 0xa6c   :  { %7854 = vpow2.f32 %v7395_v3  ;;  %v7396_v32 = vmul.f32 -1.442695, %v6033_v51  ;;  %v7397_v34 = vmul.f32 -1.442695, %v6057_v17  ;;  %v6054_v51 = vrot.slane %v6012_v57, 2 }
 0xa6e   :  { %7856 = vpow2.f32 %v7396_v32 }
 0xa6f   :  { %7858 = vpow2.f32 %v7397_v34  ;;  %v6162_v52 = vpop.f32.mrf.mxu2  ;;  %v6182_v21 = vpop.f32.mrf.mxu3 }
 0xa70   :  { %v6190_v53 = vrot.slane %v6162_v52, 6  ;;  %v6191_v27 = vrot.slane %v6182_v21, 5 }
 0xa72   :  { %v7855_v58 = vpop.eup %7854  ;;  %v6193_v24 = vsel %vm290_vm2, %v6190_v53, %v6191_v27 }
 0xa73   :  { %v6016_v38 = vadd.f32 1.0, %v7855_v58  ;;  %v6194_v5 = vsel %vm292_vm3, %v6192_v29, %v6193_v24 }
 0xa74   :  { %v7857_v1 = vpop.eup %7856  ;;  %v11413_v43 = vadd.f32 %v6194_v5, %v6085_v33 }
 0xa75   :  { %v7859_v39 = vpop.eup %7858  ;;  %7860 = vrcp.f32 %v6016_v38  ;;  %v6038_v26 = vadd.f32 1.0, %v7857_v1  ;;  %v6028_v21 = vand.u32 2147483648, %v6016_v38  ;;  %v6026_v16 = vand.u32 2147483647, %v6016_v38 }
 0xa76   :  { %v11415_v15 = vadd.f32 1.0, %v7859_v39  ;;  %v7402_v0 = vmul.f32 -1.442695, %v11413_v43  ;;  %v6217_v46 = vrot.slane %v11413_v43, 1  ;;  %v6241_v56 = vrot.slane %v11413_v43, 3 }
 0xa77   :  { %7862 = vrcp.f32 %v6038_v26  ;;  %vm6022_vm5 = vweird.f32 %v6016_v38  ;;  %v6050_v24 = vand.u32 2147483648, %v6038_v26  ;;  %v6048_v39 = vand.u32 2147483647, %v6038_v26 }
 0xa78   :  { %7864 = vrcp.f32 %v11415_v15  ;;  %v7403_v49 = vmul.f32 -1.442695, %v6217_v46  ;;  %v7404_v40 = vmul.f32 -1.442695, %v6241_v56  ;;  %v6029_v46 = vor.u32 1.1754944e-38, %v6028_v21 }
 0xa79   :  { %7866 = vpow2.f32 %v7402_v0  ;;  %vm6027_vm8 = vcmp.eq.f32.partialorder %v6026_v16, 8.507059e+37  ;;  %vm6044_vm9 = vweird.f32 %v6038_v26  ;;  %vm6049_vm11 = vcmp.eq.f32.partialorder %v6048_v39, 8.507059e+37 }
 0xa7a   :  { %7868 = vpow2.f32 %v7403_v49  ;;  %vm6068_vm12 = vweird.f32 %v11415_v15 }
 0xa7b   :  { %v7861_v45 = vpop.eup %7860  ;;  %7870 = vpow2.f32 %v7404_v40 }
 0xa7c   :  { %v6018_v3 = vmul.f32 %v7861_v45, %v6016_v38  ;;  %vm6023_vm4 = vweird.f32 %v7861_v45  ;;  %7872 = vtanh.f32 %v6054_v51  ;;  %v6051_v38 = vor.u32 1.1754944e-38, %v6050_v24 }
 0xa7d   :  { %v7863_v17 = vpop.eup %7862  ;;  %vm6024_vm6 = vmor %vm6022_vm5, %vm6023_vm4 }
 0xa7e   :  { %v6019_v54 = vsub.f32 1.0, %v6018_v3  ;;  %v11421_v32 = vpop.eup %7864  ;;  %v6040_v34 = vmul.f32 %v7863_v17, %v6038_v26  ;;  %vm6045_vm7 = vweird.f32 %v7863_v17 }
 0xa7f   :  { %v7867_v9 = vpop.eup %7866  ;;  %v6064_v53 = vmul.f32 %v11421_v32, %v11415_v15  ;;  %vm6046_vm10 = vmor %vm6044_vm9, %vm6045_vm7  ;;  %vm6069_vm13 = vweird.f32 %v11421_v32 }
 0xa80   :  { %v6020_v52 = vmul.f32 %v7861_v45, %v6019_v54  ;;  %v7869_v27 = vpop.eup %7868  ;;  %v6041_v58 = vsub.f32 1.0, %v6040_v34  ;;  %v11425_v29 = vadd.f32 1.0, %v7867_v9  ;;  %v6238_v9 = vrot.slane %v11413_v43, 2  ;;  %vm11455_vm4 = vmor %vm6068_vm12, %vm6069_vm13 }
 0xa81   :  { %v11427_v33 = vadd.f32 1.0, %v7869_v27  ;;  %v7871_v5 = vpop.eup %7870  ;;  %v6065_v56 = vsub.f32 1.0, %v6064_v53 }
 0xa82   :  { %v6021_v57 = vadd.f32 %v7861_v45, %v6020_v52  ;;  %v6042_v1 = vmul.f32 %v7863_v17, %v6041_v58  ;;  %7874 = vrcp.f32 %v11425_v29  ;;  %v11431_v3 = vadd.f32 1.0, %v7871_v5  ;;  %v7873_v51 = vpop.eup %7872 }
 0xa83   :  { %7876 = vrcp.f32 %v11427_v33  ;;  %v6072_v5 = vand.u32 2147483647, %v11415_v15  ;;  %vm6206_vm5 = vweird.f32 %v11425_v29  ;;  %vm6228_vm7 = vweird.f32 %v11427_v33 }
 0xa84   :  { %v6025_v0 = vsel %vm6024_vm6, %v7861_v45, %v6021_v57  ;;  %v6043_v49 = vadd.f32 %v7863_v17, %v6042_v1  ;;  %7878 = vrcp.f32 %v11431_v3  ;;  %v6066_v45 = vmul.f32 %v11421_v32, %v6065_v56 }
 0xa85   :  { %v6030_v40 = vsel %vm6027_vm8, %v6029_v46, %v6025_v0  ;;  %7880 = vtanh.f32 %v6238_v9  ;;  %v6210_v0 = vand.u32 2147483647, %v11425_v29  ;;  %v6234_v46 = vand.u32 2147483648, %v11427_v33 }
 0xa86   :  { %v6047_v54 = vsel %vm6046_vm10, %v7863_v17, %v6043_v49  ;;  %v6079_v53 = vmul.f32 %v7873_v51, %v6030_v40  ;;  %v6074_v17 = vand.u32 2147483648, %v11415_v15  ;;  %v6067_v57 = vadd.f32 %v11421_v32, %v6066_v45 }
 0xa87   :  { %v6052_v34 = vsel %vm6049_vm11, %v6051_v38, %v6047_v54  ;;  %v6232_v49 = vand.u32 2147483647, %v11427_v33  ;;  %vm6211_vm8 = vcmp.eq.f32.partialorder %v6210_v0, 8.507059e+37  ;;  %vm6073_vm10 = vcmp.eq.f32.partialorder %v6072_v5, 8.507059e+37 }
 0xa88   :  { %v7875_v52 = vpop.eup %7874  ;;  %v6078_v21 = vmul.f32 %v6052_v34, %v11327_v61  ;;  %v6212_v61 = vand.u32 2147483648, %v11425_v29  ;;  %v6071_v54 = vsel %vm11455_vm4, %v11421_v32, %v6067_v57  ;;  %v6075_v34 = vor.u32 1.1754944e-38, %v6074_v17 }
 0xa89   :  { %v7877_v26 = vpop.eup %7876  ;;  %v6202_v27 = vmul.f32 %v7875_v52, %v11425_v29  ;;  %vm6207_vm14 = vweird.f32 %v7875_v52  ;;  %vm6233_vm11 = vcmp.eq.f32.partialorder %v6232_v49, 8.507059e+37  ;;  %vm6252_vm13 = vweird.f32 %v11431_v3 }
 0xa8a   :  { %v11438_v16 = vadd.f32 %v6079_v53, %v6078_v21  ;;  %v6224_v58 = vmul.f32 %v7877_v26, %v11427_v33  ;;  %v11448_v1 = vpop.eup %7878  ;;  %vm6229_vm15 = vweird.f32 %v7877_v26  ;;  %vm6208_vm6 = vmor %vm6206_vm5, %vm6207_vm14  ;;  %v6213_v9 = vor.u32 1.1754944e-38, %v6212_v61 }
 0xa8b   :  { %v6203_v43 = vsub.f32 1.0, %v6202_v27  ;;  %v6248_v38 = vmul.f32 %v11448_v1, %v11431_v3  ;;  %v7881_v21 = vpop.eup %7880  ;;  %vm6230_vm9 = vmor %vm6228_vm7, %vm6229_vm15  ;;  %v6235_v27 = vor.u32 1.1754944e-38, %v6234_v46  ;;  %vm6253_vm12 = vweird.f32 %v11448_v1 }
 0xa8c   :  { %v6225_v24 = vsub.f32 1.0, %v6224_v58  ;;  %7882 = vtanh.f32 %v11438_v16  ;;  %v6256_v5 = vand.u32 2147483647, %v11431_v3  ;;  %vm6254_vm14 = vmor %vm6252_vm13, %vm6253_vm12 }
 0xa8d   :  { %v6204_v39 = vmul.f32 %v7875_v52, %v6203_v43  ;;  %v6249_v15 = vsub.f32 1.0, %v6248_v38 }
 0xa8e   :  { %v6226_v56 = vmul.f32 %v7877_v26, %v6225_v24  ;;  %v6076_v24 = vsel %vm6073_vm10, %v6075_v34, %v6071_v54  ;;  %vm6257_vm15 = vcmp.eq.f32.partialorder %v6256_v5, 8.507059e+37 }
 0xa8f   :  { %v6205_v51 = vadd.f32 %v7875_v52, %v6204_v39  ;;  %v6250_v57 = vmul.f32 %v11448_v1, %v6249_v15 }
 0xa90   :  { %v6227_v45 = vadd.f32 %v7877_v26, %v6226_v56 }
 0xa91   :  { %v6209_v53 = vsel %vm6208_vm6, %v7875_v52, %v6205_v51 }
 0xa92   :  { %v7883_v58 = vpop.eup %7882  ;;  %v6214_v29 = vsel %vm6211_vm8, %v6213_v9, %v6209_v53  ;;  %v6231_v43 = vsel %vm6230_vm9, %v7877_v26, %v6227_v45  ;;  %v6251_v26 = vadd.f32 %v11448_v1, %v6250_v57 }
 0xa93   :  { %v6236_v32 = vsel %vm6233_vm11, %v6235_v27, %v6231_v43  ;;  %v6082_v17 = vmul.f32 %v7883_v58, %v6076_v24  ;;  %v6263_v33 = vmul.f32 %v7881_v21, %v6214_v29 }
 0xa94   :  { %v6262_v61 = vmul.f32 %v6236_v32, %v11360_v14  ;;  %v6258_v14 = vand.u32 2147483648, %v11431_v3 }
 0xa95   :  { %6083 = vst [vmem:[#allocation4 + $0x2] sm:$0x1] %v6082_v17  ;;  %7405 = vmatmul.msk.f32.vlgmr.msra.gmra.mxu0 %vm93_vm0, %v6082_v17  ;;  %7406 = vmatmul.msk.f32.vlgmr.msra.gmra.mxu1 %vm93_vm0, %v6082_v17 }
 0xa96   :  { %v11471_v52 = vadd.f32 %v6263_v33, %v6262_v61  ;;  %7407 = vmatmul.msk.f32.vlgmr.msra.gmra.mxu2 %vm93_vm0, %v6082_v17  ;;  %7408 = vmatmul.msk.f32.vlgmr.msra.gmra.mxu3 %vm93_vm0, %v6082_v17 }
 0xa97   :  { %6688 = vmatpush.msra.mxu1 %v11105_v11  ;;  %6708 = vmatpush.msra.mxu2 %v11085_v10  ;;  %v6255_v10 = vsel %vm6254_vm14, %v11448_v1, %v6251_v26  ;;  %v6453_v1 = vld [vmem:[#allocation8 + $0x6] ss:$8 sm:$0xf] }
 0xa98   :  { %7884 = vtanh.f32 %v11471_v52  ;;  %6728 = vmatpush.msra.mxu3 %v11092_v30  ;;  %6668 = vmatpush.msra.mxu0 %v11097_v7  ;;  %v6259_v30 = vor.u32 1.1754944e-38, %v6258_v14 }
 0xa99   :  { %6689 = vmatpush.msra.mxu1 %v11128_v63  ;;  %6709 = vmatpush.msra.mxu2 %v11110_v44 }
 0xa9a   :  { %6729 = vmatpush.msra.mxu3 %v11115_v19  ;;  %6669 = vmatpush.msra.mxu0 %v11123_v35  ;;  %v6260_v11 = vsel %vm6257_vm15, %v6259_v30, %v6255_v10 }
 0xa9b   :  { %6690 = vmatpush.msra.mxu1 %v11154_v60  ;;  %6710 = vmatpush.msra.mxu2 %v11135_v48 }
 0xa9c   :  { %6730 = vmatpush.msra.mxu3 %v11140_v4  ;;  %6670 = vmatpush.msra.mxu0 %v11145_v55 }
 0xa9d   :  { %6691 = vmatpush.msra.mxu1 %v11178_v50  ;;  %6711 = vmatpush.msra.mxu2 %v11159_v23 }
 0xa9e   :  { %v7885_v7 = vpop.eup %7884  ;;  %6731 = vmatpush.msra.mxu3 %v11164_v62  ;;  %6671 = vmatpush.msra.mxu0 %v11173_v2  ;;  %v6269_v2 = vld [vmem:[#allocation7 + $0x1] ss:$8 sm:$0xf] }
 0xa9f   :  { %v6266_v44 = vmul.f32 %v7885_v7, %v6260_v11 }
 0xaa1   :  { %6267 = vst [vmem:[#allocation5 + $0x5] sm:$0x1] %v6266_v44  ;;  %7412 = vmatmul.msk.f32.vlgmr.msrb.gmra.mxu0 %vm93_vm0, %v6266_v44  ;;  %7413 = vmatmul.msk.f32.vlgmr.msrb.gmra.mxu1 %vm93_vm0, %v6266_v44 }
 0xaa2   :  { %7414 = vmatmul.msk.f32.vlgmr.msrb.gmra.mxu2 %vm93_vm0, %v6266_v44  ;;  %7415 = vmatmul.msk.f32.vlgmr.msrb.gmra.mxu3 %vm93_vm0, %v6266_v44 }
 0xaa3   :  { %6872 = vmatpush.msrb.mxu1 %v11205_v22  ;;  %6892 = vmatpush.msrb.mxu2 %v11183_v42 }
 0xaa4   :  { %6912 = vmatpush.msrb.mxu3 %v11191_v37  ;;  %6852 = vmatpush.msrb.mxu0 %v11196_v6 }
 0xaa5   :  { %6873 = vmatpush.msrb.mxu1 %v11238_v18  ;;  %6893 = vmatpush.msrb.mxu2 %v11210_v59 }
 0xaa6   :  { %6913 = vmatpush.msrb.mxu3 %v11221_v31  ;;  %6853 = vmatpush.msrb.mxu0 %v11226_v20 }
 0xaa7   :  { %6874 = vmatpush.msrb.mxu1 %v11270_v12  ;;  %6894 = vmatpush.msrb.mxu2 %v11243_v25 }
 0xaa8   :  { %6914 = vmatpush.msrb.mxu3 %v11253_v41  ;;  %6854 = vmatpush.msrb.mxu0 %v11258_v47 }
 0xaa9   :  { %6875 = vmatpush.msrb.mxu1 %v11308_v8  ;;  %6895 = vmatpush.msrb.mxu2 %v11275_v13 }
 0xaaa   :  { %6915 = vmatpush.msrb.mxu3 %v11292_v28  ;;  %6855 = vmatpush.msrb.mxu0 %v11297_v36 }
 0xb12   :  { %v6326_v19 = vpop.f32.mrf.mxu1  ;;  %v6306_v60 = vpop.f32.mrf.mxu0 }
 0xb13   :  { %v6373_v35 = vrot.slane %v6326_v19, 7 }
 0xb15   :  { %v6376_v23 = vsel %vm288_vm1, %v6306_v60, %v6373_v35 }
 0xb19   :  { %v6346_v63 = vpop.f32.mrf.mxu2  ;;  %v6366_v48 = vpop.f32.mrf.mxu3 }
 0xb1a   :  { %v6374_v4 = vrot.slane %v6346_v63, 6  ;;  %v6375_v55 = vrot.slane %v6366_v48, 5 }
 0xb1c   :  { %v6377_v62 = vsel %vm290_vm2, %v6374_v4, %v6375_v55 }
 0xb1d   :  { %v6378_v50 = vsel %vm292_vm3, %v6376_v23, %v6377_v62 }
 0xb1e   :  { %v6380_v42 = vadd.f32 %v6378_v50, %v6269_v2  ;;  %v6510_v59 = vpop.f32.mrf.mxu1  ;;  %v6490_v13 = vpop.f32.mrf.mxu0 }
 0xb1f   :  { %v6557_v18 = vrot.slane %v6510_v59, 7 }
 0xb20   :  { %v7409_v37 = vmul.f32 -1.442695, %v6380_v42  ;;  %v6401_v6 = vrot.slane %v6380_v42, 1  ;;  %v6425_v22 = vrot.slane %v6380_v42, 3  ;;  %v6422_v21 = vrot.slane %v6380_v42, 2 }
 0xb21   :  { %v6560_v36 = vsel %vm288_vm1, %v6490_v13, %v6557_v18 }
 0xb22   :  { %7886 = vpow2.f32 %v7409_v37  ;;  %v7410_v31 = vmul.f32 -1.442695, %v6401_v6  ;;  %v7411_v20 = vmul.f32 -1.442695, %v6425_v22 }
 0xb24   :  { %7888 = vpow2.f32 %v7410_v31 }
 0xb25   :  { %7890 = vpow2.f32 %v7411_v20  ;;  %v6530_v25 = vpop.f32.mrf.mxu2  ;;  %v6550_v41 = vpop.f32.mrf.mxu3 }
 0xb26   :  { %v6558_v47 = vrot.slane %v6530_v25, 6  ;;  %v6559_v12 = vrot.slane %v6550_v41, 5 }
 0xb28   :  { %v7887_v28 = vpop.eup %7886  ;;  %v6561_v8 = vsel %vm290_vm2, %v6558_v47, %v6559_v12 }
 0xb29   :  { %v6384_v3 = vadd.f32 1.0, %v7887_v28  ;;  %v6562_v39 = vsel %vm292_vm3, %v6560_v36, %v6561_v8 }
 0xb2a   :  { %v7889_v0 = vpop.eup %7888  ;;  %v11524_v46 = vadd.f32 %v6562_v39, %v6453_v1 }
 0xb2b   :  { %v7891_v56 = vpop.eup %7890  ;;  %7892 = vrcp.f32 %v6384_v3  ;;  %v6406_v49 = vadd.f32 1.0, %v7889_v0  ;;  %v6396_v32 = vand.u32 2147483648, %v6384_v3  ;;  %v6394_v61 = vand.u32 2147483647, %v6384_v3 }
 0xb2c   :  { %v11526_v40 = vadd.f32 1.0, %v7891_v56  ;;  %v7416_v38 = vmul.f32 -1.442695, %v11524_v46  ;;  %v6585_v51 = vrot.slane %v11524_v46, 1  ;;  %v6609_v54 = vrot.slane %v11524_v46, 3 }
 0xb2d   :  { %7894 = vrcp.f32 %v6406_v49  ;;  %vm6390_vm5 = vweird.f32 %v6384_v3  ;;  %v6418_v5 = vand.u32 2147483648, %v6406_v49  ;;  %v6416_v11 = vand.u32 2147483647, %v6406_v49 }
 0xb2e   :  { %7896 = vrcp.f32 %v11526_v40  ;;  %v7417_v34 = vmul.f32 -1.442695, %v6585_v51  ;;  %v7418_v9 = vmul.f32 -1.442695, %v6609_v54  ;;  %v6397_v19 = vor.u32 1.1754944e-38, %v6396_v32  ;;  %v7019_v32 = vld [vmem:[%s11847_s11 + $0x78] sm:$0xff] }
 0xb2f   :  { %7898 = vpow2.f32 %v7416_v38  ;;  %vm6395_vm8 = vcmp.eq.f32.partialorder %v6394_v61, 8.507059e+37  ;;  %vm6412_vm9 = vweird.f32 %v6406_v49  ;;  %v6419_v4 = vor.u32 1.1754944e-38, %v6418_v5  ;;  %v7017_v61 = vld [vmem:[%s11847_s11 + $0x68] sm:$0xff] }
 0xb30   :  { %7900 = vpow2.f32 %v7417_v34  ;;  %vm6417_vm11 = vcmp.eq.f32.partialorder %v6416_v11, 8.507059e+37  ;;  %v6606_v2 = vrot.slane %v11524_v46, 2  ;;  %vm6436_vm12 = vweird.f32 %v11526_v40 }
 0xb31   :  { %v7893_v45 = vpop.eup %7892  ;;  %7902 = vpow2.f32 %v7418_v9  ;;  %v6442_v18 = vand.u32 2147483648, %v11526_v40  ;;  %v6440_v12 = vand.u32 2147483647, %v11526_v40 }
 0xb32   :  { %v6386_v15 = vmul.f32 %v7893_v45, %v6384_v3  ;;  %vm6391_vm4 = vweird.f32 %v7893_v45  ;;  %7904 = vtanh.f32 %v6422_v21 }
 0xb33   :  { %v7895_v53 = vpop.eup %7894  ;;  %vm6392_vm6 = vmor %vm6390_vm5, %vm6391_vm4 }
 0xb34   :  { %v6387_v27 = vsub.f32 1.0, %v6386_v15  ;;  %v11532_v58 = vpop.eup %7896  ;;  %v6408_v29 = vmul.f32 %v7895_v53, %v6406_v49  ;;  %vm6413_vm7 = vweird.f32 %v7895_v53  ;;  %v6443_v49 = vor.u32 1.1754944e-38, %v6442_v18 }
 0xb35   :  { %v7899_v43 = vpop.eup %7898  ;;  %v6432_v17 = vmul.f32 %v11532_v58, %v11526_v40  ;;  %vm6414_vm10 = vmor %vm6412_vm9, %vm6413_vm7  ;;  %vm6437_vm13 = vweird.f32 %v11532_v58 }
 0xb36   :  { %v6388_v24 = vmul.f32 %v7893_v45, %v6387_v27  ;;  %v7901_v57 = vpop.eup %7900  ;;  %v6409_v33 = vsub.f32 1.0, %v6408_v29  ;;  %v11536_v26 = vadd.f32 1.0, %v7899_v43  ;;  %vm11566_vm4 = vmor %vm6436_vm12, %vm6437_vm13 }
 0xb37   :  { %v11538_v10 = vadd.f32 1.0, %v7901_v57  ;;  %v7903_v30 = vpop.eup %7902  ;;  %v6433_v35 = vsub.f32 1.0, %v6432_v17 }
 0xb38   :  { %v6389_v14 = vadd.f32 %v7893_v45, %v6388_v24  ;;  %v6410_v7 = vmul.f32 %v7895_v53, %v6409_v33  ;;  %7906 = vrcp.f32 %v11536_v26  ;;  %v11542_v55 = vadd.f32 1.0, %v7903_v30  ;;  %v7905_v60 = vpop.eup %7904  ;;  %v7015_v30 = vld [vmem:[%s11847_s11 + $0x58] sm:$0xff] }
 0xb39   :  { %7908 = vrcp.f32 %v11538_v10  ;;  %v6434_v50 = vmul.f32 %v11532_v58, %v6433_v35  ;;  %v6578_v36 = vand.u32 2147483647, %v11536_v26  ;;  %v6602_v8 = vand.u32 2147483648, %v11538_v10  ;;  %v7013_v35 = vld [vmem:[%s11847_s11 + $0x48] sm:$0xff] }
 0xb3a   :  { %v6393_v44 = vsel %vm6392_vm6, %v7893_v45, %v6389_v14  ;;  %v6411_v63 = vadd.f32 %v7895_v53, %v6410_v7  ;;  %7910 = vrcp.f32 %v11542_v55  ;;  %v6600_v1 = vand.u32 2147483647, %v11538_v10  ;;  %v7016_v14 = vld [vmem:[%s11847_s11 + $0x60] sm:$0xff] }
 0xb3b   :  { %v6398_v48 = vsel %vm6395_vm8, %v6397_v19, %v6393_v44  ;;  %7912 = vtanh.f32 %v6606_v2  ;;  %v6435_v41 = vadd.f32 %v11532_v58, %v6434_v50  ;;  %vm6574_vm5 = vweird.f32 %v11536_v26  ;;  %v7014_v19 = vld [vmem:[%s11847_s11 + $0x50] sm:$0xff]  ;;  %v7005_v2 = vld [vmem:[%s11847_s11 + $0x8] sm:$0xff]  ;;  %v7004_v50 = vld [vmem:[%s11847_s11] sm:$0xff] }
 0xb3c   :  { %v6415_v23 = vsel %vm6414_vm10, %v7895_v53, %v6411_v63  ;;  %v6447_v6 = vmul.f32 %v7905_v60, %v6398_v48  ;;  %vm6596_vm7 = vweird.f32 %v11538_v10  ;;  %vm6579_vm8 = vcmp.eq.f32.partialorder %v6578_v36, 8.507059e+37  ;;  %v7012_v63 = vld [vmem:[%s11847_s11 + $0x40] sm:$0xff]  ;;  %v7011_v48 = vld [vmem:[%s11847_s11 + $0x38] sm:$0xff] }
 0xb3d   :  { %v6420_v62 = vsel %vm6417_vm11, %v6419_v4, %v6415_v23  ;;  %v6439_v56 = vsel %vm11566_vm4, %v11532_v58, %v6435_v41  ;;  %v6603_v9 = vor.u32 1.1754944e-38, %v6602_v8  ;;  %vm6441_vm10 = vcmp.eq.f32.partialorder %v6440_v12, 8.507059e+37  ;;  %v7010_v4 = vld [vmem:[%s11847_s11 + $0x30] sm:$0xff]  ;;  %v7008_v60 = vld [vmem:[%s11847_s11 + $0x20] sm:$0xff]  ;;  %v7007_v23 = vld [vmem:[%s11847_s11 + $0x18] sm:$0xff] }
 0xb3e   :  { %v7907_v42 = vpop.eup %7906  ;;  %v6446_v37 = vmul.f32 %v6420_v62, %v11438_v16  ;;  %v6580_v16 = vand.u32 2147483648, %v11536_v26  ;;  %vm6601_vm11 = vcmp.eq.f32.partialorder %v6600_v1, 8.507059e+37  ;;  %v6444_v53 = vsel %vm6441_vm10, %v6443_v49, %v6439_v56  ;;  %v7006_v62 = vld [vmem:[%s11847_s11 + $0x10] sm:$0xff]  ;;  %v7034_v56 = vld [vmem:[%s11848_s12 + $0x68] sm:$0xff] }
 0xb3f   :  { %v7909_v22 = vpop.eup %7908  ;;  %v6570_v59 = vmul.f32 %v7907_v42, %v11536_v26  ;;  %vm6575_vm14 = vweird.f32 %v7907_v42  ;;  %v6626_v33 = vand.u32 2147483648, %v11542_v55  ;;  %vm6620_vm13 = vweird.f32 %v11542_v55  ;;  %v7035_v1 = vld [vmem:[%s11848_s12 + $0x70] sm:$0xff] }
 0xb40   :  { %v11549_v31 = vadd.f32 %v6447_v6, %v6446_v37  ;;  %v6592_v20 = vmul.f32 %v7909_v22, %v11538_v10  ;;  %v11559_v13 = vpop.eup %7910  ;;  %vm6597_vm15 = vweird.f32 %v7909_v22  ;;  %vm6576_vm6 = vmor %vm6574_vm5, %vm6575_vm14  ;;  %v6581_v38 = vor.u32 1.1754944e-38, %v6580_v16 }
 0xb41   :  { %v6571_v25 = vsub.f32 1.0, %v6570_v59  ;;  %v6616_v0 = vmul.f32 %v11559_v13, %v11542_v55  ;;  %v7913_v54 = vpop.eup %7912  ;;  %vm6598_vm9 = vmor %vm6596_vm7, %vm6597_vm15  ;;  %vm6621_vm12 = vweird.f32 %v11559_v13  ;;  %v6624_v26 = vand.u32 2147483647, %v11542_v55  ;;  %v7009_v55 = vld [vmem:[%s11847_s11 + $0x28] sm:$0xff] }
 0xb42   :  { %v6593_v47 = vsub.f32 1.0, %v6592_v20  ;;  %7914 = vtanh.f32 %v11549_v31  ;;  %vm6622_vm14 = vmor %vm6620_vm13, %vm6621_vm12  ;;  %v6627_v10 = vor.u32 1.1754944e-38, %v6626_v33  ;;  %v7107_v33 = vld [vmem:[%s11853_s17 + $0x68] sm:$0xff] }
 0xb43   :  { %v6572_v28 = vmul.f32 %v7907_v42, %v6571_v25  ;;  %v6617_v40 = vsub.f32 1.0, %v6616_v0  ;;  %vm6625_vm15 = vcmp.eq.f32.partialorder %v6624_v26, 8.507059e+37 }
 0xb44   :  { %v6594_v3 = vmul.f32 %v7909_v22, %v6593_v47  ;;  %v6636_v47 = vld [vmem:[#allocation7] ss:$8 sm:$0xf] }
 0xb45   :  { %v6573_v46 = vadd.f32 %v7907_v42, %v6572_v28  ;;  %v6618_v29 = vmul.f32 %v11559_v13, %v6617_v40  ;;  %v7036_v28 = vld [vmem:[%s11848_s12 + $0x78] sm:$0xff] }
 0xb46   :  { %v6595_v51 = vadd.f32 %v7909_v22, %v6594_v3 }
 0xb47   :  { %v6577_v34 = vsel %vm6576_vm6, %v7907_v42, %v6573_v46  ;;  %v6619_v57 = vadd.f32 %v11559_v13, %v6618_v29  ;;  %v7003_v42 = vld [vmem:[#allocation3] sm:$0xff]  ;;  %v7108_v29 = vld [vmem:[%s11853_s17 + $0x70] sm:$0xff] }
 0xb48   :  { %v7915_v45 = vpop.eup %7914  ;;  %v6582_v15 = vsel %vm6579_vm8, %v6581_v38, %v6577_v34  ;;  %v6599_v21 = vsel %vm6598_vm9, %v7909_v22, %v6595_v51  ;;  %v7033_v38 = vld [vmem:[%s11848_s12 + $0x60] sm:$0xff] }
 0xb49   :  { %v6604_v27 = vsel %vm6601_vm11, %v6603_v9, %v6599_v21  ;;  %v6450_v58 = vmul.f32 %v7915_v45, %v6444_v53  ;;  %v6631_v24 = vmul.f32 %v7913_v54, %v6582_v15  ;;  %v6623_v5 = vsel %vm6622_vm14, %v11559_v13, %v6619_v57  ;;  %v7032_v9 = vld [vmem:[%s11848_s12 + $0x58] sm:$0xff] }
 0xb4a   :  { %v6630_v43 = vmul.f32 %v6604_v27, %v11471_v52  ;;  %v7018_v52 = vld [vmem:[%s11847_s11 + $0x70] sm:$0xff]  ;;  %v6628_v11 = vsel %vm6625_vm15, %v6627_v10, %v6623_v5  ;;  %v7109_v45 = vld [vmem:[%s11853_s17 + $0x78] sm:$0xff] }
 0xb4b   :  { %6451 = vst [vmem:[#allocation4 + $0x1] sm:$0x1] %v6450_v58  ;;  %7419 = vmatmul.msk.f32.vlgmr.msra.gmra.mxu0 %vm93_vm0, %v6450_v58  ;;  %7420 = vmatmul.msk.f32.vlgmr.msra.gmra.mxu1 %vm93_vm0, %v6450_v58 }
 0xb4c   :  { %v11585_v17 = vadd.f32 %v6631_v24, %v6630_v43  ;;  %7421 = vmatmul.msk.f32.vlgmr.msra.gmra.mxu2 %vm93_vm0, %v6450_v58  ;;  %7422 = vmatmul.msk.f32.vlgmr.msra.gmra.mxu3 %vm93_vm0, %v6450_v58  ;;  %v7031_v58 = vld [vmem:[%s11848_s12 + $0x50] sm:$0xff] }
 0xb4d   :  { %7057 = vmatpush.msra.mxu1 %v7019_v32  ;;  %7037 = vmatpush.msra.mxu0 %v7036_v28  ;;  %v6820_v24 = vld [vmem:[#allocation8 + $0x7] ss:$8 sm:$0xf] }
 0xb4e   :  { %7916 = vtanh.f32 %v11585_v17  ;;  %7114 = vmatpush.msra.mxu2 %v7109_v45  ;;  %v7099_v45 = vld [vmem:[%s11853_s17 + $0x28] sm:$0xff] }
 0xb4f   :  { %7058 = vmatpush.msra.mxu1 %v7018_v52  ;;  %7038 = vmatpush.msra.mxu0 %v7035_v1 }
 0xb50   :  { %7115 = vmatpush.msra.mxu2 %v7108_v29 }
 0xb51   :  { %7059 = vmatpush.msra.mxu1 %v7017_v61  ;;  %7039 = vmatpush.msra.mxu0 %v7034_v56  ;;  %v7030_v61 = vld [vmem:[%s11848_s12 + $0x48] sm:$0xff] }
 0xb52   :  { %7116 = vmatpush.msra.mxu2 %v7107_v33 }
 0xb53   :  { %7060 = vmatpush.msra.mxu1 %v7016_v14  ;;  %7040 = vmatpush.msra.mxu0 %v7033_v38 }
 0xb54   :  { %v7917_v7 = vpop.eup %7916 }
 0xb55   :  { %v6634_v44 = vmul.f32 %v7917_v7, %v6628_v11  ;;  %7061 = vmatpush.msra.mxu1 %v7015_v30  ;;  %7041 = vmatpush.msra.mxu0 %v7032_v9  ;;  %v7029_v7 = vld [vmem:[%s11848_s12 + $0x40] sm:$0xff]  ;;  %v7022_v9 = vld [vmem:[%s11848_s12 + $0x8] sm:$0xff] }
 0xb57   :  { %6635 = vst [vmem:[#allocation5 + $0x6] sm:$0x1] %v6634_v44  ;;  %7426 = vmatmul.msk.f32.vlgmr.msrb.gmra.mxu0 %vm93_vm0, %v6634_v44  ;;  %7427 = vmatmul.msk.f32.vlgmr.msrb.gmra.mxu1 %vm93_vm0, %v6634_v44 }
 0xb58   :  { %7428 = vmatmul.msk.f32.vlgmr.msrb.gmra.mxu2 %vm93_vm0, %v6634_v44  ;;  %7429 = vmatmul.msk.f32.vlgmr.msrb.gmra.mxu3 %vm93_vm0, %v6634_v44  ;;  %v7106_v44 = vld [vmem:[%s11853_s17 + $0x60] sm:$0xff] }
 0xb59   :  { %7062 = vmatpush.msra.mxu1 %v7014_v19  ;;  %7042 = vmatpush.msra.mxu0 %v7031_v58  ;;  %v7028_v19 = vld [vmem:[%s11848_s12 + $0x38] sm:$0xff] }
 0xb5a   :  { %7117 = vmatpush.msra.mxu2 %v7106_v44  ;;  %v7095_v44 = vld [vmem:[%s11853_s17 + $0x8] sm:$0xff] }
 0xb5b   :  { %7063 = vmatpush.msra.mxu1 %v7013_v35  ;;  %7043 = vmatpush.msra.mxu0 %v7030_v61  ;;  %v7105_v35 = vld [vmem:[%s11853_s17 + $0x58] sm:$0xff] }
 0xb5c   :  { %7118 = vmatpush.msra.mxu2 %v7105_v35 }
 0xb5d   :  { %7064 = vmatpush.msra.mxu1 %v7012_v63  ;;  %7044 = vmatpush.msra.mxu0 %v7029_v7 }
 0xb5f   :  { %7065 = vmatpush.msra.mxu1 %v7011_v48  ;;  %7045 = vmatpush.msra.mxu0 %v7028_v19  ;;  %v7027_v48 = vld [vmem:[%s11848_s12 + $0x30] sm:$0xff] }
 0xb61   :  { %7066 = vmatpush.msra.mxu1 %v7010_v4  ;;  %v7104_v4 = vld [vmem:[%s11853_s17 + $0x50] sm:$0xff]  ;;  %7046 = vmatpush.msra.mxu0 %v7027_v48 }
 0xb62   :  { %7119 = vmatpush.msra.mxu2 %v7104_v4 }
 0xb63   :  { %7067 = vmatpush.msra.mxu1 %v7009_v55 }
 0xb65   :  { %7068 = vmatpush.msra.mxu1 %v7008_v60 }
 0xb67   :  { %7069 = vmatpush.msra.mxu1 %v7007_v23 }
 0xb69   :  { %7070 = vmatpush.msra.mxu1 %v7006_v62  ;;  %v7026_v62 = vld [vmem:[%s11848_s12 + $0x28] sm:$0xff] }
 0xb6a   :  { %7047 = vmatpush.msra.mxu0 %v7026_v62 }
 0xb6b   :  { %7071 = vmatpush.msra.mxu1 %v7005_v2  ;;  %v7103_v2 = vld [vmem:[%s11853_s17 + $0x48] sm:$0xff] }
 0xb6c   :  { %7120 = vmatpush.msra.mxu2 %v7103_v2 }
 0xb6d   :  { %7072 = vmatpush.msra.mxu1 %v7004_v50 }
 0xb6e   :  { %7073 = vmatmul.f32.vlgmr.msra.gmra.mxu1 %v7003_v42 }
 0xbc8   :  { %v6693_v37 = vpop.f32.mrf.mxu1  ;;  %v6673_v25 = vpop.f32.mrf.mxu0 }
 0xbc9   :  { %v6740_v6 = vrot.slane %v6693_v37, 7 }
 0xbcb   :  { %v6743_v41 = vsel %vm288_vm1, %v6673_v25, %v6740_v6  ;;  %v7025_v6 = vld [vmem:[%s11848_s12 + $0x20] sm:$0xff] }
 0xbcc   :  { %7048 = vmatpush.msra.mxu0 %v7025_v6 }
 0xbcf   :  { %v6713_v22 = vpop.f32.mrf.mxu2  ;;  %v6733_v59 = vpop.f32.mrf.mxu3 }
 0xbd0   :  { %v6741_v20 = vrot.slane %v6713_v22, 6  ;;  %v6742_v18 = vrot.slane %v6733_v59, 5  ;;  %v7102_v22 = vld [vmem:[%s11853_s17 + $0x40] sm:$0xff] }
 0xbd1   :  { %7121 = vmatpush.msra.mxu2 %v7102_v22 }
 0xbd2   :  { %v6744_v16 = vsel %vm290_vm2, %v6741_v20, %v6742_v18 }
 0xbd3   :  { %v6745_v12 = vsel %vm292_vm3, %v6743_v41, %v6744_v16 }
 0xbd4   :  { %v11648_v13 = vadd.f32 %v6745_v12, %v6636_v47  ;;  %v6877_v39 = vpop.f32.mrf.mxu1  ;;  %v6857_v15 = vpop.f32.mrf.mxu0  ;;  %v7024_v47 = vld [vmem:[%s11848_s12 + $0x18] sm:$0xff] }
 0xbd5   :  { %v6924_v49 = vrot.slane %v6877_v39, 7  ;;  %v7101_v12 = vld [vmem:[%s11853_s17 + $0x38] sm:$0xff]  ;;  %7049 = vmatpush.msra.mxu0 %v7024_v47  ;;  %v7023_v39 = vld [vmem:[%s11848_s12 + $0x10] sm:$0xff] }
 0xbd6   :  { %v7423_v36 = vmul.f32 -1.442695, %v11648_v13  ;;  %v6768_v8 = vrot.slane %v11648_v13, 1  ;;  %v6792_v3 = vrot.slane %v11648_v13, 3  ;;  %v6789_v37 = vrot.slane %v11648_v13, 2  ;;  %7122 = vmatpush.msra.mxu2 %v7101_v12 }
 0xbd7   :  { %v6927_v53 = vsel %vm288_vm1, %v6857_v15, %v6924_v49  ;;  %7050 = vmatpush.msra.mxu0 %v7023_v39  ;;  %v7021_v15 = vld [vmem:[%s11848_s12] sm:$0xff] }
 0xbd8   :  { %7918 = vpow2.f32 %v7423_v36  ;;  %v7424_v0 = vmul.f32 -1.442695, %v6768_v8  ;;  %v7425_v46 = vmul.f32 -1.442695, %v6792_v3 }
 0xbd9   :  { %7051 = vmatpush.msra.mxu0 %v7022_v9 }
 0xbda   :  { %7920 = vpow2.f32 %v7424_v0  ;;  %v7100_v0 = vld [vmem:[%s11853_s17 + $0x30] sm:$0xff] }
 0xbdb   :  { %7922 = vpow2.f32 %v7425_v46  ;;  %v6897_v51 = vpop.f32.mrf.mxu2  ;;  %v6917_v40 = vpop.f32.mrf.mxu3  ;;  %7123 = vmatpush.msra.mxu2 %v7100_v0  ;;  %7052 = vmatpush.msra.mxu0 %v7021_v15 }
 0xbdc   :  { %v6925_v54 = vrot.slane %v6897_v51, 6  ;;  %v6926_v34 = vrot.slane %v6917_v40, 5 }
 0xbdd   :  { %7124 = vmatpush.msra.mxu2 %v7099_v45 }
 0xbde   :  { %v7919_v21 = vpop.eup %7918  ;;  %v6928_v27 = vsel %vm290_vm2, %v6925_v54, %v6926_v34 }
 0xbdf   :  { %v11679_v43 = vadd.f32 1.0, %v7919_v21  ;;  %v6929_v32 = vsel %vm292_vm3, %v6927_v53, %v6928_v27  ;;  %v7098_v27 = vld [vmem:[%s11853_s17 + $0x20] sm:$0xff] }
 0xbe0   :  { %v7921_v52 = vpop.eup %7920  ;;  %v11682_v57 = vadd.f32 %v6929_v32, %v6820_v24  ;;  %v7097_v24 = vld [vmem:[%s11853_s17 + $0x18] sm:$0xff]  ;;  %7125 = vmatpush.msra.mxu2 %v7098_v27 }
 0xbe1   :  { %v7923_v26 = vpop.eup %7922  ;;  %7924 = vrcp.f32 %v11679_v43  ;;  %v11691_v14 = vadd.f32 1.0, %v7921_v52  ;;  %v6763_v41 = vand.u32 2147483648, %v11679_v43  ;;  %v6761_v13 = vand.u32 2147483647, %v11679_v43 }
 0xbe2   :  { %v11693_v5 = vadd.f32 1.0, %v7923_v26  ;;  %v7430_v10 = vmul.f32 -1.442695, %v11682_v57  ;;  %v6952_v30 = vrot.slane %v11682_v57, 1  ;;  %v6976_v11 = vrot.slane %v11682_v57, 3  ;;  %7126 = vmatpush.msra.mxu2 %v7097_v24 }
 0xbe3   :  { %7926 = vrcp.f32 %v11691_v14  ;;  %vm6757_vm1 = vweird.f32 %v11679_v43  ;;  %v6785_v1 = vand.u32 2147483648, %v11691_v14  ;;  %v6783_v38 = vand.u32 2147483647, %v11691_v14 }
 0xbe4   :  { %7928 = vrcp.f32 %v11693_v5  ;;  %v7431_v63 = vmul.f32 -1.442695, %v6952_v30  ;;  %v7432_v60 = vmul.f32 -1.442695, %v6976_v11  ;;  %v6764_v40 = vor.u32 1.1754944e-38, %v6763_v41 }
 0xbe5   :  { %7930 = vpow2.f32 %v7430_v10  ;;  %vm6762_vm4 = vcmp.eq.f32.partialorder %v6761_v13, 8.507059e+37  ;;  %vm6779_vm5 = vweird.f32 %v11691_v14  ;;  %v6786_v29 = vor.u32 1.1754944e-38, %v6785_v1  ;;  %v7096_v10 = vld [vmem:[%s11853_s17 + $0x10] sm:$0xff] }
 0xbe6   :  { %7932 = vpow2.f32 %v7431_v63  ;;  %vm6784_vm7 = vcmp.eq.f32.partialorder %v6783_v38, 8.507059e+37  ;;  %v6973_v11 = vrot.slane %v11682_v57, 2  ;;  %7127 = vmatpush.msra.mxu2 %v7096_v10  ;;  %vm6803_vm9 = vweird.f32 %v11693_v5  ;;  %v7094_v57 = vld [vmem:[%s11853_s17] sm:$0xff] }
 0xbe7   :  { %v7925_v55 = vpop.eup %7924  ;;  %7934 = vpow2.f32 %v7432_v60  ;;  %v6809_v63 = vand.u32 2147483648, %v11693_v5 }
 0xbe8   :  { %v6753_v23 = vmul.f32 %v7925_v55, %v11679_v43  ;;  %vm6758_vm0 = vweird.f32 %v7925_v55  ;;  %7936 = vtanh.f32 %v6789_v37  ;;  %7128 = vmatpush.msra.mxu2 %v7095_v44 }
 0xbe9   :  { %v7927_v50 = vpop.eup %7926  ;;  %vm11756_vm2 = vmor %vm6757_vm1, %vm6758_vm0  ;;  %v6810_v22 = vor.u32 1.1754944e-38, %v6809_v63 }
 0xbea   :  { %v6754_v42 = vsub.f32 1.0, %v6753_v23  ;;  %v11732_v59 = vpop.eup %7928  ;;  %v6775_v20 = vmul.f32 %v7927_v50, %v11691_v14  ;;  %vm6780_vm3 = vweird.f32 %v7927_v50  ;;  %7129 = vmatpush.msra.mxu2 %v7094_v57 }
 0xbeb   :  { %v7931_v18 = vpop.eup %7930  ;;  %v6799_v16 = vmul.f32 %v11732_v59, %v11693_v5  ;;  %vm6781_vm6 = vmor %vm6779_vm5, %vm6780_vm3  ;;  %vm6804_vm8 = vweird.f32 %v11732_v59  ;;  %v7074_v27 = vpop.f32.mrf.mxu1 }
 0xbec   :  { %v6755_v25 = vmul.f32 %v7925_v55, %v6754_v42  ;;  %v6776_v28 = vsub.f32 1.0, %v6775_v20  ;;  %v11745_v36 = vadd.f32 1.0, %v7931_v18  ;;  %v7933_v8 = vpop.eup %7932  ;;  %vm11807_vm11 = vmor %vm6803_vm9, %vm6804_vm8 }
 0xbed   :  { %v7935_v46 = vpop.eup %7934  ;;  %v6800_v54 = vsub.f32 1.0, %v6799_v16  ;;  %v11764_v34 = vadd.f32 1.0, %v7933_v8 }
 0xbee   :  { %v6756_v3 = vadd.f32 %v7925_v55, %v6755_v25  ;;  %v6777_v49 = vmul.f32 %v7927_v50, %v6776_v28  ;;  %7938 = vrcp.f32 %v11745_v36  ;;  %v11776_v53 = vadd.f32 1.0, %v7935_v46  ;;  %v7937_v32 = vpop.eup %7936 }
 0xbef   :  { %7940 = vrcp.f32 %v11764_v34  ;;  %v6801_v61 = vmul.f32 %v11732_v59, %v6800_v54  ;;  %v6947_v23 = vand.u32 2147483648, %v11745_v36  ;;  %v6945_v2 = vand.u32 2147483647, %v11745_v36 }
 0xbf0   :  { %v6760_v51 = vsel %vm11756_vm2, %v7925_v55, %v6756_v3  ;;  %v6778_v21 = vadd.f32 %v7927_v50, %v6777_v49  ;;  %7942 = vrcp.f32 %v11776_v53  ;;  %v6807_v55 = vand.u32 2147483647, %v11693_v5 }
 0xbf1   :  { %v6765_v58 = vsel %vm6762_vm4, %v6764_v40, %v6760_v51  ;;  %v6802_v35 = vadd.f32 %v11732_v59, %v6801_v61  ;;  %vm6941_vm12 = vweird.f32 %v11745_v36  ;;  %v6969_v6 = vand.u32 2147483648, %v11764_v34 }
 0xbf2   :  { %v6782_v43 = vsel %vm6781_vm6, %v7927_v50, %v6778_v21  ;;  %v6814_v14 = vmul.f32 %v7937_v32, %v6765_v58  ;;  %v6967_v18 = vand.u32 2147483647, %v11764_v34  ;;  %vm6808_vm15 = vcmp.eq.f32.partialorder %v6807_v55, 8.507059e+37  ;;  %v7436_v21 = vld [vmem:[%s11849_s13] ss:$0 sm:$0xff]  ;;  %s8011_s13 = smov [#allocation9]  }
 0xbf3   :  { %v6787_v52 = vsel %vm6784_vm7, %v6786_v29, %v6782_v43  ;;  %v6806_v37 = vsel %vm11807_vm11, %v11732_v59, %v6802_v35  ;;  %v6948_v41 = vor.u32 1.1754944e-38, %v6947_v23  ;;  %vm6946_vm0 = vcmp.eq.f32.partialorder %v6945_v2, 8.507059e+37  ;;  %v7437_v43 = vld [vmem:[%s11854_s18] ss:$0 sm:$0xff]  ;;  %s7150_s18 = sshll.u32 %s8011_s13, 4  ;;  %s7151_s18 = int_to_ptr.vmem [resolvable:$true] %s7150_s18 }
 0xbf4   :  { %v7939_v33 = vpop.eup %7938  ;;  %v6813_v26 = vmul.f32 %v6787_v52, %v11549_v31  ;;  %v6811_v12 = vsel %vm6808_vm15, %v6810_v22, %v6806_v37  ;;  %vm6963_vm1 = vweird.f32 %v11764_v34  ;;  %vm6968_vm3 = vcmp.eq.f32.partialorder %v6967_v18, 8.507059e+37 }
 0xbf5   :  { %v6937_v30 = vmul.f32 %v7939_v33, %v11745_v36  ;;  %v7941_v19 = vpop.eup %7940  ;;  %vm6942_vm10 = vweird.f32 %v7939_v33  ;;  %v6970_v36 = vor.u32 1.1754944e-38, %v6969_v6  ;;  %v6993_v38 = vand.u32 2147483648, %v11776_v53 }
 0xbf6   :  { %v6815_v7 = vadd.f32 %v6814_v14, %v6813_v26  ;;  %v6959_v48 = vmul.f32 %v7941_v19, %v11764_v34  ;;  %v7943_v4 = vpop.eup %7942  ;;  %vm6943_vm13 = vmor %vm6941_vm12, %vm6942_vm10  ;;  %vm6964_vm14 = vweird.f32 %v7941_v19  ;;  %vm6987_vm5 = vweird.f32 %v11776_v53 }
 0xbf7   :  { %v6938_v31 = vsub.f32 1.0, %v6937_v30  ;;  %v6983_v42 = vmul.f32 %v7943_v4, %v11776_v53  ;;  %vm6965_vm2 = vmor %vm6963_vm1, %vm6964_vm14  ;;  %vm6988_vm4 = vweird.f32 %v7943_v4  ;;  %v6991_v51 = vand.u32 2147483647, %v11776_v53 }
 0xbf8   :  { %7944 = vtanh.f32 %v6815_v7  ;;  %v6960_v50 = vsub.f32 1.0, %v6959_v48  ;;  %vm6989_vm6 = vmor %vm6987_vm5, %vm6988_vm4  ;;  %v6994_v34 = vor.u32 1.1754944e-38, %v6993_v38 }
 0xbf9   :  { %v6939_v60 = vmul.f32 %v7939_v33, %v6938_v31  ;;  %7946 = vtanh.f32 %v6973_v11  ;;  %v6984_v16 = vsub.f32 1.0, %v6983_v42  ;;  %vm6992_vm7 = vcmp.eq.f32.partialorder %v6991_v51, 8.507059e+37 }
 0xbfa   :  { %v6961_v20 = vmul.f32 %v7941_v19, %v6960_v50 }
 0xbfb   :  { %v6940_v5 = vadd.f32 %v7939_v33, %v6939_v60  ;;  %v6985_v39 = vmul.f32 %v7943_v4, %v6984_v16 }
 0xbfc   :  { %v6962_v59 = vadd.f32 %v7941_v19, %v6961_v20 }
 0xbfd   :  { %v6944_v25 = vsel %vm6943_vm13, %v7939_v33, %v6940_v5  ;;  %v6986_v49 = vadd.f32 %v7943_v4, %v6985_v39 }
 0xbfe   :  { %v7945_v47 = vpop.eup %7944  ;;  %v6949_v28 = vsel %vm6946_vm0, %v6948_v41, %v6944_v25  ;;  %v6966_v3 = vsel %vm6965_vm2, %v7941_v19, %v6962_v59 }
 0xbff   :  { %v6817_v13 = vmul.f32 %v7945_v47, %v6811_v12  ;;  %v7947_v8 = vpop.eup %7946  ;;  %v6971_v1 = vsel %vm6968_vm3, %v6970_v36, %v6966_v3  ;;  %v6990_v54 = vsel %vm6989_vm6, %v7943_v4, %v6986_v49 }
 0xc00   :  { %v6997_v0 = vmul.f32 %v6971_v1, %v11585_v17  ;;  %v6998_v46 = vmul.f32 %v7947_v8, %v6949_v28  ;;  %v6995_v45 = vsel %vm6992_vm7, %v6994_v34, %v6990_v54 }
 0xc01   :  { %6818 = vst [vmem:[#allocation4] sm:$0x1] %v6817_v13 }
 0xc02   :  { %v6999_v56 = vadd.f32 %v6998_v46, %v6997_v0 }
 0xc04   :  { %7948 = vtanh.f32 %v6999_v56 }
 0xc08   :  { %v7020_v40 = vld [vmem:[#allocation4] sm:$0xff] }
 0xc09   :  { %7053 = vmatmul.f32.vlgmr.msra.gmra.mxu0 %v7020_v40 }
 0xc0a   :  { %v7949_v9 = vpop.eup %7948 }
 0xc0b   :  { %v7001_v17 = vmul.f32 %v7949_v9, %v6995_v45 }
 0xc0d   :  { %7002 = vst [vmem:[#allocation5 + $0x7] sm:$0x1] %v7001_v17 }
 0xc14   :  { %v7093_v15 = vld [vmem:[#allocation5] sm:$0xff] }
 0xc15   :  { %7130 = vmatmul.f32.vlgmr.msra.gmra.mxu2 %v7093_v15 }
 0xc86   :  { %v7054_v58 = vpop.f32.mrf.mxu0 }
 0xc87   :  { %v7075_v29 = vadd.f32 %v7074_v27, %v7054_v58 }
 0xc89   :  { %v7081_v53 = vadd.f32 %v7436_v21, %v7075_v29 }
 0xc8b   :  { %7082 = vmax.xlane.f32.xlu0 %v7081_v53 }
 0xc98   :  { %v7131_v24 = vpop.f32.mrf.mxu2 }
 0xc99   :  { %v7132_v32 = vadd.f32 %v7437_v43, %v7131_v24 }
 0xc9b   :  { %7134 = vmax.xlane.f32.xlu0 %v7132_v32 }
 0xcfe   :  { %v7083_v52 = vpop.xlane.xlu0 %7082 }
 0xcff   :  { %v7084_v61 = vsub.f32 %v7081_v53, %v7083_v52 }
 0xd01   :  { %v7085_v33 = vmul.f32 1.442695, %v7084_v61 }
 0xd03   :  { %7950 = vpow2.f32 %v7085_v33 }
 0xd09   :  { %v7951_v26 = vpop.eup %7950 }
 0xd0a   :  { %7087 = vadd.xlane.f32.xlu1 %v7951_v26 }
 0xd0e   :  { %v7135_v14 = vpop.xlane.xlu0 %7134 }
 0xd0f   :  { %v7136_v10 = vsub.f32 %v7132_v32, %v7135_v14 }
 0xd11   :  { %v7137_v30 = vmul.f32 1.442695, %v7136_v10 }
 0xd13   :  { %7952 = vpow2.f32 %v7137_v30 }
 0xd19   :  { %v7953_v7 = vpop.eup %7952 }
 0xd1a   :  { %7139 = vadd.xlane.f32.xlu1 %v7953_v7 }
 0xd7d   :  { %v7088_v11 = vpop.xlane.xlu1 %7087 }
 0xd7e   :  { %7954 = vlog2.f32 %v7088_v11 }
 0xd84   :  { %v7955_v44 = vpop.eup %7954 }
 0xd85   :  { %v7090_v19 = vmul.f32 0.6931472, %v7955_v44 }
 0xd87   :  { %v7091_v35 = vsub.f32 %v7084_v61, %v7090_v19 }
 0xd89   :  { %7092 = vst [vmem:[#allocation9] sm:$0xff] %v7091_v35 }
 0xd8a   :  { %7155 = dma.vmem_to_hbm [thread:$0]  %s7151_s18, 128, %s7153_s23, [#allocation10]  }
 0xd8d   :  { %v7140_v31 = vpop.xlane.xlu1 %7139 }
 0xd8e   :  { %7956 = vlog2.f32 %v7140_v31 }
 0xd94   :  { %v7957_v63 = vpop.eup %7956 }
 0xd95   :  { %v7142_v48 = vmul.f32 0.6931472, %v7957_v63 }
 0xd97   :  { %v7143_v57 = vsub.f32 %v7136_v10, %v7142_v48 }
 0xd99   :  { %7144 = vst [vmem:[#allocation11] sm:$0xff] %v7143_v57 }
 0xd9a   :  { %7166 = dma.vmem_to_hbm [thread:$0]  %s7162_s1, 128, %s7164_s10, [#allocation12]  }
 0xd9b   :  { %8006 = dma.done.wait [#allocation10], 128  }
 0xd9c   :  { %8007 = vsyncadd [#allocation10], 4294967168 }
 0xd9d   :  { %8008 = dma.done.wait [#allocation12], 128  }
 0xd9e   :  { %8009 = vsyncadd [#allocation12], 4294967168 }
 0xd9f   :  { %7175 = vsyncpa [#allocation10], 1 }
 0xda0   :  { %7176 = vsyncpa [#allocation12], 1 }

</bundles_post_ra>
